<compile_context>
chip_gen: v6e
topology: v6e:2x2x1
jax: 0.10.0
libtpu: 0.0.40
codegen_flags: <defaults>
</compile_context>

<pallas_src>
import functools

import numpy as np
import jax
import jax.numpy as jnp
from jax import lax
from jax.experimental import pallas as pl
from jax.experimental.pallas import tpu as pltpu

# ---- model dimensions (PyTorch __init__ defaults) ------------------------------
INPUT_DIM = 5
H = 32                        # feature encoder / all GRU hiddens / head hidden
EMB = 12
N_RANCH, N_PARCEL, N_CLASS, N_TYPE, N_VAR = 13, 44, 2, 14, 59
CLIM_IN = 9
KILO_IN = 1
OUT_DIM = 5
OUT_PAD = 128                 # lane-dense padded output width
EMB_OFFSETS = (0, 13, 57, 59, 73)      # ranch | parcel | class | type | variety
EMB_TOTAL = N_RANCH + N_PARCEL + N_CLASS + N_TYPE + N_VAR     # 132
EMB_PAD = 136                 # emb rows padded to a multiple of 8

GW = 128                      # per-gate group padded to a full vreg of lanes
LG = 3 * GW                   # 384 = one GRU layer's padded r|z|n block
XW = 16                       # padded width of the fused (climate|kilo) step input
FW = 8                        # padded width of the static feature vector
BP = 8                        # padded batch (one f32 sublane tile)

# ---- packed-slab row offsets (shared by fold_params and the kernel) -------------
MS_WIN0, MS_WIH1 = 0, 16                      # layer-0 / layer-1 input projections
MS_BIN0, MS_BIH1, MS_BHH0, MS_BHH1 = 144, 160, 176, 192
MS_ROWS = 208

HS_WFE, HS_BFE, HS_EMB = 0, 16, 32            # feature enc, folded embedding table
HS_WS1, HS_BS1 = 176, 304                     # fused first head linear
HS_WS2, HS_BS2 = 320, 448                     # final head linear (lane padded)
HS_ROWS = 464


# ---- the kernel -----------------------------------------------------------------
def schedule_kernel(features_ref, x_ref, ids_ref,
                    whh_ref, wmisc_ref, whead_ref,
                    out_ref, gi0_scr,
                    *, batch, t_clim, t_kilo):
    f32, bf16 = jnp.float32, jnp.bfloat16
    bp = features_ref.shape[0]                      # padded batch (8)
    t_max = max(t_clim, t_kilo)

    # ---- one-time slab views (static, tile-aligned row offsets) ----------------
    w_hh = whh_ref[...]                                         # (256, 768) bf16
    w_in0 = wmisc_ref[MS_WIN0:MS_WIN0 + XW, :]                  # (16, 384)
    w_ih1 = wmisc_ref[MS_WIH1:MS_WIH1 + GW, :]                  # (128, 384)
    b_in0 = wmisc_ref[MS_BIN0:MS_BIN0 + 1, :].astype(f32)       # (1, 384)
    b_ih1 = wmisc_ref[MS_BIH1:MS_BIH1 + bp, :].astype(f32)      # (8, 384)
    b_hh0 = wmisc_ref[MS_BHH0:MS_BHH0 + bp, :].astype(f32)
    b_hh1 = wmisc_ref[MS_BHH1:MS_BHH1 + bp, :].astype(f32)

    # ---- 1) hoisted layer-0 input projections (both GRUs, all timesteps) -------
    gi0_scr[...] = jnp.dot(x_ref[...].astype(bf16), w_in0,
                           preferred_element_type=f32) + b_in0

    # ---- 2) fused 2-GRU / 2-layer recurrence over max(Tc, Tk) steps ------------
    lane = lax.broadcasted_iota(jnp.int32, (bp, GW), 1)
    clim_mask = lane < H                      # lanes  0:32  = climate cells
    kilo_mask = (lane >= H) & (lane < 2 * H)  # lanes 32:64  = kilo cells

    def gru_update(gi, gh, h):
        # gi/gh: (bp, 384) with 128-lane-aligned r|z|n slabs; h: (bp, 128)
        r = jax.nn.sigmoid(gi[:, 0:GW] + gh[:, 0:GW])
        z = jax.nn.sigmoid(gi[:, GW:2 * GW] + gh[:, GW:2 * GW])
        n = jnp.tanh(gi[:, 2 * GW:3 * GW] + r * gh[:, 2 * GW:3 * GW])
        return (1.0 - z) * n + z * h

    state = jnp.zeros((bp, 2 * GW), f32)      # [layer-0 (128) | layer-1 (128)]
    for t in range(t_max):                    # static full unroll (T <= ~20)
        gh = jnp.dot(state.astype(bf16), w_hh, preferred_element_type=f32)  # (bp,768)
        h_l0, h_l1 = state[:, 0:GW], state[:, GW:2 * GW]
        gi0 = gi0_scr[t * bp:(t + 1) * bp, :]                   # 8-row aligned slice
        h_l0n = gru_update(gi0, gh[:, 0:LG] + b_hh0, h_l0)
        gi1 = jnp.dot(h_l0n.astype(bf16), w_ih1, preferred_element_type=f32) + b_ih1
        h_l1n = gru_update(gi1, gh[:, LG:2 * LG] + b_hh1, h_l1)
        if t >= t_kilo:                       # climate-only tail: freeze kilo lanes
            h_l0n = jnp.where(clim_mask, h_l0n, h_l0)
            h_l1n = jnp.where(clim_mask, h_l1n, h_l1)
        elif t >= t_clim:                     # kilo-only tail: freeze climate lanes
            h_l0n = jnp.where(kilo_mask, h_l0n, h_l0)
            h_l1n = jnp.where(kilo_mask, h_l1n, h_l1)
        state = jnp.concatenate([h_l0n, h_l1n], axis=-1)   # vreg-boundary join
    h_rnn = state[:, GW:2 * GW]               # [climate_out | kilo_out | 0] (bp,128)

    # ---- 3) feature encoder (its 32 outputs land in lanes 64:96) ----------------
    w_fe = whead_ref[HS_WFE:HS_WFE + FW, :]
    b_fe = whead_ref[HS_BFE:HS_BFE + bp, :].astype(f32)
    h_feat = jnp.maximum(
        jnp.dot(features_ref[...].astype(bf16), w_fe,
                preferred_element_type=f32) + b_fe, 0.0)          # (bp, 128)

    # ---- 4) hierarchical embeddings: folded table, one-hot from SMEM ids --------
    e_lane = lax.broadcasted_iota(jnp.int32, (bp, EMB_PAD), 1)
    e_row = lax.broadcasted_iota(jnp.int32, (bp, EMB_PAD), 0)
    onehot = jnp.zeros((bp, EMB_PAD), f32)
    for b in range(batch):                    # real batch rows only (static)
        for k in range(5):
            onehot = onehot + (
                (e_row == b) & (e_lane == ids_ref[b, k])).astype(f32)
    emb_hid = jnp.dot(onehot.astype(bf16),
                      whead_ref[HS_EMB:HS_EMB + EMB_PAD, :],
                      preferred_element_type=f32)                 # (bp, 128)

    # ---- 5) schedule head: one fused matmul over [clim|kilo|feat] lanes ---------
    head_in = jnp.where(lane < 2 * H, h_rnn, 0.0) + h_feat        # (bp, 128)
    hid = (jnp.dot(head_in.astype(bf16), whead_ref[HS_WS1:HS_WS1 + GW, :],
                   preferred_element_type=f32)
           + emb_hid
           + whead_ref[HS_BS1:HS_BS1 + bp, :].astype(f32))
    hid = jnp.maximum(hid, 0.0)
    out_ref[...] = (jnp.dot(hid.astype(bf16), whead_ref[HS_WS2:HS_WS2 + GW, :],
                            preferred_element_type=f32)
                    + whead_ref[HS_BS2:HS_BS2 + bp, :].astype(f32))


# ---- raw parameters (PyTorch-equivalent, weight_norm resolved) -------------------
def init_params(key):
    keys = iter(jax.random.split(key, 64))

    def rand(shape, scale=0.2):
        return scale * jax.random.normal(next(keys), shape, dtype=jnp.float32)

    def wn_linear(out_f, in_f):
        # PyTorch weight_norm (dim=0): w = g * v / ||v||_row ; stored as (in, out)
        v = rand((out_f, in_f))
        g = 1.0 + 0.1 * jax.random.normal(next(keys), (out_f, 1), dtype=jnp.float32)
        w = g * v / jnp.sqrt(jnp.sum(v * v, axis=1, keepdims=True) + 1e-12)
        b = rand((1, out_f))
        return w.T, b

    def gru_layer(in_f):
        return dict(w_ih=rand((3 * H, in_f)).T, w_hh=rand((3 * H, H)).T,
                    b_ih=rand((1, 3 * H)), b_hh=rand((1, 3 * H)))

    p = {}
    p['w_fe'], p['b_fe'] = wn_linear(H, INPUT_DIM)
    p['cg0'], p['cg1'] = gru_layer(CLIM_IN), gru_layer(H)
    p['ranch_tab'] = rand((N_RANCH, EMB))
    p['parcel_tab'] = rand((N_PARCEL, EMB))
    p['class_tab'] = rand((N_CLASS, EMB))
    p['type_tab'] = rand((N_TYPE, EMB))
    p['var_tab'] = rand((N_VAR, EMB))
    p['w_p2r'], p['b_p2r'] = wn_linear(EMB, EMB)
    p['w_t2c'], p['b_t2c'] = wn_linear(EMB, EMB)
    p['w_v2t'], p['b_v2t'] = wn_linear(EMB, EMB)
    p['kg0'], p['kg1'] = gru_layer(KILO_IN), gru_layer(H)
    p['w_s1'], p['b_s1'] = wn_linear(H, H + H + 5 * EMB + H)   # (156, 32)
    p['w_s2'], p['b_s2'] = wn_linear(OUT_DIM, H)               # (32, 5)
    return p


# ---- offline folding into three packed bf16 slabs (done once, on host) ----------
def _scatter_gates(dst, row0, w, lane_sub, col0=0):
    """w: (R, 3H) gate-major [r|z|n].  Gate g goes to
    dst[row0:row0+R, col0 + g*GW + lane_sub : + H]  (128-lane padded gate groups)."""
    w = np.asarray(w, np.float32)
    r = w.shape[0]
    for g in range(3):
        c = col0 + g * GW + lane_sub
        dst[row0:row0 + r, c:c + H] = w[:, g * H:(g + 1) * H]


def fold_params(p):
    assert KILO_IN == 1 and CLIM_IN + KILO_IN <= XW
    np32 = lambda a: np.asarray(a, np.float32)

    # --- recurrent slab (256, 768): block-diagonal over {layer} x {clim,kilo} ----
    whh = np.zeros((2 * GW, 2 * LG), np.float32)
    _scatter_gates(whh, 0,      p['cg0']['w_hh'], 0, 0)
    _scatter_gates(whh, H,      p['kg0']['w_hh'], H, 0)
    _scatter_gates(whh, GW,     p['cg1']['w_hh'], 0, LG)
    _scatter_gates(whh, GW + H, p['kg1']['w_hh'], H, LG)

    # --- misc slab (208, 384): input projections + per-step biases ---------------
    misc = np.zeros((MS_ROWS, LG), np.float32)
    _scatter_gates(misc, MS_WIN0,           p['cg0']['w_ih'], 0)   # rows 0:9
    _scatter_gates(misc, MS_WIN0 + CLIM_IN, p['kg0']['w_ih'], H)   # row 9
    _scatter_gates(misc, MS_WIH1,           p['cg1']['w_ih'], 0)   # rows 16:48
    _scatter_gates(misc, MS_WIH1 + H,       p['kg1']['w_ih'], H)   # rows 48:80

    def gate_bias(b_clim, b_kilo):
        out = np.zeros((1, LG), np.float32)
        _scatter_gates(out, 0, np32(b_clim), 0)
        _scatter_gates(out, 0, np32(b_kilo), H)
        return out

    misc[MS_BIN0:MS_BIN0 + 1] = gate_bias(p['cg0']['b_ih'], p['kg0']['b_ih'])
    misc[MS_BIH1:MS_BIH1 + BP] = gate_bias(p['cg1']['b_ih'], p['kg1']['b_ih'])
    misc[MS_BHH0:MS_BHH0 + BP] = gate_bias(p['cg0']['b_hh'], p['kg0']['b_hh'])
    misc[MS_BHH1:MS_BHH1 + BP] = gate_bias(p['cg1']['b_hh'], p['kg1']['b_hh'])

    # --- head slab (464, 128): feature enc + folded embedding path + head --------
    ws1 = np32(p['w_s1'])                      # (156, 32) rows in original concat order
    ws1_feat, ws1_clim = ws1[0:32], ws1[32:64]
    ws1_r, ws1_p = ws1[64:76], ws1[76:88]
    ws1_c, ws1_t, ws1_v = ws1[88:100], ws1[100:112], ws1[112:124]
    ws1_kilo = ws1[124:156]

    w_p2r, b_p2r = np32(p['w_p2r']), np32(p['b_p2r'])
    w_t2c, b_t2c = np32(p['w_t2c']), np32(p['b_t2c'])
    w_v2t, b_v2t = np32(p['w_v2t']), np32(p['b_v2t'])

    t_path = ws1_t + w_t2c @ ws1_c
    emb2hid = np.concatenate([
        np32(p['ranch_tab']) @ ws1_r,
        np32(p['parcel_tab']) @ (w_p2r @ ws1_r + ws1_p),
        np32(p['class_tab']) @ ws1_c,
        np32(p['type_tab']) @ t_path,
        np32(p['var_tab']) @ (w_v2t @ t_path + ws1_v),
    ], axis=0)                                 # (132, 32)
    b_s1_eff = np32(p['b_s1']) + b_p2r @ ws1_r + b_t2c @ ws1_c + b_v2t @ t_path

    head = np.zeros((HS_ROWS, OUT_PAD), np.float32)
    head[HS_WFE:HS_WFE + INPUT_DIM, 2 * H:3 * H] = np32(p['w_fe'])   # feat -> 64:96
    head[HS_BFE:HS_BFE + BP,        2 * H:3 * H] = np32(p['b_fe'])
    head[HS_EMB:HS_EMB + EMB_TOTAL, 0:H] = emb2hid
    head[HS_WS1 + 0:HS_WS1 + H,         0:H] = ws1_clim              # lanes  0:32
    head[HS_WS1 + H:HS_WS1 + 2 * H,     0:H] = ws1_kilo              # lanes 32:64
    head[HS_WS1 + 2 * H:HS_WS1 + 3 * H, 0:H] = ws1_feat              # lanes 64:96
    head[HS_BS1:HS_BS1 + BP, 0:H] = b_s1_eff
    head[HS_WS2:HS_WS2 + H, 0:OUT_DIM] = np32(p['w_s2'])
    head[HS_BS2:HS_BS2 + BP, 0:OUT_DIM] = np32(p['b_s2'])

    return dict(whh=jnp.asarray(whh, jnp.bfloat16),
                misc=jnp.asarray(misc, jnp.bfloat16),
                head=jnp.asarray(head, jnp.bfloat16))


# ---- wrapper ---------------------------------------------------------------------
@jax.jit
def schedule_model(features, encoded_features, climate_data, kilo_gru_input, params):
    """features:(B,5) f32, encoded_features:(B,5) int, climate_data:(B,Tc,9) f32,
    kilo_gru_input:(B,Tk,1) f32  ->  (B,5) f32."""
    f32 = jnp.float32
    batch = features.shape[0]
    t_clim = climate_data.shape[1]
    t_kilo = kilo_gru_input.shape[1]
    assert batch <= BP, "operand packing assumes batch <= 8"
    t_max = max(t_clim, t_kilo)

    # time-major, batch-padded fused step input: cols 0:9 climate, col 9 kilo
    x_all = jnp.zeros((t_max, BP, XW), f32)
    x_all = x_all.at[:t_clim, :batch, 0:CLIM_IN].set(
        jnp.transpose(climate_data.astype(f32), (1, 0, 2)))
    x_all = x_all.at[:t_kilo, :batch, CLIM_IN:CLIM_IN + KILO_IN].set(
        jnp.transpose(kilo_gru_input.astype(f32), (1, 0, 2)))
    x_all = x_all.reshape(t_max * BP, XW)

    features_p = jnp.zeros((BP, FW), f32).at[:batch, :INPUT_DIM].set(
        features.astype(f32))

    offs = jnp.asarray(EMB_OFFSETS, jnp.int32)
    ids_p = jnp.zeros((BP, 8), jnp.int32).at[:batch, :5].set(
        encoded_features.astype(jnp.int32) + offs[None, :])

    kernel = functools.partial(schedule_kernel, batch=batch,
                               t_clim=t_clim, t_kilo=t_kilo)
    out_padded = pl.pallas_call(
        kernel,
        out_shape=jax.ShapeDtypeStruct((BP, OUT_PAD), f32),
        in_specs=[
            pl.BlockSpec(memory_space=pltpu.MemorySpace.VMEM),   # features (padded)
            pl.BlockSpec(memory_space=pltpu.MemorySpace.VMEM),   # fused step inputs
            pl.BlockSpec(memory_space=pltpu.MemorySpace.SMEM),   # ids (+offsets)
            pl.BlockSpec(memory_space=pltpu.MemorySpace.VMEM),   # recurrent slab
            pl.BlockSpec(memory_space=pltpu.MemorySpace.VMEM),   # misc slab
            pl.BlockSpec(memory_space=pltpu.MemorySpace.VMEM),   # head slab
        ],
        out_specs=pl.BlockSpec(memory_space=pltpu.MemorySpace.VMEM),
        scratch_shapes=[pltpu.VMEM((t_max * BP, LG), jnp.float32)],
    )(features_p, x_all, ids_p, params['whh'], params['misc'], params['head'])
    return out_padded[:batch, :OUT_DIM]


# ---- plain-JAX reference (direct port of the PyTorch forward, raw params) --------
def reference_forward(features, ids, climate, kilo, p):
    def cell(x, h, l):
        gi = x @ l['w_ih'] + l['b_ih']
        gh = h @ l['w_hh'] + l['b_hh']
        r = jax.nn.sigmoid(gi[:, :H] + gh[:, :H])
        z = jax.nn.sigmoid(gi[:, H:2 * H] + gh[:, H:2 * H])
        n = jnp.tanh(gi[:, 2 * H:] + r * gh[:, 2 * H:])
        return (1.0 - z) * n + z * h

    def gru2(x, l0, l1):
        b = x.shape[0]
        h0 = jnp.zeros((b, H), jnp.float32)
        h1 = jnp.zeros((b, H), jnp.float32)
        for t in range(x.shape[1]):
            h0 = cell(x[:, t, :], h0, l0)
            h1 = cell(h0, h1, l1)
        return h1

    h_feat = jnp.maximum(features @ p['w_fe'] + p['b_fe'], 0.0)
    climate_out = gru2(climate, p['cg0'], p['cg1'])
    kilo_out = gru2(kilo, p['kg0'], p['kg1'])
    r = p['ranch_tab'][ids[:, 0]]
    pa = p['parcel_tab'][ids[:, 1]]
    c = p['class_tab'][ids[:, 2]]
    t = p['type_tab'][ids[:, 3]]
    v = p['var_tab'][ids[:, 4]]
    r = r + pa @ p['w_p2r'] + p['b_p2r']
    t = t + v @ p['w_v2t'] + p['b_v2t']
    c = c + t @ p['w_t2c'] + p['b_t2c']
    combined = jnp.concatenate([h_feat, climate_out, r, pa, c, t, v, kilo_out], axis=-1)
    hid = jnp.maximum(combined @ p['w_s1'] + p['b_s1'], 0.0)
    return hid @ p['w_s2'] + p['b_s2']


# ---- main --------------------------------------------------------------------------
if __name__ == "__main__":
    key = jax.random.PRNGKey(0)
    k_par, k_feat, k_clim, k_kilo, k_r, k_p, k_c, k_t, k_v = jax.random.split(key, 9)

    B, Tc, Tk = 2, 8, 6     # small shapes consistent with the forward signature

    raw = init_params(k_par)
    params = fold_params(raw)

    features = jax.random.normal(k_feat, (B, INPUT_DIM), jnp.float32)
    climate_data = jax.random.normal(k_clim, (B, Tc, CLIM_IN), jnp.float32)
    kilo_gru_input = jax.random.normal(k_kilo, (B, Tk, KILO_IN), jnp.float32)
    encoded_features = jnp.stack([
        jax.random.randint(k_r, (B,), 0, N_RANCH),
        jax.random.randint(k_p, (B,), 0, N_PARCEL),
        jax.random.randint(k_c, (B,), 0, N_CLASS),
        jax.random.randint(k_t, (B,), 0, N_TYPE),
        jax.random.randint(k_v, (B,), 0, N_VAR),
    ], axis=1).astype(jnp.int32)                                    # (B, 5)

    out = schedule_model(features, encoded_features, climate_data,
                         kilo_gru_input, params)
    out = jax.block_until_ready(out)
    assert out.shape == (B, OUT_DIM) and out.dtype == jnp.float32

    # correctness self-check vs a plain-JAX f32 port of the PyTorch forward
    # (tolerance loosened for bf16 MXU inputs with f32 accumulation)
    ref = reference_forward(features, encoded_features, climate_data,
                            kilo_gru_input, raw)
    err = float(jnp.max(jnp.abs(out - ref)))
    assert jnp.allclose(out, ref, atol=5e-2, rtol=5e-2), (err, out, ref)

    # TODO(synk): GRU dropout(0.2) is training-mode only; eval forward (identity).
    print("KERNEL_OK")
</pallas_src>

<mosaic_0001>
module attributes {stable_mosaic.version = 11 : i64} {
  func.func @schedule_kernel(%arg0: memref<8x8xf32, #tpu.memory_space<vmem>>, %arg1: memref<64x16xf32, #tpu.memory_space<vmem>>, %arg2: memref<8x8xi32, #tpu.memory_space<smem>>, %arg3: memref<256x768xbf16, #tpu.memory_space<vmem>>, %arg4: memref<208x384xbf16, #tpu.memory_space<vmem>>, %arg5: memref<464x128xbf16, #tpu.memory_space<vmem>>, %arg6: memref<8x128xf32, #tpu.memory_space<vmem>>, %arg7: memref<64x384xf32, #tpu.memory_space<vmem>>) attributes {dimension_semantics = [], scalar_prefetch = 0 : i64, scratch_operands = 1 : i64, tpu.core_type = #tpu.core_type<tc>} {
    %c0 = arith.constant 0 : index
    %c0_0 = arith.constant 0 : index
    %0 = vector.load %arg3[%c0, %c0_0] : memref<256x768xbf16, #tpu.memory_space<vmem>>, vector<256x768xbf16>
    %c0_1 = arith.constant 0 : index
    %c0_2 = arith.constant 0 : index
    %1 = vector.load %arg4[%c0_1, %c0_2] : memref<208x384xbf16, #tpu.memory_space<vmem>>, vector<16x384xbf16>
    %c16 = arith.constant 16 : index
    %c0_3 = arith.constant 0 : index
    %2 = vector.load %arg4[%c16, %c0_3] : memref<208x384xbf16, #tpu.memory_space<vmem>>, vector<128x384xbf16>
    %c144 = arith.constant 144 : index
    %c0_4 = arith.constant 0 : index
    %3 = vector.load %arg4[%c144, %c0_4] : memref<208x384xbf16, #tpu.memory_space<vmem>>, vector<1x384xbf16>
    %4 = arith.extf %3 : vector<1x384xbf16> to vector<1x384xf32>
    %c160 = arith.constant 160 : index
    %c0_5 = arith.constant 0 : index
    %5 = vector.load %arg4[%c160, %c0_5] : memref<208x384xbf16, #tpu.memory_space<vmem>>, vector<8x384xbf16>
    %6 = arith.extf %5 : vector<8x384xbf16> to vector<8x384xf32>
    %c176 = arith.constant 176 : index
    %c0_6 = arith.constant 0 : index
    %7 = vector.load %arg4[%c176, %c0_6] : memref<208x384xbf16, #tpu.memory_space<vmem>>, vector<8x384xbf16>
    %8 = arith.extf %7 : vector<8x384xbf16> to vector<8x384xf32>
    %c192 = arith.constant 192 : index
    %c0_7 = arith.constant 0 : index
    %9 = vector.load %arg4[%c192, %c0_7] : memref<208x384xbf16, #tpu.memory_space<vmem>>, vector<8x384xbf16>
    %10 = arith.extf %9 : vector<8x384xbf16> to vector<8x384xf32>
    %c0_8 = arith.constant 0 : index
    %c0_9 = arith.constant 0 : index
    %11 = vector.load %arg1[%c0_8, %c0_9] : memref<64x16xf32, #tpu.memory_space<vmem>>, vector<64x16xf32>
    %12 = arith.truncf %11 : vector<64x16xf32> to vector<64x16xbf16>
    %cst = arith.constant dense<0.000000e+00> : vector<64x384xf32>
    %13 = tpu.matmul %12, %1, %cst {dimension_numbers = #tpu.dot_dimension_numbers<[1], [0], [0], [1], [0, 0, 1, 1], [], []>} : vector<64x16xbf16>, vector<16x384xbf16>, vector<64x384xf32> -> vector<64x384xf32>
    %14 = vector.broadcast %4 : vector<1x384xf32> to vector<64x384xf32>
    %15 = arith.addf %13, %14 : vector<64x384xf32>
    %c0_10 = arith.constant 0 : index
    %c0_11 = arith.constant 0 : index
    %16 = vector.load %arg7[%c0_10, %c0_11] : memref<64x384xf32, #tpu.memory_space<vmem>>, vector<64x384xf32>
    tpu.vector_store %arg7[%c0_10, %c0_11], %15 {strides = array<i32>} : memref<64x384xf32, #tpu.memory_space<vmem>>, vector<64x384xf32>,
    %17 = tpu.iota {dimensions = array<i32: 1>} : vector<8x128xi32>
    %c32_i32 = arith.constant 32 : i32
    %18 = vector.broadcast %c32_i32 : i32 to vector<8x128xi32>
    %19 = arith.cmpi slt, %17, %18 : vector<8x128xi32>
    %cst_12 = arith.constant 0.000000e+00 : f32
    %20 = vector.broadcast %cst_12 : f32 to vector<8x256xf32>
    %21 = arith.truncf %20 : vector<8x256xf32> to vector<8x256xbf16>
    %cst_13 = arith.constant dense<0.000000e+00> : vector<8x768xf32>
    %22 = tpu.matmul %21, %0, %cst_13 {dimension_numbers = #tpu.dot_dimension_numbers<[1], [0], [0], [1], [0, 0, 1, 1], [], []>} : vector<8x256xbf16>, vector<256x768xbf16>, vector<8x768xf32> -> vector<8x768xf32>
    %23 = vector.extract_strided_slice %20 {offsets = [0, 0], sizes = [8, 128], strides = [1, 1]} : vector<8x256xf32> to vector<8x128xf32>
    %24 = vector.extract_strided_slice %20 {offsets = [0, 128], sizes = [8, 128], strides = [1, 1]} : vector<8x256xf32> to vector<8x128xf32>
    %c0_14 = arith.constant 0 : index
    %c0_15 = arith.constant 0 : index
    %25 = vector.load %arg7[%c0_14, %c0_15] : memref<64x384xf32, #tpu.memory_space<vmem>>, vector<8x384xf32>
    %26 = vector.extract_strided_slice %22 {offsets = [0, 0], sizes = [8, 384], strides = [1, 1]} : vector<8x768xf32> to vector<8x384xf32>
    %27 = arith.addf %26, %8 : vector<8x384xf32>
    %28 = vector.extract_strided_slice %25 {offsets = [0, 0], sizes = [8, 128], strides = [1, 1]} : vector<8x384xf32> to vector<8x128xf32>
    %29 = vector.extract_strided_slice %27 {offsets = [0, 0], sizes = [8, 128], strides = [1, 1]} : vector<8x384xf32> to vector<8x128xf32>
    %30 = arith.addf %28, %29 : vector<8x128xf32>
    %31 = arith.negf %30 : vector<8x128xf32>
    %32 = math.exp %31 : vector<8x128xf32>
    %cst_16 = arith.constant 1.000000e+00 : f32
    %33 = vector.broadcast %cst_16 : f32 to vector<8x128xf32>
    %34 = arith.addf %33, %32 : vector<8x128xf32>
    %35 = arith.divf %33, %34 : vector<8x128xf32>
    %36 = vector.extract_strided_slice %25 {offsets = [0, 128], sizes = [8, 128], strides = [1, 1]} : vector<8x384xf32> to vector<8x128xf32>
    %37 = vector.extract_strided_slice %27 {offsets = [0, 128], sizes = [8, 128], strides = [1, 1]} : vector<8x384xf32> to vector<8x128xf32>
    %38 = arith.addf %36, %37 : vector<8x128xf32>
    %39 = arith.negf %38 : vector<8x128xf32>
    %40 = math.exp %39 : vector<8x128xf32>
    %cst_17 = arith.constant 1.000000e+00 : f32
    %41 = vector.broadcast %cst_17 : f32 to vector<8x128xf32>
    %42 = arith.addf %41, %40 : vector<8x128xf32>
    %43 = arith.divf %41, %42 : vector<8x128xf32>
    %44 = vector.extract_strided_slice %25 {offsets = [0, 256], sizes = [8, 128], strides = [1, 1]} : vector<8x384xf32> to vector<8x128xf32>
    %45 = vector.extract_strided_slice %27 {offsets = [0, 256], sizes = [8, 128], strides = [1, 1]} : vector<8x384xf32> to vector<8x128xf32>
    %46 = arith.mulf %35, %45 : vector<8x128xf32>
    %47 = arith.addf %44, %46 : vector<8x128xf32>
    %48 = math.tanh %47 : vector<8x128xf32>
    %cst_18 = arith.constant 1.000000e+00 : f32
    %49 = vector.broadcast %cst_18 : f32 to vector<8x128xf32>
    %50 = arith.subf %49, %43 : vector<8x128xf32>
    %51 = arith.mulf %50, %48 : vector<8x128xf32>
    %52 = arith.mulf %43, %23 : vector<8x128xf32>
    %53 = arith.addf %51, %52 : vector<8x128xf32>
    %54 = arith.truncf %53 : vector<8x128xf32> to vector<8x128xbf16>
    %cst_19 = arith.constant dense<0.000000e+00> : vector<8x384xf32>
    %55 = tpu.matmul %54, %2, %cst_19 {dimension_numbers = #tpu.dot_dimension_numbers<[1], [0], [0], [1], [0, 0, 1, 1], [], []>} : vector<8x128xbf16>, vector<128x384xbf16>, vector<8x384xf32> -> vector<8x384xf32>
    %56 = arith.addf %55, %6 : vector<8x384xf32>
    %57 = vector.extract_strided_slice %22 {offsets = [0, 384], sizes = [8, 384], strides = [1, 1]} : vector<8x768xf32> to vector<8x384xf32>
    %58 = arith.addf %57, %10 : vector<8x384xf32>
    %59 = vector.extract_strided_slice %56 {offsets = [0, 0], sizes = [8, 128], strides = [1, 1]} : vector<8x384xf32> to vector<8x128xf32>
    %60 = vector.extract_strided_slice %58 {offsets = [0, 0], sizes = [8, 128], strides = [1, 1]} : vector<8x384xf32> to vector<8x128xf32>
    %61 = arith.addf %59, %60 : vector<8x128xf32>
    %62 = arith.negf %61 : vector<8x128xf32>
    %63 = math.exp %62 : vector<8x128xf32>
    %cst_20 = arith.constant 1.000000e+00 : f32
    %64 = vector.broadcast %cst_20 : f32 to vector<8x128xf32>
    %65 = arith.addf %64, %63 : vector<8x128xf32>
    %66 = arith.divf %64, %65 : vector<8x128xf32>
    %67 = vector.extract_strided_slice %56 {offsets = [0, 128], sizes = [8, 128], strides = [1, 1]} : vector<8x384xf32> to vector<8x128xf32>
    %68 = vector.extract_strided_slice %58 {offsets = [0, 128], sizes = [8, 128], strides = [1, 1]} : vector<8x384xf32> to vector<8x128xf32>
    %69 = arith.addf %67, %68 : vector<8x128xf32>
    %70 = arith.negf %69 : vector<8x128xf32>
    %71 = math.exp %70 : vector<8x128xf32>
    %cst_21 = arith.constant 1.000000e+00 : f32
    %72 = vector.broadcast %cst_21 : f32 to vector<8x128xf32>
    %73 = arith.addf %72, %71 : vector<8x128xf32>
    %74 = arith.divf %72, %73 : vector<8x128xf32>
    %75 = vector.extract_strided_slice %56 {offsets = [0, 256], sizes = [8, 128], strides = [1, 1]} : vector<8x384xf32> to vector<8x128xf32>
    %76 = vector.extract_strided_slice %58 {offsets = [0, 256], sizes = [8, 128], strides = [1, 1]} : vector<8x384xf32> to vector<8x128xf32>
    %77 = arith.mulf %66, %76 : vector<8x128xf32>
    %78 = arith.addf %75, %77 : vector<8x128xf32>
    %79 = math.tanh %78 : vector<8x128xf32>
    %cst_22 = arith.constant 1.000000e+00 : f32
    %80 = vector.broadcast %cst_22 : f32 to vector<8x128xf32>
    %81 = arith.subf %80, %74 : vector<8x128xf32>
    %82 = arith.mulf %81, %79 : vector<8x128xf32>
    %83 = arith.mulf %74, %24 : vector<8x128xf32>
    %84 = arith.addf %82, %83 : vector<8x128xf32>
    %85 = tpu.concatenate %53, %84 in 1 : vector<8x128xf32>, vector<8x128xf32> -> vector<8x256xf32>
    %86 = arith.truncf %85 : vector<8x256xf32> to vector<8x256xbf16>
    %cst_23 = arith.constant dense<0.000000e+00> : vector<8x768xf32>
    %87 = tpu.matmul %86, %0, %cst_23 {dimension_numbers = #tpu.dot_dimension_numbers<[1], [0], [0], [1], [0, 0, 1, 1], [], []>} : vector<8x256xbf16>, vector<256x768xbf16>, vector<8x768xf32> -> vector<8x768xf32>
    %88 = vector.extract_strided_slice %85 {offsets = [0, 0], sizes = [8, 128], strides = [1, 1]} : vector<8x256xf32> to vector<8x128xf32>
    %89 = vector.extract_strided_slice %85 {offsets = [0, 128], sizes = [8, 128], strides = [1, 1]} : vector<8x256xf32> to vector<8x128xf32>
    %c8 = arith.constant 8 : index
    %c0_24 = arith.constant 0 : index
    %90 = vector.load %arg7[%c8, %c0_24] : memref<64x384xf32, #tpu.memory_space<vmem>>, vector<8x384xf32>
    %91 = vector.extract_strided_slice %87 {offsets = [0, 0], sizes = [8, 384], strides = [1, 1]} : vector<8x768xf32> to vector<8x384xf32>
    %92 = arith.addf %91, %8 : vector<8x384xf32>
    %93 = vector.extract_strided_slice %90 {offsets = [0, 0], sizes = [8, 128], strides = [1, 1]} : vector<8x384xf32> to vector<8x128xf32>
    %94 = vector.extract_strided_slice %92 {offsets = [0, 0], sizes = [8, 128], strides = [1, 1]} : vector<8x384xf32> to vector<8x128xf32>
    %95 = arith.addf %93, %94 : vector<8x128xf32>
    %96 = arith.negf %95 : vector<8x128xf32>
    %97 = math.exp %96 : vector<8x128xf32>
    %cst_25 = arith.constant 1.000000e+00 : f32
    %98 = vector.broadcast %cst_25 : f32 to vector<8x128xf32>
    %99 = arith.addf %98, %97 : vector<8x128xf32>
    %100 = arith.divf %98, %99 : vector<8x128xf32>
    %101 = vector.extract_strided_slice %90 {offsets = [0, 128], sizes = [8, 128], strides = [1, 1]} : vector<8x384xf32> to vector<8x128xf32>
    %102 = vector.extract_strided_slice %92 {offsets = [0, 128], sizes = [8, 128], strides = [1, 1]} : vector<8x384xf32> to vector<8x128xf32>
    %103 = arith.addf %101, %102 : vector<8x128xf32>
    %104 = arith.negf %103 : vector<8x128xf32>
    %105 = math.exp %104 : vector<8x128xf32>
    %cst_26 = arith.constant 1.000000e+00 : f32
    %106 = vector.broadcast %cst_26 : f32 to vector<8x128xf32>
    %107 = arith.addf %106, %105 : vector<8x128xf32>
    %108 = arith.divf %106, %107 : vector<8x128xf32>
    %109 = vector.extract_strided_slice %90 {offsets = [0, 256], sizes = [8, 128], strides = [1, 1]} : vector<8x384xf32> to vector<8x128xf32>
    %110 = vector.extract_strided_slice %92 {offsets = [0, 256], sizes = [8, 128], strides = [1, 1]} : vector<8x384xf32> to vector<8x128xf32>
    %111 = arith.mulf %100, %110 : vector<8x128xf32>
    %112 = arith.addf %109, %111 : vector<8x128xf32>
    %113 = math.tanh %112 : vector<8x128xf32>
    %cst_27 = arith.constant 1.000000e+00 : f32
    %114 = vector.broadcast %cst_27 : f32 to vector<8x128xf32>
    %115 = arith.subf %114, %108 : vector<8x128xf32>
    %116 = arith.mulf %115, %113 : vector<8x128xf32>
    %117 = arith.mulf %108, %88 : vector<8x128xf32>
    %118 = arith.addf %116, %117 : vector<8x128xf32>
    %119 = arith.truncf %118 : vector<8x128xf32> to vector<8x128xbf16>
    %cst_28 = arith.constant dense<0.000000e+00> : vector<8x384xf32>
    %120 = tpu.matmul %119, %2, %cst_28 {dimension_numbers = #tpu.dot_dimension_numbers<[1], [0], [0], [1], [0, 0, 1, 1], [], []>} : vector<8x128xbf16>, vector<128x384xbf16>, vector<8x384xf32> -> vector<8x384xf32>
    %121 = arith.addf %120, %6 : vector<8x384xf32>
    %122 = vector.extract_strided_slice %87 {offsets = [0, 384], sizes = [8, 384], strides = [1, 1]} : vector<8x768xf32> to vector<8x384xf32>
    %123 = arith.addf %122, %10 : vector<8x384xf32>
    %124 = vector.extract_strided_slice %121 {offsets = [0, 0], sizes = [8, 128], strides = [1, 1]} : vector<8x384xf32> to vector<8x128xf32>
    %125 = vector.extract_strided_slice %123 {offsets = [0, 0], sizes = [8, 128], strides = [1, 1]} : vector<8x384xf32> to vector<8x128xf32>
    %126 = arith.addf %124, %125 : vector<8x128xf32>
    %127 = arith.negf %126 : vector<8x128xf32>
    %128 = math.exp %127 : vector<8x128xf32>
    %cst_29 = arith.constant 1.000000e+00 : f32
    %129 = vector.broadcast %cst_29 : f32 to vector<8x128xf32>
    %130 = arith.addf %129, %128 : vector<8x128xf32>
    %131 = arith.divf %129, %130 : vector<8x128xf32>
    %132 = vector.extract_strided_slice %121 {offsets = [0, 128], sizes = [8, 128], strides = [1, 1]} : vector<8x384xf32> to vector<8x128xf32>
    %133 = vector.extract_strided_slice %123 {offsets = [0, 128], sizes = [8, 128], strides = [1, 1]} : vector<8x384xf32> to vector<8x128xf32>
    %134 = arith.addf %132, %133 : vector<8x128xf32>
    %135 = arith.negf %134 : vector<8x128xf32>
    %136 = math.exp %135 : vector<8x128xf32>
    %cst_30 = arith.constant 1.000000e+00 : f32
    %137 = vector.broadcast %cst_30 : f32 to vector<8x128xf32>
    %138 = arith.addf %137, %136 : vector<8x128xf32>
    %139 = arith.divf %137, %138 : vector<8x128xf32>
    %140 = vector.extract_strided_slice %121 {offsets = [0, 256], sizes = [8, 128], strides = [1, 1]} : vector<8x384xf32> to vector<8x128xf32>
    %141 = vector.extract_strided_slice %123 {offsets = [0, 256], sizes = [8, 128], strides = [1, 1]} : vector<8x384xf32> to vector<8x128xf32>
    %142 = arith.mulf %131, %141 : vector<8x128xf32>
    %143 = arith.addf %140, %142 : vector<8x128xf32>
    %144 = math.tanh %143 : vector<8x128xf32>
    %cst_31 = arith.constant 1.000000e+00 : f32
    %145 = vector.broadcast %cst_31 : f32 to vector<8x128xf32>
    %146 = arith.subf %145, %139 : vector<8x128xf32>
    %147 = arith.mulf %146, %144 : vector<8x128xf32>
    %148 = arith.mulf %139, %89 : vector<8x128xf32>
    %149 = arith.addf %147, %148 : vector<8x128xf32>
    %150 = tpu.concatenate %118, %149 in 1 : vector<8x128xf32>, vector<8x128xf32> -> vector<8x256xf32>
    %151 = arith.truncf %150 : vector<8x256xf32> to vector<8x256xbf16>
    %cst_32 = arith.constant dense<0.000000e+00> : vector<8x768xf32>
    %152 = tpu.matmul %151, %0, %cst_32 {dimension_numbers = #tpu.dot_dimension_numbers<[1], [0], [0], [1], [0, 0, 1, 1], [], []>} : vector<8x256xbf16>, vector<256x768xbf16>, vector<8x768xf32> -> vector<8x768xf32>
    %153 = vector.extract_strided_slice %150 {offsets = [0, 0], sizes = [8, 128], strides = [1, 1]} : vector<8x256xf32> to vector<8x128xf32>
    %154 = vector.extract_strided_slice %150 {offsets = [0, 128], sizes = [8, 128], strides = [1, 1]} : vector<8x256xf32> to vector<8x128xf32>
    %c16_33 = arith.constant 16 : index
    %c0_34 = arith.constant 0 : index
    %155 = vector.load %arg7[%c16_33, %c0_34] : memref<64x384xf32, #tpu.memory_space<vmem>>, vector<8x384xf32>
    %156 = vector.extract_strided_slice %152 {offsets = [0, 0], sizes = [8, 384], strides = [1, 1]} : vector<8x768xf32> to vector<8x384xf32>
    %157 = arith.addf %156, %8 : vector<8x384xf32>
    %158 = vector.extract_strided_slice %155 {offsets = [0, 0], sizes = [8, 128], strides = [1, 1]} : vector<8x384xf32> to vector<8x128xf32>
    %159 = vector.extract_strided_slice %157 {offsets = [0, 0], sizes = [8, 128], strides = [1, 1]} : vector<8x384xf32> to vector<8x128xf32>
    %160 = arith.addf %158, %159 : vector<8x128xf32>
    %161 = arith.negf %160 : vector<8x128xf32>
    %162 = math.exp %161 : vector<8x128xf32>
    %cst_35 = arith.constant 1.000000e+00 : f32
    %163 = vector.broadcast %cst_35 : f32 to vector<8x128xf32>
    %164 = arith.addf %163, %162 : vector<8x128xf32>
    %165 = arith.divf %163, %164 : vector<8x128xf32>
    %166 = vector.extract_strided_slice %155 {offsets = [0, 128], sizes = [8, 128], strides = [1, 1]} : vector<8x384xf32> to vector<8x128xf32>
    %167 = vector.extract_strided_slice %157 {offsets = [0, 128], sizes = [8, 128], strides = [1, 1]} : vector<8x384xf32> to vector<8x128xf32>
    %168 = arith.addf %166, %167 : vector<8x128xf32>
    %169 = arith.negf %168 : vector<8x128xf32>
    %170 = math.exp %169 : vector<8x128xf32>
    %cst_36 = arith.constant 1.000000e+00 : f32
    %171 = vector.broadcast %cst_36 : f32 to vector<8x128xf32>
    %172 = arith.addf %171, %170 : vector<8x128xf32>
    %173 = arith.divf %171, %172 : vector<8x128xf32>
    %174 = vector.extract_strided_slice %155 {offsets = [0, 256], sizes = [8, 128], strides = [1, 1]} : vector<8x384xf32> to vector<8x128xf32>
    %175 = vector.extract_strided_slice %157 {offsets = [0, 256], sizes = [8, 128], strides = [1, 1]} : vector<8x384xf32> to vector<8x128xf32>
    %176 = arith.mulf %165, %175 : vector<8x128xf32>
    %177 = arith.addf %174, %176 : vector<8x128xf32>
    %178 = math.tanh %177 : vector<8x128xf32>
    %cst_37 = arith.constant 1.000000e+00 : f32
    %179 = vector.broadcast %cst_37 : f32 to vector<8x128xf32>
    %180 = arith.subf %179, %173 : vector<8x128xf32>
    %181 = arith.mulf %180, %178 : vector<8x128xf32>
    %182 = arith.mulf %173, %153 : vector<8x128xf32>
    %183 = arith.addf %181, %182 : vector<8x128xf32>
    %184 = arith.truncf %183 : vector<8x128xf32> to vector<8x128xbf16>
    %cst_38 = arith.constant dense<0.000000e+00> : vector<8x384xf32>
    %185 = tpu.matmul %184, %2, %cst_38 {dimension_numbers = #tpu.dot_dimension_numbers<[1], [0], [0], [1], [0, 0, 1, 1], [], []>} : vector<8x128xbf16>, vector<128x384xbf16>, vector<8x384xf32> -> vector<8x384xf32>
    %186 = arith.addf %185, %6 : vector<8x384xf32>
    %187 = vector.extract_strided_slice %152 {offsets = [0, 384], sizes = [8, 384], strides = [1, 1]} : vector<8x768xf32> to vector<8x384xf32>
    %188 = arith.addf %187, %10 : vector<8x384xf32>
    %189 = vector.extract_strided_slice %186 {offsets = [0, 0], sizes = [8, 128], strides = [1, 1]} : vector<8x384xf32> to vector<8x128xf32>
    %190 = vector.extract_strided_slice %188 {offsets = [0, 0], sizes = [8, 128], strides = [1, 1]} : vector<8x384xf32> to vector<8x128xf32>
    %191 = arith.addf %189, %190 : vector<8x128xf32>
    %192 = arith.negf %191 : vector<8x128xf32>
    %193 = math.exp %192 : vector<8x128xf32>
    %cst_39 = arith.constant 1.000000e+00 : f32
    %194 = vector.broadcast %cst_39 : f32 to vector<8x128xf32>
    %195 = arith.addf %194, %193 : vector<8x128xf32>
    %196 = arith.divf %194, %195 : vector<8x128xf32>
    %197 = vector.extract_strided_slice %186 {offsets = [0, 128], sizes = [8, 128], strides = [1, 1]} : vector<8x384xf32> to vector<8x128xf32>
    %198 = vector.extract_strided_slice %188 {offsets = [0, 128], sizes = [8, 128], strides = [1, 1]} : vector<8x384xf32> to vector<8x128xf32>
    %199 = arith.addf %197, %198 : vector<8x128xf32>
    %200 = arith.negf %199 : vector<8x128xf32>
    %201 = math.exp %200 : vector<8x128xf32>
    %cst_40 = arith.constant 1.000000e+00 : f32
    %202 = vector.broadcast %cst_40 : f32 to vector<8x128xf32>
    %203 = arith.addf %202, %201 : vector<8x128xf32>
    %204 = arith.divf %202, %203 : vector<8x128xf32>
    %205 = vector.extract_strided_slice %186 {offsets = [0, 256], sizes = [8, 128], strides = [1, 1]} : vector<8x384xf32> to vector<8x128xf32>
    %206 = vector.extract_strided_slice %188 {offsets = [0, 256], sizes = [8, 128], strides = [1, 1]} : vector<8x384xf32> to vector<8x128xf32>
    %207 = arith.mulf %196, %206 : vector<8x128xf32>
    %208 = arith.addf %205, %207 : vector<8x128xf32>
    %209 = math.tanh %208 : vector<8x128xf32>
    %cst_41 = arith.constant 1.000000e+00 : f32
    %210 = vector.broadcast %cst_41 : f32 to vector<8x128xf32>
    %211 = arith.subf %210, %204 : vector<8x128xf32>
    %212 = arith.mulf %211, %209 : vector<8x128xf32>
    %213 = arith.mulf %204, %154 : vector<8x128xf32>
    %214 = arith.addf %212, %213 : vector<8x128xf32>
    %215 = tpu.concatenate %183, %214 in 1 : vector<8x128xf32>, vector<8x128xf32> -> vector<8x256xf32>
    %216 = arith.truncf %215 : vector<8x256xf32> to vector<8x256xbf16>
    %cst_42 = arith.constant dense<0.000000e+00> : vector<8x768xf32>
    %217 = tpu.matmul %216, %0, %cst_42 {dimension_numbers = #tpu.dot_dimension_numbers<[1], [0], [0], [1], [0, 0, 1, 1], [], []>} : vector<8x256xbf16>, vector<256x768xbf16>, vector<8x768xf32> -> vector<8x768xf32>
    %218 = vector.extract_strided_slice %215 {offsets = [0, 0], sizes = [8, 128], strides = [1, 1]} : vector<8x256xf32> to vector<8x128xf32>
    %219 = vector.extract_strided_slice %215 {offsets = [0, 128], sizes = [8, 128], strides = [1, 1]} : vector<8x256xf32> to vector<8x128xf32>
    %c24 = arith.constant 24 : index
    %c0_43 = arith.constant 0 : index
    %220 = vector.load %arg7[%c24, %c0_43] : memref<64x384xf32, #tpu.memory_space<vmem>>, vector<8x384xf32>
    %221 = vector.extract_strided_slice %217 {offsets = [0, 0], sizes = [8, 384], strides = [1, 1]} : vector<8x768xf32> to vector<8x384xf32>
    %222 = arith.addf %221, %8 : vector<8x384xf32>
    %223 = vector.extract_strided_slice %220 {offsets = [0, 0], sizes = [8, 128], strides = [1, 1]} : vector<8x384xf32> to vector<8x128xf32>
    %224 = vector.extract_strided_slice %222 {offsets = [0, 0], sizes = [8, 128], strides = [1, 1]} : vector<8x384xf32> to vector<8x128xf32>
    %225 = arith.addf %223, %224 : vector<8x128xf32>
    %226 = arith.negf %225 : vector<8x128xf32>
    %227 = math.exp %226 : vector<8x128xf32>
    %cst_44 = arith.constant 1.000000e+00 : f32
    %228 = vector.broadcast %cst_44 : f32 to vector<8x128xf32>
    %229 = arith.addf %228, %227 : vector<8x128xf32>
    %230 = arith.divf %228, %229 : vector<8x128xf32>
    %231 = vector.extract_strided_slice %220 {offsets = [0, 128], sizes = [8, 128], strides = [1, 1]} : vector<8x384xf32> to vector<8x128xf32>
    %232 = vector.extract_strided_slice %222 {offsets = [0, 128], sizes = [8, 128], strides = [1, 1]} : vector<8x384xf32> to vector<8x128xf32>
    %233 = arith.addf %231, %232 : vector<8x128xf32>
    %234 = arith.negf %233 : vector<8x128xf32>
    %235 = math.exp %234 : vector<8x128xf32>
    %cst_45 = arith.constant 1.000000e+00 : f32
    %236 = vector.broadcast %cst_45 : f32 to vector<8x128xf32>
    %237 = arith.addf %236, %235 : vector<8x128xf32>
    %238 = arith.divf %236, %237 : vector<8x128xf32>
    %239 = vector.extract_strided_slice %220 {offsets = [0, 256], sizes = [8, 128], strides = [1, 1]} : vector<8x384xf32> to vector<8x128xf32>
    %240 = vector.extract_strided_slice %222 {offsets = [0, 256], sizes = [8, 128], strides = [1, 1]} : vector<8x384xf32> to vector<8x128xf32>
    %241 = arith.mulf %230, %240 : vector<8x128xf32>
    %242 = arith.addf %239, %241 : vector<8x128xf32>
    %243 = math.tanh %242 : vector<8x128xf32>
    %cst_46 = arith.constant 1.000000e+00 : f32
    %244 = vector.broadcast %cst_46 : f32 to vector<8x128xf32>
    %245 = arith.subf %244, %238 : vector<8x128xf32>
    %246 = arith.mulf %245, %243 : vector<8x128xf32>
    %247 = arith.mulf %238, %218 : vector<8x128xf32>
    %248 = arith.addf %246, %247 : vector<8x128xf32>
    %249 = arith.truncf %248 : vector<8x128xf32> to vector<8x128xbf16>
    %cst_47 = arith.constant dense<0.000000e+00> : vector<8x384xf32>
    %250 = tpu.matmul %249, %2, %cst_47 {dimension_numbers = #tpu.dot_dimension_numbers<[1], [0], [0], [1], [0, 0, 1, 1], [], []>} : vector<8x128xbf16>, vector<128x384xbf16>, vector<8x384xf32> -> vector<8x384xf32>
    %251 = arith.addf %250, %6 : vector<8x384xf32>
    %252 = vector.extract_strided_slice %217 {offsets = [0, 384], sizes = [8, 384], strides = [1, 1]} : vector<8x768xf32> to vector<8x384xf32>
    %253 = arith.addf %252, %10 : vector<8x384xf32>
    %254 = vector.extract_strided_slice %251 {offsets = [0, 0], sizes = [8, 128], strides = [1, 1]} : vector<8x384xf32> to vector<8x128xf32>
    %255 = vector.extract_strided_slice %253 {offsets = [0, 0], sizes = [8, 128], strides = [1, 1]} : vector<8x384xf32> to vector<8x128xf32>
    %256 = arith.addf %254, %255 : vector<8x128xf32>
    %257 = arith.negf %256 : vector<8x128xf32>
    %258 = math.exp %257 : vector<8x128xf32>
    %cst_48 = arith.constant 1.000000e+00 : f32
    %259 = vector.broadcast %cst_48 : f32 to vector<8x128xf32>
    %260 = arith.addf %259, %258 : vector<8x128xf32>
    %261 = arith.divf %259, %260 : vector<8x128xf32>
    %262 = vector.extract_strided_slice %251 {offsets = [0, 128], sizes = [8, 128], strides = [1, 1]} : vector<8x384xf32> to vector<8x128xf32>
    %263 = vector.extract_strided_slice %253 {offsets = [0, 128], sizes = [8, 128], strides = [1, 1]} : vector<8x384xf32> to vector<8x128xf32>
    %264 = arith.addf %262, %263 : vector<8x128xf32>
    %265 = arith.negf %264 : vector<8x128xf32>
    %266 = math.exp %265 : vector<8x128xf32>
    %cst_49 = arith.constant 1.000000e+00 : f32
    %267 = vector.broadcast %cst_49 : f32 to vector<8x128xf32>
    %268 = arith.addf %267, %266 : vector<8x128xf32>
    %269 = arith.divf %267, %268 : vector<8x128xf32>
    %270 = vector.extract_strided_slice %251 {offsets = [0, 256], sizes = [8, 128], strides = [1, 1]} : vector<8x384xf32> to vector<8x128xf32>
    %271 = vector.extract_strided_slice %253 {offsets = [0, 256], sizes = [8, 128], strides = [1, 1]} : vector<8x384xf32> to vector<8x128xf32>
    %272 = arith.mulf %261, %271 : vector<8x128xf32>
    %273 = arith.addf %270, %272 : vector<8x128xf32>
    %274 = math.tanh %273 : vector<8x128xf32>
    %cst_50 = arith.constant 1.000000e+00 : f32
    %275 = vector.broadcast %cst_50 : f32 to vector<8x128xf32>
    %276 = arith.subf %275, %269 : vector<8x128xf32>
    %277 = arith.mulf %276, %274 : vector<8x128xf32>
    %278 = arith.mulf %269, %219 : vector<8x128xf32>
    %279 = arith.addf %277, %278 : vector<8x128xf32>
    %280 = tpu.concatenate %248, %279 in 1 : vector<8x128xf32>, vector<8x128xf32> -> vector<8x256xf32>
    %281 = arith.truncf %280 : vector<8x256xf32> to vector<8x256xbf16>
    %cst_51 = arith.constant dense<0.000000e+00> : vector<8x768xf32>
    %282 = tpu.matmul %281, %0, %cst_51 {dimension_numbers = #tpu.dot_dimension_numbers<[1], [0], [0], [1], [0, 0, 1, 1], [], []>} : vector<8x256xbf16>, vector<256x768xbf16>, vector<8x768xf32> -> vector<8x768xf32>
    %283 = vector.extract_strided_slice %280 {offsets = [0, 0], sizes = [8, 128], strides = [1, 1]} : vector<8x256xf32> to vector<8x128xf32>
    %284 = vector.extract_strided_slice %280 {offsets = [0, 128], sizes = [8, 128], strides = [1, 1]} : vector<8x256xf32> to vector<8x128xf32>
    %c32 = arith.constant 32 : index
    %c0_52 = arith.constant 0 : index
    %285 = vector.load %arg7[%c32, %c0_52] : memref<64x384xf32, #tpu.memory_space<vmem>>, vector<8x384xf32>
    %286 = vector.extract_strided_slice %282 {offsets = [0, 0], sizes = [8, 384], strides = [1, 1]} : vector<8x768xf32> to vector<8x384xf32>
    %287 = arith.addf %286, %8 : vector<8x384xf32>
    %288 = vector.extract_strided_slice %285 {offsets = [0, 0], sizes = [8, 128], strides = [1, 1]} : vector<8x384xf32> to vector<8x128xf32>
    %289 = vector.extract_strided_slice %287 {offsets = [0, 0], sizes = [8, 128], strides = [1, 1]} : vector<8x384xf32> to vector<8x128xf32>
    %290 = arith.addf %288, %289 : vector<8x128xf32>
    %291 = arith.negf %290 : vector<8x128xf32>
    %292 = math.exp %291 : vector<8x128xf32>
    %cst_53 = arith.constant 1.000000e+00 : f32
    %293 = vector.broadcast %cst_53 : f32 to vector<8x128xf32>
    %294 = arith.addf %293, %292 : vector<8x128xf32>
    %295 = arith.divf %293, %294 : vector<8x128xf32>
    %296 = vector.extract_strided_slice %285 {offsets = [0, 128], sizes = [8, 128], strides = [1, 1]} : vector<8x384xf32> to vector<8x128xf32>
    %297 = vector.extract_strided_slice %287 {offsets = [0, 128], sizes = [8, 128], strides = [1, 1]} : vector<8x384xf32> to vector<8x128xf32>
    %298 = arith.addf %296, %297 : vector<8x128xf32>
    %299 = arith.negf %298 : vector<8x128xf32>
    %300 = math.exp %299 : vector<8x128xf32>
    %cst_54 = arith.constant 1.000000e+00 : f32
    %301 = vector.broadcast %cst_54 : f32 to vector<8x128xf32>
    %302 = arith.addf %301, %300 : vector<8x128xf32>
    %303 = arith.divf %301, %302 : vector<8x128xf32>
    %304 = vector.extract_strided_slice %285 {offsets = [0, 256], sizes = [8, 128], strides = [1, 1]} : vector<8x384xf32> to vector<8x128xf32>
    %305 = vector.extract_strided_slice %287 {offsets = [0, 256], sizes = [8, 128], strides = [1, 1]} : vector<8x384xf32> to vector<8x128xf32>
    %306 = arith.mulf %295, %305 : vector<8x128xf32>
    %307 = arith.addf %304, %306 : vector<8x128xf32>
    %308 = math.tanh %307 : vector<8x128xf32>
    %cst_55 = arith.constant 1.000000e+00 : f32
    %309 = vector.broadcast %cst_55 : f32 to vector<8x128xf32>
    %310 = arith.subf %309, %303 : vector<8x128xf32>
    %311 = arith.mulf %310, %308 : vector<8x128xf32>
    %312 = arith.mulf %303, %283 : vector<8x128xf32>
    %313 = arith.addf %311, %312 : vector<8x128xf32>
    %314 = arith.truncf %313 : vector<8x128xf32> to vector<8x128xbf16>
    %cst_56 = arith.constant dense<0.000000e+00> : vector<8x384xf32>
    %315 = tpu.matmul %314, %2, %cst_56 {dimension_numbers = #tpu.dot_dimension_numbers<[1], [0], [0], [1], [0, 0, 1, 1], [], []>} : vector<8x128xbf16>, vector<128x384xbf16>, vector<8x384xf32> -> vector<8x384xf32>
    %316 = arith.addf %315, %6 : vector<8x384xf32>
    %317 = vector.extract_strided_slice %282 {offsets = [0, 384], sizes = [8, 384], strides = [1, 1]} : vector<8x768xf32> to vector<8x384xf32>
    %318 = arith.addf %317, %10 : vector<8x384xf32>
    %319 = vector.extract_strided_slice %316 {offsets = [0, 0], sizes = [8, 128], strides = [1, 1]} : vector<8x384xf32> to vector<8x128xf32>
    %320 = vector.extract_strided_slice %318 {offsets = [0, 0], sizes = [8, 128], strides = [1, 1]} : vector<8x384xf32> to vector<8x128xf32>
    %321 = arith.addf %319, %320 : vector<8x128xf32>
    %322 = arith.negf %321 : vector<8x128xf32>
    %323 = math.exp %322 : vector<8x128xf32>
    %cst_57 = arith.constant 1.000000e+00 : f32
    %324 = vector.broadcast %cst_57 : f32 to vector<8x128xf32>
    %325 = arith.addf %324, %323 : vector<8x128xf32>
    %326 = arith.divf %324, %325 : vector<8x128xf32>
    %327 = vector.extract_strided_slice %316 {offsets = [0, 128], sizes = [8, 128], strides = [1, 1]} : vector<8x384xf32> to vector<8x128xf32>
    %328 = vector.extract_strided_slice %318 {offsets = [0, 128], sizes = [8, 128], strides = [1, 1]} : vector<8x384xf32> to vector<8x128xf32>
    %329 = arith.addf %327, %328 : vector<8x128xf32>
    %330 = arith.negf %329 : vector<8x128xf32>
    %331 = math.exp %330 : vector<8x128xf32>
    %cst_58 = arith.constant 1.000000e+00 : f32
    %332 = vector.broadcast %cst_58 : f32 to vector<8x128xf32>
    %333 = arith.addf %332, %331 : vector<8x128xf32>
    %334 = arith.divf %332, %333 : vector<8x128xf32>
    %335 = vector.extract_strided_slice %316 {offsets = [0, 256], sizes = [8, 128], strides = [1, 1]} : vector<8x384xf32> to vector<8x128xf32>
    %336 = vector.extract_strided_slice %318 {offsets = [0, 256], sizes = [8, 128], strides = [1, 1]} : vector<8x384xf32> to vector<8x128xf32>
    %337 = arith.mulf %326, %336 : vector<8x128xf32>
    %338 = arith.addf %335, %337 : vector<8x128xf32>
    %339 = math.tanh %338 : vector<8x128xf32>
    %cst_59 = arith.constant 1.000000e+00 : f32
    %340 = vector.broadcast %cst_59 : f32 to vector<8x128xf32>
    %341 = arith.subf %340, %334 : vector<8x128xf32>
    %342 = arith.mulf %341, %339 : vector<8x128xf32>
    %343 = arith.mulf %334, %284 : vector<8x128xf32>
    %344 = arith.addf %342, %343 : vector<8x128xf32>
    %345 = tpu.concatenate %313, %344 in 1 : vector<8x128xf32>, vector<8x128xf32> -> vector<8x256xf32>
    %346 = arith.truncf %345 : vector<8x256xf32> to vector<8x256xbf16>
    %cst_60 = arith.constant dense<0.000000e+00> : vector<8x768xf32>
    %347 = tpu.matmul %346, %0, %cst_60 {dimension_numbers = #tpu.dot_dimension_numbers<[1], [0], [0], [1], [0, 0, 1, 1], [], []>} : vector<8x256xbf16>, vector<256x768xbf16>, vector<8x768xf32> -> vector<8x768xf32>
    %348 = vector.extract_strided_slice %345 {offsets = [0, 0], sizes = [8, 128], strides = [1, 1]} : vector<8x256xf32> to vector<8x128xf32>
    %349 = vector.extract_strided_slice %345 {offsets = [0, 128], sizes = [8, 128], strides = [1, 1]} : vector<8x256xf32> to vector<8x128xf32>
    %c40 = arith.constant 40 : index
    %c0_61 = arith.constant 0 : index
    %350 = vector.load %arg7[%c40, %c0_61] : memref<64x384xf32, #tpu.memory_space<vmem>>, vector<8x384xf32>
    %351 = vector.extract_strided_slice %347 {offsets = [0, 0], sizes = [8, 384], strides = [1, 1]} : vector<8x768xf32> to vector<8x384xf32>
    %352 = arith.addf %351, %8 : vector<8x384xf32>
    %353 = vector.extract_strided_slice %350 {offsets = [0, 0], sizes = [8, 128], strides = [1, 1]} : vector<8x384xf32> to vector<8x128xf32>
    %354 = vector.extract_strided_slice %352 {offsets = [0, 0], sizes = [8, 128], strides = [1, 1]} : vector<8x384xf32> to vector<8x128xf32>
    %355 = arith.addf %353, %354 : vector<8x128xf32>
    %356 = arith.negf %355 : vector<8x128xf32>
    %357 = math.exp %356 : vector<8x128xf32>
    %cst_62 = arith.constant 1.000000e+00 : f32
    %358 = vector.broadcast %cst_62 : f32 to vector<8x128xf32>
    %359 = arith.addf %358, %357 : vector<8x128xf32>
    %360 = arith.divf %358, %359 : vector<8x128xf32>
    %361 = vector.extract_strided_slice %350 {offsets = [0, 128], sizes = [8, 128], strides = [1, 1]} : vector<8x384xf32> to vector<8x128xf32>
    %362 = vector.extract_strided_slice %352 {offsets = [0, 128], sizes = [8, 128], strides = [1, 1]} : vector<8x384xf32> to vector<8x128xf32>
    %363 = arith.addf %361, %362 : vector<8x128xf32>
    %364 = arith.negf %363 : vector<8x128xf32>
    %365 = math.exp %364 : vector<8x128xf32>
    %cst_63 = arith.constant 1.000000e+00 : f32
    %366 = vector.broadcast %cst_63 : f32 to vector<8x128xf32>
    %367 = arith.addf %366, %365 : vector<8x128xf32>
    %368 = arith.divf %366, %367 : vector<8x128xf32>
    %369 = vector.extract_strided_slice %350 {offsets = [0, 256], sizes = [8, 128], strides = [1, 1]} : vector<8x384xf32> to vector<8x128xf32>
    %370 = vector.extract_strided_slice %352 {offsets = [0, 256], sizes = [8, 128], strides = [1, 1]} : vector<8x384xf32> to vector<8x128xf32>
    %371 = arith.mulf %360, %370 : vector<8x128xf32>
    %372 = arith.addf %369, %371 : vector<8x128xf32>
    %373 = math.tanh %372 : vector<8x128xf32>
    %cst_64 = arith.constant 1.000000e+00 : f32
    %374 = vector.broadcast %cst_64 : f32 to vector<8x128xf32>
    %375 = arith.subf %374, %368 : vector<8x128xf32>
    %376 = arith.mulf %375, %373 : vector<8x128xf32>
    %377 = arith.mulf %368, %348 : vector<8x128xf32>
    %378 = arith.addf %376, %377 : vector<8x128xf32>
    %379 = arith.truncf %378 : vector<8x128xf32> to vector<8x128xbf16>
    %cst_65 = arith.constant dense<0.000000e+00> : vector<8x384xf32>
    %380 = tpu.matmul %379, %2, %cst_65 {dimension_numbers = #tpu.dot_dimension_numbers<[1], [0], [0], [1], [0, 0, 1, 1], [], []>} : vector<8x128xbf16>, vector<128x384xbf16>, vector<8x384xf32> -> vector<8x384xf32>
    %381 = arith.addf %380, %6 : vector<8x384xf32>
    %382 = vector.extract_strided_slice %347 {offsets = [0, 384], sizes = [8, 384], strides = [1, 1]} : vector<8x768xf32> to vector<8x384xf32>
    %383 = arith.addf %382, %10 : vector<8x384xf32>
    %384 = vector.extract_strided_slice %381 {offsets = [0, 0], sizes = [8, 128], strides = [1, 1]} : vector<8x384xf32> to vector<8x128xf32>
    %385 = vector.extract_strided_slice %383 {offsets = [0, 0], sizes = [8, 128], strides = [1, 1]} : vector<8x384xf32> to vector<8x128xf32>
    %386 = arith.addf %384, %385 : vector<8x128xf32>
    %387 = arith.negf %386 : vector<8x128xf32>
    %388 = math.exp %387 : vector<8x128xf32>
    %cst_66 = arith.constant 1.000000e+00 : f32
    %389 = vector.broadcast %cst_66 : f32 to vector<8x128xf32>
    %390 = arith.addf %389, %388 : vector<8x128xf32>
    %391 = arith.divf %389, %390 : vector<8x128xf32>
    %392 = vector.extract_strided_slice %381 {offsets = [0, 128], sizes = [8, 128], strides = [1, 1]} : vector<8x384xf32> to vector<8x128xf32>
    %393 = vector.extract_strided_slice %383 {offsets = [0, 128], sizes = [8, 128], strides = [1, 1]} : vector<8x384xf32> to vector<8x128xf32>
    %394 = arith.addf %392, %393 : vector<8x128xf32>
    %395 = arith.negf %394 : vector<8x128xf32>
    %396 = math.exp %395 : vector<8x128xf32>
    %cst_67 = arith.constant 1.000000e+00 : f32
    %397 = vector.broadcast %cst_67 : f32 to vector<8x128xf32>
    %398 = arith.addf %397, %396 : vector<8x128xf32>
    %399 = arith.divf %397, %398 : vector<8x128xf32>
    %400 = vector.extract_strided_slice %381 {offsets = [0, 256], sizes = [8, 128], strides = [1, 1]} : vector<8x384xf32> to vector<8x128xf32>
    %401 = vector.extract_strided_slice %383 {offsets = [0, 256], sizes = [8, 128], strides = [1, 1]} : vector<8x384xf32> to vector<8x128xf32>
    %402 = arith.mulf %391, %401 : vector<8x128xf32>
    %403 = arith.addf %400, %402 : vector<8x128xf32>
    %404 = math.tanh %403 : vector<8x128xf32>
    %cst_68 = arith.constant 1.000000e+00 : f32
    %405 = vector.broadcast %cst_68 : f32 to vector<8x128xf32>
    %406 = arith.subf %405, %399 : vector<8x128xf32>
    %407 = arith.mulf %406, %404 : vector<8x128xf32>
    %408 = arith.mulf %399, %349 : vector<8x128xf32>
    %409 = arith.addf %407, %408 : vector<8x128xf32>
    %410 = tpu.concatenate %378, %409 in 1 : vector<8x128xf32>, vector<8x128xf32> -> vector<8x256xf32>
    %411 = arith.truncf %410 : vector<8x256xf32> to vector<8x256xbf16>
    %cst_69 = arith.constant dense<0.000000e+00> : vector<8x768xf32>
    %412 = tpu.matmul %411, %0, %cst_69 {dimension_numbers = #tpu.dot_dimension_numbers<[1], [0], [0], [1], [0, 0, 1, 1], [], []>} : vector<8x256xbf16>, vector<256x768xbf16>, vector<8x768xf32> -> vector<8x768xf32>
    %413 = vector.extract_strided_slice %410 {offsets = [0, 0], sizes = [8, 128], strides = [1, 1]} : vector<8x256xf32> to vector<8x128xf32>
    %414 = vector.extract_strided_slice %410 {offsets = [0, 128], sizes = [8, 128], strides = [1, 1]} : vector<8x256xf32> to vector<8x128xf32>
    %c48 = arith.constant 48 : index
    %c0_70 = arith.constant 0 : index
    %415 = vector.load %arg7[%c48, %c0_70] : memref<64x384xf32, #tpu.memory_space<vmem>>, vector<8x384xf32>
    %416 = vector.extract_strided_slice %412 {offsets = [0, 0], sizes = [8, 384], strides = [1, 1]} : vector<8x768xf32> to vector<8x384xf32>
    %417 = arith.addf %416, %8 : vector<8x384xf32>
    %418 = vector.extract_strided_slice %415 {offsets = [0, 0], sizes = [8, 128], strides = [1, 1]} : vector<8x384xf32> to vector<8x128xf32>
    %419 = vector.extract_strided_slice %417 {offsets = [0, 0], sizes = [8, 128], strides = [1, 1]} : vector<8x384xf32> to vector<8x128xf32>
    %420 = arith.addf %418, %419 : vector<8x128xf32>
    %421 = arith.negf %420 : vector<8x128xf32>
    %422 = math.exp %421 : vector<8x128xf32>
    %cst_71 = arith.constant 1.000000e+00 : f32
    %423 = vector.broadcast %cst_71 : f32 to vector<8x128xf32>
    %424 = arith.addf %423, %422 : vector<8x128xf32>
    %425 = arith.divf %423, %424 : vector<8x128xf32>
    %426 = vector.extract_strided_slice %415 {offsets = [0, 128], sizes = [8, 128], strides = [1, 1]} : vector<8x384xf32> to vector<8x128xf32>
    %427 = vector.extract_strided_slice %417 {offsets = [0, 128], sizes = [8, 128], strides = [1, 1]} : vector<8x384xf32> to vector<8x128xf32>
    %428 = arith.addf %426, %427 : vector<8x128xf32>
    %429 = arith.negf %428 : vector<8x128xf32>
    %430 = math.exp %429 : vector<8x128xf32>
    %cst_72 = arith.constant 1.000000e+00 : f32
    %431 = vector.broadcast %cst_72 : f32 to vector<8x128xf32>
    %432 = arith.addf %431, %430 : vector<8x128xf32>
    %433 = arith.divf %431, %432 : vector<8x128xf32>
    %434 = vector.extract_strided_slice %415 {offsets = [0, 256], sizes = [8, 128], strides = [1, 1]} : vector<8x384xf32> to vector<8x128xf32>
    %435 = vector.extract_strided_slice %417 {offsets = [0, 256], sizes = [8, 128], strides = [1, 1]} : vector<8x384xf32> to vector<8x128xf32>
    %436 = arith.mulf %425, %435 : vector<8x128xf32>
    %437 = arith.addf %434, %436 : vector<8x128xf32>
    %438 = math.tanh %437 : vector<8x128xf32>
    %cst_73 = arith.constant 1.000000e+00 : f32
    %439 = vector.broadcast %cst_73 : f32 to vector<8x128xf32>
    %440 = arith.subf %439, %433 : vector<8x128xf32>
    %441 = arith.mulf %440, %438 : vector<8x128xf32>
    %442 = arith.mulf %433, %413 : vector<8x128xf32>
    %443 = arith.addf %441, %442 : vector<8x128xf32>
    %444 = arith.truncf %443 : vector<8x128xf32> to vector<8x128xbf16>
    %cst_74 = arith.constant dense<0.000000e+00> : vector<8x384xf32>
    %445 = tpu.matmul %444, %2, %cst_74 {dimension_numbers = #tpu.dot_dimension_numbers<[1], [0], [0], [1], [0, 0, 1, 1], [], []>} : vector<8x128xbf16>, vector<128x384xbf16>, vector<8x384xf32> -> vector<8x384xf32>
    %446 = arith.addf %445, %6 : vector<8x384xf32>
    %447 = vector.extract_strided_slice %412 {offsets = [0, 384], sizes = [8, 384], strides = [1, 1]} : vector<8x768xf32> to vector<8x384xf32>
    %448 = arith.addf %447, %10 : vector<8x384xf32>
    %449 = vector.extract_strided_slice %446 {offsets = [0, 0], sizes = [8, 128], strides = [1, 1]} : vector<8x384xf32> to vector<8x128xf32>
    %450 = vector.extract_strided_slice %448 {offsets = [0, 0], sizes = [8, 128], strides = [1, 1]} : vector<8x384xf32> to vector<8x128xf32>
    %451 = arith.addf %449, %450 : vector<8x128xf32>
    %452 = arith.negf %451 : vector<8x128xf32>
    %453 = math.exp %452 : vector<8x128xf32>
    %cst_75 = arith.constant 1.000000e+00 : f32
    %454 = vector.broadcast %cst_75 : f32 to vector<8x128xf32>
    %455 = arith.addf %454, %453 : vector<8x128xf32>
    %456 = arith.divf %454, %455 : vector<8x128xf32>
    %457 = vector.extract_strided_slice %446 {offsets = [0, 128], sizes = [8, 128], strides = [1, 1]} : vector<8x384xf32> to vector<8x128xf32>
    %458 = vector.extract_strided_slice %448 {offsets = [0, 128], sizes = [8, 128], strides = [1, 1]} : vector<8x384xf32> to vector<8x128xf32>
    %459 = arith.addf %457, %458 : vector<8x128xf32>
    %460 = arith.negf %459 : vector<8x128xf32>
    %461 = math.exp %460 : vector<8x128xf32>
    %cst_76 = arith.constant 1.000000e+00 : f32
    %462 = vector.broadcast %cst_76 : f32 to vector<8x128xf32>
    %463 = arith.addf %462, %461 : vector<8x128xf32>
    %464 = arith.divf %462, %463 : vector<8x128xf32>
    %465 = vector.extract_strided_slice %446 {offsets = [0, 256], sizes = [8, 128], strides = [1, 1]} : vector<8x384xf32> to vector<8x128xf32>
    %466 = vector.extract_strided_slice %448 {offsets = [0, 256], sizes = [8, 128], strides = [1, 1]} : vector<8x384xf32> to vector<8x128xf32>
    %467 = arith.mulf %456, %466 : vector<8x128xf32>
    %468 = arith.addf %465, %467 : vector<8x128xf32>
    %469 = math.tanh %468 : vector<8x128xf32>
    %cst_77 = arith.constant 1.000000e+00 : f32
    %470 = vector.broadcast %cst_77 : f32 to vector<8x128xf32>
    %471 = arith.subf %470, %464 : vector<8x128xf32>
    %472 = arith.mulf %471, %469 : vector<8x128xf32>
    %473 = arith.mulf %464, %414 : vector<8x128xf32>
    %474 = arith.addf %472, %473 : vector<8x128xf32>
    %475 = arith.select %19, %443, %413 : vector<8x128xi1>, vector<8x128xf32>
    %476 = arith.select %19, %474, %414 : vector<8x128xi1>, vector<8x128xf32>
    %477 = tpu.concatenate %475, %476 in 1 : vector<8x128xf32>, vector<8x128xf32> -> vector<8x256xf32>
    %478 = arith.truncf %477 : vector<8x256xf32> to vector<8x256xbf16>
    %cst_78 = arith.constant dense<0.000000e+00> : vector<8x768xf32>
    %479 = tpu.matmul %478, %0, %cst_78 {dimension_numbers = #tpu.dot_dimension_numbers<[1], [0], [0], [1], [0, 0, 1, 1], [], []>} : vector<8x256xbf16>, vector<256x768xbf16>, vector<8x768xf32> -> vector<8x768xf32>
    %480 = vector.extract_strided_slice %477 {offsets = [0, 0], sizes = [8, 128], strides = [1, 1]} : vector<8x256xf32> to vector<8x128xf32>
    %481 = vector.extract_strided_slice %477 {offsets = [0, 128], sizes = [8, 128], strides = [1, 1]} : vector<8x256xf32> to vector<8x128xf32>
    %c56 = arith.constant 56 : index
    %c0_79 = arith.constant 0 : index
    %482 = vector.load %arg7[%c56, %c0_79] : memref<64x384xf32, #tpu.memory_space<vmem>>, vector<8x384xf32>
    %483 = vector.extract_strided_slice %479 {offsets = [0, 0], sizes = [8, 384], strides = [1, 1]} : vector<8x768xf32> to vector<8x384xf32>
    %484 = arith.addf %483, %8 : vector<8x384xf32>
    %485 = vector.extract_strided_slice %482 {offsets = [0, 0], sizes = [8, 128], strides = [1, 1]} : vector<8x384xf32> to vector<8x128xf32>
    %486 = vector.extract_strided_slice %484 {offsets = [0, 0], sizes = [8, 128], strides = [1, 1]} : vector<8x384xf32> to vector<8x128xf32>
    %487 = arith.addf %485, %486 : vector<8x128xf32>
    %488 = arith.negf %487 : vector<8x128xf32>
    %489 = math.exp %488 : vector<8x128xf32>
    %cst_80 = arith.constant 1.000000e+00 : f32
    %490 = vector.broadcast %cst_80 : f32 to vector<8x128xf32>
    %491 = arith.addf %490, %489 : vector<8x128xf32>
    %492 = arith.divf %490, %491 : vector<8x128xf32>
    %493 = vector.extract_strided_slice %482 {offsets = [0, 128], sizes = [8, 128], strides = [1, 1]} : vector<8x384xf32> to vector<8x128xf32>
    %494 = vector.extract_strided_slice %484 {offsets = [0, 128], sizes = [8, 128], strides = [1, 1]} : vector<8x384xf32> to vector<8x128xf32>
    %495 = arith.addf %493, %494 : vector<8x128xf32>
    %496 = arith.negf %495 : vector<8x128xf32>
    %497 = math.exp %496 : vector<8x128xf32>
    %cst_81 = arith.constant 1.000000e+00 : f32
    %498 = vector.broadcast %cst_81 : f32 to vector<8x128xf32>
    %499 = arith.addf %498, %497 : vector<8x128xf32>
    %500 = arith.divf %498, %499 : vector<8x128xf32>
    %501 = vector.extract_strided_slice %482 {offsets = [0, 256], sizes = [8, 128], strides = [1, 1]} : vector<8x384xf32> to vector<8x128xf32>
    %502 = vector.extract_strided_slice %484 {offsets = [0, 256], sizes = [8, 128], strides = [1, 1]} : vector<8x384xf32> to vector<8x128xf32>
    %503 = arith.mulf %492, %502 : vector<8x128xf32>
    %504 = arith.addf %501, %503 : vector<8x128xf32>
    %505 = math.tanh %504 : vector<8x128xf32>
    %cst_82 = arith.constant 1.000000e+00 : f32
    %506 = vector.broadcast %cst_82 : f32 to vector<8x128xf32>
    %507 = arith.subf %506, %500 : vector<8x128xf32>
    %508 = arith.mulf %507, %505 : vector<8x128xf32>
    %509 = arith.mulf %500, %480 : vector<8x128xf32>
    %510 = arith.addf %508, %509 : vector<8x128xf32>
    %511 = arith.truncf %510 : vector<8x128xf32> to vector<8x128xbf16>
    %cst_83 = arith.constant dense<0.000000e+00> : vector<8x384xf32>
    %512 = tpu.matmul %511, %2, %cst_83 {dimension_numbers = #tpu.dot_dimension_numbers<[1], [0], [0], [1], [0, 0, 1, 1], [], []>} : vector<8x128xbf16>, vector<128x384xbf16>, vector<8x384xf32> -> vector<8x384xf32>
    %513 = arith.addf %512, %6 : vector<8x384xf32>
    %514 = vector.extract_strided_slice %479 {offsets = [0, 384], sizes = [8, 384], strides = [1, 1]} : vector<8x768xf32> to vector<8x384xf32>
    %515 = arith.addf %514, %10 : vector<8x384xf32>
    %516 = vector.extract_strided_slice %513 {offsets = [0, 0], sizes = [8, 128], strides = [1, 1]} : vector<8x384xf32> to vector<8x128xf32>
    %517 = vector.extract_strided_slice %515 {offsets = [0, 0], sizes = [8, 128], strides = [1, 1]} : vector<8x384xf32> to vector<8x128xf32>
    %518 = arith.addf %516, %517 : vector<8x128xf32>
    %519 = arith.negf %518 : vector<8x128xf32>
    %520 = math.exp %519 : vector<8x128xf32>
    %cst_84 = arith.constant 1.000000e+00 : f32
    %521 = vector.broadcast %cst_84 : f32 to vector<8x128xf32>
    %522 = arith.addf %521, %520 : vector<8x128xf32>
    %523 = arith.divf %521, %522 : vector<8x128xf32>
    %524 = vector.extract_strided_slice %513 {offsets = [0, 128], sizes = [8, 128], strides = [1, 1]} : vector<8x384xf32> to vector<8x128xf32>
    %525 = vector.extract_strided_slice %515 {offsets = [0, 128], sizes = [8, 128], strides = [1, 1]} : vector<8x384xf32> to vector<8x128xf32>
    %526 = arith.addf %524, %525 : vector<8x128xf32>
    %527 = arith.negf %526 : vector<8x128xf32>
    %528 = math.exp %527 : vector<8x128xf32>
    %cst_85 = arith.constant 1.000000e+00 : f32
    %529 = vector.broadcast %cst_85 : f32 to vector<8x128xf32>
    %530 = arith.addf %529, %528 : vector<8x128xf32>
    %531 = arith.divf %529, %530 : vector<8x128xf32>
    %532 = vector.extract_strided_slice %513 {offsets = [0, 256], sizes = [8, 128], strides = [1, 1]} : vector<8x384xf32> to vector<8x128xf32>
    %533 = vector.extract_strided_slice %515 {offsets = [0, 256], sizes = [8, 128], strides = [1, 1]} : vector<8x384xf32> to vector<8x128xf32>
    %534 = arith.mulf %523, %533 : vector<8x128xf32>
    %535 = arith.addf %532, %534 : vector<8x128xf32>
    %536 = math.tanh %535 : vector<8x128xf32>
    %cst_86 = arith.constant 1.000000e+00 : f32
    %537 = vector.broadcast %cst_86 : f32 to vector<8x128xf32>
    %538 = arith.subf %537, %531 : vector<8x128xf32>
    %539 = arith.mulf %538, %536 : vector<8x128xf32>
    %540 = arith.mulf %531, %481 : vector<8x128xf32>
    %541 = arith.addf %539, %540 : vector<8x128xf32>
    %542 = arith.select %19, %510, %480 : vector<8x128xi1>, vector<8x128xf32>
    %543 = arith.select %19, %541, %481 : vector<8x128xi1>, vector<8x128xf32>
    %544 = tpu.concatenate %542, %543 in 1 : vector<8x128xf32>, vector<8x128xf32> -> vector<8x256xf32>
    %545 = vector.extract_strided_slice %544 {offsets = [0, 128], sizes = [8, 128], strides = [1, 1]} : vector<8x256xf32> to vector<8x128xf32>
    %c0_87 = arith.constant 0 : index
    %c0_88 = arith.constant 0 : index
    %546 = vector.load %arg5[%c0_87, %c0_88] : memref<464x128xbf16, #tpu.memory_space<vmem>>, vector<8x128xbf16>
    %c16_89 = arith.constant 16 : index
    %c0_90 = arith.constant 0 : index
    %547 = vector.load %arg5[%c16_89, %c0_90] : memref<464x128xbf16, #tpu.memory_space<vmem>>, vector<8x128xbf16>
    %548 = arith.extf %547 : vector<8x128xbf16> to vector<8x128xf32>
    %c0_91 = arith.constant 0 : index
    %c0_92 = arith.constant 0 : index
    %549 = vector.load %arg0[%c0_91, %c0_92] : memref<8x8xf32, #tpu.memory_space<vmem>>, vector<8x8xf32>
    %550 = arith.truncf %549 : vector<8x8xf32> to vector<8x8xbf16>
    %cst_93 = arith.constant dense<0.000000e+00> : vector<8x128xf32>
    %551 = tpu.matmul %550, %546, %cst_93 {dimension_numbers = #tpu.dot_dimension_numbers<[1], [0], [0], [1], [0, 0, 1, 1], [], []>} : vector<8x8xbf16>, vector<8x128xbf16>, vector<8x128xf32> -> vector<8x128xf32>
    %552 = arith.addf %551, %548 : vector<8x128xf32>
    %cst_94 = arith.constant 0.000000e+00 : f32
    %553 = vector.broadcast %cst_94 : f32 to vector<8x128xf32>
    %554 = arith.maximumf %552, %553 : vector<8x128xf32>
    %555 = tpu.iota {dimensions = array<i32: 1>} : vector<8x136xi32>
    %556 = tpu.iota {dimensions = array<i32: 0>} : vector<8x136xi32>
    %cst_95 = arith.constant 0.000000e+00 : f32
    %557 = vector.broadcast %cst_95 : f32 to vector<8x136xf32>
    %c0_i32 = arith.constant 0 : i32
    %558 = vector.broadcast %c0_i32 : i32 to vector<8x136xi32>
    %559 = arith.cmpi eq, %556, %558 : vector<8x136xi32>
    %c0_96 = arith.constant 0 : index
    %c0_97 = arith.constant 0 : index
    %560 = memref.load %arg2[%c0_96, %c0_97] : memref<8x8xi32, #tpu.memory_space<smem>>
    %561 = vector.broadcast %560 : i32 to vector<8x136xi32>
    %562 = arith.cmpi eq, %555, %561 : vector<8x136xi32>
    %563 = arith.andi %559, %562 : vector<8x136xi1>
    %564 = arith.extui %563 : vector<8x136xi1> to vector<8x136xi32>
    %565 = arith.sitofp %564 : vector<8x136xi32> to vector<8x136xf32>
    %566 = arith.addf %557, %565 : vector<8x136xf32>
    %c0_i32_98 = arith.constant 0 : i32
    %567 = vector.broadcast %c0_i32_98 : i32 to vector<8x136xi32>
    %568 = arith.cmpi eq, %556, %567 : vector<8x136xi32>
    %c0_99 = arith.constant 0 : index
    %c1 = arith.constant 1 : index
    %569 = memref.load %arg2[%c0_99, %c1] : memref<8x8xi32, #tpu.memory_space<smem>>
    %570 = vector.broadcast %569 : i32 to vector<8x136xi32>
    %571 = arith.cmpi eq, %555, %570 : vector<8x136xi32>
    %572 = arith.andi %568, %571 : vector<8x136xi1>
    %573 = arith.extui %572 : vector<8x136xi1> to vector<8x136xi32>
    %574 = arith.sitofp %573 : vector<8x136xi32> to vector<8x136xf32>
    %575 = arith.addf %566, %574 : vector<8x136xf32>
    %c0_i32_100 = arith.constant 0 : i32
    %576 = vector.broadcast %c0_i32_100 : i32 to vector<8x136xi32>
    %577 = arith.cmpi eq, %556, %576 : vector<8x136xi32>
    %c0_101 = arith.constant 0 : index
    %c2 = arith.constant 2 : index
    %578 = memref.load %arg2[%c0_101, %c2] : memref<8x8xi32, #tpu.memory_space<smem>>
    %579 = vector.broadcast %578 : i32 to vector<8x136xi32>
    %580 = arith.cmpi eq, %555, %579 : vector<8x136xi32>
    %581 = arith.andi %577, %580 : vector<8x136xi1>
    %582 = arith.extui %581 : vector<8x136xi1> to vector<8x136xi32>
    %583 = arith.sitofp %582 : vector<8x136xi32> to vector<8x136xf32>
    %584 = arith.addf %575, %583 : vector<8x136xf32>
    %c0_i32_102 = arith.constant 0 : i32
    %585 = vector.broadcast %c0_i32_102 : i32 to vector<8x136xi32>
    %586 = arith.cmpi eq, %556, %585 : vector<8x136xi32>
    %c0_103 = arith.constant 0 : index
    %c3 = arith.constant 3 : index
    %587 = memref.load %arg2[%c0_103, %c3] : memref<8x8xi32, #tpu.memory_space<smem>>
    %588 = vector.broadcast %587 : i32 to vector<8x136xi32>
    %589 = arith.cmpi eq, %555, %588 : vector<8x136xi32>
    %590 = arith.andi %586, %589 : vector<8x136xi1>
    %591 = arith.extui %590 : vector<8x136xi1> to vector<8x136xi32>
    %592 = arith.sitofp %591 : vector<8x136xi32> to vector<8x136xf32>
    %593 = arith.addf %584, %592 : vector<8x136xf32>
    %c0_i32_104 = arith.constant 0 : i32
    %594 = vector.broadcast %c0_i32_104 : i32 to vector<8x136xi32>
    %595 = arith.cmpi eq, %556, %594 : vector<8x136xi32>
    %c0_105 = arith.constant 0 : index
    %c4 = arith.constant 4 : index
    %596 = memref.load %arg2[%c0_105, %c4] : memref<8x8xi32, #tpu.memory_space<smem>>
    %597 = vector.broadcast %596 : i32 to vector<8x136xi32>
    %598 = arith.cmpi eq, %555, %597 : vector<8x136xi32>
    %599 = arith.andi %595, %598 : vector<8x136xi1>
    %600 = arith.extui %599 : vector<8x136xi1> to vector<8x136xi32>
    %601 = arith.sitofp %600 : vector<8x136xi32> to vector<8x136xf32>
    %602 = arith.addf %593, %601 : vector<8x136xf32>
    %c1_i32 = arith.constant 1 : i32
    %603 = vector.broadcast %c1_i32 : i32 to vector<8x136xi32>
    %604 = arith.cmpi eq, %556, %603 : vector<8x136xi32>
    %c1_106 = arith.constant 1 : index
    %c0_107 = arith.constant 0 : index
    %605 = memref.load %arg2[%c1_106, %c0_107] : memref<8x8xi32, #tpu.memory_space<smem>>
    %606 = vector.broadcast %605 : i32 to vector<8x136xi32>
    %607 = arith.cmpi eq, %555, %606 : vector<8x136xi32>
    %608 = arith.andi %604, %607 : vector<8x136xi1>
    %609 = arith.extui %608 : vector<8x136xi1> to vector<8x136xi32>
    %610 = arith.sitofp %609 : vector<8x136xi32> to vector<8x136xf32>
    %611 = arith.addf %602, %610 : vector<8x136xf32>
    %c1_i32_108 = arith.constant 1 : i32
    %612 = vector.broadcast %c1_i32_108 : i32 to vector<8x136xi32>
    %613 = arith.cmpi eq, %556, %612 : vector<8x136xi32>
    %c1_109 = arith.constant 1 : index
    %c1_110 = arith.constant 1 : index
    %614 = memref.load %arg2[%c1_109, %c1_110] : memref<8x8xi32, #tpu.memory_space<smem>>
    %615 = vector.broadcast %614 : i32 to vector<8x136xi32>
    %616 = arith.cmpi eq, %555, %615 : vector<8x136xi32>
    %617 = arith.andi %613, %616 : vector<8x136xi1>
    %618 = arith.extui %617 : vector<8x136xi1> to vector<8x136xi32>
    %619 = arith.sitofp %618 : vector<8x136xi32> to vector<8x136xf32>
    %620 = arith.addf %611, %619 : vector<8x136xf32>
    %c1_i32_111 = arith.constant 1 : i32
    %621 = vector.broadcast %c1_i32_111 : i32 to vector<8x136xi32>
    %622 = arith.cmpi eq, %556, %621 : vector<8x136xi32>
    %c1_112 = arith.constant 1 : index
    %c2_113 = arith.constant 2 : index
    %623 = memref.load %arg2[%c1_112, %c2_113] : memref<8x8xi32, #tpu.memory_space<smem>>
    %624 = vector.broadcast %623 : i32 to vector<8x136xi32>
    %625 = arith.cmpi eq, %555, %624 : vector<8x136xi32>
    %626 = arith.andi %622, %625 : vector<8x136xi1>
    %627 = arith.extui %626 : vector<8x136xi1> to vector<8x136xi32>
    %628 = arith.sitofp %627 : vector<8x136xi32> to vector<8x136xf32>
    %629 = arith.addf %620, %628 : vector<8x136xf32>
    %c1_i32_114 = arith.constant 1 : i32
    %630 = vector.broadcast %c1_i32_114 : i32 to vector<8x136xi32>
    %631 = arith.cmpi eq, %556, %630 : vector<8x136xi32>
    %c1_115 = arith.constant 1 : index
    %c3_116 = arith.constant 3 : index
    %632 = memref.load %arg2[%c1_115, %c3_116] : memref<8x8xi32, #tpu.memory_space<smem>>
    %633 = vector.broadcast %632 : i32 to vector<8x136xi32>
    %634 = arith.cmpi eq, %555, %633 : vector<8x136xi32>
    %635 = arith.andi %631, %634 : vector<8x136xi1>
    %636 = arith.extui %635 : vector<8x136xi1> to vector<8x136xi32>
    %637 = arith.sitofp %636 : vector<8x136xi32> to vector<8x136xf32>
    %638 = arith.addf %629, %637 : vector<8x136xf32>
    %c1_i32_117 = arith.constant 1 : i32
    %639 = vector.broadcast %c1_i32_117 : i32 to vector<8x136xi32>
    %640 = arith.cmpi eq, %556, %639 : vector<8x136xi32>
    %c1_118 = arith.constant 1 : index
    %c4_119 = arith.constant 4 : index
    %641 = memref.load %arg2[%c1_118, %c4_119] : memref<8x8xi32, #tpu.memory_space<smem>>
    %642 = vector.broadcast %641 : i32 to vector<8x136xi32>
    %643 = arith.cmpi eq, %555, %642 : vector<8x136xi32>
    %644 = arith.andi %640, %643 : vector<8x136xi1>
    %645 = arith.extui %644 : vector<8x136xi1> to vector<8x136xi32>
    %646 = arith.sitofp %645 : vector<8x136xi32> to vector<8x136xf32>
    %647 = arith.addf %638, %646 : vector<8x136xf32>
    %648 = arith.truncf %647 : vector<8x136xf32> to vector<8x136xbf16>
    %c32_120 = arith.constant 32 : index
    %c0_121 = arith.constant 0 : index
    %649 = vector.load %arg5[%c32_120, %c0_121] : memref<464x128xbf16, #tpu.memory_space<vmem>>, vector<136x128xbf16>
    %cst_122 = arith.constant dense<0.000000e+00> : vector<8x128xf32>
    %650 = tpu.matmul %648, %649, %cst_122 {dimension_numbers = #tpu.dot_dimension_numbers<[1], [0], [0], [1], [0, 0, 1, 1], [], []>} : vector<8x136xbf16>, vector<136x128xbf16>, vector<8x128xf32> -> vector<8x128xf32>
    %c64_i32 = arith.constant 64 : i32
    %651 = vector.broadcast %c64_i32 : i32 to vector<8x128xi32>
    %652 = arith.cmpi slt, %17, %651 : vector<8x128xi32>
    %cst_123 = arith.constant 0.000000e+00 : f32
    %653 = vector.broadcast %cst_123 : f32 to vector<8x128xf32>
    %654 = arith.select %652, %545, %653 : vector<8x128xi1>, vector<8x128xf32>
    %655 = arith.addf %654, %554 : vector<8x128xf32>
    %656 = arith.truncf %655 : vector<8x128xf32> to vector<8x128xbf16>
    %c176_124 = arith.constant 176 : index
    %c0_125 = arith.constant 0 : index
    %657 = vector.load %arg5[%c176_124, %c0_125] : memref<464x128xbf16, #tpu.memory_space<vmem>>, vector<128x128xbf16>
    %cst_126 = arith.constant dense<0.000000e+00> : vector<8x128xf32>
    %658 = tpu.matmul %656, %657, %cst_126 {dimension_numbers = #tpu.dot_dimension_numbers<[1], [0], [0], [1], [0, 0, 1, 1], [], []>} : vector<8x128xbf16>, vector<128x128xbf16>, vector<8x128xf32> -> vector<8x128xf32>
    %659 = arith.addf %658, %650 : vector<8x128xf32>
    %c304 = arith.constant 304 : index
    %c0_127 = arith.constant 0 : index
    %660 = vector.load %arg5[%c304, %c0_127] : memref<464x128xbf16, #tpu.memory_space<vmem>>, vector<8x128xbf16>
    %661 = arith.extf %660 : vector<8x128xbf16> to vector<8x128xf32>
    %662 = arith.addf %659, %661 : vector<8x128xf32>
    %cst_128 = arith.constant 0.000000e+00 : f32
    %663 = vector.broadcast %cst_128 : f32 to vector<8x128xf32>
    %664 = arith.maximumf %662, %663 : vector<8x128xf32>
    %665 = arith.truncf %664 : vector<8x128xf32> to vector<8x128xbf16>
    %c320 = arith.constant 320 : index
    %c0_129 = arith.constant 0 : index
    %666 = vector.load %arg5[%c320, %c0_129] : memref<464x128xbf16, #tpu.memory_space<vmem>>, vector<128x128xbf16>
    %cst_130 = arith.constant dense<0.000000e+00> : vector<8x128xf32>
    %667 = tpu.matmul %665, %666, %cst_130 {dimension_numbers = #tpu.dot_dimension_numbers<[1], [0], [0], [1], [0, 0, 1, 1], [], []>} : vector<8x128xbf16>, vector<128x128xbf16>, vector<8x128xf32> -> vector<8x128xf32>
    %c448 = arith.constant 448 : index
    %c0_131 = arith.constant 0 : index
    %668 = vector.load %arg5[%c448, %c0_131] : memref<464x128xbf16, #tpu.memory_space<vmem>>, vector<8x128xbf16>
    %669 = arith.extf %668 : vector<8x128xbf16> to vector<8x128xf32>
    %670 = arith.addf %667, %669 : vector<8x128xf32>
    %c0_132 = arith.constant 0 : index
    %c0_133 = arith.constant 0 : index
    %671 = vector.load %arg6[%c0_132, %c0_133] : memref<8x128xf32, #tpu.memory_space<vmem>>, vector<8x128xf32>
    tpu.vector_store %arg6[%c0_132, %c0_133], %670 {strides = array<i32>} : memref<8x128xf32, #tpu.memory_space<vmem>>, vector<8x128xf32>,
    return
  }
}

</mosaic_0001>

<bundles_post_ra>
// kernel: schedule_model.1
= control target key start
LH: loop header
LB: loop body
LE: loop exit
PB: predicated region body
PF: predicated region fallthrough
CT: control target
= control target key end

     0   :  { %11 = vsyncpa [#allocation5], 0  ;;  %s7370_s0 = inlined_call_operand.vmem [shape: f32[8,8], index: 0, kind: input, shape index: {}]   ;;  %s7371_s1 = inlined_call_operand.vmem [shape: f32[64,16], index: 1, kind: input, shape index: {}]   ;;  %s7372_s2 = inlined_call_operand.vmem [shape: s32[8,8], index: 2, kind: input, shape index: {}]   ;;  %s7373_s3 = inlined_call_operand.hbm [shape: bf16[256,768], index: 3, kind: input, shape index: {}]   ;;  %s7374_s4 = inlined_call_operand.hbm [shape: bf16[208,384], index: 4, kind: input, shape index: {}]   ;;  %s7375_s5 = inlined_call_operand.vmem [shape: bf16[464,128], index: 5, kind: input, shape index: {}]   ;;  %s7376_s6 = inlined_call_operand.vmem [shape: f32[8,128], index: 6, kind: output, shape index: {}]  }
   0x1   :  { %12 = vsyncpa [#allocation4], 0  ;;  %s24_s23 = sshll.u32 %s7372_s2, 4  ;;  %s25_s23 = int_to_ptr.vmem [resolvable:$true] %s24_s23 }
   0x2   :  { %13 = vsyncpa [#allocation8], 0  ;;  %s4778_s24 = scalar_lea.vmem %s25_s23, 128  ;;  %p4783_p1 = scmp.lt.s32.totalorder %s25_s23, %s25_s23 }
   0x3   :  { %p4779_p0 = scmp.ne.s32.totalorder %s25_s23, %s4778_s24  ;;  %p4784_p2 = scmp.lt.s32.totalorder %s4778_s24, %s4778_s24 }
   0x5   :  { %p4785_p3 = por %p4784_p2, %p4783_p1 }
   0x7   :  { %p4786_p4 = pnand %p4785_p3, %p4779_p0 }
   0x9   :  { %4789 = shalt.err (!%p4786_p4)
}
   0xa   :  { %s4836_s25 = smov [#allocation3]   ;;  %s4837_s26 = smov [#allocation6]  }
   0xb   :  { %27 = dma.vmem_to_smem %s25_s23, 128, %s4836_s25, [#allocation5]  }
   0xc   :  { %s33_s27 = sshll.u32 %s4837_s26, 4  ;;  %s34_s27 = int_to_ptr.vmem [resolvable:$true] %s33_s27 }
   0xd   :  { %s4798_s28 = scalar_lea.vmem %s34_s27, 12288  ;;  %p4803_p6 = scmp.lt.s32.totalorder %s34_s27, %s34_s27 }
   0xe   :  { %p4799_p5 = scmp.ne.s32.totalorder %s34_s27, %s4798_s28  ;;  %p4804_p7 = scmp.lt.s32.totalorder %s4798_s28, %s4798_s28 }
  0x10   :  { %p4805_p8 = por %p4804_p7, %p4803_p6 }
  0x12   :  { %p4806_p9 = pnand %p4805_p8, %p4799_p5 }
  0x14   :  { %4809 = shalt.err (!%p4806_p9)
}
  0x15   :  { %s4838_s2 = smov 384   ;;  %s4839_s29 = smov 24  }
  0x16   :  { %39 = dma.hbm_to_vmem [thread:$0]  %s7373_s3, 12288, %s34_s27, [#allocation4], %s4838_s2, %s4838_s2, %s4839_s29  }
  0x17   :  { %s4840_s8 = smov [#allocation7]  }
  0x18   :  { %s45_s9 = sshll.u32 %s4840_s8, 4  ;;  %s46_s9 = int_to_ptr.vmem [resolvable:$true] %s45_s9 }
  0x19   :  { %s4818_s10 = scalar_lea.vmem %s46_s9, 4992  ;;  %p4823_p11 = scmp.lt.s32.totalorder %s46_s9, %s46_s9 }
  0x1a   :  { %p4819_p10 = scmp.ne.s32.totalorder %s46_s9, %s4818_s10  ;;  %p4824_p12 = scmp.lt.s32.totalorder %s4818_s10, %s4818_s10 }
  0x1c   :  { %p4825_p13 = por %p4824_p12, %p4823_p11 }
  0x1e   :  { %p4826_p0 = pnand %p4825_p13, %p4819_p10 }
  0x20   :  { %4829 = shalt.err (!%p4826_p0)
}
  0x21   :  { %s4841_s11 = smov 192   ;;  %s4842_s12 = smov 12  }
  0x22   :  { %51 = dma.hbm_to_vmem [thread:$0]  %s7374_s4, 4992, %s46_s9, [#allocation8], %s4841_s11, %s4841_s11, %s4842_s12  }
  0x23   :  { %4830 = dma.done.wait [#allocation5], 128  }
  0x24   :  { %4831 = vsyncadd [#allocation5], 4294967168 }
  0x25   :  { %4832 = dma.done.wait [#allocation4], 12288  }
  0x26   :  { %4833 = vsyncadd [#allocation4], 4294955008 }
  0x27   :  { %4834 = dma.done.wait [#allocation8], 4992  }
  0x28   :  { %4835 = vsyncadd [#allocation8], 4294962304 }
  0x29   :  { %63 = sfence }
  0x2a   :  { %v4166_v0 = vld [vmem:[#allocation7 + $0x4] ss:$12 sps:$4 sm:$0xff]   ;;  %v4168_v1 = vld [vmem:[#allocation7] ss:$12 sps:$4 sm:$0xff]   ;;  %v7377_v2 = vmov 0   ;;  %vm257_vm0 = vcmask 130048  }
  0x2b   :  { %302 = vmatprep.mubr.bf16.mxu0 %v7377_v2  ;;  %v217_v3 = vld [vmem:[%s7371_s1] sm:$0xff]  ;;  %v218_v4 = vld [vmem:[%s7371_s1 + $0x8] sm:$0xff]  ;;  %284 = vmatprep.subr.bf16.mxu0 %v4166_v0  ;;  %v4193_v14 = vld [vmem:[#allocation6 + $0x15c] ss:$24 sps:$4 sm:$0xff]   ;;  %vm4845_vm1 = vmmov 0   ;;  %vm3111_vm3 = vcmask 1043456  }
  0x2c   :  { %v225_v5 = vpack.c.bf16 %v218_v4, %v217_v3  ;;  %v4897_v6 = vld [vmem:[#allocation6 + $0x154] ss:$24 sps:$4 sm:$0xff]   ;;  %285 = vmatpush1.bf16.msra.mxu0 %v4168_v1  ;;  %v4899_v7 = vld [vmem:[#allocation6 + $0x150] ss:$24 sps:$4 sm:$0xff]   ;;  %v4902_v8 = vld [vmem:[#allocation6 + $0x124] ss:$24 sps:$4 sm:$0xff]  }
  0x2d   :  { %915 = vmatprep.subr.bf16.mxu0 %v4897_v6  ;;  %v4907_v9 = vld [vmem:[#allocation6 + $0x120] ss:$24 sps:$4 sm:$0xff]   ;;  %v4911_v10 = vld [vmem:[#allocation6 + $0xf4] ss:$24 sps:$4 sm:$0xff]   ;;  %v4914_v12 = vld [vmem:[#allocation6 + $0xf0] ss:$24 sps:$4 sm:$0xff]  }
  0x2e   :  { %3942 = vmatprep.mubr.msk.bf16.mxu1 %vm257_vm0, %v225_v5  ;;  %v4187_v11 = vld [vmem:[#allocation7 + $0x8] ss:$12 sps:$4 sm:$0xff]   ;;  %v4917_v13 = vld [vmem:[#allocation6 + $0xc4] ss:$24 sps:$4 sm:$0xff]   ;;  %v4926_v17 = vld [vmem:[#allocation6 + $0xc0] ss:$24 sps:$4 sm:$0xff]  }
  0x2f   :  { %3627 = vmatmul.mubr.msk.bf16.vlgmr.msra.gmra.mxu0 %vm257_vm0, %v225_v5  ;;  %3940 = vmatprep.subr.bf16.mxu1 %v4187_v11  ;;  %v219_v15 = vld [vmem:[%s7371_s1 + $0x10] sm:$0xff]  ;;  %v220_v16 = vld [vmem:[%s7371_s1 + $0x18] sm:$0xff]  ;;  %v4199_v21 = vld [vmem:[#allocation6 + $0x12c] ss:$24 sps:$4 sm:$0xff]   ;;  %vm3107_vm4 = vcmask 64512   ;;  %s3160_s10 = sld [smem:[#allocation3]] }
  0x30   :  { %916 = vmatpush1.bf16.msra.mxu0 %v4899_v7  ;;  %312 = vmatprep.mubr.bf16.mxu0 %v7377_v2  ;;  %v226_v18 = vpack.c.bf16 %v220_v16, %v219_v15  ;;  %v4196_v19 = vld [vmem:[#allocation6 + $0x158] ss:$24 sps:$4 sm:$0xff]   ;;  %v4929_v20 = vld [vmem:[#allocation6 + $0x94] ss:$24 sps:$4 sm:$0xff]   ;;  %v4202_v22 = vld [vmem:[#allocation6 + $0x128] ss:$24 sps:$4 sm:$0xff]  }
  0x31   :  { %917 = vmatprep.subr.bf16.mxu0 %v4902_v8  ;;  %3941 = vmatpush3.bf16.msra.mxu1 %v4187_v11  ;;  %v4935_v23 = vld [vmem:[#allocation6 + $0x90] ss:$24 sps:$4 sm:$0xff]   ;;  %v4938_v24 = vld [vmem:[#allocation6 + $0x64] ss:$24 sps:$4 sm:$0xff]   ;;  %v4940_v26 = vld [vmem:[#allocation6 + $0x60] ss:$24 sps:$4 sm:$0xff]  }
  0x32   :  { %956 = vmatprep.subr.bf16.mxu1 %v4193_v14  ;;  %v4205_v25 = vld [vmem:[#allocation6 + $0xfc] ss:$24 sps:$4 sm:$0xff]   ;;  %v4208_v27 = vld [vmem:[#allocation6 + $0xf8] ss:$24 sps:$4 sm:$0xff]   ;;  %v4211_v29 = vld [vmem:[#allocation6 + $0xcc] ss:$24 sps:$4 sm:$0xff]  }
  0x33   :  { %v4943_v28 = vld [vmem:[#allocation6 + $0x34] ss:$24 sps:$4 sm:$0xff]   ;;  %v221_v30 = vld [vmem:[%s7371_s1 + $0x20] sm:$0xff]  ;;  %v4952_v33 = vld [vmem:[#allocation6 + $0x30] ss:$24 sps:$4 sm:$0xff]   ;;  %s7072_s11 = sld [smem:[#allocation3 + $0x1]] }
  0x34   :  { %918 = vmatpush1.bf16.msra.mxu0 %v4907_v9  ;;  %3943 = vmatmul.mubr.msk.bf16.vlgmr.msra.gmra.mxu1 %vm257_vm0, %v226_v18  ;;  %v222_v31 = vld [vmem:[%s7371_s1 + $0x28] sm:$0xff]  ;;  %v4957_v35 = vld [vmem:[#allocation6 + $0x9c] ss:$24 sps:$4 sm:$0xff]   ;;  %v4963_v37 = vld [vmem:[#allocation6] ss:$24 sps:$4 sm:$0xff]   ;;  %s7077_s14 = sld [smem:[#allocation3 + $0x2]] }
  0x35   :  { %919 = vmatprep.subr.bf16.mxu0 %v4911_v10  ;;  %957 = vmatpush1.bf16.msra.mxu1 %v4196_v19  ;;  %v227_v32 = vpack.c.bf16 %v222_v31, %v221_v30  ;;  %v4954_v34 = vld [vmem:[#allocation6 + $0xc8] ss:$24 sps:$4 sm:$0xff]   ;;  %v4960_v36 = vld [vmem:[#allocation6 + $0x4] ss:$24 sps:$4 sm:$0xff]   ;;  %v4965_v38 = vld [vmem:[#allocation6 + $0x98] ss:$24 sps:$4 sm:$0xff]  }
  0x36   :  { %958 = vmatprep.subr.bf16.mxu1 %v4199_v21  ;;  %v223_v39 = vld [vmem:[%s7371_s1 + $0x30] sm:$0xff]  ;;  %v224_v40 = vld [vmem:[%s7371_s1 + $0x38] sm:$0xff]  ;;  %v4978_v41 = vld [vmem:[#allocation6 + $0x6c] ss:$24 sps:$4 sm:$0xff]   ;;  %s7082_s16 = sld [smem:[#allocation3 + $0x3]] }
  0x37   :  { %3628 = vmatmul.mubr.msk.bf16.gmra.mxu0 %vm257_vm0, %v226_v18  ;;  %3946 = vmatprep.mubr.msk.bf16.mxu1 %vm257_vm0, %v227_v32  ;;  %v228_v42 = vpack.c.bf16 %v224_v40, %v223_v39  ;;  %v4981_v43 = vld [vmem:[#allocation6 + $0x2d4] ss:$24 sps:$4 sm:$0xff]   ;;  %v4985_v44 = vld [vmem:[#allocation6 + $0x68] ss:$24 sps:$4 sm:$0xff]   ;;  %v4995_v47 = vld [vmem:[#allocation6 + $0x2a4] ss:$24 sps:$4 sm:$0xff]  }
  0x38   :  { %920 = vmatpush1.bf16.msra.mxu0 %v4914_v12  ;;  %322 = vmatprep.mubr.bf16.mxu0 %v7377_v2  ;;  %v4989_v45 = vld [vmem:[#allocation6 + $0x2d0] ss:$24 sps:$4 sm:$0xff]   ;;  %v4992_v46 = vld [vmem:[#allocation6 + $0x3c] ss:$24 sps:$4 sm:$0xff]   ;;  %v5003_v49 = vld [vmem:[#allocation6 + $0x2a0] ss:$24 sps:$4 sm:$0xff]  }
  0x39   :  { %921 = vmatprep.subr.bf16.mxu0 %v4917_v13  ;;  %959 = vmatpush1.bf16.msra.mxu1 %v4202_v22  ;;  %v5000_v48 = vld [vmem:[#allocation6 + $0x38] ss:$24 sps:$4 sm:$0xff]   ;;  %v5006_v50 = vld [vmem:[#allocation6 + $0xc] ss:$24 sps:$4 sm:$0xff]   ;;  %v5012_v52 = vld [vmem:[#allocation6 + $0x8] ss:$24 sps:$4 sm:$0xff]  }
  0x3a   :  { %960 = vmatprep.subr.bf16.mxu1 %v4205_v25  ;;  %v5009_v51 = vld [vmem:[#allocation6 + $0x274] ss:$24 sps:$4 sm:$0xff]   ;;  %v5015_v53 = vld [vmem:[#allocation6 + $0x270] ss:$24 sps:$4 sm:$0xff]   ;;  %v5021_v55 = vld [vmem:[#allocation6 + $0x244] ss:$24 sps:$4 sm:$0xff]  }
  0x3b   :  { %v5018_v54 = vld [vmem:[#allocation6 + $0x2dc] ss:$24 sps:$4 sm:$0xff]   ;;  %v5024_v56 = vld [vmem:[#allocation6 + $0x2d8] ss:$24 sps:$4 sm:$0xff]   ;;  %v5032_v59 = vld [vmem:[#allocation6 + $0x2ac] ss:$24 sps:$4 sm:$0xff]  }
  0x3c   :  { %922 = vmatpush1.bf16.msra.mxu0 %v4926_v17  ;;  %3947 = vmatmul.mubr.msk.bf16.gmra.mxu1 %vm257_vm0, %v228_v42  ;;  %v5027_v57 = vld [vmem:[#allocation6 + $0x240] ss:$24 sps:$4 sm:$0xff]   ;;  %v5029_v58 = vld [vmem:[#allocation6 + $0x214] ss:$24 sps:$4 sm:$0xff]   ;;  %v5037_v61 = vld [vmem:[#allocation6 + $0x210] ss:$24 sps:$4 sm:$0xff]  }
  0x3d   :  { %923 = vmatprep.subr.bf16.mxu0 %v4929_v20  ;;  %961 = vmatpush1.bf16.msra.mxu1 %v4208_v27  ;;  %v5035_v60 = vld [vmem:[#allocation6 + $0x2a8] ss:$24 sps:$4 sm:$0xff]   ;;  %v5039_v62 = vld [vmem:[#allocation6 + $0x27c] ss:$24 sps:$4 sm:$0xff]   ;;  %v5047_v0 = vld [vmem:[#allocation6 + $0x278] ss:$24 sps:$4 sm:$0xff]  }
  0x3e   :  { %962 = vmatprep.subr.bf16.mxu1 %v4211_v29  ;;  %988 = vmatprep.mubr.bf16.mxu1 %v7377_v2  ;;  %v5041_v63 = vld [vmem:[#allocation6 + $0x1e4] ss:$24 sps:$4 sm:$0xff]   ;;  %v5049_v1 = vld [vmem:[#allocation6 + $0x1e0] ss:$24 sps:$4 sm:$0xff]   ;;  %v5053_v4 = vld [vmem:[#allocation6 + $0x1b4] ss:$24 sps:$4 sm:$0xff]  }
  0x3f   :  { %3629 = vmatmul.mubr.msk.bf16.gmra.mxu0 %vm257_vm0, %v227_v32  ;;  %v5051_v3 = vld [vmem:[#allocation6 + $0x24c] ss:$24 sps:$4 sm:$0xff]   ;;  %v5059_v5 = vld [vmem:[#allocation6 + $0x248] ss:$24 sps:$4 sm:$0xff]   ;;  %v5063_v14 = vld [vmem:[#allocation6 + $0x21c] ss:$24 sps:$4 sm:$0xff]  }
  0x40   :  { %924 = vmatpush1.bf16.msra.mxu0 %v4935_v23  ;;  %332 = vmatprep.mubr.bf16.mxu0 %v7377_v2  ;;  %v5061_v11 = vld [vmem:[#allocation6 + $0x1b0] ss:$24 sps:$4 sm:$0xff]   ;;  %v5065_v15 = vld [vmem:[#allocation6 + $0x184] ss:$24 sps:$4 sm:$0xff]   ;;  %v5073_v18 = vld [vmem:[#allocation6 + $0x180] ss:$24 sps:$4 sm:$0xff]  }
  0x41   :  { %925 = vmatprep.subr.bf16.mxu0 %v4938_v24  ;;  %963 = vmatpush1.bf16.msra.mxu1 %v4954_v34  ;;  %v5071_v16 = vld [vmem:[#allocation6 + $0x218] ss:$24 sps:$4 sm:$0xff]   ;;  %v5075_v19 = vld [vmem:[#allocation6 + $0x1ec] ss:$24 sps:$4 sm:$0xff]   ;;  %v5081_v21 = vld [vmem:[#allocation6 + $0x1e8] ss:$24 sps:$4 sm:$0xff]  }
  0x42   :  { %964 = vmatprep.subr.bf16.mxu1 %v4957_v35  ;;  %7775 = vst [vmem:[#allocation12_spill] sm:$0xff] %v5075_v19  ;;  %7776 = vst [vmem:[#allocation13_spill] sm:$0xff] %v5081_v21  ;;  %v5083_v22 = vld [vmem:[#allocation6 + $0x1bc] ss:$24 sps:$4 sm:$0xff]   ;;  %v5088_v25 = vld [vmem:[#allocation6 + $0x1b8] ss:$24 sps:$4 sm:$0xff]  }
  0x43   :  { %7777 = vst [vmem:[#allocation14_spill] sm:$0xff] %v5083_v22  ;;  %7778 = vst [vmem:[#allocation15_spill] sm:$0xff] %v5088_v25  ;;  %v5093_v27 = vld [vmem:[#allocation6 + $0x18c] ss:$24 sps:$4 sm:$0xff]   ;;  %v5096_v29 = vld [vmem:[#allocation6 + $0x188] ss:$24 sps:$4 sm:$0xff]  }
  0x44   :  { %926 = vmatpush1.bf16.msra.mxu0 %v4940_v26  ;;  %7779 = vst [vmem:[#allocation16_spill] sm:$0xff] %v5093_v27  ;;  %7780 = vst [vmem:[#allocation17_spill] sm:$0xff] %v5096_v29  ;;  %v5103_v30 = vld [vmem:[#allocation6 + $0x164] ss:$24 sps:$4 sm:$0xff]   ;;  %v5106_v31 = vld [vmem:[#allocation6 + $0x160] ss:$24 sps:$4 sm:$0xff]  }
  0x45   :  { %927 = vmatprep.subr.bf16.mxu0 %v4943_v28  ;;  %965 = vmatpush1.bf16.msra.mxu1 %v4965_v38  ;;  %7781 = vst [vmem:[#allocation18_spill] sm:$0xff] %v5106_v31  ;;  %v5109_v32 = vld [vmem:[#allocation6 + $0x134] ss:$24 sps:$4 sm:$0xff]   ;;  %v5111_v39 = vld [vmem:[#allocation6 + $0x130] ss:$24 sps:$4 sm:$0xff]   ;;  %s7091_s18 = sld [smem:[#allocation3 + $0x4]] }
  0x46   :  { %966 = vmatprep.subr.bf16.mxu1 %v4978_v41  ;;  %7782 = vst [vmem:[#allocation19_spill] sm:$0xff] %v5109_v32  ;;  %7783 = vst [vmem:[#allocation20_spill] sm:$0xff] %v5111_v39  ;;  %v5115_v40 = vld [vmem:[#allocation6 + $0x104] ss:$24 sps:$4 sm:$0xff]   ;;  %s7104_s21 = sld [smem:[#allocation3 + $0x80]] }
  0x47   :  { %3630 = vmatmul.mubr.msk.bf16.gmra.mxu0 %vm257_vm0, %v228_v42  ;;  %7784 = vst [vmem:[#allocation21_spill] sm:$0xff] %v5115_v40  ;;  %v5117_v42 = vld [vmem:[#allocation6 + $0x100] ss:$24 sps:$4 sm:$0xff]   ;;  %s7123_s24 = sld [smem:[#allocation3 + $0x81]] }
  0x48   :  { %928 = vmatpush1.bf16.msra.mxu0 %v4952_v33  ;;  %947 = vmatprep.mubr.bf16.mxu0 %v7377_v2  ;;  %7785 = vst [vmem:[#allocation22_spill] sm:$0xff] %v5117_v42  ;;  %s7143_s1 = sld [smem:[#allocation3 + $0x82]] }
  0x49   :  { %929 = vmatprep.subr.bf16.mxu0 %v4960_v36  ;;  %967 = vmatpush1.bf16.msra.mxu1 %v4985_v44  ;;  %s7161_s30 = sld [smem:[#allocation3 + $0x83]] }
  0x4a   :  { %968 = vmatprep.subr.bf16.mxu1 %v4992_v46  ;;  %s7185_s8 = sld [smem:[#allocation3 + $0x84]] }
  0x4c   :  { %930 = vmatpush1.bf16.msra.mxu0 %v4963_v37 }
  0x4d   :  { %931 = vmatprep.subr.bf16.mxu0 %v4981_v43  ;;  %969 = vmatpush1.bf16.msra.mxu1 %v5000_v48 }
  0x4e   :  { %970 = vmatprep.subr.bf16.mxu1 %v5006_v50 }
  0x50   :  { %932 = vmatpush2.bf16.msra.mxu0 %v4989_v45 }
  0x51   :  { %933 = vmatprep.subr.bf16.mxu0 %v4995_v47  ;;  %971 = vmatpush1.bf16.msra.mxu1 %v5012_v52 }
  0x52   :  { %972 = vmatprep.subr.bf16.mxu1 %v5018_v54 }
  0x54   :  { %934 = vmatpush2.bf16.msra.mxu0 %v5003_v49 }
  0x55   :  { %935 = vmatprep.subr.bf16.mxu0 %v5009_v51  ;;  %973 = vmatpush2.bf16.msra.mxu1 %v5024_v56 }
  0x56   :  { %974 = vmatprep.subr.bf16.mxu1 %v5032_v59 }
  0x58   :  { %936 = vmatpush2.bf16.msra.mxu0 %v5015_v53 }
  0x59   :  { %937 = vmatprep.subr.bf16.mxu0 %v5021_v55  ;;  %975 = vmatpush2.bf16.msra.mxu1 %v5035_v60 }
  0x5a   :  { %976 = vmatprep.subr.bf16.mxu1 %v5039_v62 }
  0x5c   :  { %938 = vmatpush2.bf16.msra.mxu0 %v5027_v57 }
  0x5d   :  { %939 = vmatprep.subr.bf16.mxu0 %v5029_v58  ;;  %977 = vmatpush2.bf16.msra.mxu1 %v5047_v0 }
  0x5e   :  { %978 = vmatprep.subr.bf16.mxu1 %v5051_v3 }
  0x60   :  { %940 = vmatpush2.bf16.msra.mxu0 %v5037_v61 }
  0x61   :  { %941 = vmatprep.subr.bf16.mxu0 %v5041_v63  ;;  %979 = vmatpush2.bf16.msra.mxu1 %v5059_v5 }
  0x62   :  { %980 = vmatprep.subr.bf16.mxu1 %v5063_v14 }
  0x64   :  { %942 = vmatpush2.bf16.msra.mxu0 %v5049_v1 }
  0x65   :  { %943 = vmatprep.subr.bf16.mxu0 %v5053_v4  ;;  %981 = vmatpush2.bf16.msra.mxu1 %v5071_v16 }
  0x66   :  { %982 = vmatprep.subr.bf16.mxu1 %v5075_v19 }
  0x68   :  { %944 = vmatpush2.bf16.msra.mxu0 %v5061_v11 }
  0x69   :  { %945 = vmatprep.subr.bf16.mxu0 %v5065_v15  ;;  %983 = vmatpush2.bf16.msra.mxu1 %v5081_v21 }
  0x6a   :  { %984 = vmatprep.subr.bf16.mxu1 %v5083_v22  ;;  %v5217_v22 = vld [vmem:[#allocation7 + $0x34] ss:$12 sps:$4 sm:$0xff]  }
  0x6b   :  { %7819 = vst [vmem:[#allocation56_spill] sm:$0xff] %v5217_v22 }
  0x6c   :  { %946 = vmatpush2.bf16.msra.mxu0 %v5073_v18 }
  0x6d   :  { %985 = vmatpush2.bf16.msra.mxu1 %v5088_v25  ;;  %997 = vmatprep.subr.bf16.mxu0 %v5103_v30  ;;  %v5201_v25 = vld [vmem:[#allocation6 + $0x224] ss:$24 sps:$4 sm:$0xff]  }
  0x6e   :  { %986 = vmatprep.subr.bf16.mxu1 %v5093_v27  ;;  %v5152_v27 = vld [vmem:[#allocation7 + $0xc0] ss:$12 sps:$4 sm:$0xff]   ;;  %7814 = vst [vmem:[#allocation51_spill] sm:$0xff] %v5201_v25 }
  0x6f   :  { %948 = vmatmul.mubr.bf16.vlgmr.msra.gmra.mxu0 %v7377_v2  ;;  %7797 = vst [vmem:[#allocation34_spill] sm:$0xff] %v5152_v27 }
  0x70   :  { %1029 = vmatprep.mubr.bf16.mxu0 %v7377_v2  ;;  %998 = vmatpush1.bf16.msra.mxu0 %v5106_v31  ;;  %v5127_v31 = vld [vmem:[#allocation6 + $0xa4] ss:$24 sps:$4 sm:$0xff]  }
  0x71   :  { %987 = vmatpush2.bf16.msra.mxu1 %v5096_v29  ;;  %999 = vmatprep.subr.bf16.mxu0 %v5109_v32  ;;  %v5123_v29 = vld [vmem:[#allocation6 + $0xd0] ss:$24 sps:$4 sm:$0xff]   ;;  %7788 = vst [vmem:[#allocation25_spill] sm:$0xff] %v5127_v31  ;;  %v5129_v32 = vld [vmem:[#allocation6 + $0xa0] ss:$24 sps:$4 sm:$0xff]  }
  0x72   :  { %7787 = vst [vmem:[#allocation24_spill] sm:$0xff] %v5123_v29  ;;  %7789 = vst [vmem:[#allocation26_spill] sm:$0xff] %v5129_v32 }
  0x74   :  { %989 = vmatmul.mubr.bf16.vlgmr.msra.gmra.mxu1 %v7377_v2  ;;  %1000 = vmatpush1.bf16.msra.mxu0 %v5111_v39  ;;  %v5133_v39 = vld [vmem:[#allocation6 + $0x74] ss:$24 sps:$4 sm:$0xff]  }
  0x75   :  { %1226 = vmatprep.mubr.bf16.mxu1 %v7377_v2  ;;  %1001 = vmatprep.subr.bf16.mxu0 %v5115_v40  ;;  %v5121_v2 = vld [vmem:[#allocation6 + $0xd4] ss:$24 sps:$4 sm:$0xff]   ;;  %7790 = vst [vmem:[#allocation27_spill] sm:$0xff] %v5133_v39  ;;  %v5135_v40 = vld [vmem:[#allocation6 + $0x70] ss:$24 sps:$4 sm:$0xff]  }
  0x76   :  { %7786 = vst [vmem:[#allocation23_spill] sm:$0xff] %v5121_v2  ;;  %7791 = vst [vmem:[#allocation28_spill] sm:$0xff] %v5135_v40 }
  0x78   :  { %1002 = vmatpush1.bf16.msra.mxu0 %v5117_v42  ;;  %v5139_v42 = vld [vmem:[#allocation6 + $0x44] ss:$24 sps:$4 sm:$0xff]  }
  0x79   :  { %1003 = vmatprep.subr.bf16.mxu0 %v5121_v2  ;;  %7792 = vst [vmem:[#allocation29_spill] sm:$0xff] %v5139_v42  ;;  %v5141_v2 = vld [vmem:[#allocation6 + $0x40] ss:$24 sps:$4 sm:$0xff]  }
  0x7a   :  { %7793 = vst [vmem:[#allocation30_spill] sm:$0xff] %v5141_v2 }
  0x7c   :  { %1004 = vmatpush1.bf16.msra.mxu0 %v5123_v29  ;;  %v5145_v29 = vld [vmem:[#allocation6 + $0x14] ss:$24 sps:$4 sm:$0xff]  }
  0x7d   :  { %1005 = vmatprep.subr.bf16.mxu0 %v5127_v31  ;;  %7794 = vst [vmem:[#allocation31_spill] sm:$0xff] %v5145_v29  ;;  %v5147_v31 = vld [vmem:[#allocation6 + $0x10] ss:$24 sps:$4 sm:$0xff]  }
  0x7e   :  { %7795 = vst [vmem:[#allocation32_spill] sm:$0xff] %v5147_v31 }
  0x80   :  { %1006 = vmatpush1.bf16.msra.mxu0 %v5129_v32  ;;  %v5149_v32 = vld [vmem:[#allocation7 + $0xc4] ss:$12 sps:$4 sm:$0xff]  }
  0x81   :  { %1007 = vmatprep.subr.bf16.mxu0 %v5133_v39  ;;  %7796 = vst [vmem:[#allocation33_spill] sm:$0xff] %v5149_v32  ;;  %1194 = vmatprep.subr.bf16.mxu1 %v5149_v32  ;;  %v5164_v39 = vld [vmem:[#allocation7 + $0xa8] ss:$12 sps:$4 sm:$0xff]   ;;  %v5176_v32 = vld [vmem:[#allocation7 + $0x90] ss:$12 sps:$4 sm:$0xff]  }
  0x82   :  { %1195 = vmatpush1.bf16.msra.mxu1 %v5152_v27  ;;  %7801 = vst [vmem:[#allocation38_spill] sm:$0xff] %v5164_v39  ;;  %v5173_v27 = vld [vmem:[#allocation7 + $0x94] ss:$12 sps:$4 sm:$0xff]   ;;  %7805 = vst [vmem:[#allocation42_spill] sm:$0xff] %v5176_v32 }
  0x83   :  { %7804 = vst [vmem:[#allocation41_spill] sm:$0xff] %v5173_v27 }
  0x84   :  { %1008 = vmatpush1.bf16.msra.mxu0 %v5135_v40  ;;  %v5157_v40 = vld [vmem:[#allocation6 + $0x2e4] ss:$24 sps:$4 sm:$0xff]  }
  0x85   :  { %1009 = vmatprep.subr.bf16.mxu0 %v5139_v42  ;;  %7798 = vst [vmem:[#allocation35_spill] sm:$0xff] %v5157_v40  ;;  %v5159_v42 = vld [vmem:[#allocation6 + $0x2e0] ss:$24 sps:$4 sm:$0xff]  }
  0x86   :  { %7799 = vst [vmem:[#allocation36_spill] sm:$0xff] %v5159_v42 }
  0x88   :  { %1010 = vmatpush1.bf16.msra.mxu0 %v5141_v2  ;;  %v5161_v2 = vld [vmem:[#allocation7 + $0xac] ss:$12 sps:$4 sm:$0xff]  }
  0x89   :  { %1011 = vmatprep.subr.bf16.mxu0 %v5145_v29  ;;  %7800 = vst [vmem:[#allocation37_spill] sm:$0xff] %v5161_v2  ;;  %1196 = vmatprep.subr.bf16.mxu1 %v5161_v2  ;;  %v5171_v29 = vld [vmem:[#allocation6 + $0x2b0] ss:$24 sps:$4 sm:$0xff]   ;;  %v5188_v2 = vld [vmem:[#allocation7 + $0x78] ss:$12 sps:$4 sm:$0xff]  }
  0x8a   :  { %1197 = vmatpush1.bf16.msra.mxu1 %v5164_v39  ;;  %7803 = vst [vmem:[#allocation40_spill] sm:$0xff] %v5171_v29  ;;  %v5185_v39 = vld [vmem:[#allocation7 + $0x7c] ss:$12 sps:$4 sm:$0xff]   ;;  %7809 = vst [vmem:[#allocation46_spill] sm:$0xff] %v5188_v2 }
  0x8b   :  { %1198 = vmatprep.subr.bf16.mxu1 %v5173_v27  ;;  %7808 = vst [vmem:[#allocation45_spill] sm:$0xff] %v5185_v39  ;;  %v5199_v27 = vld [vmem:[#allocation7 + $0x60] ss:$12 sps:$4 sm:$0xff]  }
  0x8c   :  { %1012 = vmatpush1.bf16.msra.mxu0 %v5147_v31  ;;  %v5169_v31 = vld [vmem:[#allocation6 + $0x2b4] ss:$24 sps:$4 sm:$0xff]   ;;  %7813 = vst [vmem:[#allocation50_spill] sm:$0xff] %v5199_v27 }
  0x8d   :  { %1013 = vmatprep.subr.bf16.mxu0 %v5157_v40  ;;  %7802 = vst [vmem:[#allocation39_spill] sm:$0xff] %v5169_v31  ;;  %v5183_v40 = vld [vmem:[#allocation6 + $0x280] ss:$24 sps:$4 sm:$0xff]  }
  0x8e   :  { %1199 = vmatpush1.bf16.msra.mxu1 %v5176_v32  ;;  %7807 = vst [vmem:[#allocation44_spill] sm:$0xff] %v5183_v40  ;;  %v5197_v32 = vld [vmem:[#allocation7 + $0x64] ss:$12 sps:$4 sm:$0xff]  }
  0x8f   :  { %1200 = vmatprep.subr.bf16.mxu1 %v5185_v39  ;;  %7812 = vst [vmem:[#allocation49_spill] sm:$0xff] %v5197_v32  ;;  %v5214_v39 = vld [vmem:[#allocation6 + $0x1f4] ss:$24 sps:$4 sm:$0xff]  }
  0x90   :  { %1014 = vmatpush2.bf16.msra.mxu0 %v5159_v42  ;;  %v5181_v42 = vld [vmem:[#allocation6 + $0x284] ss:$24 sps:$4 sm:$0xff]   ;;  %7818 = vst [vmem:[#allocation55_spill] sm:$0xff] %v5214_v39 }
  0x91   :  { %1015 = vmatprep.subr.bf16.mxu0 %v5169_v31  ;;  %7806 = vst [vmem:[#allocation43_spill] sm:$0xff] %v5181_v42  ;;  %v5195_v31 = vld [vmem:[#allocation6 + $0x250] ss:$24 sps:$4 sm:$0xff]  }
  0x92   :  { %1201 = vmatpush1.bf16.msra.mxu1 %v5188_v2  ;;  %7811 = vst [vmem:[#allocation48_spill] sm:$0xff] %v5195_v31  ;;  %v5212_v2 = vld [vmem:[#allocation7 + $0x48] ss:$12 sps:$4 sm:$0xff]  }
  0x93   :  { %1202 = vmatprep.subr.bf16.mxu1 %v5197_v32  ;;  %7817 = vst [vmem:[#allocation54_spill] sm:$0xff] %v5212_v2  ;;  %v7829_v32 = vmov 0  }
  0x94   :  { %1016 = vmatpush2.bf16.msra.mxu0 %v5171_v29  ;;  %v5193_v29 = vld [vmem:[#allocation6 + $0x254] ss:$24 sps:$4 sm:$0xff]  }
  0x95   :  { %1017 = vmatprep.subr.bf16.mxu0 %v5181_v42  ;;  %7810 = vst [vmem:[#allocation47_spill] sm:$0xff] %v5193_v29  ;;  %v5205_v42 = vld [vmem:[#allocation7 + $0x4c] ss:$12 sps:$4 sm:$0xff]  }
  0x96   :  { %7815 = vst [vmem:[#allocation52_spill] sm:$0xff] %v5205_v42  ;;  %1203 = vmatpush1.bf16.msra.mxu1 %v5199_v27  ;;  %v5226_v27 = vld [vmem:[#allocation6 + $0x1c4] ss:$24 sps:$4 sm:$0xff]  }
  0x97   :  { %1204 = vmatprep.subr.bf16.mxu1 %v5205_v42  ;;  %7822 = vst [vmem:[#allocation59_spill] sm:$0xff] %v5226_v27  ;;  %v5232_v42 = vld [vmem:[#allocation6 + $0x1c0] ss:$24 sps:$4 sm:$0xff]  }
  0x98   :  { %1018 = vmatpush2.bf16.msra.mxu0 %v5183_v40  ;;  %v5208_v40 = vld [vmem:[#allocation6 + $0x220] ss:$24 sps:$4 sm:$0xff]   ;;  %7824 = vst [vmem:[#allocation61_spill] sm:$0xff] %v5232_v42 }
  0x99   :  { %1019 = vmatprep.subr.bf16.mxu0 %v5193_v29  ;;  %7816 = vst [vmem:[#allocation53_spill] sm:$0xff] %v5208_v40  ;;  %v5220_v29 = vld [vmem:[#allocation6 + $0x1f0] ss:$24 sps:$4 sm:$0xff]  }
  0x9a   :  { %7820 = vst [vmem:[#allocation57_spill] sm:$0xff] %v5220_v29  ;;  %1205 = vmatpush1.bf16.msra.mxu1 %v5212_v2  ;;  %v5238_v2 = vld [vmem:[#allocation6 + $0x194] ss:$24 sps:$4 sm:$0xff]  }
  0x9b   :  { %1206 = vmatprep.subr.bf16.mxu1 %v5217_v22  ;;  %7826 = vst [vmem:[#allocation63_spill] sm:$0xff] %v5238_v2  ;;  %v5242_v22 = vld [vmem:[#allocation6 + $0x190] ss:$24 sps:$4 sm:$0xff]  }
  0x9c   :  { %1020 = vmatpush2.bf16.msra.mxu0 %v5195_v31  ;;  %v5224_v31 = vld [vmem:[#allocation7 + $0x30] ss:$12 sps:$4 sm:$0xff]   ;;  %7827 = vst [vmem:[#allocation64_spill] sm:$0xff] %v5242_v22 }
  0x9d   :  { %1021 = vmatprep.subr.bf16.mxu0 %v5201_v25  ;;  %7821 = vst [vmem:[#allocation58_spill] sm:$0xff] %v5224_v31  ;;  %v5229_v25 = vld [vmem:[#allocation7 + $0x1c] ss:$12 sps:$4 sm:$0xff]  }
  0x9e   :  { %7823 = vst [vmem:[#allocation60_spill] sm:$0xff] %v5229_v25  ;;  %1207 = vmatpush1.bf16.msra.mxu1 %v5224_v31  ;;  %v197_v31 = vld [vmem:[#allocation7 + $0xd8] sm:$0x11] }
  0x9f   :  { %1208 = vmatprep.subr.bf16.mxu1 %v5229_v25  ;;  %v199_v25 = vunpack.c.l.bf16 %v197_v31 }
  0xa0   :  { %1022 = vmatpush2.bf16.msra.mxu0 %v5208_v40  ;;  %v5236_v40 = vld [vmem:[#allocation7 + $0x18] ss:$12 sps:$4 sm:$0xff]  }
  0xa1   :  { %1023 = vmatprep.subr.bf16.mxu0 %v5214_v39  ;;  %7825 = vst [vmem:[#allocation62_spill] sm:$0xff] %v5236_v40  ;;  %v7437_v39 = vlaneseq }
  0xa2   :  { %1209 = vmatpush1.bf16.msra.mxu1 %v5236_v40  ;;  %v198_v40 = vld [vmem:[#allocation7 + $0xe0] sm:$0x1] }
  0xa3   :  { %v201_v19 = vunpack.c.l.bf16 %v198_v40 }
  0xa4   :  { %1024 = vmatpush2.bf16.msra.mxu0 %v5220_v29  ;;  %v7438_v29 = vmov 0.0  }
  0xa5   :  { %1025 = vmatprep.subr.bf16.mxu0 %v5226_v27  ;;  %3950 = vmatprep.subr.bf16.mxu1 %v7438_v29  ;;  %v5248_v27 = vshrl.u32 %v7437_v39, 7 }
  0xa7   :  { %7828 = vst [vmem:[#allocation65_spill] sm:$0xff] %v5248_v27 }
  0xa8   :  { %1026 = vmatpush2.bf16.msra.mxu0 %v5232_v42  ;;  %v231_v42 = vsub.s32 0, %v5248_v27 }
  0xa9   :  { %1027 = vmatprep.subr.bf16.mxu0 %v5238_v2  ;;  %v200_v2 = vunpack.c.h.bf16 %v197_v31 }
  0xaa   :  { %v5260_v29 = vrot.slane %v199_v25, %v231_v42 }
  0xac   :  { %1028 = vmatpush2.bf16.msra.mxu0 %v5242_v22 }
  0xad   :  { %1300 = vmatprep.subr.bf16.mxu0 %v4897_v6  ;;  %v5263_v6 = vrot.slane %v200_v2, %v231_v42 }
  0xaf   :  { %1030 = vmatmul.mubr.bf16.vlgmr.msra.gmra.mxu0 %v7829_v32 }
  0xb0   :  { %1301 = vmatpush1.bf16.msra.mxu0 %v4899_v7 }
  0xb1   :  { %1302 = vmatprep.subr.bf16.mxu0 %v4902_v8  ;;  %v5272_v8 = vrot.slane %v201_v19, %v231_v42 }
  0xb4   :  { %1303 = vmatpush1.bf16.msra.mxu0 %v4907_v9 }
  0xb5   :  { %1304 = vmatprep.subr.bf16.mxu0 %v4911_v10 }
  0xb8   :  { %1305 = vmatpush1.bf16.msra.mxu0 %v4914_v12 }
  0xb9   :  { %1306 = vmatprep.subr.bf16.mxu0 %v4917_v13 }
  0xbc   :  { %1307 = vmatpush1.bf16.msra.mxu0 %v4926_v17 }
  0xbd   :  { %1308 = vmatprep.subr.bf16.mxu0 %v4929_v20 }
  0xc0   :  { %1309 = vmatpush1.bf16.msra.mxu0 %v4935_v23 }
  0xc1   :  { %1310 = vmatprep.subr.bf16.mxu0 %v4938_v24 }
  0xc4   :  { %1311 = vmatpush1.bf16.msra.mxu0 %v4940_v26 }
  0xc5   :  { %1312 = vmatprep.subr.bf16.mxu0 %v4943_v28 }
  0xc8   :  { %1313 = vmatpush1.bf16.msra.mxu0 %v4952_v33 }
  0xc9   :  { %1314 = vmatprep.subr.bf16.mxu0 %v4960_v36 }
  0xcc   :  { %1315 = vmatpush1.bf16.msra.mxu0 %v4963_v37 }
  0xcd   :  { %1316 = vmatprep.subr.bf16.mxu0 %v4981_v43 }
  0xd0   :  { %1317 = vmatpush2.bf16.msra.mxu0 %v4989_v45  ;;  %v207_v45 = vld [vmem:[#allocation7 + $0x108] sm:$0xff] }
  0xd1   :  { %1318 = vmatprep.subr.bf16.mxu0 %v4995_v47  ;;  %v5360_v47 = vunpack.c.l.bf16 %v207_v45 }
  0xd3   :  { %7848 = vst [vmem:[#allocation84_spill] sm:$0xff] %v5360_v47 }
  0xd4   :  { %1319 = vmatpush2.bf16.msra.mxu0 %v5003_v49 }
  0xd5   :  { %1320 = vmatprep.subr.bf16.mxu0 %v5009_v51 }
  0xd8   :  { %1321 = vmatpush2.bf16.msra.mxu0 %v5015_v53 }
  0xd9   :  { %1322 = vmatprep.subr.bf16.mxu0 %v5021_v55  ;;  %v5366_v55 = vunpack.c.h.bf16 %v207_v45  ;;  %v5373_v45 = vld [vmem:[#allocation7 + $0x110] ss:$24 sps:$4 sm:$0xff]  }
  0xdc   :  { %1323 = vmatpush2.bf16.msra.mxu0 %v5027_v57 }
  0xdd   :  { %1324 = vmatprep.subr.bf16.mxu0 %v5029_v58 }
  0xe0   :  { %1325 = vmatpush2.bf16.msra.mxu0 %v5037_v61 }
  0xe1   :  { %1326 = vmatprep.subr.bf16.mxu0 %v5041_v63 }
  0xe4   :  { %1327 = vmatpush2.bf16.msra.mxu0 %v5049_v1 }
  0xe5   :  { %1328 = vmatprep.subr.bf16.mxu0 %v5053_v4 }
  0xe8   :  { %1329 = vmatpush2.bf16.msra.mxu0 %v5061_v11 }
  0xe9   :  { %1330 = vmatprep.subr.bf16.mxu0 %v5065_v15 }
  0xec   :  { %1331 = vmatpush2.bf16.msra.mxu0 %v5073_v18 }
  0xed   :  { %1382 = vmatprep.subr.bf16.mxu0 %v5103_v30 }
  0xef   :  { %v5254_v21 = vpop.f32.mrf.mxu0 }
  0xf0   :  { %v305_v51 = vadd.f32 %v5254_v21, %v5260_v29 }
  0xf1   :  { %v5258_v39 = vpop.f32.mrf.mxu0 }
  0xf2   :  { %v307_v11 = vadd.f32 %v5258_v39, %v5263_v6 }
  0xf3   :  { %v308_v22 = vpop.f32.mrf.mxu0 }
  0xf4   :  { %v5266_v27 = vadd.f32 %v308_v22, %v5260_v29  ;;  %v3944_v25 = vpop.f32.mrf.mxu1 }
  0xf5   :  { %v310_v7 = vpop.f32.mrf.mxu0  ;;  %v5277_v2 = vadd.f32 %v3944_v25, %v5272_v8 }
  0xf6   :  { %v5270_v31 = vadd.f32 %v310_v7, %v5263_v6  ;;  %v5283_v10 = vpop.f32.mrf.mxu1 }
  0xf7   :  { %v314_v40 = vpop.f32.mrf.mxu0  ;;  %7830 = vst [vmem:[#allocation66_spill] sm:$0xff] %v5277_v2  ;;  %v5607_v2 = vld [vmem:[#allocation6 + $0x270] ss:$24 sps:$4 sm:$0xff]  }
  0xf8   :  { %v5280_v9 = vadd.f32 %v314_v40, %v5260_v29  ;;  %v3945_v12 = vpop.f32.mrf.mxu1 }
  0xf9   :  { %v316_v22 = vpop.f32.mrf.mxu0  ;;  %v5290_v42 = vadd.f32 %v3945_v12, %v5272_v8 }
  0xfa   :  { %7831 = vst [vmem:[#allocation67_spill] sm:$0xff] %v5280_v9  ;;  %v5287_v19 = vadd.f32 %v316_v22, %v5263_v6  ;;  %v380_v25 = vpop.f32.mrf.mxu1  ;;  %v5613_v9 = vld [vmem:[#allocation6 + $0x240] ss:$24 sps:$4 sm:$0xff]  }
  0xfb   :  { %v318_v13 = vpop.f32.mrf.mxu0  ;;  %7833 = vst [vmem:[#allocation69_spill] sm:$0xff] %v5290_v42  ;;  %v5298_v40 = vadd.f32 %v380_v25, %v5272_v8  ;;  %v5598_v42 = vld [vmem:[#allocation6 + $0x2a4] ss:$24 sps:$4 sm:$0xff]  }
  0xfc   :  { %7832 = vst [vmem:[#allocation68_spill] sm:$0xff] %v5287_v19  ;;  %v5293_v7 = vadd.f32 %v318_v13, %v5260_v29  ;;  %v5610_v19 = vld [vmem:[#allocation6 + $0x244] ss:$24 sps:$4 sm:$0xff]  }
  0xfd   :  { %v320_v17 = vpop.f32.mrf.mxu0 }
  0xfe   :  { %7834 = vst [vmem:[#allocation70_spill] sm:$0xff] %v5293_v7  ;;  %v5301_v20 = vadd.f32 %v320_v17, %v5263_v6  ;;  %v3948_v17 = vpop.f32.mrf.mxu1  ;;  %v5604_v7 = vld [vmem:[#allocation6 + $0x274] ss:$24 sps:$4 sm:$0xff]  }
  0xff   :  { %v324_v22 = vpop.f32.mrf.mxu0  ;;  %v5317_v28 = vadd.f32 %v3948_v17, %v5272_v8 }
 0x100   :  { %7835 = vst [vmem:[#allocation71_spill] sm:$0xff] %v5301_v20  ;;  %v5306_v12 = vadd.f32 %v324_v22, %v5260_v29  ;;  %v393_v33 = vpop.f32.mrf.mxu1  ;;  %v5601_v20 = vld [vmem:[#allocation6 + $0x2a0] ss:$24 sps:$4 sm:$0xff]  }
 0x101   :  { %v326_v13 = vpop.f32.mrf.mxu0  ;;  %7839 = vst [vmem:[#allocation75_spill] sm:$0xff] %v5317_v28  ;;  %v5325_v36 = vadd.f32 %v393_v33, %v5272_v8 }
 0x102   :  { %7836 = vst [vmem:[#allocation72_spill] sm:$0xff] %v5306_v12  ;;  %v5310_v23 = vadd.f32 %v326_v13, %v5263_v6  ;;  %v5595_v12 = vld [vmem:[#allocation6 + $0x2d0] ss:$24 sps:$4 sm:$0xff]  }
 0x103   :  { %v328_v24 = vpop.f32.mrf.mxu0  ;;  %7841 = vst [vmem:[#allocation77_spill] sm:$0xff] %v5325_v36  ;;  %v5592_v36 = vld [vmem:[#allocation6 + $0x2d4] ss:$24 sps:$4 sm:$0xff]  }
 0x104   :  { %7837 = vst [vmem:[#allocation73_spill] sm:$0xff] %v5310_v23  ;;  %v5314_v25 = vadd.f32 %v328_v24, %v5260_v29 }
 0x105   :  { %v330_v26 = vpop.f32.mrf.mxu0 }
 0x106   :  { %7838 = vst [vmem:[#allocation74_spill] sm:$0xff] %v5314_v25  ;;  %v5321_v22 = vadd.f32 %v330_v26, %v5263_v6  ;;  %v3949_v25 = vpop.f32.mrf.mxu1 }
 0x107   :  { %v334_v13 = vpop.f32.mrf.mxu0  ;;  %v5331_v17 = vadd.f32 %v3949_v25, %v5272_v8 }
 0x108   :  { %7840 = vst [vmem:[#allocation76_spill] sm:$0xff] %v5321_v22  ;;  %v5328_v24 = vadd.f32 %v334_v13, %v5260_v29  ;;  %v396_v26 = vpop.f32.mrf.mxu1  ;;  %v5589_v22 = vld [vmem:[#allocation6] ss:$24 sps:$4 sm:$0xff]  }
 0x109   :  { %v336_v23 = vpop.f32.mrf.mxu0  ;;  %7843 = vst [vmem:[#allocation79_spill] sm:$0xff] %v5331_v17  ;;  %v5339_v33 = vadd.f32 %v396_v26, %v5272_v8 }
 0x10a   :  { %7842 = vst [vmem:[#allocation78_spill] sm:$0xff] %v5328_v24  ;;  %v5335_v37 = vadd.f32 %v336_v23, %v5263_v6  ;;  %v5583_v24 = vld [vmem:[#allocation6 + $0x30] ss:$24 sps:$4 sm:$0xff]  }
 0x10b   :  { %v338_v43 = vpop.f32.mrf.mxu0  ;;  %7845 = vst [vmem:[#allocation81_spill] sm:$0xff] %v5339_v33  ;;  %v5586_v33 = vld [vmem:[#allocation6 + $0x4] ss:$24 sps:$4 sm:$0xff]  }
 0x10c   :  { %7844 = vst [vmem:[#allocation80_spill] sm:$0xff] %v5335_v37  ;;  %v5342_v13 = vadd.f32 %v338_v43, %v5260_v29  ;;  %v5580_v37 = vld [vmem:[#allocation6 + $0x34] ss:$24 sps:$4 sm:$0xff]  }
 0x10d   :  { %v340_v28 = vpop.f32.mrf.mxu0 }
 0x10e   :  { %7846 = vst [vmem:[#allocation82_spill] sm:$0xff] %v5342_v13  ;;  %v5346_v25 = vadd.f32 %v340_v28, %v5263_v6  ;;  %v5577_v13 = vld [vmem:[#allocation6 + $0x60] ss:$24 sps:$4 sm:$0xff]  }
 0x110   :  { %7847 = vst [vmem:[#allocation83_spill] sm:$0xff] %v5346_v25 }
 0x12f   :  { %v949_v49 = vpop.f32.mrf.mxu0 }
 0x130   :  { %v1041_v53 = vadd.f32 %v949_v49, %v5360_v47  ;;  %v5376_v49 = vunpack.c.l.bf16 %v5373_v45 }
 0x131   :  { %v951_v57 = vpop.f32.mrf.mxu0 }
 0x132   :  { %v1044_v58 = vadd.f32 %v1041_v53, %v305_v51  ;;  %v1042_v1 = vadd.f32 %v951_v57, %v5366_v55  ;;  %v378_v57 = vadd.f32 %v5283_v10, %v5272_v8  ;;  %v5391_v8 = vld [vmem:[#allocation7 + $0xb0] ss:$12 sps:$4 sm:$0xff]   ;;  %v7849_v10 = vmov 0.0  }
 0x133   :  { %v953_v61 = vpop.f32.mrf.mxu0 }
 0x134   :  { %v3731_v63 = vmul.f32 -1.442695, %v1044_v58  ;;  %v1051_v15 = vadd.f32 %v1042_v1, %v307_v11  ;;  %v990_v18 = vpop.f32.mrf.mxu1 }
 0x135   :  { %v954_v4 = vpop.f32.mrf.mxu0  ;;  %v1043_v39 = vadd.f32 %v990_v18, %v5376_v49 }
 0x136   :  { %4371 = vpow2.f32 %v3731_v63  ;;  %v3732_v23 = vmul.f32 -1.442695, %v1051_v15  ;;  %v5371_v28 = vpop.f32.mrf.mxu1 }
 0x138   :  { %v994_v21 = vpop.f32.mrf.mxu1  ;;  %4373 = vpow2.f32 %v3732_v23 }
 0x139   :  { %v5383_v21 = vld [vmem:[#allocation7 + $0xc8] ss:$12 sps:$4 sm:$0xff]  }
 0x13a   :  { %v995_v29 = vpop.f32.mrf.mxu1 }
 0x13b   :  { %v5397_v29 = vld [vmem:[#allocation7 + $0x98] ss:$12 sps:$4 sm:$0xff]  }
 0x143   :  { %v4372_v26 = vpop.eup %4371 }
 0x144   :  { %v1048_v43 = vadd.f32 1.0, %v4372_v26  ;;  %v5401_v26 = vld [vmem:[#allocation7 + $0x80] ss:$12 sps:$4 sm:$0xff]  }
 0x145   :  { %v4374_v51 = vpop.eup %4373 }
 0x146   :  { %4375 = vrcp.f32 %v1048_v43  ;;  %v1055_v53 = vadd.f32 1.0, %v4374_v51  ;;  %v5405_v43 = vld [vmem:[#allocation7 + $0x68] ss:$12 sps:$4 sm:$0xff]   ;;  %v5409_v51 = vld [vmem:[#allocation7 + $0x50] ss:$12 sps:$4 sm:$0xff]  }
 0x148   :  { %4377 = vrcp.f32 %v1055_v53  ;;  %v5413_v53 = vld [vmem:[#allocation7 + $0x38] ss:$12 sps:$4 sm:$0xff]  }
 0x153   :  { %v4376_v6 = vpop.eup %4375 }
 0x154   :  { %v1058_v58 = vmul.f32 %v4376_v6, %v1043_v39  ;;  %v5417_v39 = vld [vmem:[#allocation7 + $0x20] ss:$12 sps:$4 sm:$0xff]   ;;  %v5421_v6 = vld [vmem:[#allocation6 + $0x15c] ss:$24 sps:$4 sm:$0xff]  }
 0x155   :  { %v4378_v63 = vpop.eup %4377 }
 0x156   :  { %v1059_v61 = vadd.f32 %v1058_v58, %v378_v57  ;;  %v1061_v1 = vsub.f32 1.0, %v4378_v63  ;;  %v1063_v15 = vmul.f32 0.0, %v4378_v63  ;;  %v5425_v57 = vld [vmem:[#allocation6 + $0x158] ss:$24 sps:$4 sm:$0xff]   ;;  %v5428_v58 = vld [vmem:[#allocation6 + $0x12c] ss:$24 sps:$4 sm:$0xff]  }
 0x157   :  { %v5434_v63 = vld [vmem:[#allocation6 + $0xfc] ss:$24 sps:$4 sm:$0xff]  }
 0x158   :  { %4379 = vtanh.f32 %v1059_v61  ;;  %v5431_v61 = vld [vmem:[#allocation6 + $0x128] ss:$24 sps:$4 sm:$0xff]  }
 0x165   :  { %v4380_v4 = vpop.eup %4379 }
 0x166   :  { %v1062_v11 = vmul.f32 %v4380_v4, %v1061_v1  ;;  %v5437_v1 = vld [vmem:[#allocation6 + $0xf8] ss:$24 sps:$4 sm:$0xff]   ;;  %v5440_v4 = vld [vmem:[#allocation6 + $0xcc] ss:$24 sps:$4 sm:$0xff]  }
 0x168   :  { %v5381_v23 = vadd.f32 %v1063_v15, %v1062_v11 }
 0x16a   :  { %v5387_v18 = vpack.c.bf16 %v5381_v23, %v5381_v23 }
 0x16c   :  { %1227 = vmatmul.mubr.bf16.vlgmr.msra.gmra.mxu1 %v5387_v18 }
 0x16d   :  { %3951 = vmatpush3.bf16.msra.mxu1 %v5383_v21  ;;  %3966 = vmatprep.mubr.msk.bf16.mxu1 %vm4845_vm1, %v7849_v10 }
 0x16e   :  { %3952 = vmatprep.subr.bf16.mxu1 %v7849_v10 }
 0x171   :  { %3953 = vmatpush3.bf16.msra.mxu1 %v5391_v8 }
 0x172   :  { %3954 = vmatprep.subr.bf16.mxu1 %v7849_v10 }
 0x175   :  { %3955 = vmatpush3.bf16.msra.mxu1 %v5397_v29 }
 0x176   :  { %3956 = vmatprep.subr.bf16.mxu1 %v7849_v10 }
 0x179   :  { %3957 = vmatpush3.bf16.msra.mxu1 %v5401_v26 }
 0x17a   :  { %3958 = vmatprep.subr.bf16.mxu1 %v7849_v10 }
 0x17d   :  { %3959 = vmatpush3.bf16.msra.mxu1 %v5405_v43 }
 0x17e   :  { %3960 = vmatprep.subr.bf16.mxu1 %v7849_v10 }
 0x181   :  { %3961 = vmatpush3.bf16.msra.mxu1 %v5409_v51 }
 0x182   :  { %3962 = vmatprep.subr.bf16.mxu1 %v7849_v10 }
 0x185   :  { %3963 = vmatpush3.bf16.msra.mxu1 %v5413_v53 }
 0x186   :  { %3964 = vmatprep.subr.bf16.mxu1 %v7849_v10 }
 0x189   :  { %3965 = vmatpush3.bf16.msra.mxu1 %v5417_v39 }
 0x18a   :  { %1341 = vmatprep.subr.bf16.mxu1 %v5421_v6 }
 0x18c   :  { %3967 = vmatmul.mubr.bf16.vlgmr.msra.gmra.mxu1 %v5387_v18 }
 0x18d   :  { %1342 = vmatpush1.bf16.msra.mxu1 %v5425_v57 }
 0x18e   :  { %1343 = vmatprep.subr.bf16.mxu1 %v5428_v58 }
 0x191   :  { %1344 = vmatpush1.bf16.msra.mxu1 %v5431_v61 }
 0x192   :  { %1345 = vmatprep.subr.bf16.mxu1 %v5434_v63 }
 0x195   :  { %1346 = vmatpush1.bf16.msra.mxu1 %v5437_v1 }
 0x196   :  { %1347 = vmatprep.subr.bf16.mxu1 %v5440_v4 }
 0x199   :  { %1348 = vmatpush1.bf16.msra.mxu1 %v4954_v34  ;;  %v1031_v34 = vpop.f32.mrf.mxu0 }
 0x19a   :  { %1349 = vmatprep.subr.bf16.mxu1 %v4957_v35 }
 0x19b   :  { %v1033_v35 = vpop.f32.mrf.mxu0 }
 0x19d   :  { %1350 = vmatpush1.bf16.msra.mxu1 %v4965_v38  ;;  %v1035_v38 = vpop.f32.mrf.mxu0 }
 0x19e   :  { %1351 = vmatprep.subr.bf16.mxu1 %v4978_v41 }
 0x19f   :  { %v1036_v41 = vpop.f32.mrf.mxu0 }
 0x1a1   :  { %1352 = vmatpush1.bf16.msra.mxu1 %v4985_v44  ;;  %v7850_v44 = vld [vmem:[#allocation12_spill] sm:$0xff] }
 0x1a2   :  { %1353 = vmatprep.subr.bf16.mxu1 %v4992_v46  ;;  %v7851_v46 = vld [vmem:[#allocation13_spill] sm:$0xff] }
 0x1a5   :  { %1354 = vmatpush1.bf16.msra.mxu1 %v5000_v48  ;;  %v7852_v48 = vld [vmem:[#allocation14_spill] sm:$0xff] }
 0x1a6   :  { %1355 = vmatprep.subr.bf16.mxu1 %v5006_v50  ;;  %v7853_v50 = vld [vmem:[#allocation15_spill] sm:$0xff] }
 0x1a9   :  { %1356 = vmatpush1.bf16.msra.mxu1 %v5012_v52  ;;  %v7854_v52 = vld [vmem:[#allocation16_spill] sm:$0xff] }
 0x1aa   :  { %1357 = vmatprep.subr.bf16.mxu1 %v5018_v54  ;;  %v7855_v54 = vld [vmem:[#allocation17_spill] sm:$0xff] }
 0x1ad   :  { %1358 = vmatpush2.bf16.msra.mxu1 %v5024_v56  ;;  %v7856_v56 = vld [vmem:[#allocation33_spill] sm:$0xff] }
 0x1ae   :  { %1359 = vmatprep.subr.bf16.mxu1 %v5032_v59  ;;  %v212_v59 = vld [vmem:[#allocation7 + $0x120] sm:$0xff] }
 0x1b1   :  { %1360 = vmatpush2.bf16.msra.mxu1 %v5035_v60  ;;  %v202_v60 = vld [vmem:[#allocation7 + $0xf0] sm:$0xff] }
 0x1b2   :  { %1361 = vmatprep.subr.bf16.mxu1 %v5039_v62  ;;  %v5469_v62 = vunpack.c.l.bf16 %v212_v59  ;;  %v5478_v11 = vunpack.c.h.bf16 %v202_v60 }
 0x1b4   :  { %7857 = vst [vmem:[#allocation12_spill] sm:$0xff] %v5469_v62 }
 0x1b5   :  { %1362 = vmatpush2.bf16.msra.mxu1 %v5047_v0  ;;  %v5471_v0 = vunpack.c.l.bf16 %v202_v60  ;;  %v5483_v60 = vunpack.c.h.bf16 %v5373_v45 }
 0x1b6   :  { %1363 = vmatprep.subr.bf16.mxu1 %v5051_v3 }
 0x1b7   :  { %7858 = vst [vmem:[#allocation13_spill] sm:$0xff] %v5471_v0 }
 0x1b9   :  { %1364 = vmatpush2.bf16.msra.mxu1 %v5059_v5  ;;  %v1275_v5 = vadd.f32 %v5371_v28, %v5469_v62 }
 0x1ba   :  { %1365 = vmatprep.subr.bf16.mxu1 %v5063_v14 }
 0x1bd   :  { %1366 = vmatpush2.bf16.msra.mxu1 %v5071_v16  ;;  %v5476_v16 = vunpack.c.h.bf16 %v212_v59 }
 0x1be   :  { %1367 = vmatprep.subr.bf16.mxu1 %v7850_v44 }
 0x1c1   :  { %1368 = vmatpush2.bf16.msra.mxu1 %v7851_v46  ;;  %v1276_v46 = vadd.f32 %v1031_v34, %v5476_v16 }
 0x1c2   :  { %1369 = vmatprep.subr.bf16.mxu1 %v7852_v48 }
 0x1c5   :  { %1370 = vmatpush2.bf16.msra.mxu1 %v7853_v50 }
 0x1c6   :  { %1371 = vmatprep.subr.bf16.mxu1 %v7854_v52 }
 0x1c9   :  { %1372 = vmatpush2.bf16.msra.mxu1 %v7855_v54 }
 0x1ca   :  { %1451 = vmatprep.subr.bf16.mxu1 %v7856_v56 }
 0x22c   :  { %v1228_v3 = vpop.f32.mrf.mxu1 }
 0x22d   :  { %v1229_v14 = vadd.f32 %v1228_v3, %v5471_v0  ;;  %v203_v3 = vld [vmem:[#allocation7 + $0xf8] sm:$0xf] }
 0x22e   :  { %v1230_v15 = vpop.f32.mrf.mxu1 }
 0x22f   :  { %v1278_v38 = vadd.f32 %v1275_v5, %v1229_v14  ;;  %v1231_v48 = vadd.f32 %v1230_v15, %v5478_v11  ;;  %v1277_v15 = vadd.f32 %v1033_v35, %v5483_v60  ;;  %v7859_v35 = vld [vmem:[#allocation18_spill] sm:$0xff] }
 0x230   :  { %v1232_v41 = vpop.f32.mrf.mxu1 }
 0x231   :  { %v3757_v44 = vmul.f32 -1.442695, %v1278_v38  ;;  %v1285_v52 = vadd.f32 %v1276_v46, %v1231_v48  ;;  %v5485_v38 = vunpack.c.l.bf16 %v203_v3 }
 0x232   :  { %v1233_v50 = vpop.f32.mrf.mxu1 }
 0x233   :  { %4381 = vpow2.f32 %v3757_v44  ;;  %v3758_v54 = vmul.f32 -1.442695, %v1285_v52 }
 0x235   :  { %4383 = vpow2.f32 %v3758_v54 }
 0x240   :  { %v4382_v28 = vpop.eup %4381 }
 0x241   :  { %v1282_v17 = vadd.f32 1.0, %v4382_v28 }
 0x242   :  { %v4384_v59 = vpop.eup %4383 }
 0x243   :  { %4385 = vrcp.f32 %v1282_v17  ;;  %v1289_v14 = vadd.f32 1.0, %v4384_v59 }
 0x245   :  { %4387 = vrcp.f32 %v1289_v14  ;;  %v7861_v14 = vld [vmem:[#allocation34_spill] sm:$0xff] }
 0x24c   :  { %v1269_v5 = vpop.f32.mrf.mxu1 }
 0x24d   :  { %v1270_v48 = vadd.f32 %v1269_v5, %v5485_v38  ;;  %v7860_v5 = vld [vmem:[#allocation19_spill] sm:$0xff] }
 0x24e   :  { %v3968_v34 = vpop.f32.mrf.mxu1 }
 0x24f   :  { %v7862_v34 = vld [vmem:[#allocation37_spill] sm:$0xff] }
 0x250   :  { %v4386_v41 = vpop.eup %4385  ;;  %v1272_v44 = vpop.f32.mrf.mxu1 }
 0x251   :  { %v1292_v46 = vmul.f32 %v4386_v41, %v1277_v15  ;;  %v7864_v15 = vld [vmem:[#allocation21_spill] sm:$0xff]  ;;  %v7865_v41 = vld [vmem:[#allocation38_spill] sm:$0xff] }
 0x252   :  { %v3969_v50 = vpop.f32.mrf.mxu1  ;;  %v4388_v52 = vpop.eup %4387  ;;  %v7866_v44 = vld [vmem:[#allocation41_spill] sm:$0xff]  ;;  %7916 = vst [vmem:[#allocation38_spill] sm:$0xff] %v5577_v13 }
 0x253   :  { %v1293_v17 = vadd.f32 %v1292_v46, %v1270_v48  ;;  %v1295_v54 = vsub.f32 1.0, %v4388_v52  ;;  %v1297_v25 = vmul.f32 0.0, %v4388_v52  ;;  %v7867_v46 = vld [vmem:[#allocation22_spill] sm:$0xff]  ;;  %v7868_v48 = vld [vmem:[#allocation23_spill] sm:$0xff]  ;;  %v7871_v52 = vld [vmem:[#allocation24_spill] sm:$0xff]  ;;  %7917 = vst [vmem:[#allocation41_spill] sm:$0xff] %v5580_v37 }
 0x254   :  { %v7869_v50 = vld [vmem:[#allocation42_spill] sm:$0xff]  ;;  %7918 = vst [vmem:[#allocation22_spill] sm:$0xff] %v5583_v24  ;;  %7919 = vst [vmem:[#allocation23_spill] sm:$0xff] %v5586_v33 }
 0x255   :  { %4389 = vtanh.f32 %v1293_v17  ;;  %v7870_v17 = vld [vmem:[#allocation45_spill] sm:$0xff]  ;;  %7920 = vst [vmem:[#allocation42_spill] sm:$0xff] %v5589_v22  ;;  %7922 = vst [vmem:[#allocation24_spill] sm:$0xff] %v5595_v12 }
 0x256   :  { %7921 = vst [vmem:[#allocation45_spill] sm:$0xff] %v5592_v36 }
 0x262   :  { %v4390_v45 = vpop.eup %4389 }
 0x263   :  { %v1296_v28 = vmul.f32 %v4390_v45, %v1295_v54  ;;  %v7872_v54 = vld [vmem:[#allocation25_spill] sm:$0xff]  ;;  %v7873_v45 = vld [vmem:[#allocation46_spill] sm:$0xff] }
 0x264   :  { %7923 = vst [vmem:[#allocation25_spill] sm:$0xff] %v5598_v42  ;;  %7924 = vst [vmem:[#allocation46_spill] sm:$0xff] %v5601_v20 }
 0x265   :  { %v5489_v59 = vadd.f32 %v1297_v25, %v1296_v28  ;;  %v7863_v25 = vld [vmem:[#allocation20_spill] sm:$0xff]  ;;  %v7874_v28 = vld [vmem:[#allocation49_spill] sm:$0xff] }
 0x266   :  { %7925 = vst [vmem:[#allocation49_spill] sm:$0xff] %v5604_v7 }
 0x267   :  { %v1299_v3 = vpack.c.bf16 %v5489_v59, %v5489_v59 }
 0x269   :  { %1332 = vmatprep.mubr.bf16.mxu0 %v1299_v3  ;;  %1373 = vmatprep.mubr.bf16.mxu1 %v1299_v3 }
 0x26a   :  { %1333 = vmatmul.mubr.bf16.vlgmr.msra.gmra.mxu0 %v5387_v18  ;;  %1374 = vmatmul.mubr.bf16.vlgmr.msra.gmra.mxu1 %v5387_v18 }
 0x26b   :  { %1383 = vmatpush1.bf16.msra.mxu0 %v7859_v35  ;;  %1414 = vmatprep.mubr.bf16.mxu0 %v1299_v3  ;;  %v7875_v3 = vld [vmem:[#allocation26_spill] sm:$0xff]  ;;  %v7876_v35 = vld [vmem:[#allocation27_spill] sm:$0xff] }
 0x26c   :  { %1384 = vmatprep.subr.bf16.mxu0 %v7860_v5  ;;  %1452 = vmatpush1.bf16.msra.mxu1 %v7861_v14  ;;  %v7877_v5 = vld [vmem:[#allocation50_spill] sm:$0xff]  ;;  %v7878_v14 = vld [vmem:[#allocation52_spill] sm:$0xff]  ;;  %7926 = vst [vmem:[#allocation26_spill] sm:$0xff] %v5607_v2  ;;  %7927 = vst [vmem:[#allocation27_spill] sm:$0xff] %v5610_v19 }
 0x26d   :  { %1453 = vmatprep.subr.bf16.mxu1 %v7862_v34  ;;  %1483 = vmatprep.mubr.bf16.mxu1 %v7829_v32  ;;  %v7879_v34 = vld [vmem:[#allocation28_spill] sm:$0xff]  ;;  %7928 = vst [vmem:[#allocation50_spill] sm:$0xff] %v5613_v9 }
 0x26f   :  { %1385 = vmatpush1.bf16.msra.mxu0 %v7863_v25  ;;  %v7880_v25 = vld [vmem:[#allocation29_spill] sm:$0xff] }
 0x270   :  { %1386 = vmatprep.subr.bf16.mxu0 %v7864_v15  ;;  %1454 = vmatpush1.bf16.msra.mxu1 %v7865_v41  ;;  %v7881_v15 = vld [vmem:[#allocation54_spill] sm:$0xff]  ;;  %v7882_v41 = vld [vmem:[#allocation56_spill] sm:$0xff] }
 0x271   :  { %1455 = vmatprep.subr.bf16.mxu1 %v7866_v44  ;;  %v7883_v44 = vld [vmem:[#allocation30_spill] sm:$0xff] }
 0x273   :  { %1387 = vmatpush1.bf16.msra.mxu0 %v7867_v46  ;;  %v7884_v46 = vld [vmem:[#allocation31_spill] sm:$0xff] }
 0x274   :  { %1388 = vmatprep.subr.bf16.mxu0 %v7868_v48  ;;  %1456 = vmatpush1.bf16.msra.mxu1 %v7869_v50  ;;  %v7885_v48 = vld [vmem:[#allocation58_spill] sm:$0xff]  ;;  %v7886_v50 = vld [vmem:[#allocation60_spill] sm:$0xff] }
 0x275   :  { %1457 = vmatprep.subr.bf16.mxu1 %v7870_v17  ;;  %v7887_v17 = vld [vmem:[#allocation32_spill] sm:$0xff] }
 0x277   :  { %1389 = vmatpush1.bf16.msra.mxu0 %v7871_v52  ;;  %v7888_v52 = vld [vmem:[#allocation35_spill] sm:$0xff] }
 0x278   :  { %1390 = vmatprep.subr.bf16.mxu0 %v7872_v54  ;;  %1458 = vmatpush1.bf16.msra.mxu1 %v7873_v45  ;;  %v7889_v54 = vld [vmem:[#allocation62_spill] sm:$0xff]  ;;  %v7890_v45 = vld [vmem:[#allocation36_spill] sm:$0xff] }
 0x279   :  { %1459 = vmatprep.subr.bf16.mxu1 %v7874_v28  ;;  %v7891_v28 = vld [vmem:[#allocation39_spill] sm:$0xff] }
 0x27b   :  { %1391 = vmatpush1.bf16.msra.mxu0 %v7875_v3  ;;  %v7892_v3 = vld [vmem:[#allocation40_spill] sm:$0xff] }
 0x27c   :  { %1392 = vmatprep.subr.bf16.mxu0 %v7876_v35  ;;  %1460 = vmatpush1.bf16.msra.mxu1 %v7877_v5  ;;  %v7893_v35 = vld [vmem:[#allocation43_spill] sm:$0xff]  ;;  %v7894_v5 = vld [vmem:[#allocation44_spill] sm:$0xff] }
 0x27d   :  { %1461 = vmatprep.subr.bf16.mxu1 %v7878_v14 }
 0x27f   :  { %1393 = vmatpush1.bf16.msra.mxu0 %v7879_v34  ;;  %v7895_v34 = vld [vmem:[#allocation47_spill] sm:$0xff] }
 0x280   :  { %1394 = vmatprep.subr.bf16.mxu0 %v7880_v25  ;;  %1462 = vmatpush1.bf16.msra.mxu1 %v7881_v15  ;;  %v7896_v25 = vld [vmem:[#allocation48_spill] sm:$0xff] }
 0x281   :  { %1463 = vmatprep.subr.bf16.mxu1 %v7882_v41 }
 0x283   :  { %1395 = vmatpush1.bf16.msra.mxu0 %v7883_v44  ;;  %v7897_v44 = vld [vmem:[#allocation51_spill] sm:$0xff] }
 0x284   :  { %1396 = vmatprep.subr.bf16.mxu0 %v7884_v46  ;;  %1464 = vmatpush1.bf16.msra.mxu1 %v7885_v48  ;;  %v7898_v46 = vld [vmem:[#allocation53_spill] sm:$0xff] }
 0x285   :  { %1465 = vmatprep.subr.bf16.mxu1 %v7886_v50 }
 0x287   :  { %1397 = vmatpush1.bf16.msra.mxu0 %v7887_v17  ;;  %v7899_v17 = vld [vmem:[#allocation55_spill] sm:$0xff] }
 0x288   :  { %1398 = vmatprep.subr.bf16.mxu0 %v7888_v52  ;;  %1466 = vmatpush1.bf16.msra.mxu1 %v7889_v54  ;;  %v7900_v52 = vld [vmem:[#allocation57_spill] sm:$0xff] }
 0x289   :  { %3970 = vmatprep.subr.bf16.mxu1 %v7849_v10 }
 0x28b   :  { %1399 = vmatpush2.bf16.msra.mxu0 %v7890_v45  ;;  %v7901_v45 = vld [vmem:[#allocation59_spill] sm:$0xff] }
 0x28c   :  { %1400 = vmatprep.subr.bf16.mxu0 %v7891_v28  ;;  %v7902_v28 = vld [vmem:[#allocation61_spill] sm:$0xff] }
 0x28f   :  { %1401 = vmatpush2.bf16.msra.mxu0 %v7892_v3  ;;  %v7903_v3 = vld [vmem:[#allocation63_spill] sm:$0xff] }
 0x290   :  { %1402 = vmatprep.subr.bf16.mxu0 %v7893_v35  ;;  %v7904_v35 = vld [vmem:[#allocation64_spill] sm:$0xff] }
 0x293   :  { %1403 = vmatpush2.bf16.msra.mxu0 %v7894_v5  ;;  %v5543_v5 = vld [vmem:[#allocation6 + $0x154] ss:$24 sps:$4 sm:$0xff]  }
 0x294   :  { %1404 = vmatprep.subr.bf16.mxu0 %v7895_v34  ;;  %7905 = vst [vmem:[#allocation14_spill] sm:$0xff] %v5543_v5  ;;  %v5547_v34 = vld [vmem:[#allocation6 + $0x150] ss:$24 sps:$4 sm:$0xff]  }
 0x295   :  { %7906 = vst [vmem:[#allocation15_spill] sm:$0xff] %v5547_v34 }
 0x297   :  { %1405 = vmatpush2.bf16.msra.mxu0 %v7896_v25  ;;  %v5550_v25 = vld [vmem:[#allocation6 + $0x124] ss:$24 sps:$4 sm:$0xff]  }
 0x298   :  { %1406 = vmatprep.subr.bf16.mxu0 %v7897_v44  ;;  %7907 = vst [vmem:[#allocation16_spill] sm:$0xff] %v5550_v25  ;;  %v5553_v44 = vld [vmem:[#allocation6 + $0x120] ss:$24 sps:$4 sm:$0xff]  }
 0x299   :  { %7908 = vst [vmem:[#allocation17_spill] sm:$0xff] %v5553_v44 }
 0x29b   :  { %1407 = vmatpush2.bf16.msra.mxu0 %v7898_v46  ;;  %v5556_v46 = vld [vmem:[#allocation6 + $0xf4] ss:$24 sps:$4 sm:$0xff]  }
 0x29c   :  { %1408 = vmatprep.subr.bf16.mxu0 %v7899_v17  ;;  %7909 = vst [vmem:[#allocation33_spill] sm:$0xff] %v5556_v46  ;;  %v5559_v17 = vld [vmem:[#allocation6 + $0xf0] ss:$24 sps:$4 sm:$0xff]  }
 0x29d   :  { %7910 = vst [vmem:[#allocation18_spill] sm:$0xff] %v5559_v17 }
 0x29f   :  { %1409 = vmatpush2.bf16.msra.mxu0 %v7900_v52  ;;  %v5565_v52 = vld [vmem:[#allocation6 + $0xc0] ss:$24 sps:$4 sm:$0xff]  }
 0x2a0   :  { %1410 = vmatprep.subr.bf16.mxu0 %v7901_v45  ;;  %7912 = vst [vmem:[#allocation34_spill] sm:$0xff] %v5565_v52  ;;  %v5568_v45 = vld [vmem:[#allocation6 + $0x94] ss:$24 sps:$4 sm:$0xff]  }
 0x2a1   :  { %7913 = vst [vmem:[#allocation37_spill] sm:$0xff] %v5568_v45 }
 0x2a3   :  { %1411 = vmatpush2.bf16.msra.mxu0 %v7902_v28  ;;  %v5571_v28 = vld [vmem:[#allocation6 + $0x90] ss:$24 sps:$4 sm:$0xff]  }
 0x2a4   :  { %1412 = vmatprep.subr.bf16.mxu0 %v7903_v3  ;;  %7914 = vst [vmem:[#allocation20_spill] sm:$0xff] %v5571_v28  ;;  %v5574_v3 = vld [vmem:[#allocation6 + $0x64] ss:$24 sps:$4 sm:$0xff]  }
 0x2a5   :  { %7915 = vst [vmem:[#allocation21_spill] sm:$0xff] %v5574_v3 }
 0x2a7   :  { %1413 = vmatpush2.bf16.msra.mxu0 %v7904_v35 }
 0x2a8   :  { %1557 = vmatprep.subr.bf16.mxu0 %v5543_v5 }
 0x2aa   :  { %1415 = vmatmul.mubr.bf16.vlgmr.msra.gmra.mxu0 %v5387_v18  ;;  %v5562_v18 = vld [vmem:[#allocation6 + $0xc4] ss:$24 sps:$4 sm:$0xff]  }
 0x2ab   :  { %1558 = vmatpush1.bf16.msra.mxu0 %v5547_v34  ;;  %7911 = vst [vmem:[#allocation19_spill] sm:$0xff] %v5562_v18 }
 0x2ac   :  { %1559 = vmatprep.subr.bf16.mxu0 %v5550_v25 }
 0x2af   :  { %1560 = vmatpush1.bf16.msra.mxu0 %v5553_v44 }
 0x2b0   :  { %1561 = vmatprep.subr.bf16.mxu0 %v5556_v46 }
 0x2b3   :  { %1562 = vmatpush1.bf16.msra.mxu0 %v5559_v17 }
 0x2b4   :  { %1563 = vmatprep.subr.bf16.mxu0 %v5562_v18 }
 0x2b7   :  { %1564 = vmatpush1.bf16.msra.mxu0 %v5565_v52 }
 0x2b8   :  { %1565 = vmatprep.subr.bf16.mxu0 %v5568_v45 }
 0x2bb   :  { %1566 = vmatpush1.bf16.msra.mxu0 %v5571_v28 }
 0x2bc   :  { %1567 = vmatprep.subr.bf16.mxu0 %v5574_v3 }
 0x2bf   :  { %1568 = vmatpush1.bf16.msra.mxu0 %v5577_v13 }
 0x2c0   :  { %1569 = vmatprep.subr.bf16.mxu0 %v5580_v37 }
 0x2c3   :  { %1570 = vmatpush1.bf16.msra.mxu0 %v5583_v24 }
 0x2c4   :  { %1571 = vmatprep.subr.bf16.mxu0 %v5586_v33 }
 0x2c7   :  { %1572 = vmatpush1.bf16.msra.mxu0 %v5589_v22 }
 0x2c8   :  { %1573 = vmatprep.subr.bf16.mxu0 %v5592_v36 }
 0x2cb   :  { %1574 = vmatpush2.bf16.msra.mxu0 %v5595_v12 }
 0x2cc   :  { %1575 = vmatprep.subr.bf16.mxu0 %v5598_v42  ;;  %v5616_v42 = vld [vmem:[#allocation6 + $0x214] ss:$24 sps:$4 sm:$0xff]  }
 0x2cd   :  { %7929 = vst [vmem:[#allocation52_spill] sm:$0xff] %v5616_v42 }
 0x2cf   :  { %1576 = vmatpush2.bf16.msra.mxu0 %v5601_v20  ;;  %v5619_v20 = vld [vmem:[#allocation6 + $0x210] ss:$24 sps:$4 sm:$0xff]  }
 0x2d0   :  { %1577 = vmatprep.subr.bf16.mxu0 %v5604_v7  ;;  %7930 = vst [vmem:[#allocation28_spill] sm:$0xff] %v5619_v20  ;;  %v5622_v7 = vld [vmem:[#allocation6 + $0x1e4] ss:$24 sps:$4 sm:$0xff]  }
 0x2d1   :  { %7931 = vst [vmem:[#allocation29_spill] sm:$0xff] %v5622_v7 }
 0x2d3   :  { %1578 = vmatpush2.bf16.msra.mxu0 %v5607_v2  ;;  %v5625_v2 = vld [vmem:[#allocation6 + $0x1e0] ss:$24 sps:$4 sm:$0xff]  }
 0x2d4   :  { %1579 = vmatprep.subr.bf16.mxu0 %v5610_v19  ;;  %7932 = vst [vmem:[#allocation54_spill] sm:$0xff] %v5625_v2  ;;  %v5628_v19 = vld [vmem:[#allocation6 + $0x1b4] ss:$24 sps:$4 sm:$0xff]  }
 0x2d5   :  { %7933 = vst [vmem:[#allocation56_spill] sm:$0xff] %v5628_v19 }
 0x2d7   :  { %1580 = vmatpush2.bf16.msra.mxu0 %v5613_v9  ;;  %v5631_v9 = vld [vmem:[#allocation6 + $0x1b0] ss:$24 sps:$4 sm:$0xff]  }
 0x2d8   :  { %1581 = vmatprep.subr.bf16.mxu0 %v5616_v42  ;;  %7934 = vst [vmem:[#allocation30_spill] sm:$0xff] %v5631_v9  ;;  %v5634_v42 = vld [vmem:[#allocation6 + $0x184] ss:$24 sps:$4 sm:$0xff]  }
 0x2d9   :  { %7935 = vst [vmem:[#allocation31_spill] sm:$0xff] %v5634_v42 }
 0x2db   :  { %1582 = vmatpush2.bf16.msra.mxu0 %v5619_v20  ;;  %v5637_v20 = vld [vmem:[#allocation6 + $0x180] ss:$24 sps:$4 sm:$0xff]  }
 0x2dc   :  { %1583 = vmatprep.subr.bf16.mxu0 %v5622_v7  ;;  %7936 = vst [vmem:[#allocation58_spill] sm:$0xff] %v5637_v20 }
 0x2df   :  { %1584 = vmatpush2.bf16.msra.mxu0 %v5625_v2 }
 0x2e0   :  { %1585 = vmatprep.subr.bf16.mxu0 %v5628_v19 }
 0x2e3   :  { %1586 = vmatpush2.bf16.msra.mxu0 %v5631_v9 }
 0x2e4   :  { %1587 = vmatprep.subr.bf16.mxu0 %v5634_v42 }
 0x2e7   :  { %1588 = vmatpush2.bf16.msra.mxu0 %v5637_v20 }
 0x2e8   :  { %1639 = vmatprep.subr.bf16.mxu0 %v5103_v30 }
 0x32a   :  { %v1334_v7 = vpop.f32.mrf.mxu0  ;;  %v1375_v2 = vpop.f32.mrf.mxu1 }
 0x32b   :  { %v1426_v12 = vadd.f32 %v1334_v7, %v5360_v47  ;;  %v1428_v45 = vadd.f32 %v1375_v2, %v5376_v49 }
 0x32c   :  { %v1336_v36 = vpop.f32.mrf.mxu0  ;;  %v5642_v19 = vpop.f32.mrf.mxu1 }
 0x32d   :  { %v1429_v22 = vadd.f32 %v1426_v12, %v5266_v27  ;;  %v1427_v42 = vadd.f32 %v1336_v36, %v5366_v55 }
 0x32e   :  { %v1338_v9 = vpop.f32.mrf.mxu0  ;;  %v1379_v33 = vpop.f32.mrf.mxu1 }
 0x32f   :  { %v3759_v24 = vmul.f32 -1.442695, %v1429_v22  ;;  %v1436_v20 = vadd.f32 %v1427_v42, %v5270_v31 }
 0x330   :  { %v1339_v37 = vpop.f32.mrf.mxu0  ;;  %v1380_v13 = vpop.f32.mrf.mxu1 }
 0x331   :  { %4391 = vpow2.f32 %v3759_v24  ;;  %v3760_v30 = vmul.f32 -1.442695, %v1436_v20 }
 0x333   :  { %4393 = vpow2.f32 %v3760_v30  ;;  %v5701_v30 = vld [vmem:[#allocation6 + $0x3c] ss:$24 sps:$4 sm:$0xff]  }
 0x334   :  { %7938 = vst [vmem:[#allocation32_spill] sm:$0xff] %v5701_v30 }
 0x33e   :  { %v4392_v3 = vpop.eup %4391 }
 0x33f   :  { %v1433_v28 = vadd.f32 1.0, %v4392_v3  ;;  %v5698_v3 = vld [vmem:[#allocation6 + $0x68] ss:$24 sps:$4 sm:$0xff]  }
 0x340   :  { %v4394_v7 = vpop.eup %4393  ;;  %7937 = vst [vmem:[#allocation60_spill] sm:$0xff] %v5698_v3 }
 0x341   :  { %4395 = vrcp.f32 %v1433_v28  ;;  %v1440_v47 = vadd.f32 1.0, %v4394_v7  ;;  %v5695_v28 = vld [vmem:[#allocation6 + $0x6c] ss:$24 sps:$4 sm:$0xff]   ;;  %v5704_v7 = vld [vmem:[#allocation6 + $0x38] ss:$24 sps:$4 sm:$0xff]  }
 0x342   :  { %7939 = vst [vmem:[#allocation35_spill] sm:$0xff] %v5704_v7 }
 0x343   :  { %4397 = vrcp.f32 %v1440_v47  ;;  %v5686_v47 = vld [vmem:[#allocation6 + $0xc8] ss:$24 sps:$4 sm:$0xff]  }
 0x34e   :  { %v4396_v27 = vpop.eup %4395 }
 0x34f   :  { %v1443_v9 = vmul.f32 %v4396_v27, %v1428_v45  ;;  %v5692_v45 = vld [vmem:[#allocation6 + $0x98] ss:$24 sps:$4 sm:$0xff]   ;;  %v5707_v27 = vld [vmem:[#allocation6 + $0xc] ss:$24 sps:$4 sm:$0xff]  }
 0x350   :  { %v4398_v22 = vpop.eup %4397  ;;  %7940 = vst [vmem:[#allocation62_spill] sm:$0xff] %v5707_v27 }
 0x351   :  { %v1444_v12 = vadd.f32 %v1443_v9, %v5298_v40  ;;  %v1446_v36 = vsub.f32 1.0, %v4398_v22  ;;  %v1448_v31 = vmul.f32 %v4398_v22, %v5381_v23  ;;  %v5689_v23 = vld [vmem:[#allocation6 + $0x9c] ss:$24 sps:$4 sm:$0xff]   ;;  %v5710_v9 = vld [vmem:[#allocation6 + $0x8] ss:$24 sps:$4 sm:$0xff]  }
 0x352   :  { %7941 = vst [vmem:[#allocation36_spill] sm:$0xff] %v5710_v9  ;;  %v5716_v22 = vld [vmem:[#allocation6 + $0x2d8] ss:$24 sps:$4 sm:$0xff]  }
 0x353   :  { %4399 = vtanh.f32 %v1444_v12  ;;  %v5713_v12 = vld [vmem:[#allocation6 + $0x2dc] ss:$24 sps:$4 sm:$0xff]   ;;  %7943 = vst [vmem:[#allocation40_spill] sm:$0xff] %v5716_v22 }
 0x354   :  { %7942 = vst [vmem:[#allocation39_spill] sm:$0xff] %v5713_v12 }
 0x360   :  { %v4400_v24 = vpop.eup %4399 }
 0x361   :  { %v1447_v37 = vmul.f32 %v4400_v24, %v1446_v36  ;;  %v5719_v36 = vld [vmem:[#allocation6 + $0x2ac] ss:$24 sps:$4 sm:$0xff]   ;;  %v5722_v24 = vld [vmem:[#allocation6 + $0x2a8] ss:$24 sps:$4 sm:$0xff]  }
 0x362   :  { %7944 = vst [vmem:[#allocation43_spill] sm:$0xff] %v5719_v36  ;;  %7945 = vst [vmem:[#allocation44_spill] sm:$0xff] %v5722_v24 }
 0x363   :  { %v5650_v42 = vadd.f32 %v1448_v31, %v1447_v37  ;;  %v5725_v37 = vld [vmem:[#allocation6 + $0x27c] ss:$24 sps:$4 sm:$0xff]   ;;  %v5728_v31 = vld [vmem:[#allocation6 + $0x278] ss:$24 sps:$4 sm:$0xff]  }
 0x364   :  { %7946 = vst [vmem:[#allocation47_spill] sm:$0xff] %v5725_v37  ;;  %7947 = vst [vmem:[#allocation48_spill] sm:$0xff] %v5728_v31 }
 0x365   :  { %v5654_v20 = vpack.c.bf16 %v5650_v42, %v5650_v42 }
 0x367   :  { %1484 = vmatmul.mubr.bf16.vlgmr.msra.gmra.mxu1 %v5654_v20 }
 0x368   :  { %3971 = vmatpush3.bf16.msra.mxu1 %v5383_v21  ;;  %3986 = vmatprep.mubr.msk.bf16.mxu1 %vm4845_vm1, %v7849_v10 }
 0x369   :  { %3972 = vmatprep.subr.bf16.mxu1 %v7849_v10 }
 0x36a   :  { %v5661_v2 = vpop.f32.mrf.mxu0 }
 0x36c   :  { %v5663_v40 = vpop.f32.mrf.mxu0  ;;  %3973 = vmatpush3.bf16.msra.mxu1 %v5391_v8 }
 0x36d   :  { %3974 = vmatprep.subr.bf16.mxu1 %v7849_v10 }
 0x36e   :  { %v1420_v33 = vpop.f32.mrf.mxu0 }
 0x36f   :  { %v5731_v33 = vld [vmem:[#allocation6 + $0x24c] ss:$24 sps:$4 sm:$0xff]  }
 0x370   :  { %v1421_v13 = vpop.f32.mrf.mxu0  ;;  %3975 = vmatpush3.bf16.msra.mxu1 %v5397_v29  ;;  %7948 = vst [vmem:[#allocation51_spill] sm:$0xff] %v5731_v33 }
 0x371   :  { %3976 = vmatprep.subr.bf16.mxu1 %v7849_v10  ;;  %v5734_v13 = vld [vmem:[#allocation6 + $0x248] ss:$24 sps:$4 sm:$0xff]  }
 0x372   :  { %7949 = vst [vmem:[#allocation53_spill] sm:$0xff] %v5734_v13 }
 0x374   :  { %3977 = vmatpush3.bf16.msra.mxu1 %v5401_v26 }
 0x375   :  { %3978 = vmatprep.subr.bf16.mxu1 %v7849_v10 }
 0x378   :  { %3979 = vmatpush3.bf16.msra.mxu1 %v5405_v43 }
 0x379   :  { %3980 = vmatprep.subr.bf16.mxu1 %v7849_v10 }
 0x37c   :  { %3981 = vmatpush3.bf16.msra.mxu1 %v5409_v51 }
 0x37d   :  { %3982 = vmatprep.subr.bf16.mxu1 %v7849_v10 }
 0x380   :  { %3983 = vmatpush3.bf16.msra.mxu1 %v5413_v53 }
 0x381   :  { %3984 = vmatprep.subr.bf16.mxu1 %v7849_v10 }
 0x384   :  { %3985 = vmatpush3.bf16.msra.mxu1 %v5417_v39 }
 0x385   :  { %1598 = vmatprep.subr.bf16.mxu1 %v5421_v6 }
 0x387   :  { %3987 = vmatmul.mubr.bf16.vlgmr.msra.gmra.mxu1 %v5654_v20 }
 0x388   :  { %1599 = vmatpush1.bf16.msra.mxu1 %v5425_v57 }
 0x389   :  { %1600 = vmatprep.subr.bf16.mxu1 %v5428_v58 }
 0x38c   :  { %1601 = vmatpush1.bf16.msra.mxu1 %v5431_v61 }
 0x38d   :  { %1602 = vmatprep.subr.bf16.mxu1 %v5434_v63 }
 0x390   :  { %1603 = vmatpush1.bf16.msra.mxu1 %v5437_v1 }
 0x391   :  { %1604 = vmatprep.subr.bf16.mxu1 %v5440_v4 }
 0x394   :  { %1605 = vmatpush1.bf16.msra.mxu1 %v5686_v47 }
 0x395   :  { %1606 = vmatprep.subr.bf16.mxu1 %v5689_v23 }
 0x398   :  { %1607 = vmatpush1.bf16.msra.mxu1 %v5692_v45 }
 0x399   :  { %1608 = vmatprep.subr.bf16.mxu1 %v5695_v28 }
 0x39c   :  { %1609 = vmatpush1.bf16.msra.mxu1 %v5698_v3 }
 0x39d   :  { %1610 = vmatprep.subr.bf16.mxu1 %v5701_v30 }
 0x3a0   :  { %1611 = vmatpush1.bf16.msra.mxu1 %v5704_v7 }
 0x3a1   :  { %1612 = vmatprep.subr.bf16.mxu1 %v5707_v27 }
 0x3a4   :  { %1613 = vmatpush1.bf16.msra.mxu1 %v5710_v9 }
 0x3a5   :  { %1614 = vmatprep.subr.bf16.mxu1 %v5713_v12 }
 0x3a8   :  { %1615 = vmatpush2.bf16.msra.mxu1 %v5716_v22 }
 0x3a9   :  { %1616 = vmatprep.subr.bf16.mxu1 %v5719_v36  ;;  %v5737_v36 = vld [vmem:[#allocation6 + $0x21c] ss:$24 sps:$4 sm:$0xff]  }
 0x3aa   :  { %7950 = vst [vmem:[#allocation55_spill] sm:$0xff] %v5737_v36 }
 0x3ac   :  { %1617 = vmatpush2.bf16.msra.mxu1 %v5722_v24  ;;  %v5740_v24 = vld [vmem:[#allocation6 + $0x218] ss:$24 sps:$4 sm:$0xff]  }
 0x3ad   :  { %1618 = vmatprep.subr.bf16.mxu1 %v5725_v37  ;;  %7951 = vst [vmem:[#allocation57_spill] sm:$0xff] %v5740_v24  ;;  %v5743_v37 = vld [vmem:[#allocation6 + $0x1ec] ss:$24 sps:$4 sm:$0xff]  }
 0x3ae   :  { %7952 = vst [vmem:[#allocation59_spill] sm:$0xff] %v5743_v37 }
 0x3b0   :  { %1619 = vmatpush2.bf16.msra.mxu1 %v5728_v31  ;;  %v5746_v31 = vld [vmem:[#allocation6 + $0x1e8] ss:$24 sps:$4 sm:$0xff]  }
 0x3b1   :  { %1620 = vmatprep.subr.bf16.mxu1 %v5731_v33  ;;  %7953 = vst [vmem:[#allocation61_spill] sm:$0xff] %v5746_v31  ;;  %v5749_v33 = vld [vmem:[#allocation6 + $0x1bc] ss:$24 sps:$4 sm:$0xff]  }
 0x3b2   :  { %7954 = vst [vmem:[#allocation63_spill] sm:$0xff] %v5749_v33 }
 0x3b4   :  { %1621 = vmatpush2.bf16.msra.mxu1 %v5734_v13  ;;  %v5752_v13 = vld [vmem:[#allocation6 + $0x1b8] ss:$24 sps:$4 sm:$0xff]  }
 0x3b5   :  { %1622 = vmatprep.subr.bf16.mxu1 %v5737_v36  ;;  %7955 = vst [vmem:[#allocation64_spill] sm:$0xff] %v5752_v13  ;;  %v5755_v36 = vld [vmem:[#allocation6 + $0x18c] ss:$24 sps:$4 sm:$0xff]  }
 0x3b6   :  { %7956 = vst [vmem:[#allocation85_spill] sm:$0xff] %v5755_v36 }
 0x3b8   :  { %1623 = vmatpush2.bf16.msra.mxu1 %v5740_v24  ;;  %v5758_v24 = vld [vmem:[#allocation6 + $0x188] ss:$24 sps:$4 sm:$0xff]  }
 0x3b9   :  { %1624 = vmatprep.subr.bf16.mxu1 %v5743_v37  ;;  %7957 = vst [vmem:[#allocation86_spill] sm:$0xff] %v5758_v24 }
 0x3bc   :  { %1625 = vmatpush2.bf16.msra.mxu1 %v5746_v31  ;;  %v1532_v31 = vadd.f32 %v5642_v19, %v5469_v62 }
 0x3bd   :  { %1626 = vmatprep.subr.bf16.mxu1 %v5749_v33 }
 0x3c0   :  { %1627 = vmatpush2.bf16.msra.mxu1 %v5752_v13 }
 0x3c1   :  { %1628 = vmatprep.subr.bf16.mxu1 %v5755_v36  ;;  %v1533_v36 = vadd.f32 %v5661_v2, %v5476_v16 }
 0x3c4   :  { %1629 = vmatpush2.bf16.msra.mxu1 %v5758_v24 }
 0x3c5   :  { %1708 = vmatprep.subr.bf16.mxu1 %v7856_v56 }
 0x427   :  { %v1485_v37 = vpop.f32.mrf.mxu1 }
 0x428   :  { %v1486_v33 = vadd.f32 %v1485_v37, %v5471_v0 }
 0x429   :  { %v1487_v22 = vpop.f32.mrf.mxu1 }
 0x42a   :  { %v1535_v12 = vadd.f32 %v1532_v31, %v1486_v33  ;;  %v1488_v27 = vadd.f32 %v1487_v22, %v5478_v11 }
 0x42b   :  { %v1489_v9 = vpop.f32.mrf.mxu1 }
 0x42c   :  { %v3761_v13 = vmul.f32 -1.442695, %v1535_v12  ;;  %v1542_v24 = vadd.f32 %v1533_v36, %v1488_v27  ;;  %v1534_v9 = vadd.f32 %v5663_v40, %v5483_v60  ;;  %v5781_v40 = vld [vmem:[#allocation6 + $0x134] ss:$24 sps:$4 sm:$0xff]  }
 0x42d   :  { %v1490_v7 = vpop.f32.mrf.mxu1 }
 0x42e   :  { %4401 = vpow2.f32 %v3761_v13  ;;  %v3762_v30 = vmul.f32 -1.442695, %v1542_v24 }
 0x430   :  { %4403 = vpow2.f32 %v3762_v30 }
 0x43b   :  { %v4402_v56 = vpop.eup %4401 }
 0x43c   :  { %v1539_v3 = vadd.f32 1.0, %v4402_v56  ;;  %v5787_v56 = vld [vmem:[#allocation7 + $0xac] ss:$12 sps:$4 sm:$0xff]  }
 0x43d   :  { %v4404_v19 = vpop.eup %4403 }
 0x43e   :  { %4405 = vrcp.f32 %v1539_v3  ;;  %v1546_v37 = vadd.f32 1.0, %v4404_v19  ;;  %v5791_v19 = vld [vmem:[#allocation6 + $0x130] ss:$24 sps:$4 sm:$0xff]  }
 0x440   :  { %4407 = vrcp.f32 %v1546_v37  ;;  %v5794_v37 = vld [vmem:[#allocation6 + $0x104] ss:$24 sps:$4 sm:$0xff]  }
 0x447   :  { %v1526_v62 = vpop.f32.mrf.mxu1 }
 0x448   :  { %v1527_v7 = vadd.f32 %v1526_v62, %v5485_v38  ;;  %v5778_v62 = vld [vmem:[#allocation6 + $0x160] ss:$24 sps:$4 sm:$0xff]  }
 0x449   :  { %v3988_v0 = vpop.f32.mrf.mxu1 }
 0x44b   :  { %v4406_v12 = vpop.eup %4405  ;;  %v1529_v22 = vpop.f32.mrf.mxu1 }
 0x44c   :  { %v1549_v2 = vmul.f32 %v4406_v12, %v1534_v9  ;;  %v5797_v9 = vld [vmem:[#allocation7 + $0xa8] ss:$12 sps:$4 sm:$0xff]   ;;  %v5803_v22 = vld [vmem:[#allocation6 + $0x100] ss:$24 sps:$4 sm:$0xff]  }
 0x44d   :  { %v3989_v31 = vpop.f32.mrf.mxu1  ;;  %v4408_v30 = vpop.eup %4407  ;;  %v5800_v12 = vld [vmem:[#allocation7 + $0x94] ss:$12 sps:$4 sm:$0xff]  }
 0x44e   :  { %v1550_v27 = vadd.f32 %v1549_v2, %v1527_v7  ;;  %v1552_v36 = vsub.f32 1.0, %v4408_v30  ;;  %v1554_v33 = vmul.f32 %v4408_v30, %v5489_v59  ;;  %v5784_v59 = vld [vmem:[#allocation7 + $0xc0] ss:$12 sps:$4 sm:$0xff]   ;;  %v5809_v2 = vld [vmem:[#allocation7 + $0x90] ss:$12 sps:$4 sm:$0xff]  }
 0x44f   :  { %v5806_v7 = vld [vmem:[#allocation6 + $0xd4] ss:$24 sps:$4 sm:$0xff]   ;;  %v5812_v31 = vld [vmem:[#allocation7 + $0x7c] ss:$12 sps:$4 sm:$0xff]  }
 0x450   :  { %4409 = vtanh.f32 %v1550_v27  ;;  %v5815_v27 = vld [vmem:[#allocation6 + $0xd0] ss:$24 sps:$4 sm:$0xff]   ;;  %v5818_v30 = vld [vmem:[#allocation6 + $0xa4] ss:$24 sps:$4 sm:$0xff]  }
 0x451   :  { %7958 = vst [vmem:[#allocation87_spill] sm:$0xff] %v5818_v30 }
 0x45d   :  { %v4410_v24 = vpop.eup %4409 }
 0x45e   :  { %v1553_v3 = vmul.f32 %v4410_v24, %v1552_v36  ;;  %v5821_v36 = vld [vmem:[#allocation7 + $0x78] ss:$12 sps:$4 sm:$0xff]  }
 0x45f   :  { %7959 = vst [vmem:[#allocation88_spill] sm:$0xff] %v5821_v36  ;;  %v5824_v24 = vld [vmem:[#allocation7 + $0x64] ss:$12 sps:$4 sm:$0xff]  }
 0x460   :  { %v5772_v13 = vadd.f32 %v1554_v33, %v1553_v3  ;;  %7960 = vst [vmem:[#allocation89_spill] sm:$0xff] %v5824_v24  ;;  %v5827_v3 = vld [vmem:[#allocation6 + $0xa0] ss:$24 sps:$4 sm:$0xff]   ;;  %v5830_v33 = vld [vmem:[#allocation6 + $0x74] ss:$24 sps:$4 sm:$0xff]  }
 0x461   :  { %7961 = vst [vmem:[#allocation90_spill] sm:$0xff] %v5827_v3  ;;  %7962 = vst [vmem:[#allocation91_spill] sm:$0xff] %v5830_v33 }
 0x462   :  { %v1556_v0 = vpack.c.bf16 %v5772_v13, %v5772_v13 }
 0x464   :  { %1589 = vmatprep.mubr.bf16.mxu0 %v1556_v0  ;;  %1630 = vmatprep.mubr.bf16.mxu1 %v1556_v0 }
 0x465   :  { %1590 = vmatmul.mubr.bf16.vlgmr.msra.gmra.mxu0 %v5654_v20  ;;  %1631 = vmatmul.mubr.bf16.vlgmr.msra.gmra.mxu1 %v5654_v20 }
 0x466   :  { %1640 = vmatpush1.bf16.msra.mxu0 %v5778_v62  ;;  %1671 = vmatprep.mubr.bf16.mxu0 %v1556_v0  ;;  %v5833_v0 = vld [vmem:[#allocation7 + $0x60] ss:$12 sps:$4 sm:$0xff]  }
 0x467   :  { %1641 = vmatprep.subr.bf16.mxu0 %v5781_v40  ;;  %1709 = vmatpush1.bf16.msra.mxu1 %v5784_v59  ;;  %7963 = vst [vmem:[#allocation92_spill] sm:$0xff] %v5833_v0 }
 0x468   :  { %1710 = vmatprep.subr.bf16.mxu1 %v5787_v56  ;;  %1740 = vmatprep.mubr.bf16.mxu1 %v7829_v32 }
 0x46a   :  { %1642 = vmatpush1.bf16.msra.mxu0 %v5791_v19 }
 0x46b   :  { %1643 = vmatprep.subr.bf16.mxu0 %v5794_v37  ;;  %1711 = vmatpush1.bf16.msra.mxu1 %v5797_v9 }
 0x46c   :  { %1712 = vmatprep.subr.bf16.mxu1 %v5800_v12 }
 0x46e   :  { %1644 = vmatpush1.bf16.msra.mxu0 %v5803_v22 }
 0x46f   :  { %1645 = vmatprep.subr.bf16.mxu0 %v5806_v7  ;;  %1713 = vmatpush1.bf16.msra.mxu1 %v5809_v2 }
 0x470   :  { %1714 = vmatprep.subr.bf16.mxu1 %v5812_v31 }
 0x472   :  { %1646 = vmatpush1.bf16.msra.mxu0 %v5815_v27 }
 0x473   :  { %1647 = vmatprep.subr.bf16.mxu0 %v5818_v30  ;;  %1715 = vmatpush1.bf16.msra.mxu1 %v5821_v36  ;;  %v5837_v30 = vld [vmem:[#allocation6 + $0x70] ss:$24 sps:$4 sm:$0xff]   ;;  %v5840_v36 = vld [vmem:[#allocation6 + $0x44] ss:$24 sps:$4 sm:$0xff]  }
 0x474   :  { %1716 = vmatprep.subr.bf16.mxu1 %v5824_v24  ;;  %7964 = vst [vmem:[#allocation93_spill] sm:$0xff] %v5837_v30  ;;  %7965 = vst [vmem:[#allocation94_spill] sm:$0xff] %v5840_v36 }
 0x476   :  { %1648 = vmatpush1.bf16.msra.mxu0 %v5827_v3  ;;  %v5845_v3 = vld [vmem:[#allocation6 + $0x40] ss:$24 sps:$4 sm:$0xff]  }
 0x477   :  { %1649 = vmatprep.subr.bf16.mxu0 %v5830_v33  ;;  %1717 = vmatpush1.bf16.msra.mxu1 %v5833_v0  ;;  %7966 = vst [vmem:[#allocation95_spill] sm:$0xff] %v5845_v3  ;;  %v5848_v33 = vld [vmem:[#allocation6 + $0x14] ss:$24 sps:$4 sm:$0xff]  }
 0x478   :  { %1718 = vmatprep.subr.bf16.mxu1 %v7878_v14  ;;  %7967 = vst [vmem:[#allocation96_spill] sm:$0xff] %v5848_v33  ;;  %v5853_v14 = vld [vmem:[#allocation6 + $0x10] ss:$24 sps:$4 sm:$0xff]  }
 0x479   :  { %7968 = vst [vmem:[#allocation97_spill] sm:$0xff] %v5853_v14 }
 0x47a   :  { %1650 = vmatpush1.bf16.msra.mxu0 %v5837_v30 }
 0x47b   :  { %1651 = vmatprep.subr.bf16.mxu0 %v5840_v36  ;;  %1719 = vmatpush1.bf16.msra.mxu1 %v7881_v15  ;;  %v5856_v36 = vld [vmem:[#allocation6 + $0x2e4] ss:$24 sps:$4 sm:$0xff]   ;;  %v5861_v15 = vld [vmem:[#allocation6 + $0x2e0] ss:$24 sps:$4 sm:$0xff]  }
 0x47c   :  { %1720 = vmatprep.subr.bf16.mxu1 %v7882_v41  ;;  %7969 = vst [vmem:[#allocation98_spill] sm:$0xff] %v5856_v36  ;;  %7970 = vst [vmem:[#allocation99_spill] sm:$0xff] %v5861_v15  ;;  %v5864_v41 = vld [vmem:[#allocation6 + $0x2b4] ss:$24 sps:$4 sm:$0xff]  }
 0x47d   :  { %7971 = vst [vmem:[#allocation100_spill] sm:$0xff] %v5864_v41 }
 0x47e   :  { %1652 = vmatpush1.bf16.msra.mxu0 %v5845_v3 }
 0x47f   :  { %1653 = vmatprep.subr.bf16.mxu0 %v5848_v33  ;;  %1721 = vmatpush1.bf16.msra.mxu1 %v7885_v48  ;;  %v5867_v48 = vld [vmem:[#allocation6 + $0x2b0] ss:$24 sps:$4 sm:$0xff]  }
 0x480   :  { %1722 = vmatprep.subr.bf16.mxu1 %v7886_v50  ;;  %7972 = vst [vmem:[#allocation101_spill] sm:$0xff] %v5867_v48  ;;  %v5870_v50 = vld [vmem:[#allocation6 + $0x284] ss:$24 sps:$4 sm:$0xff]  }
 0x481   :  { %7973 = vst [vmem:[#allocation102_spill] sm:$0xff] %v5870_v50 }
 0x482   :  { %1654 = vmatpush1.bf16.msra.mxu0 %v5853_v14 }
 0x483   :  { %1655 = vmatprep.subr.bf16.mxu0 %v5856_v36  ;;  %1723 = vmatpush1.bf16.msra.mxu1 %v7889_v54  ;;  %v5873_v36 = vld [vmem:[#allocation6 + $0x280] ss:$24 sps:$4 sm:$0xff]   ;;  %v5876_v54 = vld [vmem:[#allocation6 + $0x254] ss:$24 sps:$4 sm:$0xff]  }
 0x484   :  { %3990 = vmatprep.subr.bf16.mxu1 %v7849_v10  ;;  %7974 = vst [vmem:[#allocation103_spill] sm:$0xff] %v5873_v36  ;;  %7975 = vst [vmem:[#allocation104_spill] sm:$0xff] %v5876_v54 }
 0x486   :  { %1656 = vmatpush2.bf16.msra.mxu0 %v5861_v15  ;;  %v5879_v15 = vld [vmem:[#allocation6 + $0x250] ss:$24 sps:$4 sm:$0xff]  }
 0x487   :  { %1657 = vmatprep.subr.bf16.mxu0 %v5864_v41  ;;  %7976 = vst [vmem:[#allocation105_spill] sm:$0xff] %v5879_v15  ;;  %v5882_v41 = vld [vmem:[#allocation6 + $0x224] ss:$24 sps:$4 sm:$0xff]  }
 0x488   :  { %7977 = vst [vmem:[#allocation106_spill] sm:$0xff] %v5882_v41 }
 0x48a   :  { %1658 = vmatpush2.bf16.msra.mxu0 %v5867_v48  ;;  %v5885_v48 = vld [vmem:[#allocation6 + $0x220] ss:$24 sps:$4 sm:$0xff]  }
 0x48b   :  { %1659 = vmatprep.subr.bf16.mxu0 %v5870_v50  ;;  %7978 = vst [vmem:[#allocation107_spill] sm:$0xff] %v5885_v48  ;;  %v5888_v50 = vld [vmem:[#allocation6 + $0x1f4] ss:$24 sps:$4 sm:$0xff]  }
 0x48c   :  { %7979 = vst [vmem:[#allocation108_spill] sm:$0xff] %v5888_v50 }
 0x48e   :  { %1660 = vmatpush2.bf16.msra.mxu0 %v5873_v36  ;;  %v5891_v36 = vld [vmem:[#allocation6 + $0x1f0] ss:$24 sps:$4 sm:$0xff]  }
 0x48f   :  { %1661 = vmatprep.subr.bf16.mxu0 %v5876_v54  ;;  %7980 = vst [vmem:[#allocation109_spill] sm:$0xff] %v5891_v36  ;;  %v5894_v54 = vld [vmem:[#allocation6 + $0x1c4] ss:$24 sps:$4 sm:$0xff]  }
 0x490   :  { %7981 = vst [vmem:[#allocation110_spill] sm:$0xff] %v5894_v54 }
 0x492   :  { %1662 = vmatpush2.bf16.msra.mxu0 %v5879_v15  ;;  %v5897_v15 = vld [vmem:[#allocation6 + $0x1c0] ss:$24 sps:$4 sm:$0xff]  }
 0x493   :  { %1663 = vmatprep.subr.bf16.mxu0 %v5882_v41  ;;  %7982 = vst [vmem:[#allocation111_spill] sm:$0xff] %v5897_v15  ;;  %v5900_v41 = vld [vmem:[#allocation6 + $0x194] ss:$24 sps:$4 sm:$0xff]  }
 0x494   :  { %7983 = vst [vmem:[#allocation112_spill] sm:$0xff] %v5900_v41 }
 0x496   :  { %1664 = vmatpush2.bf16.msra.mxu0 %v5885_v48  ;;  %v8011_v48 = vld [vmem:[#allocation68_spill] sm:$0xff] }
 0x497   :  { %1665 = vmatprep.subr.bf16.mxu0 %v5888_v50 }
 0x49a   :  { %1666 = vmatpush2.bf16.msra.mxu0 %v5891_v36 }
 0x49b   :  { %1667 = vmatprep.subr.bf16.mxu0 %v5894_v54 }
 0x49e   :  { %1668 = vmatpush2.bf16.msra.mxu0 %v5897_v15 }
 0x49f   :  { %1669 = vmatprep.subr.bf16.mxu0 %v5900_v41  ;;  %v7984_v41 = vld [vmem:[#allocation37_spill] sm:$0xff] }
 0x4a2   :  { %1670 = vmatpush2.bf16.msra.mxu0 %v7904_v35  ;;  %v7985_v35 = vld [vmem:[#allocation20_spill] sm:$0xff] }
 0x4a3   :  { %1814 = vmatprep.subr.bf16.mxu0 %v5543_v5  ;;  %v7986_v5 = vld [vmem:[#allocation21_spill] sm:$0xff] }
 0x4a5   :  { %1672 = vmatmul.mubr.bf16.vlgmr.msra.gmra.mxu0 %v5654_v20  ;;  %v7987_v20 = vld [vmem:[#allocation38_spill] sm:$0xff] }
 0x4a6   :  { %1815 = vmatpush1.bf16.msra.mxu0 %v5547_v34  ;;  %v7988_v34 = vld [vmem:[#allocation41_spill] sm:$0xff] }
 0x4a7   :  { %1816 = vmatprep.subr.bf16.mxu0 %v5550_v25  ;;  %v7989_v25 = vld [vmem:[#allocation22_spill] sm:$0xff] }
 0x4aa   :  { %1817 = vmatpush1.bf16.msra.mxu0 %v5553_v44  ;;  %v7990_v44 = vld [vmem:[#allocation23_spill] sm:$0xff] }
 0x4ab   :  { %1818 = vmatprep.subr.bf16.mxu0 %v5556_v46  ;;  %v7991_v46 = vld [vmem:[#allocation42_spill] sm:$0xff] }
 0x4ae   :  { %1819 = vmatpush1.bf16.msra.mxu0 %v5559_v17  ;;  %v7992_v17 = vld [vmem:[#allocation45_spill] sm:$0xff] }
 0x4af   :  { %1820 = vmatprep.subr.bf16.mxu0 %v5562_v18  ;;  %v7993_v18 = vld [vmem:[#allocation24_spill] sm:$0xff] }
 0x4b2   :  { %1821 = vmatpush1.bf16.msra.mxu0 %v5565_v52  ;;  %v7994_v52 = vld [vmem:[#allocation25_spill] sm:$0xff] }
 0x4b3   :  { %1822 = vmatprep.subr.bf16.mxu0 %v7984_v41  ;;  %v7995_v41 = vld [vmem:[#allocation46_spill] sm:$0xff] }
 0x4b6   :  { %1823 = vmatpush1.bf16.msra.mxu0 %v7985_v35  ;;  %v7996_v35 = vld [vmem:[#allocation49_spill] sm:$0xff] }
 0x4b7   :  { %1824 = vmatprep.subr.bf16.mxu0 %v7986_v5  ;;  %v7997_v5 = vld [vmem:[#allocation26_spill] sm:$0xff] }
 0x4ba   :  { %1825 = vmatpush1.bf16.msra.mxu0 %v7987_v20  ;;  %v7998_v20 = vld [vmem:[#allocation27_spill] sm:$0xff] }
 0x4bb   :  { %1826 = vmatprep.subr.bf16.mxu0 %v7988_v34  ;;  %v7999_v34 = vld [vmem:[#allocation50_spill] sm:$0xff] }
 0x4be   :  { %1827 = vmatpush1.bf16.msra.mxu0 %v7989_v25  ;;  %v8000_v25 = vld [vmem:[#allocation52_spill] sm:$0xff] }
 0x4bf   :  { %1828 = vmatprep.subr.bf16.mxu0 %v7990_v44  ;;  %v8001_v44 = vld [vmem:[#allocation28_spill] sm:$0xff] }
 0x4c2   :  { %1829 = vmatpush1.bf16.msra.mxu0 %v7991_v46  ;;  %v8002_v46 = vld [vmem:[#allocation29_spill] sm:$0xff] }
 0x4c3   :  { %1830 = vmatprep.subr.bf16.mxu0 %v7992_v17  ;;  %v8003_v17 = vld [vmem:[#allocation54_spill] sm:$0xff] }
 0x4c6   :  { %1831 = vmatpush2.bf16.msra.mxu0 %v7993_v18  ;;  %v8004_v18 = vld [vmem:[#allocation56_spill] sm:$0xff] }
 0x4c7   :  { %1832 = vmatprep.subr.bf16.mxu0 %v7994_v52  ;;  %v8005_v52 = vld [vmem:[#allocation30_spill] sm:$0xff] }
 0x4ca   :  { %1833 = vmatpush2.bf16.msra.mxu0 %v7995_v41  ;;  %v8006_v41 = vld [vmem:[#allocation31_spill] sm:$0xff] }
 0x4cb   :  { %1834 = vmatprep.subr.bf16.mxu0 %v7996_v35  ;;  %v8007_v35 = vld [vmem:[#allocation58_spill] sm:$0xff] }
 0x4ce   :  { %1835 = vmatpush2.bf16.msra.mxu0 %v7997_v5  ;;  %v5937_v5 = vld [vmem:[#allocation6 + $0x164] ss:$24 sps:$4 sm:$0xff]  }
 0x4cf   :  { %1836 = vmatprep.subr.bf16.mxu0 %v7998_v20  ;;  %8008 = vst [vmem:[#allocation113_spill] sm:$0xff] %v5937_v5  ;;  %v8009_v20 = vld [vmem:[#allocation84_spill] sm:$0xff] }
 0x4d2   :  { %1837 = vmatpush2.bf16.msra.mxu0 %v7999_v34 }
 0x4d3   :  { %1838 = vmatprep.subr.bf16.mxu0 %v8000_v25 }
 0x4d6   :  { %1839 = vmatpush2.bf16.msra.mxu0 %v8001_v44 }
 0x4d7   :  { %1840 = vmatprep.subr.bf16.mxu0 %v8002_v46 }
 0x4da   :  { %1841 = vmatpush2.bf16.msra.mxu0 %v8003_v17  ;;  %v8010_v17 = vld [vmem:[#allocation67_spill] sm:$0xff] }
 0x4db   :  { %1842 = vmatprep.subr.bf16.mxu0 %v8004_v18 }
 0x4de   :  { %1843 = vmatpush2.bf16.msra.mxu0 %v8005_v52 }
 0x4df   :  { %1844 = vmatprep.subr.bf16.mxu0 %v8006_v41 }
 0x4e2   :  { %1845 = vmatpush2.bf16.msra.mxu0 %v8007_v35 }
 0x4e3   :  { %1896 = vmatprep.subr.bf16.mxu0 %v5937_v5 }
 0x525   :  { %v1591_v34 = vpop.f32.mrf.mxu0  ;;  %v1632_v25 = vpop.f32.mrf.mxu1 }
 0x526   :  { %v1683_v44 = vadd.f32 %v1591_v34, %v8009_v20  ;;  %v1685_v30 = vadd.f32 %v1632_v25, %v5376_v49 }
 0x527   :  { %v1593_v15 = vpop.f32.mrf.mxu0  ;;  %v5941_v46 = vpop.f32.mrf.mxu1 }
 0x528   :  { %v1686_v54 = vadd.f32 %v1683_v44, %v8010_v17  ;;  %v1684_v41 = vadd.f32 %v1593_v15, %v5366_v55 }
 0x529   :  { %v1595_v18 = vpop.f32.mrf.mxu0  ;;  %v1636_v36 = vpop.f32.mrf.mxu1 }
 0x52a   :  { %v3763_v52 = vmul.f32 -1.442695, %v1686_v54  ;;  %v1693_v14 = vadd.f32 %v1684_v41, %v8011_v48  ;;  %v8012_v18 = vld [vmem:[#allocation66_spill] sm:$0xff]  ;;  %v8028_v41 = vld [vmem:[#allocation59_spill] sm:$0xff]  ;;  %v8029_v48 = vld [vmem:[#allocation61_spill] sm:$0xff] }
 0x52b   :  { %v1596_v50 = vpop.f32.mrf.mxu0  ;;  %v1637_v35 = vpop.f32.mrf.mxu1 }
 0x52c   :  { %4411 = vpow2.f32 %v3763_v52  ;;  %v3764_v5 = vmul.f32 -1.442695, %v1693_v14  ;;  %v8030_v35 = vld [vmem:[#allocation63_spill] sm:$0xff] }
 0x52e   :  { %4413 = vpow2.f32 %v3764_v5 }
 0x539   :  { %v4412_v33 = vpop.eup %4411 }
 0x53a   :  { %v1690_v3 = vadd.f32 1.0, %v4412_v33 }
 0x53b   :  { %v4414_v34 = vpop.eup %4413 }
 0x53c   :  { %4415 = vrcp.f32 %v1690_v3  ;;  %v1697_v20 = vadd.f32 1.0, %v4414_v34  ;;  %v8032_v34 = vld [vmem:[#allocation85_spill] sm:$0xff] }
 0x53e   :  { %4417 = vrcp.f32 %v1697_v20  ;;  %v8031_v20 = vld [vmem:[#allocation64_spill] sm:$0xff] }
 0x549   :  { %v4416_v44 = vpop.eup %4415 }
 0x54a   :  { %v1700_v17 = vmul.f32 %v4416_v44, %v1685_v30  ;;  %v8033_v44 = vld [vmem:[#allocation86_spill] sm:$0xff] }
 0x54b   :  { %v4418_v15 = vpop.eup %4417 }
 0x54c   :  { %v1701_v36 = vadd.f32 %v1700_v17, %v8012_v18  ;;  %v1703_v50 = vsub.f32 1.0, %v4418_v15  ;;  %v1705_v14 = vmul.f32 %v4418_v15, %v5650_v42  ;;  %v6008_v17 = vld [vmem:[#allocation7 + $0xc4] ss:$12 sps:$4 sm:$0xff]  }
 0x54d   :  { %8034 = vst [vmem:[#allocation67_spill] sm:$0xff] %v6008_v17 }
 0x54e   :  { %4419 = vtanh.f32 %v1701_v36  ;;  %v8035_v36 = vld [vmem:[#allocation12_spill] sm:$0xff] }
 0x54f   :  { %v1789_v15 = vadd.f32 %v5941_v46, %v8035_v36 }
 0x55b   :  { %v4420_v52 = vpop.eup %4419 }
 0x55c   :  { %v1704_v54 = vmul.f32 %v4420_v52, %v1703_v50  ;;  %v8036_v50 = vld [vmem:[#allocation13_spill] sm:$0xff] }
 0x55e   :  { %v5949_v5 = vadd.f32 %v1705_v14, %v1704_v54 }
 0x560   :  { %v5953_v3 = vpack.c.bf16 %v5949_v5, %v5949_v5 }
 0x562   :  { %1741 = vmatmul.mubr.bf16.vlgmr.msra.gmra.mxu1 %v5953_v3 }
 0x563   :  { %3991 = vmatpush3.bf16.msra.mxu1 %v5383_v21  ;;  %4006 = vmatprep.mubr.msk.bf16.mxu1 %vm4845_vm1, %v7849_v10  ;;  %v8013_v21 = vld [vmem:[#allocation60_spill] sm:$0xff] }
 0x564   :  { %3992 = vmatprep.subr.bf16.mxu1 %v7849_v10 }
 0x565   :  { %v1673_v25 = vpop.f32.mrf.mxu0 }
 0x567   :  { %v5960_v30 = vpop.f32.mrf.mxu0  ;;  %3993 = vmatpush3.bf16.msra.mxu1 %v5391_v8  ;;  %v8014_v8 = vld [vmem:[#allocation32_spill] sm:$0xff] }
 0x568   :  { %3994 = vmatprep.subr.bf16.mxu1 %v7849_v10 }
 0x569   :  { %v1677_v42 = vpop.f32.mrf.mxu0 }
 0x56b   :  { %v1678_v33 = vpop.f32.mrf.mxu0  ;;  %3995 = vmatpush3.bf16.msra.mxu1 %v5397_v29  ;;  %v8015_v29 = vld [vmem:[#allocation35_spill] sm:$0xff] }
 0x56c   :  { %3996 = vmatprep.subr.bf16.mxu1 %v7849_v10 }
 0x56f   :  { %3997 = vmatpush3.bf16.msra.mxu1 %v5401_v26  ;;  %v8016_v26 = vld [vmem:[#allocation62_spill] sm:$0xff] }
 0x570   :  { %3998 = vmatprep.subr.bf16.mxu1 %v7849_v10 }
 0x573   :  { %3999 = vmatpush3.bf16.msra.mxu1 %v5405_v43  ;;  %v8017_v43 = vld [vmem:[#allocation36_spill] sm:$0xff] }
 0x574   :  { %4000 = vmatprep.subr.bf16.mxu1 %v7849_v10 }
 0x577   :  { %4001 = vmatpush3.bf16.msra.mxu1 %v5409_v51  ;;  %v8018_v51 = vld [vmem:[#allocation39_spill] sm:$0xff] }
 0x578   :  { %4002 = vmatprep.subr.bf16.mxu1 %v7849_v10 }
 0x57b   :  { %4003 = vmatpush3.bf16.msra.mxu1 %v5413_v53  ;;  %v8019_v53 = vld [vmem:[#allocation40_spill] sm:$0xff] }
 0x57c   :  { %4004 = vmatprep.subr.bf16.mxu1 %v7849_v10 }
 0x57f   :  { %4005 = vmatpush3.bf16.msra.mxu1 %v5417_v39  ;;  %v8020_v39 = vld [vmem:[#allocation43_spill] sm:$0xff] }
 0x580   :  { %1855 = vmatprep.subr.bf16.mxu1 %v5421_v6  ;;  %v8021_v6 = vld [vmem:[#allocation44_spill] sm:$0xff] }
 0x582   :  { %4007 = vmatmul.mubr.bf16.vlgmr.msra.gmra.mxu1 %v5953_v3 }
 0x583   :  { %1856 = vmatpush1.bf16.msra.mxu1 %v5425_v57  ;;  %v8022_v57 = vld [vmem:[#allocation47_spill] sm:$0xff] }
 0x584   :  { %1857 = vmatprep.subr.bf16.mxu1 %v5428_v58  ;;  %v8023_v58 = vld [vmem:[#allocation48_spill] sm:$0xff] }
 0x587   :  { %1858 = vmatpush1.bf16.msra.mxu1 %v5431_v61  ;;  %v8024_v61 = vld [vmem:[#allocation51_spill] sm:$0xff] }
 0x588   :  { %1859 = vmatprep.subr.bf16.mxu1 %v5434_v63  ;;  %v8025_v63 = vld [vmem:[#allocation53_spill] sm:$0xff] }
 0x58b   :  { %1860 = vmatpush1.bf16.msra.mxu1 %v5437_v1  ;;  %v8026_v1 = vld [vmem:[#allocation55_spill] sm:$0xff] }
 0x58c   :  { %1861 = vmatprep.subr.bf16.mxu1 %v5440_v4  ;;  %v8027_v4 = vld [vmem:[#allocation57_spill] sm:$0xff] }
 0x58f   :  { %1862 = vmatpush1.bf16.msra.mxu1 %v5686_v47 }
 0x590   :  { %1863 = vmatprep.subr.bf16.mxu1 %v5689_v23 }
 0x593   :  { %1864 = vmatpush1.bf16.msra.mxu1 %v5692_v45 }
 0x594   :  { %1865 = vmatprep.subr.bf16.mxu1 %v5695_v28 }
 0x597   :  { %1866 = vmatpush1.bf16.msra.mxu1 %v8013_v21 }
 0x598   :  { %1867 = vmatprep.subr.bf16.mxu1 %v8014_v8 }
 0x59b   :  { %1868 = vmatpush1.bf16.msra.mxu1 %v8015_v29 }
 0x59c   :  { %1869 = vmatprep.subr.bf16.mxu1 %v8016_v26 }
 0x59f   :  { %1870 = vmatpush1.bf16.msra.mxu1 %v8017_v43 }
 0x5a0   :  { %1871 = vmatprep.subr.bf16.mxu1 %v8018_v51 }
 0x5a3   :  { %1872 = vmatpush2.bf16.msra.mxu1 %v8019_v53 }
 0x5a4   :  { %1873 = vmatprep.subr.bf16.mxu1 %v8020_v39 }
 0x5a7   :  { %1874 = vmatpush2.bf16.msra.mxu1 %v8021_v6 }
 0x5a8   :  { %1875 = vmatprep.subr.bf16.mxu1 %v8022_v57 }
 0x5ab   :  { %1876 = vmatpush2.bf16.msra.mxu1 %v8023_v58 }
 0x5ac   :  { %1877 = vmatprep.subr.bf16.mxu1 %v8024_v61 }
 0x5af   :  { %1878 = vmatpush2.bf16.msra.mxu1 %v8025_v63 }
 0x5b0   :  { %1879 = vmatprep.subr.bf16.mxu1 %v8026_v1 }
 0x5b3   :  { %1880 = vmatpush2.bf16.msra.mxu1 %v8027_v4 }
 0x5b4   :  { %1881 = vmatprep.subr.bf16.mxu1 %v8028_v41 }
 0x5b7   :  { %1882 = vmatpush2.bf16.msra.mxu1 %v8029_v48 }
 0x5b8   :  { %1883 = vmatprep.subr.bf16.mxu1 %v8030_v35 }
 0x5bb   :  { %1884 = vmatpush2.bf16.msra.mxu1 %v8031_v20 }
 0x5bc   :  { %1885 = vmatprep.subr.bf16.mxu1 %v8032_v34  ;;  %v1790_v34 = vadd.f32 %v1673_v25, %v5476_v16 }
 0x5bf   :  { %1886 = vmatpush2.bf16.msra.mxu1 %v8033_v44 }
 0x5c0   :  { %1965 = vmatprep.subr.bf16.mxu1 %v6008_v17 }
 0x622   :  { %v1742_v18 = vpop.f32.mrf.mxu1 }
 0x623   :  { %v1743_v52 = vadd.f32 %v1742_v18, %v8036_v50 }
 0x624   :  { %v1744_v54 = vpop.f32.mrf.mxu1 }
 0x625   :  { %v1792_v14 = vadd.f32 %v1789_v15, %v1743_v52  ;;  %v1745_v20 = vadd.f32 %v1744_v54, %v5478_v11  ;;  %v1791_v15 = vadd.f32 %v5960_v30, %v5483_v60 }
 0x626   :  { %v1746_v42 = vpop.f32.mrf.mxu1 }
 0x627   :  { %v3765_v33 = vmul.f32 -1.442695, %v1792_v14  ;;  %v1799_v44 = vadd.f32 %v1790_v34, %v1745_v20  ;;  %v8039_v42 = vld [vmem:[#allocation90_spill] sm:$0xff] }
 0x628   :  { %v1747_v35 = vpop.f32.mrf.mxu1 }
 0x629   :  { %4421 = vpow2.f32 %v3765_v33  ;;  %v3766_v48 = vmul.f32 -1.442695, %v1799_v44  ;;  %v8040_v33 = vld [vmem:[#allocation91_spill] sm:$0xff] }
 0x62b   :  { %4423 = vpow2.f32 %v3766_v48 }
 0x636   :  { %v4422_v17 = vpop.eup %4421 }
 0x637   :  { %v1796_v41 = vadd.f32 1.0, %v4422_v17 }
 0x638   :  { %v4424_v4 = vpop.eup %4423 }
 0x639   :  { %4425 = vrcp.f32 %v1796_v41  ;;  %v1803_v36 = vadd.f32 1.0, %v4424_v4 }
 0x63b   :  { %4427 = vrcp.f32 %v1803_v36  ;;  %v8038_v36 = vld [vmem:[#allocation88_spill] sm:$0xff] }
 0x642   :  { %v1783_v46 = vpop.f32.mrf.mxu1 }
 0x643   :  { %v1784_v35 = vadd.f32 %v1783_v46, %v5485_v38  ;;  %v6046_v46 = vld [vmem:[#allocation7 + $0x4c] ss:$12 sps:$4 sm:$0xff]  }
 0x644   :  { %v4008_v18 = vpop.f32.mrf.mxu1  ;;  %8041 = vst [vmem:[#allocation68_spill] sm:$0xff] %v6046_v46 }
 0x645   :  { %v8042_v18 = vld [vmem:[#allocation93_spill] sm:$0xff] }
 0x646   :  { %v4426_v52 = vpop.eup %4425  ;;  %v1786_v14 = vpop.f32.mrf.mxu1 }
 0x647   :  { %v1806_v25 = vmul.f32 %v4426_v52, %v1791_v15  ;;  %v8043_v15 = vld [vmem:[#allocation94_spill] sm:$0xff]  ;;  %v6054_v14 = vld [vmem:[#allocation7 + $0x34] ss:$12 sps:$4 sm:$0xff]  }
 0x648   :  { %v4009_v54 = vpop.f32.mrf.mxu1  ;;  %v4428_v48 = vpop.eup %4427  ;;  %v6051_v52 = vld [vmem:[#allocation7 + $0x48] ss:$12 sps:$4 sm:$0xff]   ;;  %8045 = vst [vmem:[#allocation60_spill] sm:$0xff] %v6054_v14 }
 0x649   :  { %v1807_v20 = vadd.f32 %v1806_v25, %v1784_v35  ;;  %v1809_v34 = vsub.f32 1.0, %v4428_v48  ;;  %v1811_v17 = vmul.f32 %v4428_v48, %v5772_v13  ;;  %v8037_v13 = vld [vmem:[#allocation87_spill] sm:$0xff]  ;;  %8044 = vst [vmem:[#allocation66_spill] sm:$0xff] %v6051_v52  ;;  %v8047_v25 = vld [vmem:[#allocation96_spill] sm:$0xff]  ;;  %v8050_v48 = vld [vmem:[#allocation97_spill] sm:$0xff] }
 0x64a   :  { %v8046_v35 = vld [vmem:[#allocation95_spill] sm:$0xff] }
 0x64b   :  { %4429 = vtanh.f32 %v1807_v20  ;;  %v6059_v54 = vld [vmem:[#allocation7 + $0x30] ss:$12 sps:$4 sm:$0xff]  }
 0x64c   :  { %8048 = vst [vmem:[#allocation32_spill] sm:$0xff] %v6059_v54  ;;  %v6062_v20 = vld [vmem:[#allocation7 + $0x1c] ss:$12 sps:$4 sm:$0xff]  }
 0x64d   :  { %8049 = vst [vmem:[#allocation35_spill] sm:$0xff] %v6062_v20 }
 0x658   :  { %v4430_v44 = vpop.eup %4429 }
 0x659   :  { %v1810_v41 = vmul.f32 %v4430_v44, %v1809_v34  ;;  %v8051_v34 = vld [vmem:[#allocation98_spill] sm:$0xff]  ;;  %v6067_v44 = vld [vmem:[#allocation7 + $0x18] ss:$12 sps:$4 sm:$0xff]  }
 0x65a   :  { %8052 = vst [vmem:[#allocation62_spill] sm:$0xff] %v6067_v44 }
 0x65b   :  { %v6020_v4 = vadd.f32 %v1811_v17, %v1810_v41  ;;  %v8053_v41 = vld [vmem:[#allocation99_spill] sm:$0xff]  ;;  %v8054_v17 = vld [vmem:[#allocation100_spill] sm:$0xff] }
 0x65d   :  { %v1813_v30 = vpack.c.bf16 %v6020_v4, %v6020_v4 }
 0x65f   :  { %1846 = vmatprep.mubr.bf16.mxu0 %v1813_v30  ;;  %1887 = vmatprep.mubr.bf16.mxu1 %v1813_v30 }
 0x660   :  { %1847 = vmatmul.mubr.bf16.vlgmr.msra.gmra.mxu0 %v5953_v3  ;;  %1888 = vmatmul.mubr.bf16.vlgmr.msra.gmra.mxu1 %v5953_v3 }
 0x661   :  { %1897 = vmatpush1.bf16.msra.mxu0 %v5778_v62  ;;  %1928 = vmatprep.mubr.bf16.mxu0 %v1813_v30  ;;  %v8055_v30 = vld [vmem:[#allocation101_spill] sm:$0xff] }
 0x662   :  { %1898 = vmatprep.subr.bf16.mxu0 %v5781_v40  ;;  %1966 = vmatpush1.bf16.msra.mxu1 %v5784_v59 }
 0x663   :  { %1967 = vmatprep.subr.bf16.mxu1 %v5787_v56  ;;  %1997 = vmatprep.mubr.bf16.mxu1 %v7829_v32 }
 0x665   :  { %1899 = vmatpush1.bf16.msra.mxu0 %v5791_v19 }
 0x666   :  { %1900 = vmatprep.subr.bf16.mxu0 %v5794_v37  ;;  %1968 = vmatpush1.bf16.msra.mxu1 %v5797_v9 }
 0x667   :  { %1969 = vmatprep.subr.bf16.mxu1 %v5800_v12 }
 0x669   :  { %1901 = vmatpush1.bf16.msra.mxu0 %v5803_v22 }
 0x66a   :  { %1902 = vmatprep.subr.bf16.mxu0 %v5806_v7  ;;  %1970 = vmatpush1.bf16.msra.mxu1 %v5809_v2 }
 0x66b   :  { %1971 = vmatprep.subr.bf16.mxu1 %v5812_v31 }
 0x66d   :  { %1903 = vmatpush1.bf16.msra.mxu0 %v5815_v27 }
 0x66e   :  { %1904 = vmatprep.subr.bf16.mxu0 %v8037_v13  ;;  %1972 = vmatpush1.bf16.msra.mxu1 %v8038_v36 }
 0x66f   :  { %1973 = vmatprep.subr.bf16.mxu1 %v5824_v24 }
 0x671   :  { %1905 = vmatpush1.bf16.msra.mxu0 %v8039_v42 }
 0x672   :  { %1906 = vmatprep.subr.bf16.mxu0 %v8040_v33  ;;  %1974 = vmatpush1.bf16.msra.mxu1 %v5833_v0 }
 0x673   :  { %1975 = vmatprep.subr.bf16.mxu1 %v6046_v46 }
 0x675   :  { %1907 = vmatpush1.bf16.msra.mxu0 %v8042_v18 }
 0x676   :  { %1908 = vmatprep.subr.bf16.mxu0 %v8043_v15  ;;  %1976 = vmatpush1.bf16.msra.mxu1 %v6051_v52 }
 0x677   :  { %1977 = vmatprep.subr.bf16.mxu1 %v6054_v14  ;;  %v8063_v14 = vld [vmem:[#allocation109_spill] sm:$0xff] }
 0x679   :  { %1909 = vmatpush1.bf16.msra.mxu0 %v8046_v35  ;;  %v8061_v35 = vld [vmem:[#allocation107_spill] sm:$0xff] }
 0x67a   :  { %1910 = vmatprep.subr.bf16.mxu0 %v8047_v25  ;;  %1978 = vmatpush1.bf16.msra.mxu1 %v6059_v54  ;;  %v8056_v54 = vld [vmem:[#allocation102_spill] sm:$0xff]  ;;  %v8057_v25 = vld [vmem:[#allocation103_spill] sm:$0xff] }
 0x67b   :  { %1979 = vmatprep.subr.bf16.mxu1 %v6062_v20  ;;  %v8058_v20 = vld [vmem:[#allocation104_spill] sm:$0xff] }
 0x67d   :  { %1911 = vmatpush1.bf16.msra.mxu0 %v8050_v48  ;;  %v8059_v48 = vld [vmem:[#allocation105_spill] sm:$0xff] }
 0x67e   :  { %1912 = vmatprep.subr.bf16.mxu0 %v8051_v34  ;;  %1980 = vmatpush1.bf16.msra.mxu1 %v6067_v44  ;;  %v8060_v34 = vld [vmem:[#allocation106_spill] sm:$0xff]  ;;  %v8062_v44 = vld [vmem:[#allocation108_spill] sm:$0xff] }
 0x67f   :  { %4010 = vmatprep.subr.bf16.mxu1 %v7849_v10 }
 0x681   :  { %1913 = vmatpush2.bf16.msra.mxu0 %v8053_v41  ;;  %v8064_v41 = vld [vmem:[#allocation110_spill] sm:$0xff] }
 0x682   :  { %1914 = vmatprep.subr.bf16.mxu0 %v8054_v17  ;;  %v8065_v17 = vld [vmem:[#allocation111_spill] sm:$0xff] }
 0x685   :  { %1915 = vmatpush2.bf16.msra.mxu0 %v8055_v30  ;;  %v8066_v30 = vld [vmem:[#allocation112_spill] sm:$0xff] }
 0x686   :  { %1916 = vmatprep.subr.bf16.mxu0 %v8056_v54  ;;  %v6085_v54 = vld [vmem:[#allocation6 + $0x190] ss:$24 sps:$4 sm:$0xff]  }
 0x687   :  { %8067 = vst [vmem:[#allocation36_spill] sm:$0xff] %v6085_v54 }
 0x689   :  { %1917 = vmatpush2.bf16.msra.mxu0 %v8057_v25  ;;  %v8101_v25 = vld [vmem:[#allocation84_spill] sm:$0xff] }
 0x68a   :  { %1918 = vmatprep.subr.bf16.mxu0 %v8058_v20  ;;  %v8068_v20 = vld [vmem:[#allocation14_spill] sm:$0xff] }
 0x68d   :  { %1919 = vmatpush2.bf16.msra.mxu0 %v8059_v48  ;;  %v8076_v48 = vld [vmem:[#allocation37_spill] sm:$0xff] }
 0x68e   :  { %1920 = vmatprep.subr.bf16.mxu0 %v8060_v34  ;;  %v8069_v34 = vld [vmem:[#allocation15_spill] sm:$0xff] }
 0x691   :  { %1921 = vmatpush2.bf16.msra.mxu0 %v8061_v35  ;;  %v8070_v35 = vld [vmem:[#allocation16_spill] sm:$0xff] }
 0x692   :  { %1922 = vmatprep.subr.bf16.mxu0 %v8062_v44  ;;  %v8071_v44 = vld [vmem:[#allocation17_spill] sm:$0xff] }
 0x695   :  { %1923 = vmatpush2.bf16.msra.mxu0 %v8063_v14  ;;  %v8072_v14 = vld [vmem:[#allocation33_spill] sm:$0xff] }
 0x696   :  { %1924 = vmatprep.subr.bf16.mxu0 %v8064_v41  ;;  %v8073_v41 = vld [vmem:[#allocation18_spill] sm:$0xff] }
 0x699   :  { %1925 = vmatpush2.bf16.msra.mxu0 %v8065_v17  ;;  %v8074_v17 = vld [vmem:[#allocation19_spill] sm:$0xff] }
 0x69a   :  { %1926 = vmatprep.subr.bf16.mxu0 %v8066_v30  ;;  %v8075_v30 = vld [vmem:[#allocation34_spill] sm:$0xff] }
 0x69d   :  { %1927 = vmatpush2.bf16.msra.mxu0 %v6085_v54  ;;  %v8077_v54 = vld [vmem:[#allocation20_spill] sm:$0xff] }
 0x69e   :  { %2071 = vmatprep.subr.bf16.mxu0 %v8068_v20  ;;  %v8078_v20 = vld [vmem:[#allocation21_spill] sm:$0xff] }
 0x6a0   :  { %1929 = vmatmul.mubr.bf16.vlgmr.msra.gmra.mxu0 %v5953_v3  ;;  %v8079_v3 = vld [vmem:[#allocation38_spill] sm:$0xff] }
 0x6a1   :  { %2072 = vmatpush1.bf16.msra.mxu0 %v8069_v34  ;;  %v8080_v34 = vld [vmem:[#allocation41_spill] sm:$0xff] }
 0x6a2   :  { %2073 = vmatprep.subr.bf16.mxu0 %v8070_v35  ;;  %v8081_v35 = vld [vmem:[#allocation22_spill] sm:$0xff] }
 0x6a5   :  { %2074 = vmatpush1.bf16.msra.mxu0 %v8071_v44  ;;  %v8082_v44 = vld [vmem:[#allocation23_spill] sm:$0xff] }
 0x6a6   :  { %2075 = vmatprep.subr.bf16.mxu0 %v8072_v14  ;;  %v8083_v14 = vld [vmem:[#allocation42_spill] sm:$0xff] }
 0x6a9   :  { %2076 = vmatpush1.bf16.msra.mxu0 %v8073_v41  ;;  %v8084_v41 = vld [vmem:[#allocation45_spill] sm:$0xff] }
 0x6aa   :  { %2077 = vmatprep.subr.bf16.mxu0 %v8074_v17  ;;  %v8085_v17 = vld [vmem:[#allocation24_spill] sm:$0xff] }
 0x6ad   :  { %2078 = vmatpush1.bf16.msra.mxu0 %v8075_v30  ;;  %v8086_v30 = vld [vmem:[#allocation25_spill] sm:$0xff] }
 0x6ae   :  { %2079 = vmatprep.subr.bf16.mxu0 %v8076_v48  ;;  %v8087_v48 = vld [vmem:[#allocation46_spill] sm:$0xff] }
 0x6b1   :  { %2080 = vmatpush1.bf16.msra.mxu0 %v8077_v54  ;;  %v8088_v54 = vld [vmem:[#allocation49_spill] sm:$0xff] }
 0x6b2   :  { %2081 = vmatprep.subr.bf16.mxu0 %v8078_v20  ;;  %v8089_v20 = vld [vmem:[#allocation26_spill] sm:$0xff] }
 0x6b5   :  { %2082 = vmatpush1.bf16.msra.mxu0 %v8079_v3  ;;  %v8090_v3 = vld [vmem:[#allocation27_spill] sm:$0xff] }
 0x6b6   :  { %2083 = vmatprep.subr.bf16.mxu0 %v8080_v34  ;;  %v8091_v34 = vld [vmem:[#allocation50_spill] sm:$0xff] }
 0x6b9   :  { %2084 = vmatpush1.bf16.msra.mxu0 %v8081_v35  ;;  %v8092_v35 = vld [vmem:[#allocation52_spill] sm:$0xff] }
 0x6ba   :  { %2085 = vmatprep.subr.bf16.mxu0 %v8082_v44  ;;  %v8093_v44 = vld [vmem:[#allocation28_spill] sm:$0xff] }
 0x6bd   :  { %2086 = vmatpush1.bf16.msra.mxu0 %v8083_v14  ;;  %v8094_v14 = vld [vmem:[#allocation29_spill] sm:$0xff] }
 0x6be   :  { %2087 = vmatprep.subr.bf16.mxu0 %v8084_v41  ;;  %v8095_v41 = vld [vmem:[#allocation54_spill] sm:$0xff] }
 0x6c1   :  { %2088 = vmatpush2.bf16.msra.mxu0 %v8085_v17  ;;  %v8096_v17 = vld [vmem:[#allocation56_spill] sm:$0xff] }
 0x6c2   :  { %2089 = vmatprep.subr.bf16.mxu0 %v8086_v30  ;;  %v8097_v30 = vld [vmem:[#allocation30_spill] sm:$0xff] }
 0x6c5   :  { %2090 = vmatpush2.bf16.msra.mxu0 %v8087_v48  ;;  %v8098_v48 = vld [vmem:[#allocation31_spill] sm:$0xff] }
 0x6c6   :  { %2091 = vmatprep.subr.bf16.mxu0 %v8088_v54  ;;  %v8099_v54 = vld [vmem:[#allocation58_spill] sm:$0xff] }
 0x6c9   :  { %2092 = vmatpush2.bf16.msra.mxu0 %v8089_v20  ;;  %v8100_v20 = vld [vmem:[#allocation113_spill] sm:$0xff] }
 0x6ca   :  { %2093 = vmatprep.subr.bf16.mxu0 %v8090_v3 }
 0x6cd   :  { %2094 = vmatpush2.bf16.msra.mxu0 %v8091_v34 }
 0x6ce   :  { %2095 = vmatprep.subr.bf16.mxu0 %v8092_v35 }
 0x6d1   :  { %2096 = vmatpush2.bf16.msra.mxu0 %v8093_v44 }
 0x6d2   :  { %2097 = vmatprep.subr.bf16.mxu0 %v8094_v14  ;;  %v8102_v14 = vld [vmem:[#allocation70_spill] sm:$0xff] }
 0x6d5   :  { %2098 = vmatpush2.bf16.msra.mxu0 %v8095_v41 }
 0x6d6   :  { %2099 = vmatprep.subr.bf16.mxu0 %v8096_v17 }
 0x6d9   :  { %2100 = vmatpush2.bf16.msra.mxu0 %v8097_v30 }
 0x6da   :  { %2101 = vmatprep.subr.bf16.mxu0 %v8098_v48 }
 0x6dd   :  { %2102 = vmatpush2.bf16.msra.mxu0 %v8099_v54  ;;  %v8103_v54 = vld [vmem:[#allocation71_spill] sm:$0xff] }
 0x6de   :  { %2153 = vmatprep.subr.bf16.mxu0 %v8100_v20 }
 0x720   :  { %v1848_v3 = vpop.f32.mrf.mxu0  ;;  %v1889_v34 = vpop.f32.mrf.mxu1 }
 0x721   :  { %v1940_v35 = vadd.f32 %v1848_v3, %v8101_v25  ;;  %v1942_v24 = vadd.f32 %v1889_v34, %v5376_v49 }
 0x722   :  { %v1850_v52 = vpop.f32.mrf.mxu0  ;;  %v6123_v44 = vpop.f32.mrf.mxu1 }
 0x723   :  { %v1943_v15 = vadd.f32 %v1940_v35, %v8102_v14  ;;  %v1941_v30 = vadd.f32 %v1850_v52, %v5366_v55 }
 0x724   :  { %v1852_v41 = vpop.f32.mrf.mxu0  ;;  %v1893_v18 = vpop.f32.mrf.mxu1 }
 0x725   :  { %v3767_v17 = vmul.f32 -1.442695, %v1943_v15  ;;  %v1950_v0 = vadd.f32 %v1941_v30, %v8103_v54  ;;  %v8104_v18 = vld [vmem:[#allocation69_spill] sm:$0xff] }
 0x726   :  { %v1853_v46 = vpop.f32.mrf.mxu0  ;;  %v1894_v48 = vpop.f32.mrf.mxu1  ;;  %v6156_v54 = vld [vmem:[#allocation7 + $0x80] ss:$12 sps:$4 sm:$0xff]  }
 0x727   :  { %4431 = vpow2.f32 %v3767_v17  ;;  %v3768_v20 = vmul.f32 -1.442695, %v1950_v0  ;;  %v6152_v48 = vld [vmem:[#allocation7 + $0x98] ss:$12 sps:$4 sm:$0xff]  }
 0x729   :  { %4433 = vpow2.f32 %v3768_v20 }
 0x734   :  { %v4432_v33 = vpop.eup %4431 }
 0x735   :  { %v1947_v42 = vadd.f32 1.0, %v4432_v33  ;;  %v6138_v33 = vld [vmem:[#allocation7 + $0xc8] ss:$12 sps:$4 sm:$0xff]  }
 0x736   :  { %v4434_v3 = vpop.eup %4433 }
 0x737   :  { %4435 = vrcp.f32 %v1947_v42  ;;  %v1954_v25 = vadd.f32 1.0, %v4434_v3  ;;  %v6160_v3 = vld [vmem:[#allocation7 + $0x68] ss:$12 sps:$4 sm:$0xff]  }
 0x739   :  { %4437 = vrcp.f32 %v1954_v25  ;;  %v6148_v25 = vld [vmem:[#allocation7 + $0xb0] ss:$12 sps:$4 sm:$0xff]  }
 0x744   :  { %v4436_v35 = vpop.eup %4435 }
 0x745   :  { %v1957_v14 = vmul.f32 %v4436_v35, %v1942_v24  ;;  %v6164_v35 = vld [vmem:[#allocation7 + $0x50] ss:$12 sps:$4 sm:$0xff]  }
 0x746   :  { %v4438_v46 = vpop.eup %4437 }
 0x747   :  { %v1958_v15 = vadd.f32 %v1957_v14, %v8104_v18  ;;  %v1960_v52 = vsub.f32 1.0, %v4438_v46  ;;  %v1962_v0 = vmul.f32 %v4438_v46, %v5949_v5  ;;  %v6168_v14 = vld [vmem:[#allocation7 + $0x38] ss:$12 sps:$4 sm:$0xff]   ;;  %v6172_v18 = vld [vmem:[#allocation7 + $0x20] ss:$12 sps:$4 sm:$0xff]  }
 0x748   :  { %v6179_v46 = vld [vmem:[#allocation6 + $0x158] ss:$24 sps:$4 sm:$0xff]  }
 0x749   :  { %4439 = vtanh.f32 %v1958_v15  ;;  %v6175_v15 = vld [vmem:[#allocation6 + $0x15c] ss:$24 sps:$4 sm:$0xff]  }
 0x756   :  { %v4440_v41 = vpop.eup %4439 }
 0x757   :  { %v1961_v17 = vmul.f32 %v4440_v41, %v1960_v52  ;;  %v6182_v52 = vld [vmem:[#allocation6 + $0x12c] ss:$24 sps:$4 sm:$0xff]   ;;  %v6185_v41 = vld [vmem:[#allocation6 + $0x128] ss:$24 sps:$4 sm:$0xff]  }
 0x759   :  { %v6131_v20 = vadd.f32 %v1962_v0, %v1961_v17  ;;  %v6188_v17 = vld [vmem:[#allocation6 + $0xfc] ss:$24 sps:$4 sm:$0xff]   ;;  %v6191_v0 = vld [vmem:[#allocation6 + $0xf8] ss:$24 sps:$4 sm:$0xff]  }
 0x75b   :  { %v6135_v42 = vpack.c.bf16 %v6131_v20, %v6131_v20 }
 0x75d   :  { %1998 = vmatmul.mubr.bf16.vlgmr.msra.gmra.mxu1 %v6135_v42 }
 0x75e   :  { %4011 = vmatpush3.bf16.msra.mxu1 %v6138_v33  ;;  %4026 = vmatprep.mubr.msk.bf16.mxu1 %vm4845_vm1, %v7849_v10 }
 0x75f   :  { %4012 = vmatprep.subr.bf16.mxu1 %v7849_v10 }
 0x760   :  { %v6144_v24 = vpop.f32.mrf.mxu0 }
 0x762   :  { %v6146_v5 = vpop.f32.mrf.mxu0  ;;  %4013 = vmatpush3.bf16.msra.mxu1 %v6148_v25 }
 0x763   :  { %4014 = vmatprep.subr.bf16.mxu1 %v7849_v10 }
 0x764   :  { %v1934_v34 = vpop.f32.mrf.mxu0 }
 0x765   :  { %v6194_v34 = vld [vmem:[#allocation6 + $0xcc] ss:$24 sps:$4 sm:$0xff]  }
 0x766   :  { %v1935_v30 = vpop.f32.mrf.mxu0  ;;  %4015 = vmatpush3.bf16.msra.mxu1 %v6152_v48 }
 0x767   :  { %4016 = vmatprep.subr.bf16.mxu1 %v7849_v10  ;;  %v2047_v30 = vadd.f32 %v6144_v24, %v5476_v16 }
 0x76a   :  { %4017 = vmatpush3.bf16.msra.mxu1 %v6156_v54 }
 0x76b   :  { %4018 = vmatprep.subr.bf16.mxu1 %v7849_v10 }
 0x76e   :  { %4019 = vmatpush3.bf16.msra.mxu1 %v6160_v3 }
 0x76f   :  { %4020 = vmatprep.subr.bf16.mxu1 %v7849_v10 }
 0x772   :  { %4021 = vmatpush3.bf16.msra.mxu1 %v6164_v35 }
 0x773   :  { %4022 = vmatprep.subr.bf16.mxu1 %v7849_v10 }
 0x776   :  { %4023 = vmatpush3.bf16.msra.mxu1 %v6168_v14 }
 0x777   :  { %4024 = vmatprep.subr.bf16.mxu1 %v7849_v10 }
 0x77a   :  { %4025 = vmatpush3.bf16.msra.mxu1 %v6172_v18 }
 0x77b   :  { %2112 = vmatprep.subr.bf16.mxu1 %v6175_v15 }
 0x77d   :  { %4027 = vmatmul.mubr.bf16.vlgmr.msra.gmra.mxu1 %v6135_v42 }
 0x77e   :  { %2113 = vmatpush1.bf16.msra.mxu1 %v6179_v46 }
 0x77f   :  { %2114 = vmatprep.subr.bf16.mxu1 %v6182_v52 }
 0x782   :  { %2115 = vmatpush1.bf16.msra.mxu1 %v6185_v41 }
 0x783   :  { %2116 = vmatprep.subr.bf16.mxu1 %v6188_v17 }
 0x786   :  { %2117 = vmatpush1.bf16.msra.mxu1 %v6191_v0 }
 0x787   :  { %2118 = vmatprep.subr.bf16.mxu1 %v6194_v34 }
 0x78a   :  { %2119 = vmatpush1.bf16.msra.mxu1 %v5686_v47  ;;  %v8105_v47 = vld [vmem:[#allocation57_spill] sm:$0xff] }
 0x78b   :  { %2120 = vmatprep.subr.bf16.mxu1 %v5689_v23  ;;  %v8106_v23 = vld [vmem:[#allocation59_spill] sm:$0xff] }
 0x78e   :  { %2121 = vmatpush1.bf16.msra.mxu1 %v5692_v45  ;;  %v8107_v45 = vld [vmem:[#allocation61_spill] sm:$0xff] }
 0x78f   :  { %2122 = vmatprep.subr.bf16.mxu1 %v5695_v28  ;;  %v8108_v28 = vld [vmem:[#allocation63_spill] sm:$0xff] }
 0x792   :  { %2123 = vmatpush1.bf16.msra.mxu1 %v8013_v21  ;;  %v8109_v21 = vld [vmem:[#allocation64_spill] sm:$0xff] }
 0x793   :  { %2124 = vmatprep.subr.bf16.mxu1 %v8014_v8  ;;  %v8110_v8 = vld [vmem:[#allocation85_spill] sm:$0xff] }
 0x796   :  { %2125 = vmatpush1.bf16.msra.mxu1 %v8015_v29  ;;  %v8111_v29 = vld [vmem:[#allocation86_spill] sm:$0xff] }
 0x797   :  { %2126 = vmatprep.subr.bf16.mxu1 %v8016_v26  ;;  %v8112_v26 = vld [vmem:[#allocation67_spill] sm:$0xff] }
 0x79a   :  { %2127 = vmatpush1.bf16.msra.mxu1 %v8017_v43 }
 0x79b   :  { %2128 = vmatprep.subr.bf16.mxu1 %v8018_v51  ;;  %v8113_v51 = vld [vmem:[#allocation12_spill] sm:$0xff] }
 0x79e   :  { %2129 = vmatpush2.bf16.msra.mxu1 %v8019_v53  ;;  %v2046_v53 = vadd.f32 %v6123_v44, %v8113_v51 }
 0x79f   :  { %2130 = vmatprep.subr.bf16.mxu1 %v8020_v39 }
 0x7a2   :  { %2131 = vmatpush2.bf16.msra.mxu1 %v8021_v6 }
 0x7a3   :  { %2132 = vmatprep.subr.bf16.mxu1 %v8022_v57 }
 0x7a6   :  { %2133 = vmatpush2.bf16.msra.mxu1 %v8023_v58 }
 0x7a7   :  { %2134 = vmatprep.subr.bf16.mxu1 %v8024_v61 }
 0x7aa   :  { %2135 = vmatpush2.bf16.msra.mxu1 %v8025_v63 }
 0x7ab   :  { %2136 = vmatprep.subr.bf16.mxu1 %v8026_v1 }
 0x7ae   :  { %2137 = vmatpush2.bf16.msra.mxu1 %v8105_v47 }
 0x7af   :  { %2138 = vmatprep.subr.bf16.mxu1 %v8106_v23 }
 0x7b2   :  { %2139 = vmatpush2.bf16.msra.mxu1 %v8107_v45 }
 0x7b3   :  { %2140 = vmatprep.subr.bf16.mxu1 %v8108_v28 }
 0x7b6   :  { %2141 = vmatpush2.bf16.msra.mxu1 %v8109_v21 }
 0x7b7   :  { %2142 = vmatprep.subr.bf16.mxu1 %v8110_v8 }
 0x7ba   :  { %2143 = vmatpush2.bf16.msra.mxu1 %v8111_v29 }
 0x7bb   :  { %2222 = vmatprep.subr.bf16.mxu1 %v8112_v26 }
 0x81d   :  { %v1999_v43 = vpop.f32.mrf.mxu1 }
 0x81e   :  { %v2000_v39 = vadd.f32 %v1999_v43, %v8036_v50  ;;  %v2048_v43 = vadd.f32 %v6146_v5, %v5483_v60 }
 0x81f   :  { %v2001_v6 = vpop.f32.mrf.mxu1 }
 0x820   :  { %v2049_v57 = vadd.f32 %v2046_v53, %v2000_v39  ;;  %v2002_v63 = vadd.f32 %v2001_v6, %v5478_v11 }
 0x821   :  { %v2003_v58 = vpop.f32.mrf.mxu1 }
 0x822   :  { %v3769_v61 = vmul.f32 -1.442695, %v2049_v57  ;;  %v2056_v47 = vadd.f32 %v2047_v30, %v2002_v63 }
 0x823   :  { %v2004_v1 = vpop.f32.mrf.mxu1 }
 0x824   :  { %4441 = vpow2.f32 %v3769_v61  ;;  %v3770_v23 = vmul.f32 -1.442695, %v2056_v47 }
 0x826   :  { %4443 = vpow2.f32 %v3770_v23 }
 0x831   :  { %v4442_v45 = vpop.eup %4441 }
 0x832   :  { %v2053_v28 = vadd.f32 1.0, %v4442_v45  ;;  %v8130_v45 = vld [vmem:[#allocation99_spill] sm:$0xff] }
 0x833   :  { %v4444_v44 = vpop.eup %4443 }
 0x834   :  { %4445 = vrcp.f32 %v2053_v28  ;;  %v2060_v8 = vadd.f32 1.0, %v4444_v44  ;;  %v8131_v28 = vld [vmem:[#allocation100_spill] sm:$0xff]  ;;  %v8132_v44 = vld [vmem:[#allocation101_spill] sm:$0xff] }
 0x836   :  { %4447 = vrcp.f32 %v2060_v8  ;;  %v8134_v8 = vld [vmem:[#allocation103_spill] sm:$0xff] }
 0x83d   :  { %v2040_v21 = vpop.f32.mrf.mxu1 }
 0x83e   :  { %v2041_v6 = vadd.f32 %v2040_v21, %v5485_v38  ;;  %v8133_v21 = vld [vmem:[#allocation102_spill] sm:$0xff] }
 0x83f   :  { %v4028_v29 = vpop.f32.mrf.mxu1 }
 0x840   :  { %v8135_v29 = vld [vmem:[#allocation104_spill] sm:$0xff] }
 0x841   :  { %v4446_v53 = vpop.eup %4445  ;;  %v2043_v39 = vpop.f32.mrf.mxu1 }
 0x842   :  { %v2063_v24 = vmul.f32 %v4446_v53, %v2048_v43  ;;  %v8136_v43 = vld [vmem:[#allocation105_spill] sm:$0xff]  ;;  %v8137_v53 = vld [vmem:[#allocation106_spill] sm:$0xff]  ;;  %v8138_v39 = vld [vmem:[#allocation107_spill] sm:$0xff] }
 0x843   :  { %v4029_v57 = vpop.f32.mrf.mxu1  ;;  %v4448_v61 = vpop.eup %4447 }
 0x844   :  { %v2064_v58 = vadd.f32 %v2063_v24, %v2041_v6  ;;  %v2066_v63 = vsub.f32 1.0, %v4448_v61  ;;  %v2068_v47 = vmul.f32 %v4448_v61, %v6020_v4  ;;  %v8127_v4 = vld [vmem:[#allocation97_spill] sm:$0xff]  ;;  %v8139_v6 = vld [vmem:[#allocation108_spill] sm:$0xff]  ;;  %v8141_v57 = vld [vmem:[#allocation110_spill] sm:$0xff] }
 0x845   :  { %v8140_v24 = vld [vmem:[#allocation109_spill] sm:$0xff]  ;;  %v8143_v61 = vld [vmem:[#allocation112_spill] sm:$0xff] }
 0x846   :  { %4449 = vtanh.f32 %v2064_v58  ;;  %v8142_v58 = vld [vmem:[#allocation111_spill] sm:$0xff] }
 0x853   :  { %v4450_v1 = vpop.eup %4449 }
 0x854   :  { %v2067_v30 = vmul.f32 %v4450_v1, %v2066_v63  ;;  %v8144_v63 = vld [vmem:[#allocation36_spill] sm:$0xff]  ;;  %v6287_v1 = vld [vmem:[#allocation6 + $0x154] ss:$24 sps:$4 sm:$0xff]  }
 0x855   :  { %8145 = vst [vmem:[#allocation39_spill] sm:$0xff] %v6287_v1 }
 0x856   :  { %v6233_v23 = vadd.f32 %v2068_v47, %v2067_v30  ;;  %v6291_v30 = vld [vmem:[#allocation6 + $0x150] ss:$24 sps:$4 sm:$0xff]   ;;  %v6294_v47 = vld [vmem:[#allocation6 + $0x124] ss:$24 sps:$4 sm:$0xff]  }
 0x857   :  { %8146 = vst [vmem:[#allocation40_spill] sm:$0xff] %v6291_v30  ;;  %8147 = vst [vmem:[#allocation43_spill] sm:$0xff] %v6294_v47 }
 0x858   :  { %v2070_v5 = vpack.c.bf16 %v6233_v23, %v6233_v23 }
 0x85a   :  { %2103 = vmatprep.mubr.bf16.mxu0 %v2070_v5  ;;  %2144 = vmatprep.mubr.bf16.mxu1 %v2070_v5 }
 0x85b   :  { %2104 = vmatmul.mubr.bf16.vlgmr.msra.gmra.mxu0 %v6135_v42  ;;  %2145 = vmatmul.mubr.bf16.vlgmr.msra.gmra.mxu1 %v6135_v42 }
 0x85c   :  { %2154 = vmatpush1.bf16.msra.mxu0 %v5778_v62  ;;  %2185 = vmatprep.mubr.bf16.mxu0 %v2070_v5  ;;  %v8114_v62 = vld [vmem:[#allocation89_spill] sm:$0xff] }
 0x85d   :  { %2155 = vmatprep.subr.bf16.mxu0 %v5781_v40  ;;  %2223 = vmatpush1.bf16.msra.mxu1 %v5784_v59  ;;  %v8115_v40 = vld [vmem:[#allocation90_spill] sm:$0xff]  ;;  %v8116_v59 = vld [vmem:[#allocation91_spill] sm:$0xff]  ;;  %v6297_v5 = vld [vmem:[#allocation6 + $0x120] ss:$24 sps:$4 sm:$0xff]  }
 0x85e   :  { %2224 = vmatprep.subr.bf16.mxu1 %v5787_v56  ;;  %2254 = vmatprep.mubr.bf16.mxu1 %v7829_v32  ;;  %v8117_v56 = vld [vmem:[#allocation92_spill] sm:$0xff]  ;;  %8148 = vst [vmem:[#allocation44_spill] sm:$0xff] %v6297_v5 }
 0x860   :  { %2156 = vmatpush1.bf16.msra.mxu0 %v5791_v19  ;;  %v8118_v19 = vld [vmem:[#allocation68_spill] sm:$0xff] }
 0x861   :  { %2157 = vmatprep.subr.bf16.mxu0 %v5794_v37  ;;  %2225 = vmatpush1.bf16.msra.mxu1 %v5797_v9  ;;  %v8119_v37 = vld [vmem:[#allocation93_spill] sm:$0xff]  ;;  %v8120_v9 = vld [vmem:[#allocation94_spill] sm:$0xff] }
 0x862   :  { %2226 = vmatprep.subr.bf16.mxu1 %v5800_v12  ;;  %v8121_v12 = vld [vmem:[#allocation66_spill] sm:$0xff] }
 0x864   :  { %2158 = vmatpush1.bf16.msra.mxu0 %v5803_v22  ;;  %v8122_v22 = vld [vmem:[#allocation60_spill] sm:$0xff] }
 0x865   :  { %2159 = vmatprep.subr.bf16.mxu0 %v5806_v7  ;;  %2227 = vmatpush1.bf16.msra.mxu1 %v5809_v2  ;;  %v8123_v7 = vld [vmem:[#allocation95_spill] sm:$0xff]  ;;  %v8124_v2 = vld [vmem:[#allocation96_spill] sm:$0xff] }
 0x866   :  { %2228 = vmatprep.subr.bf16.mxu1 %v5812_v31  ;;  %v8125_v31 = vld [vmem:[#allocation32_spill] sm:$0xff] }
 0x868   :  { %2160 = vmatpush1.bf16.msra.mxu0 %v5815_v27  ;;  %v8126_v27 = vld [vmem:[#allocation35_spill] sm:$0xff] }
 0x869   :  { %2161 = vmatprep.subr.bf16.mxu0 %v8037_v13  ;;  %2229 = vmatpush1.bf16.msra.mxu1 %v8038_v36  ;;  %v8128_v13 = vld [vmem:[#allocation98_spill] sm:$0xff] }
 0x86a   :  { %2230 = vmatprep.subr.bf16.mxu1 %v8114_v62  ;;  %v8129_v36 = vld [vmem:[#allocation62_spill] sm:$0xff] }
 0x86b   :  { %v6300_v62 = vld [vmem:[#allocation6 + $0xf4] ss:$24 sps:$4 sm:$0xff]  }
 0x86c   :  { %2162 = vmatpush1.bf16.msra.mxu0 %v8115_v40  ;;  %8149 = vst [vmem:[#allocation47_spill] sm:$0xff] %v6300_v62  ;;  %v6303_v40 = vld [vmem:[#allocation6 + $0xf0] ss:$24 sps:$4 sm:$0xff]  }
 0x86d   :  { %2163 = vmatprep.subr.bf16.mxu0 %v8116_v59  ;;  %2231 = vmatpush1.bf16.msra.mxu1 %v8117_v56  ;;  %8150 = vst [vmem:[#allocation48_spill] sm:$0xff] %v6303_v40  ;;  %v6309_v59 = vld [vmem:[#allocation6 + $0xc0] ss:$24 sps:$4 sm:$0xff]   ;;  %v6312_v56 = vld [vmem:[#allocation6 + $0x94] ss:$24 sps:$4 sm:$0xff]  }
 0x86e   :  { %2232 = vmatprep.subr.bf16.mxu1 %v8118_v19  ;;  %8152 = vst [vmem:[#allocation53_spill] sm:$0xff] %v6309_v59  ;;  %8153 = vst [vmem:[#allocation55_spill] sm:$0xff] %v6312_v56 }
 0x870   :  { %2164 = vmatpush1.bf16.msra.mxu0 %v8119_v37  ;;  %v6315_v37 = vld [vmem:[#allocation6 + $0x90] ss:$24 sps:$4 sm:$0xff]  }
 0x871   :  { %2165 = vmatprep.subr.bf16.mxu0 %v8120_v9  ;;  %2233 = vmatpush1.bf16.msra.mxu1 %v8121_v12  ;;  %8154 = vst [vmem:[#allocation87_spill] sm:$0xff] %v6315_v37  ;;  %v6318_v9 = vld [vmem:[#allocation6 + $0x64] ss:$24 sps:$4 sm:$0xff]  }
 0x872   :  { %2234 = vmatprep.subr.bf16.mxu1 %v8122_v22  ;;  %8155 = vst [vmem:[#allocation88_spill] sm:$0xff] %v6318_v9 }
 0x874   :  { %2166 = vmatpush1.bf16.msra.mxu0 %v8123_v7  ;;  %v6321_v7 = vld [vmem:[#allocation6 + $0x60] ss:$24 sps:$4 sm:$0xff]  }
 0x875   :  { %2167 = vmatprep.subr.bf16.mxu0 %v8124_v2  ;;  %2235 = vmatpush1.bf16.msra.mxu1 %v8125_v31  ;;  %8156 = vst [vmem:[#allocation14_spill] sm:$0xff] %v6321_v7  ;;  %v6324_v2 = vld [vmem:[#allocation6 + $0x34] ss:$24 sps:$4 sm:$0xff]  }
 0x876   :  { %2236 = vmatprep.subr.bf16.mxu1 %v8126_v27  ;;  %8157 = vst [vmem:[#allocation15_spill] sm:$0xff] %v6324_v2 }
 0x878   :  { %2168 = vmatpush1.bf16.msra.mxu0 %v8127_v4  ;;  %v6327_v4 = vld [vmem:[#allocation6 + $0x30] ss:$24 sps:$4 sm:$0xff]  }
 0x879   :  { %2169 = vmatprep.subr.bf16.mxu0 %v8128_v13  ;;  %2237 = vmatpush1.bf16.msra.mxu1 %v8129_v36  ;;  %8158 = vst [vmem:[#allocation16_spill] sm:$0xff] %v6327_v4  ;;  %v6330_v13 = vld [vmem:[#allocation6 + $0x4] ss:$24 sps:$4 sm:$0xff]  }
 0x87a   :  { %4030 = vmatprep.subr.bf16.mxu1 %v7849_v10  ;;  %8159 = vst [vmem:[#allocation17_spill] sm:$0xff] %v6330_v13 }
 0x87c   :  { %2170 = vmatpush2.bf16.msra.mxu0 %v8130_v45  ;;  %v6333_v45 = vld [vmem:[#allocation6] ss:$24 sps:$4 sm:$0xff]  }
 0x87d   :  { %2171 = vmatprep.subr.bf16.mxu0 %v8131_v28  ;;  %8160 = vst [vmem:[#allocation33_spill] sm:$0xff] %v6333_v45  ;;  %v6336_v28 = vld [vmem:[#allocation6 + $0x2d4] ss:$24 sps:$4 sm:$0xff]  }
 0x87e   :  { %8161 = vst [vmem:[#allocation18_spill] sm:$0xff] %v6336_v28 }
 0x880   :  { %2172 = vmatpush2.bf16.msra.mxu0 %v8132_v44  ;;  %v6339_v44 = vld [vmem:[#allocation6 + $0x2d0] ss:$24 sps:$4 sm:$0xff]  }
 0x881   :  { %2173 = vmatprep.subr.bf16.mxu0 %v8133_v21  ;;  %8162 = vst [vmem:[#allocation19_spill] sm:$0xff] %v6339_v44  ;;  %v6342_v21 = vld [vmem:[#allocation6 + $0x2a4] ss:$24 sps:$4 sm:$0xff]  }
 0x882   :  { %8163 = vst [vmem:[#allocation34_spill] sm:$0xff] %v6342_v21 }
 0x884   :  { %2174 = vmatpush2.bf16.msra.mxu0 %v8134_v8  ;;  %v6345_v8 = vld [vmem:[#allocation6 + $0x2a0] ss:$24 sps:$4 sm:$0xff]  }
 0x885   :  { %2175 = vmatprep.subr.bf16.mxu0 %v8135_v29  ;;  %8164 = vst [vmem:[#allocation37_spill] sm:$0xff] %v6345_v8  ;;  %v6348_v29 = vld [vmem:[#allocation6 + $0x274] ss:$24 sps:$4 sm:$0xff]  }
 0x886   :  { %8165 = vst [vmem:[#allocation20_spill] sm:$0xff] %v6348_v29 }
 0x888   :  { %2176 = vmatpush2.bf16.msra.mxu0 %v8136_v43  ;;  %v6351_v43 = vld [vmem:[#allocation6 + $0x270] ss:$24 sps:$4 sm:$0xff]  }
 0x889   :  { %2177 = vmatprep.subr.bf16.mxu0 %v8137_v53  ;;  %8166 = vst [vmem:[#allocation21_spill] sm:$0xff] %v6351_v43  ;;  %v6354_v53 = vld [vmem:[#allocation6 + $0x244] ss:$24 sps:$4 sm:$0xff]  }
 0x88a   :  { %8167 = vst [vmem:[#allocation38_spill] sm:$0xff] %v6354_v53 }
 0x88c   :  { %2178 = vmatpush2.bf16.msra.mxu0 %v8138_v39  ;;  %v6357_v39 = vld [vmem:[#allocation6 + $0x240] ss:$24 sps:$4 sm:$0xff]  }
 0x88d   :  { %2179 = vmatprep.subr.bf16.mxu0 %v8139_v6  ;;  %8168 = vst [vmem:[#allocation41_spill] sm:$0xff] %v6357_v39  ;;  %v6360_v6 = vld [vmem:[#allocation6 + $0x214] ss:$24 sps:$4 sm:$0xff]  }
 0x88e   :  { %8169 = vst [vmem:[#allocation22_spill] sm:$0xff] %v6360_v6 }
 0x890   :  { %2180 = vmatpush2.bf16.msra.mxu0 %v8140_v24  ;;  %v6363_v24 = vld [vmem:[#allocation6 + $0x210] ss:$24 sps:$4 sm:$0xff]  }
 0x891   :  { %2181 = vmatprep.subr.bf16.mxu0 %v8141_v57  ;;  %8170 = vst [vmem:[#allocation23_spill] sm:$0xff] %v6363_v24  ;;  %v6366_v57 = vld [vmem:[#allocation6 + $0x1e4] ss:$24 sps:$4 sm:$0xff]  }
 0x892   :  { %8171 = vst [vmem:[#allocation42_spill] sm:$0xff] %v6366_v57 }
 0x894   :  { %2182 = vmatpush2.bf16.msra.mxu0 %v8142_v58  ;;  %v6369_v58 = vld [vmem:[#allocation6 + $0x1e0] ss:$24 sps:$4 sm:$0xff]  }
 0x895   :  { %2183 = vmatprep.subr.bf16.mxu0 %v8143_v61  ;;  %8172 = vst [vmem:[#allocation45_spill] sm:$0xff] %v6369_v58  ;;  %v6372_v61 = vld [vmem:[#allocation6 + $0x1b4] ss:$24 sps:$4 sm:$0xff]  }
 0x896   :  { %8173 = vst [vmem:[#allocation24_spill] sm:$0xff] %v6372_v61 }
 0x898   :  { %2184 = vmatpush2.bf16.msra.mxu0 %v8144_v63 }
 0x899   :  { %2328 = vmatprep.subr.bf16.mxu0 %v6287_v1 }
 0x89b   :  { %2186 = vmatmul.mubr.bf16.vlgmr.msra.gmra.mxu0 %v6135_v42  ;;  %v6306_v42 = vld [vmem:[#allocation6 + $0xc4] ss:$24 sps:$4 sm:$0xff]  }
 0x89c   :  { %2329 = vmatpush1.bf16.msra.mxu0 %v6291_v30  ;;  %8151 = vst [vmem:[#allocation51_spill] sm:$0xff] %v6306_v42 }
 0x89d   :  { %2330 = vmatprep.subr.bf16.mxu0 %v6294_v47 }
 0x8a0   :  { %2331 = vmatpush1.bf16.msra.mxu0 %v6297_v5 }
 0x8a1   :  { %2332 = vmatprep.subr.bf16.mxu0 %v6300_v62 }
 0x8a4   :  { %2333 = vmatpush1.bf16.msra.mxu0 %v6303_v40 }
 0x8a5   :  { %2334 = vmatprep.subr.bf16.mxu0 %v6306_v42 }
 0x8a8   :  { %2335 = vmatpush1.bf16.msra.mxu0 %v6309_v59 }
 0x8a9   :  { %2336 = vmatprep.subr.bf16.mxu0 %v6312_v56 }
 0x8ac   :  { %2337 = vmatpush1.bf16.msra.mxu0 %v6315_v37 }
 0x8ad   :  { %2338 = vmatprep.subr.bf16.mxu0 %v6318_v9 }
 0x8b0   :  { %2339 = vmatpush1.bf16.msra.mxu0 %v6321_v7 }
 0x8b1   :  { %2340 = vmatprep.subr.bf16.mxu0 %v6324_v2 }
 0x8b4   :  { %2341 = vmatpush1.bf16.msra.mxu0 %v6327_v4 }
 0x8b5   :  { %2342 = vmatprep.subr.bf16.mxu0 %v6330_v13 }
 0x8b8   :  { %2343 = vmatpush1.bf16.msra.mxu0 %v6333_v45 }
 0x8b9   :  { %2344 = vmatprep.subr.bf16.mxu0 %v6336_v28 }
 0x8bc   :  { %2345 = vmatpush2.bf16.msra.mxu0 %v6339_v44 }
 0x8bd   :  { %2346 = vmatprep.subr.bf16.mxu0 %v6342_v21  ;;  %v8179_v21 = vld [vmem:[#allocation72_spill] sm:$0xff] }
 0x8c0   :  { %2347 = vmatpush2.bf16.msra.mxu0 %v6345_v8 }
 0x8c1   :  { %2348 = vmatprep.subr.bf16.mxu0 %v6348_v29 }
 0x8c4   :  { %2349 = vmatpush2.bf16.msra.mxu0 %v6351_v43  ;;  %v8178_v43 = vld [vmem:[#allocation84_spill] sm:$0xff] }
 0x8c5   :  { %2350 = vmatprep.subr.bf16.mxu0 %v6354_v53 }
 0x8c8   :  { %2351 = vmatpush2.bf16.msra.mxu0 %v6357_v39  ;;  %v6375_v39 = vld [vmem:[#allocation6 + $0x1b0] ss:$24 sps:$4 sm:$0xff]  }
 0x8c9   :  { %2352 = vmatprep.subr.bf16.mxu0 %v6360_v6  ;;  %8174 = vst [vmem:[#allocation25_spill] sm:$0xff] %v6375_v39  ;;  %v6378_v6 = vld [vmem:[#allocation6 + $0x184] ss:$24 sps:$4 sm:$0xff]  }
 0x8ca   :  { %8175 = vst [vmem:[#allocation46_spill] sm:$0xff] %v6378_v6 }
 0x8cc   :  { %2353 = vmatpush2.bf16.msra.mxu0 %v6363_v24  ;;  %v6381_v24 = vld [vmem:[#allocation6 + $0x180] ss:$24 sps:$4 sm:$0xff]  }
 0x8cd   :  { %2354 = vmatprep.subr.bf16.mxu0 %v6366_v57  ;;  %8176 = vst [vmem:[#allocation49_spill] sm:$0xff] %v6381_v24  ;;  %v8177_v57 = vld [vmem:[#allocation113_spill] sm:$0xff] }
 0x8d0   :  { %2355 = vmatpush2.bf16.msra.mxu0 %v6369_v58 }
 0x8d1   :  { %2356 = vmatprep.subr.bf16.mxu0 %v6372_v61 }
 0x8d4   :  { %2357 = vmatpush2.bf16.msra.mxu0 %v6375_v39 }
 0x8d5   :  { %2358 = vmatprep.subr.bf16.mxu0 %v6378_v6 }
 0x8d8   :  { %2359 = vmatpush2.bf16.msra.mxu0 %v6381_v24  ;;  %v8180_v24 = vld [vmem:[#allocation73_spill] sm:$0xff] }
 0x8d9   :  { %2410 = vmatprep.subr.bf16.mxu0 %v8177_v57 }
 0x91b   :  { %v2105_v53 = vpop.f32.mrf.mxu0  ;;  %v2146_v58 = vpop.f32.mrf.mxu1 }
 0x91c   :  { %v2197_v29 = vadd.f32 %v2105_v53, %v8178_v43  ;;  %v2199_v37 = vadd.f32 %v2146_v58, %v5376_v49  ;;  %v6436_v58 = vld [vmem:[#allocation6 + $0x98] ss:$24 sps:$4 sm:$0xff]  }
 0x91d   :  { %v2107_v8 = vpop.f32.mrf.mxu0  ;;  %v6386_v61 = vpop.f32.mrf.mxu1 }
 0x91e   :  { %v2200_v44 = vadd.f32 %v2197_v29, %v8179_v21  ;;  %v2198_v6 = vadd.f32 %v2107_v8, %v5366_v55 }
 0x91f   :  { %v2109_v39 = vpop.f32.mrf.mxu0  ;;  %v2150_v28 = vpop.f32.mrf.mxu1 }
 0x920   :  { %v3771_v45 = vmul.f32 -1.442695, %v2200_v44  ;;  %v2207_v2 = vadd.f32 %v2198_v6, %v8180_v24  ;;  %v8181_v28 = vld [vmem:[#allocation77_spill] sm:$0xff]  ;;  %v6433_v24 = vld [vmem:[#allocation6 + $0x9c] ss:$24 sps:$4 sm:$0xff]  }
 0x921   :  { %v2110_v13 = vpop.f32.mrf.mxu0  ;;  %v2151_v4 = vpop.f32.mrf.mxu1  ;;  %v6430_v6 = vld [vmem:[#allocation6 + $0xc8] ss:$24 sps:$4 sm:$0xff]  }
 0x922   :  { %4451 = vpow2.f32 %v3771_v45  ;;  %v3772_v57 = vmul.f32 -1.442695, %v2207_v2 }
 0x924   :  { %4453 = vpow2.f32 %v3772_v57  ;;  %v6439_v57 = vld [vmem:[#allocation6 + $0x6c] ss:$24 sps:$4 sm:$0xff]  }
 0x925   :  { %8182 = vst [vmem:[#allocation26_spill] sm:$0xff] %v6439_v57 }
 0x92f   :  { %v4452_v7 = vpop.eup %4451 }
 0x930   :  { %v2204_v9 = vadd.f32 1.0, %v4452_v7 }
 0x931   :  { %v4454_v53 = vpop.eup %4453 }
 0x932   :  { %4455 = vrcp.f32 %v2204_v9  ;;  %v2211_v43 = vadd.f32 1.0, %v4454_v53  ;;  %v6442_v53 = vld [vmem:[#allocation6 + $0x68] ss:$24 sps:$4 sm:$0xff]  }
 0x933   :  { %8183 = vst [vmem:[#allocation27_spill] sm:$0xff] %v6442_v53 }
 0x934   :  { %4457 = vrcp.f32 %v2211_v43 }
 0x93f   :  { %v4456_v21 = vpop.eup %4455 }
 0x940   :  { %v2214_v29 = vmul.f32 %v4456_v21, %v2199_v37  ;;  %v6445_v21 = vld [vmem:[#allocation6 + $0x3c] ss:$24 sps:$4 sm:$0xff]  }
 0x941   :  { %v4458_v13 = vpop.eup %4457  ;;  %8184 = vst [vmem:[#allocation50_spill] sm:$0xff] %v6445_v21 }
 0x942   :  { %v2215_v44 = vadd.f32 %v2214_v29, %v8181_v28  ;;  %v2217_v4 = vsub.f32 1.0, %v4458_v13  ;;  %v2219_v2 = vmul.f32 %v4458_v13, %v6131_v20  ;;  %v6448_v29 = vld [vmem:[#allocation6 + $0x38] ss:$24 sps:$4 sm:$0xff]   ;;  %v6451_v28 = vld [vmem:[#allocation6 + $0xc] ss:$24 sps:$4 sm:$0xff]  }
 0x943   :  { %8185 = vst [vmem:[#allocation52_spill] sm:$0xff] %v6448_v29  ;;  %8186 = vst [vmem:[#allocation28_spill] sm:$0xff] %v6451_v28  ;;  %v6457_v13 = vld [vmem:[#allocation6 + $0x2dc] ss:$24 sps:$4 sm:$0xff]  }
 0x944   :  { %4459 = vtanh.f32 %v2215_v44  ;;  %v6454_v44 = vld [vmem:[#allocation6 + $0x8] ss:$24 sps:$4 sm:$0xff]   ;;  %8188 = vst [vmem:[#allocation54_spill] sm:$0xff] %v6457_v13 }
 0x945   :  { %8187 = vst [vmem:[#allocation29_spill] sm:$0xff] %v6454_v44 }
 0x951   :  { %v4460_v45 = vpop.eup %4459 }
 0x952   :  { %v2218_v8 = vmul.f32 %v4460_v45, %v2217_v4  ;;  %v6460_v4 = vld [vmem:[#allocation6 + $0x2d8] ss:$24 sps:$4 sm:$0xff]   ;;  %v6463_v45 = vld [vmem:[#allocation6 + $0x2ac] ss:$24 sps:$4 sm:$0xff]  }
 0x953   :  { %8189 = vst [vmem:[#allocation56_spill] sm:$0xff] %v6460_v4  ;;  %8190 = vst [vmem:[#allocation30_spill] sm:$0xff] %v6463_v45 }
 0x954   :  { %v6394_v39 = vadd.f32 %v2219_v2, %v2218_v8  ;;  %v6466_v8 = vld [vmem:[#allocation6 + $0x2a8] ss:$24 sps:$4 sm:$0xff]   ;;  %v6469_v2 = vld [vmem:[#allocation6 + $0x27c] ss:$24 sps:$4 sm:$0xff]  }
 0x955   :  { %8191 = vst [vmem:[#allocation31_spill] sm:$0xff] %v6466_v8  ;;  %8192 = vst [vmem:[#allocation58_spill] sm:$0xff] %v6469_v2 }
 0x956   :  { %v6398_v9 = vpack.c.bf16 %v6394_v39, %v6394_v39 }
 0x958   :  { %2255 = vmatmul.mubr.bf16.vlgmr.msra.gmra.mxu1 %v6398_v9 }
 0x959   :  { %4031 = vmatpush3.bf16.msra.mxu1 %v6138_v33  ;;  %4046 = vmatprep.mubr.msk.bf16.mxu1 %vm4845_vm1, %v7849_v10 }
 0x95a   :  { %4032 = vmatprep.subr.bf16.mxu1 %v7849_v10 }
 0x95b   :  { %v6405_v37 = vpop.f32.mrf.mxu0 }
 0x95d   :  { %v6407_v7 = vpop.f32.mrf.mxu0  ;;  %4033 = vmatpush3.bf16.msra.mxu1 %v6148_v25 }
 0x95e   :  { %4034 = vmatprep.subr.bf16.mxu1 %v7849_v10 }
 0x95f   :  { %v2191_v20 = vpop.f32.mrf.mxu0 }
 0x960   :  { %v6472_v20 = vld [vmem:[#allocation6 + $0x278] ss:$24 sps:$4 sm:$0xff]  }
 0x961   :  { %v2192_v43 = vpop.f32.mrf.mxu0  ;;  %4035 = vmatpush3.bf16.msra.mxu1 %v6152_v48  ;;  %8193 = vst [vmem:[#allocation70_spill] sm:$0xff] %v6472_v20 }
 0x962   :  { %4036 = vmatprep.subr.bf16.mxu1 %v7849_v10  ;;  %v6475_v43 = vld [vmem:[#allocation6 + $0x24c] ss:$24 sps:$4 sm:$0xff]  }
 0x963   :  { %8194 = vst [vmem:[#allocation71_spill] sm:$0xff] %v6475_v43 }
 0x965   :  { %4037 = vmatpush3.bf16.msra.mxu1 %v6156_v54 }
 0x966   :  { %4038 = vmatprep.subr.bf16.mxu1 %v7849_v10 }
 0x969   :  { %4039 = vmatpush3.bf16.msra.mxu1 %v6160_v3 }
 0x96a   :  { %4040 = vmatprep.subr.bf16.mxu1 %v7849_v10 }
 0x96d   :  { %4041 = vmatpush3.bf16.msra.mxu1 %v6164_v35 }
 0x96e   :  { %4042 = vmatprep.subr.bf16.mxu1 %v7849_v10 }
 0x971   :  { %4043 = vmatpush3.bf16.msra.mxu1 %v6168_v14 }
 0x972   :  { %4044 = vmatprep.subr.bf16.mxu1 %v7849_v10 }
 0x975   :  { %4045 = vmatpush3.bf16.msra.mxu1 %v6172_v18 }
 0x976   :  { %2369 = vmatprep.subr.bf16.mxu1 %v6175_v15 }
 0x978   :  { %4047 = vmatmul.mubr.bf16.vlgmr.msra.gmra.mxu1 %v6398_v9 }
 0x979   :  { %2370 = vmatpush1.bf16.msra.mxu1 %v6179_v46 }
 0x97a   :  { %2371 = vmatprep.subr.bf16.mxu1 %v6182_v52 }
 0x97d   :  { %2372 = vmatpush1.bf16.msra.mxu1 %v6185_v41 }
 0x97e   :  { %2373 = vmatprep.subr.bf16.mxu1 %v6188_v17 }
 0x981   :  { %2374 = vmatpush1.bf16.msra.mxu1 %v6191_v0 }
 0x982   :  { %2375 = vmatprep.subr.bf16.mxu1 %v6194_v34 }
 0x985   :  { %2376 = vmatpush1.bf16.msra.mxu1 %v6430_v6 }
 0x986   :  { %2377 = vmatprep.subr.bf16.mxu1 %v6433_v24 }
 0x989   :  { %2378 = vmatpush1.bf16.msra.mxu1 %v6436_v58 }
 0x98a   :  { %2379 = vmatprep.subr.bf16.mxu1 %v6439_v57 }
 0x98d   :  { %2380 = vmatpush1.bf16.msra.mxu1 %v6442_v53 }
 0x98e   :  { %2381 = vmatprep.subr.bf16.mxu1 %v6445_v21 }
 0x991   :  { %2382 = vmatpush1.bf16.msra.mxu1 %v6448_v29 }
 0x992   :  { %2383 = vmatprep.subr.bf16.mxu1 %v6451_v28 }
 0x995   :  { %2384 = vmatpush1.bf16.msra.mxu1 %v6454_v44 }
 0x996   :  { %2385 = vmatprep.subr.bf16.mxu1 %v6457_v13 }
 0x999   :  { %2386 = vmatpush2.bf16.msra.mxu1 %v6460_v4  ;;  %v6478_v4 = vld [vmem:[#allocation6 + $0x248] ss:$24 sps:$4 sm:$0xff]  }
 0x99a   :  { %2387 = vmatprep.subr.bf16.mxu1 %v6463_v45  ;;  %8195 = vst [vmem:[#allocation69_spill] sm:$0xff] %v6478_v4  ;;  %v6481_v45 = vld [vmem:[#allocation6 + $0x21c] ss:$24 sps:$4 sm:$0xff]  }
 0x99b   :  { %8196 = vst [vmem:[#allocation57_spill] sm:$0xff] %v6481_v45 }
 0x99d   :  { %2388 = vmatpush2.bf16.msra.mxu1 %v6466_v8  ;;  %v6484_v8 = vld [vmem:[#allocation6 + $0x218] ss:$24 sps:$4 sm:$0xff]  }
 0x99e   :  { %2389 = vmatprep.subr.bf16.mxu1 %v6469_v2  ;;  %8197 = vst [vmem:[#allocation59_spill] sm:$0xff] %v6484_v8  ;;  %v6487_v2 = vld [vmem:[#allocation6 + $0x1ec] ss:$24 sps:$4 sm:$0xff]  }
 0x99f   :  { %8198 = vst [vmem:[#allocation61_spill] sm:$0xff] %v6487_v2 }
 0x9a1   :  { %2390 = vmatpush2.bf16.msra.mxu1 %v6472_v20  ;;  %v6490_v20 = vld [vmem:[#allocation6 + $0x1e8] ss:$24 sps:$4 sm:$0xff]  }
 0x9a2   :  { %2391 = vmatprep.subr.bf16.mxu1 %v6475_v43  ;;  %8199 = vst [vmem:[#allocation63_spill] sm:$0xff] %v6490_v20  ;;  %v6493_v43 = vld [vmem:[#allocation6 + $0x1bc] ss:$24 sps:$4 sm:$0xff]  }
 0x9a3   :  { %8200 = vst [vmem:[#allocation64_spill] sm:$0xff] %v6493_v43 }
 0x9a5   :  { %2392 = vmatpush2.bf16.msra.mxu1 %v6478_v4  ;;  %v6496_v4 = vld [vmem:[#allocation6 + $0x1b8] ss:$24 sps:$4 sm:$0xff]  }
 0x9a6   :  { %2393 = vmatprep.subr.bf16.mxu1 %v6481_v45  ;;  %8201 = vst [vmem:[#allocation85_spill] sm:$0xff] %v6496_v4  ;;  %v6499_v45 = vld [vmem:[#allocation6 + $0x18c] ss:$24 sps:$4 sm:$0xff]  }
 0x9a7   :  { %8202 = vst [vmem:[#allocation86_spill] sm:$0xff] %v6499_v45 }
 0x9a9   :  { %2394 = vmatpush2.bf16.msra.mxu1 %v6484_v8  ;;  %v6502_v8 = vld [vmem:[#allocation6 + $0x188] ss:$24 sps:$4 sm:$0xff]  }
 0x9aa   :  { %2395 = vmatprep.subr.bf16.mxu1 %v6487_v2  ;;  %8203 = vst [vmem:[#allocation67_spill] sm:$0xff] %v6502_v8 }
 0x9ad   :  { %2396 = vmatpush2.bf16.msra.mxu1 %v6490_v20  ;;  %v2303_v20 = vadd.f32 %v6386_v61, %v8113_v51 }
 0x9ae   :  { %2397 = vmatprep.subr.bf16.mxu1 %v6493_v43 }
 0x9b1   :  { %2398 = vmatpush2.bf16.msra.mxu1 %v6496_v4 }
 0x9b2   :  { %2399 = vmatprep.subr.bf16.mxu1 %v6499_v45  ;;  %v2304_v45 = vadd.f32 %v6405_v37, %v5476_v16 }
 0x9b5   :  { %2400 = vmatpush2.bf16.msra.mxu1 %v6502_v8 }
 0x9b6   :  { %2479 = vmatprep.subr.bf16.mxu1 %v8112_v26 }
 0xa18   :  { %v2256_v2 = vpop.f32.mrf.mxu1 }
 0xa19   :  { %v2257_v43 = vadd.f32 %v2256_v2, %v8036_v50 }
 0xa1a   :  { %v2258_v13 = vpop.f32.mrf.mxu1 }
 0xa1b   :  { %v2306_v44 = vadd.f32 %v2303_v20, %v2257_v43  ;;  %v2259_v29 = vadd.f32 %v2258_v13, %v5478_v11 }
 0xa1c   :  { %v2260_v28 = vpop.f32.mrf.mxu1 }
 0xa1d   :  { %v3773_v4 = vmul.f32 -1.442695, %v2306_v44  ;;  %v2313_v8 = vadd.f32 %v2304_v45, %v2259_v29  ;;  %v2305_v28 = vadd.f32 %v6407_v7, %v5483_v60  ;;  %v6525_v7 = vld [vmem:[#allocation6 + $0x134] ss:$24 sps:$4 sm:$0xff]  }
 0xa1e   :  { %v2261_v21 = vpop.f32.mrf.mxu1 }
 0xa1f   :  { %4461 = vpow2.f32 %v3773_v4  ;;  %v3774_v53 = vmul.f32 -1.442695, %v2313_v8 }
 0xa21   :  { %4463 = vpow2.f32 %v3774_v53 }
 0xa2c   :  { %v4462_v26 = vpop.eup %4461 }
 0xa2d   :  { %v2310_v57 = vadd.f32 1.0, %v4462_v26  ;;  %v6531_v26 = vld [vmem:[#allocation7 + $0xac] ss:$12 sps:$4 sm:$0xff]  }
 0xa2e   :  { %v4464_v61 = vpop.eup %4463 }
 0xa2f   :  { %4465 = vrcp.f32 %v2310_v57  ;;  %v2317_v2 = vadd.f32 1.0, %v4464_v61  ;;  %v6535_v61 = vld [vmem:[#allocation6 + $0x130] ss:$24 sps:$4 sm:$0xff]  }
 0xa31   :  { %4467 = vrcp.f32 %v2317_v2  ;;  %v6538_v2 = vld [vmem:[#allocation6 + $0x104] ss:$24 sps:$4 sm:$0xff]  }
 0xa38   :  { %v2297_v51 = vpop.f32.mrf.mxu1 }
 0xa39   :  { %v2298_v21 = vadd.f32 %v2297_v51, %v5485_v38  ;;  %v6522_v51 = vld [vmem:[#allocation6 + $0x160] ss:$24 sps:$4 sm:$0xff]  }
 0xa3a   :  { %v4048_v50 = vpop.f32.mrf.mxu1 }
 0xa3c   :  { %v4466_v44 = vpop.eup %4465  ;;  %v2300_v13 = vpop.f32.mrf.mxu1 }
 0xa3d   :  { %v2320_v37 = vmul.f32 %v4466_v44, %v2305_v28  ;;  %v6541_v28 = vld [vmem:[#allocation7 + $0xa8] ss:$12 sps:$4 sm:$0xff]   ;;  %v6547_v13 = vld [vmem:[#allocation6 + $0x100] ss:$24 sps:$4 sm:$0xff]  }
 0xa3e   :  { %v4049_v4 = vpop.f32.mrf.mxu1  ;;  %v4468_v53 = vpop.eup %4467  ;;  %v6544_v44 = vld [vmem:[#allocation7 + $0x94] ss:$12 sps:$4 sm:$0xff]  }
 0xa3f   :  { %v2321_v29 = vadd.f32 %v2320_v37, %v2298_v21  ;;  %v2323_v45 = vsub.f32 1.0, %v4468_v53  ;;  %v2325_v20 = vmul.f32 %v4468_v53, %v6233_v23  ;;  %v6528_v23 = vld [vmem:[#allocation7 + $0xc0] ss:$12 sps:$4 sm:$0xff]   ;;  %v6553_v37 = vld [vmem:[#allocation7 + $0x90] ss:$12 sps:$4 sm:$0xff]  }
 0xa40   :  { %v6550_v21 = vld [vmem:[#allocation6 + $0xd4] ss:$24 sps:$4 sm:$0xff]   ;;  %v6556_v4 = vld [vmem:[#allocation7 + $0x7c] ss:$12 sps:$4 sm:$0xff]  }
 0xa41   :  { %4469 = vtanh.f32 %v2321_v29  ;;  %v6559_v29 = vld [vmem:[#allocation6 + $0xd0] ss:$24 sps:$4 sm:$0xff]   ;;  %v6562_v53 = vld [vmem:[#allocation6 + $0xa4] ss:$24 sps:$4 sm:$0xff]  }
 0xa42   :  { %8204 = vst [vmem:[#allocation89_spill] sm:$0xff] %v6562_v53 }
 0xa4e   :  { %v4470_v8 = vpop.eup %4469 }
 0xa4f   :  { %v2324_v57 = vmul.f32 %v4470_v8, %v2323_v45  ;;  %v6565_v45 = vld [vmem:[#allocation7 + $0x78] ss:$12 sps:$4 sm:$0xff]  }
 0xa50   :  { %8205 = vst [vmem:[#allocation90_spill] sm:$0xff] %v6565_v45  ;;  %v6568_v8 = vld [vmem:[#allocation7 + $0x64] ss:$12 sps:$4 sm:$0xff]  }
 0xa51   :  { %v6516_v43 = vadd.f32 %v2325_v20, %v2324_v57  ;;  %v6571_v57 = vld [vmem:[#allocation6 + $0xa0] ss:$24 sps:$4 sm:$0xff]   ;;  %v6574_v20 = vld [vmem:[#allocation6 + $0x74] ss:$24 sps:$4 sm:$0xff]  }
 0xa52   :  { %8206 = vst [vmem:[#allocation91_spill] sm:$0xff] %v6571_v57  ;;  %8207 = vst [vmem:[#allocation92_spill] sm:$0xff] %v6574_v20 }
 0xa53   :  { %v2327_v50 = vpack.c.bf16 %v6516_v43, %v6516_v43 }
 0xa55   :  { %2360 = vmatprep.mubr.bf16.mxu0 %v2327_v50  ;;  %2401 = vmatprep.mubr.bf16.mxu1 %v2327_v50 }
 0xa56   :  { %2361 = vmatmul.mubr.bf16.vlgmr.msra.gmra.mxu0 %v6398_v9  ;;  %2402 = vmatmul.mubr.bf16.vlgmr.msra.gmra.mxu1 %v6398_v9 }
 0xa57   :  { %2411 = vmatpush1.bf16.msra.mxu0 %v6522_v51  ;;  %2442 = vmatprep.mubr.bf16.mxu0 %v2327_v50  ;;  %v6577_v50 = vld [vmem:[#allocation7 + $0x60] ss:$12 sps:$4 sm:$0xff]  }
 0xa58   :  { %2412 = vmatprep.subr.bf16.mxu0 %v6525_v7  ;;  %2480 = vmatpush1.bf16.msra.mxu1 %v6528_v23  ;;  %8208 = vst [vmem:[#allocation68_spill] sm:$0xff] %v6577_v50 }
 0xa59   :  { %2481 = vmatprep.subr.bf16.mxu1 %v6531_v26  ;;  %2511 = vmatprep.mubr.bf16.mxu1 %v7829_v32 }
 0xa5b   :  { %2413 = vmatpush1.bf16.msra.mxu0 %v6535_v61 }
 0xa5c   :  { %2414 = vmatprep.subr.bf16.mxu0 %v6538_v2  ;;  %2482 = vmatpush1.bf16.msra.mxu1 %v6541_v28 }
 0xa5d   :  { %2483 = vmatprep.subr.bf16.mxu1 %v6544_v44 }
 0xa5f   :  { %2415 = vmatpush1.bf16.msra.mxu0 %v6547_v13 }
 0xa60   :  { %2416 = vmatprep.subr.bf16.mxu0 %v6550_v21  ;;  %2484 = vmatpush1.bf16.msra.mxu1 %v6553_v37 }
 0xa61   :  { %2485 = vmatprep.subr.bf16.mxu1 %v6556_v4 }
 0xa63   :  { %2417 = vmatpush1.bf16.msra.mxu0 %v6559_v29 }
 0xa64   :  { %2418 = vmatprep.subr.bf16.mxu0 %v6562_v53  ;;  %2486 = vmatpush1.bf16.msra.mxu1 %v6565_v45  ;;  %v6581_v53 = vld [vmem:[#allocation6 + $0x70] ss:$24 sps:$4 sm:$0xff]   ;;  %v6584_v45 = vld [vmem:[#allocation6 + $0x44] ss:$24 sps:$4 sm:$0xff]  }
 0xa65   :  { %2487 = vmatprep.subr.bf16.mxu1 %v6568_v8  ;;  %8209 = vst [vmem:[#allocation93_spill] sm:$0xff] %v6581_v53  ;;  %8210 = vst [vmem:[#allocation94_spill] sm:$0xff] %v6584_v45 }
 0xa67   :  { %2419 = vmatpush1.bf16.msra.mxu0 %v6571_v57  ;;  %v6589_v57 = vld [vmem:[#allocation6 + $0x40] ss:$24 sps:$4 sm:$0xff]  }
 0xa68   :  { %2420 = vmatprep.subr.bf16.mxu0 %v6574_v20  ;;  %2488 = vmatpush1.bf16.msra.mxu1 %v6577_v50  ;;  %8211 = vst [vmem:[#allocation66_spill] sm:$0xff] %v6589_v57  ;;  %v6592_v20 = vld [vmem:[#allocation6 + $0x14] ss:$24 sps:$4 sm:$0xff]  }
 0xa69   :  { %2489 = vmatprep.subr.bf16.mxu1 %v8118_v19  ;;  %8212 = vst [vmem:[#allocation60_spill] sm:$0xff] %v6592_v20  ;;  %v6597_v19 = vld [vmem:[#allocation6 + $0x10] ss:$24 sps:$4 sm:$0xff]  }
 0xa6a   :  { %8213 = vst [vmem:[#allocation95_spill] sm:$0xff] %v6597_v19 }
 0xa6b   :  { %2421 = vmatpush1.bf16.msra.mxu0 %v6581_v53 }
 0xa6c   :  { %2422 = vmatprep.subr.bf16.mxu0 %v6584_v45  ;;  %2490 = vmatpush1.bf16.msra.mxu1 %v8121_v12  ;;  %v6600_v45 = vld [vmem:[#allocation6 + $0x2e4] ss:$24 sps:$4 sm:$0xff]   ;;  %v6605_v12 = vld [vmem:[#allocation6 + $0x2e0] ss:$24 sps:$4 sm:$0xff]  }
 0xa6d   :  { %2491 = vmatprep.subr.bf16.mxu1 %v8122_v22  ;;  %8214 = vst [vmem:[#allocation96_spill] sm:$0xff] %v6600_v45  ;;  %8215 = vst [vmem:[#allocation32_spill] sm:$0xff] %v6605_v12  ;;  %v6608_v22 = vld [vmem:[#allocation6 + $0x2b4] ss:$24 sps:$4 sm:$0xff]  }
 0xa6e   :  { %8216 = vst [vmem:[#allocation35_spill] sm:$0xff] %v6608_v22 }
 0xa6f   :  { %2423 = vmatpush1.bf16.msra.mxu0 %v6589_v57 }
 0xa70   :  { %2424 = vmatprep.subr.bf16.mxu0 %v6592_v20  ;;  %2492 = vmatpush1.bf16.msra.mxu1 %v8125_v31  ;;  %v6611_v31 = vld [vmem:[#allocation6 + $0x2b0] ss:$24 sps:$4 sm:$0xff]  }
 0xa71   :  { %2493 = vmatprep.subr.bf16.mxu1 %v8126_v27  ;;  %8217 = vst [vmem:[#allocation97_spill] sm:$0xff] %v6611_v31  ;;  %v6614_v27 = vld [vmem:[#allocation6 + $0x284] ss:$24 sps:$4 sm:$0xff]  }
 0xa72   :  { %8218 = vst [vmem:[#allocation98_spill] sm:$0xff] %v6614_v27 }
 0xa73   :  { %2425 = vmatpush1.bf16.msra.mxu0 %v6597_v19 }
 0xa74   :  { %2426 = vmatprep.subr.bf16.mxu0 %v6600_v45  ;;  %2494 = vmatpush1.bf16.msra.mxu1 %v8129_v36  ;;  %v6617_v45 = vld [vmem:[#allocation6 + $0x280] ss:$24 sps:$4 sm:$0xff]   ;;  %v6620_v36 = vld [vmem:[#allocation6 + $0x254] ss:$24 sps:$4 sm:$0xff]  }
 0xa75   :  { %4050 = vmatprep.subr.bf16.mxu1 %v7849_v10  ;;  %8219 = vst [vmem:[#allocation62_spill] sm:$0xff] %v6617_v45  ;;  %8220 = vst [vmem:[#allocation99_spill] sm:$0xff] %v6620_v36 }
 0xa77   :  { %2427 = vmatpush2.bf16.msra.mxu0 %v6605_v12  ;;  %v6623_v12 = vld [vmem:[#allocation6 + $0x250] ss:$24 sps:$4 sm:$0xff]  }
 0xa78   :  { %2428 = vmatprep.subr.bf16.mxu0 %v6608_v22  ;;  %8221 = vst [vmem:[#allocation100_spill] sm:$0xff] %v6623_v12  ;;  %v6626_v22 = vld [vmem:[#allocation6 + $0x224] ss:$24 sps:$4 sm:$0xff]  }
 0xa79   :  { %8222 = vst [vmem:[#allocation101_spill] sm:$0xff] %v6626_v22 }
 0xa7b   :  { %2429 = vmatpush2.bf16.msra.mxu0 %v6611_v31  ;;  %v6629_v31 = vld [vmem:[#allocation6 + $0x220] ss:$24 sps:$4 sm:$0xff]  }
 0xa7c   :  { %2430 = vmatprep.subr.bf16.mxu0 %v6614_v27  ;;  %8223 = vst [vmem:[#allocation102_spill] sm:$0xff] %v6629_v31  ;;  %v6632_v27 = vld [vmem:[#allocation6 + $0x1f4] ss:$24 sps:$4 sm:$0xff]  }
 0xa7d   :  { %8224 = vst [vmem:[#allocation103_spill] sm:$0xff] %v6632_v27 }
 0xa7f   :  { %2431 = vmatpush2.bf16.msra.mxu0 %v6617_v45  ;;  %v6635_v45 = vld [vmem:[#allocation6 + $0x1f0] ss:$24 sps:$4 sm:$0xff]  }
 0xa80   :  { %2432 = vmatprep.subr.bf16.mxu0 %v6620_v36  ;;  %8225 = vst [vmem:[#allocation104_spill] sm:$0xff] %v6635_v45  ;;  %v6638_v36 = vld [vmem:[#allocation6 + $0x1c4] ss:$24 sps:$4 sm:$0xff]  }
 0xa81   :  { %8226 = vst [vmem:[#allocation105_spill] sm:$0xff] %v6638_v36 }
 0xa83   :  { %2433 = vmatpush2.bf16.msra.mxu0 %v6623_v12  ;;  %v6641_v12 = vld [vmem:[#allocation6 + $0x1c0] ss:$24 sps:$4 sm:$0xff]  }
 0xa84   :  { %2434 = vmatprep.subr.bf16.mxu0 %v6626_v22  ;;  %8227 = vst [vmem:[#allocation106_spill] sm:$0xff] %v6641_v12  ;;  %v6644_v22 = vld [vmem:[#allocation6 + $0x194] ss:$24 sps:$4 sm:$0xff]  }
 0xa85   :  { %8228 = vst [vmem:[#allocation107_spill] sm:$0xff] %v6644_v22 }
 0xa87   :  { %2435 = vmatpush2.bf16.msra.mxu0 %v6629_v31 }
 0xa88   :  { %2436 = vmatprep.subr.bf16.mxu0 %v6632_v27  ;;  %v8255_v27 = vld [vmem:[#allocation76_spill] sm:$0xff] }
 0xa8b   :  { %2437 = vmatpush2.bf16.msra.mxu0 %v6635_v45 }
 0xa8c   :  { %2438 = vmatprep.subr.bf16.mxu0 %v6638_v36 }
 0xa8f   :  { %2439 = vmatpush2.bf16.msra.mxu0 %v6641_v12 }
 0xa90   :  { %2440 = vmatprep.subr.bf16.mxu0 %v6644_v22 }
 0xa93   :  { %2441 = vmatpush2.bf16.msra.mxu0 %v8144_v63  ;;  %v8229_v63 = vld [vmem:[#allocation87_spill] sm:$0xff] }
 0xa94   :  { %2585 = vmatprep.subr.bf16.mxu0 %v6287_v1  ;;  %v8230_v1 = vld [vmem:[#allocation88_spill] sm:$0xff] }
 0xa96   :  { %2443 = vmatmul.mubr.bf16.vlgmr.msra.gmra.mxu0 %v6398_v9  ;;  %v8231_v9 = vld [vmem:[#allocation14_spill] sm:$0xff] }
 0xa97   :  { %2586 = vmatpush1.bf16.msra.mxu0 %v6291_v30  ;;  %v8232_v30 = vld [vmem:[#allocation15_spill] sm:$0xff] }
 0xa98   :  { %2587 = vmatprep.subr.bf16.mxu0 %v6294_v47  ;;  %v8233_v47 = vld [vmem:[#allocation16_spill] sm:$0xff] }
 0xa9b   :  { %2588 = vmatpush1.bf16.msra.mxu0 %v6297_v5  ;;  %v8234_v5 = vld [vmem:[#allocation17_spill] sm:$0xff] }
 0xa9c   :  { %2589 = vmatprep.subr.bf16.mxu0 %v6300_v62  ;;  %v8235_v62 = vld [vmem:[#allocation33_spill] sm:$0xff] }
 0xa9f   :  { %2590 = vmatpush1.bf16.msra.mxu0 %v6303_v40  ;;  %v8236_v40 = vld [vmem:[#allocation18_spill] sm:$0xff] }
 0xaa0   :  { %2591 = vmatprep.subr.bf16.mxu0 %v6306_v42  ;;  %v8237_v42 = vld [vmem:[#allocation19_spill] sm:$0xff] }
 0xaa3   :  { %2592 = vmatpush1.bf16.msra.mxu0 %v6309_v59  ;;  %v8238_v59 = vld [vmem:[#allocation34_spill] sm:$0xff] }
 0xaa4   :  { %2593 = vmatprep.subr.bf16.mxu0 %v6312_v56  ;;  %v8239_v56 = vld [vmem:[#allocation37_spill] sm:$0xff] }
 0xaa7   :  { %2594 = vmatpush1.bf16.msra.mxu0 %v8229_v63  ;;  %v8240_v63 = vld [vmem:[#allocation20_spill] sm:$0xff] }
 0xaa8   :  { %2595 = vmatprep.subr.bf16.mxu0 %v8230_v1  ;;  %v8241_v1 = vld [vmem:[#allocation21_spill] sm:$0xff] }
 0xaab   :  { %2596 = vmatpush1.bf16.msra.mxu0 %v8231_v9  ;;  %v8242_v9 = vld [vmem:[#allocation38_spill] sm:$0xff] }
 0xaac   :  { %2597 = vmatprep.subr.bf16.mxu0 %v8232_v30  ;;  %v8243_v30 = vld [vmem:[#allocation41_spill] sm:$0xff] }
 0xaaf   :  { %2598 = vmatpush1.bf16.msra.mxu0 %v8233_v47  ;;  %v8244_v47 = vld [vmem:[#allocation22_spill] sm:$0xff] }
 0xab0   :  { %2599 = vmatprep.subr.bf16.mxu0 %v8234_v5  ;;  %v8245_v5 = vld [vmem:[#allocation23_spill] sm:$0xff] }
 0xab3   :  { %2600 = vmatpush1.bf16.msra.mxu0 %v8235_v62  ;;  %v8246_v62 = vld [vmem:[#allocation42_spill] sm:$0xff] }
 0xab4   :  { %2601 = vmatprep.subr.bf16.mxu0 %v8236_v40  ;;  %v8247_v40 = vld [vmem:[#allocation45_spill] sm:$0xff] }
 0xab7   :  { %2602 = vmatpush2.bf16.msra.mxu0 %v8237_v42  ;;  %v8248_v42 = vld [vmem:[#allocation24_spill] sm:$0xff] }
 0xab8   :  { %2603 = vmatprep.subr.bf16.mxu0 %v8238_v59  ;;  %v8249_v59 = vld [vmem:[#allocation25_spill] sm:$0xff] }
 0xabb   :  { %2604 = vmatpush2.bf16.msra.mxu0 %v8239_v56  ;;  %v8250_v56 = vld [vmem:[#allocation46_spill] sm:$0xff] }
 0xabc   :  { %2605 = vmatprep.subr.bf16.mxu0 %v8240_v63  ;;  %v8251_v63 = vld [vmem:[#allocation49_spill] sm:$0xff] }
 0xabf   :  { %2606 = vmatpush2.bf16.msra.mxu0 %v8241_v1  ;;  %v6681_v1 = vld [vmem:[#allocation6 + $0x164] ss:$24 sps:$4 sm:$0xff]  }
 0xac0   :  { %2607 = vmatprep.subr.bf16.mxu0 %v8242_v9  ;;  %8252 = vst [vmem:[#allocation108_spill] sm:$0xff] %v6681_v1  ;;  %v8253_v9 = vld [vmem:[#allocation84_spill] sm:$0xff] }
 0xac3   :  { %2608 = vmatpush2.bf16.msra.mxu0 %v8243_v30 }
 0xac4   :  { %2609 = vmatprep.subr.bf16.mxu0 %v8244_v47 }
 0xac7   :  { %2610 = vmatpush2.bf16.msra.mxu0 %v8245_v5 }
 0xac8   :  { %2611 = vmatprep.subr.bf16.mxu0 %v8246_v62 }
 0xacb   :  { %2612 = vmatpush2.bf16.msra.mxu0 %v8247_v40  ;;  %v8254_v40 = vld [vmem:[#allocation74_spill] sm:$0xff] }
 0xacc   :  { %2613 = vmatprep.subr.bf16.mxu0 %v8248_v42 }
 0xacf   :  { %2614 = vmatpush2.bf16.msra.mxu0 %v8249_v59 }
 0xad0   :  { %2615 = vmatprep.subr.bf16.mxu0 %v8250_v56 }
 0xad3   :  { %2616 = vmatpush2.bf16.msra.mxu0 %v8251_v63 }
 0xad4   :  { %2667 = vmatprep.subr.bf16.mxu0 %v6681_v1 }
 0xb16   :  { %v2362_v30 = vpop.f32.mrf.mxu0  ;;  %v2403_v47 = vpop.f32.mrf.mxu1 }
 0xb17   :  { %v2454_v5 = vadd.f32 %v2362_v30, %v8253_v9  ;;  %v2456_v57 = vadd.f32 %v2403_v47, %v5376_v49 }
 0xb18   :  { %v2364_v22 = vpop.f32.mrf.mxu0  ;;  %v6685_v62 = vpop.f32.mrf.mxu1 }
 0xb19   :  { %v2457_v12 = vadd.f32 %v2454_v5, %v8254_v40  ;;  %v2455_v56 = vadd.f32 %v2364_v22, %v5366_v55 }
 0xb1a   :  { %v2366_v42 = vpop.f32.mrf.mxu0  ;;  %v2407_v36 = vpop.f32.mrf.mxu1 }
 0xb1b   :  { %v3775_v59 = vmul.f32 -1.442695, %v2457_v12  ;;  %v2464_v31 = vadd.f32 %v2455_v56, %v8255_v27  ;;  %v8256_v42 = vld [vmem:[#allocation81_spill] sm:$0xff] }
 0xb1c   :  { %v2367_v45 = vpop.f32.mrf.mxu0  ;;  %v2408_v63 = vpop.f32.mrf.mxu1  ;;  %v8273_v27 = vld [vmem:[#allocation61_spill] sm:$0xff] }
 0xb1d   :  { %4471 = vpow2.f32 %v3775_v59  ;;  %v3776_v1 = vmul.f32 -1.442695, %v2464_v31  ;;  %v8272_v31 = vld [vmem:[#allocation59_spill] sm:$0xff] }
 0xb1e   :  { %v8274_v63 = vld [vmem:[#allocation63_spill] sm:$0xff] }
 0xb1f   :  { %4473 = vpow2.f32 %v3776_v1 }
 0xb2a   :  { %v4472_v19 = vpop.eup %4471 }
 0xb2b   :  { %v2461_v20 = vadd.f32 1.0, %v4472_v19 }
 0xb2c   :  { %v4474_v30 = vpop.eup %4473 }
 0xb2d   :  { %4475 = vrcp.f32 %v2461_v20  ;;  %v2468_v9 = vadd.f32 1.0, %v4474_v30  ;;  %v8276_v30 = vld [vmem:[#allocation85_spill] sm:$0xff] }
 0xb2f   :  { %4477 = vrcp.f32 %v2468_v9  ;;  %v8275_v9 = vld [vmem:[#allocation64_spill] sm:$0xff] }
 0xb3a   :  { %v4476_v5 = vpop.eup %4475 }
 0xb3b   :  { %v2471_v40 = vmul.f32 %v4476_v5, %v2456_v57  ;;  %v8277_v5 = vld [vmem:[#allocation86_spill] sm:$0xff] }
 0xb3c   :  { %v4478_v45 = vpop.eup %4477 }
 0xb3d   :  { %v2472_v12 = vadd.f32 %v2471_v40, %v8256_v42  ;;  %v2474_v22 = vsub.f32 1.0, %v4478_v45  ;;  %v2476_v56 = vmul.f32 %v4478_v45, %v6394_v39  ;;  %v8278_v40 = vld [vmem:[#allocation67_spill] sm:$0xff]  ;;  %v8280_v45 = vld [vmem:[#allocation12_spill] sm:$0xff] }
 0xb3e   :  { %v6752_v42 = vld [vmem:[#allocation7 + $0xc4] ss:$12 sps:$4 sm:$0xff]  }
 0xb3f   :  { %4479 = vtanh.f32 %v2472_v12  ;;  %8279 = vst [vmem:[#allocation109_spill] sm:$0xff] %v6752_v42 }
 0xb4c   :  { %v4480_v59 = vpop.eup %4479 }
 0xb4d   :  { %v2475_v36 = vmul.f32 %v4480_v59, %v2474_v22  ;;  %v2560_v22 = vadd.f32 %v6685_v62, %v8280_v45  ;;  %v8281_v59 = vld [vmem:[#allocation13_spill] sm:$0xff] }
 0xb4f   :  { %v6693_v1 = vadd.f32 %v2476_v56, %v2475_v36 }
 0xb51   :  { %v6697_v20 = vpack.c.bf16 %v6693_v1, %v6693_v1 }
 0xb53   :  { %2512 = vmatmul.mubr.bf16.vlgmr.msra.gmra.mxu1 %v6697_v20 }
 0xb54   :  { %4051 = vmatpush3.bf16.msra.mxu1 %v6138_v33  ;;  %4066 = vmatprep.mubr.msk.bf16.mxu1 %vm4845_vm1, %v7849_v10  ;;  %v8257_v33 = vld [vmem:[#allocation26_spill] sm:$0xff] }
 0xb55   :  { %4052 = vmatprep.subr.bf16.mxu1 %v7849_v10 }
 0xb56   :  { %v2444_v47 = vpop.f32.mrf.mxu0 }
 0xb58   :  { %v6704_v57 = vpop.f32.mrf.mxu0  ;;  %4053 = vmatpush3.bf16.msra.mxu1 %v6148_v25  ;;  %v8258_v25 = vld [vmem:[#allocation27_spill] sm:$0xff] }
 0xb59   :  { %4054 = vmatprep.subr.bf16.mxu1 %v7849_v10 }
 0xb5a   :  { %v2448_v39 = vpop.f32.mrf.mxu0 }
 0xb5c   :  { %v2449_v19 = vpop.f32.mrf.mxu0  ;;  %4055 = vmatpush3.bf16.msra.mxu1 %v6152_v48  ;;  %v8259_v48 = vld [vmem:[#allocation50_spill] sm:$0xff] }
 0xb5d   :  { %4056 = vmatprep.subr.bf16.mxu1 %v7849_v10 }
 0xb60   :  { %4057 = vmatpush3.bf16.msra.mxu1 %v6156_v54  ;;  %v8260_v54 = vld [vmem:[#allocation52_spill] sm:$0xff] }
 0xb61   :  { %4058 = vmatprep.subr.bf16.mxu1 %v7849_v10 }
 0xb64   :  { %4059 = vmatpush3.bf16.msra.mxu1 %v6160_v3  ;;  %v8261_v3 = vld [vmem:[#allocation28_spill] sm:$0xff] }
 0xb65   :  { %4060 = vmatprep.subr.bf16.mxu1 %v7849_v10 }
 0xb68   :  { %4061 = vmatpush3.bf16.msra.mxu1 %v6164_v35  ;;  %v8262_v35 = vld [vmem:[#allocation29_spill] sm:$0xff] }
 0xb69   :  { %4062 = vmatprep.subr.bf16.mxu1 %v7849_v10 }
 0xb6c   :  { %4063 = vmatpush3.bf16.msra.mxu1 %v6168_v14  ;;  %v8263_v14 = vld [vmem:[#allocation54_spill] sm:$0xff] }
 0xb6d   :  { %4064 = vmatprep.subr.bf16.mxu1 %v7849_v10 }
 0xb70   :  { %4065 = vmatpush3.bf16.msra.mxu1 %v6172_v18  ;;  %v8264_v18 = vld [vmem:[#allocation56_spill] sm:$0xff] }
 0xb71   :  { %2626 = vmatprep.subr.bf16.mxu1 %v6175_v15  ;;  %v8265_v15 = vld [vmem:[#allocation30_spill] sm:$0xff] }
 0xb73   :  { %4067 = vmatmul.mubr.bf16.vlgmr.msra.gmra.mxu1 %v6697_v20 }
 0xb74   :  { %2627 = vmatpush1.bf16.msra.mxu1 %v6179_v46  ;;  %v8266_v46 = vld [vmem:[#allocation31_spill] sm:$0xff] }
 0xb75   :  { %2628 = vmatprep.subr.bf16.mxu1 %v6182_v52  ;;  %v8267_v52 = vld [vmem:[#allocation58_spill] sm:$0xff] }
 0xb78   :  { %2629 = vmatpush1.bf16.msra.mxu1 %v6185_v41  ;;  %v8268_v41 = vld [vmem:[#allocation70_spill] sm:$0xff] }
 0xb79   :  { %2630 = vmatprep.subr.bf16.mxu1 %v6188_v17  ;;  %v8269_v17 = vld [vmem:[#allocation71_spill] sm:$0xff] }
 0xb7c   :  { %2631 = vmatpush1.bf16.msra.mxu1 %v6191_v0  ;;  %v8270_v0 = vld [vmem:[#allocation69_spill] sm:$0xff] }
 0xb7d   :  { %2632 = vmatprep.subr.bf16.mxu1 %v6194_v34  ;;  %v8271_v34 = vld [vmem:[#allocation57_spill] sm:$0xff] }
 0xb80   :  { %2633 = vmatpush1.bf16.msra.mxu1 %v6430_v6 }
 0xb81   :  { %2634 = vmatprep.subr.bf16.mxu1 %v6433_v24 }
 0xb84   :  { %2635 = vmatpush1.bf16.msra.mxu1 %v6436_v58 }
 0xb85   :  { %2636 = vmatprep.subr.bf16.mxu1 %v8257_v33 }
 0xb88   :  { %2637 = vmatpush1.bf16.msra.mxu1 %v8258_v25 }
 0xb89   :  { %2638 = vmatprep.subr.bf16.mxu1 %v8259_v48 }
 0xb8c   :  { %2639 = vmatpush1.bf16.msra.mxu1 %v8260_v54 }
 0xb8d   :  { %2640 = vmatprep.subr.bf16.mxu1 %v8261_v3 }
 0xb90   :  { %2641 = vmatpush1.bf16.msra.mxu1 %v8262_v35 }
 0xb91   :  { %2642 = vmatprep.subr.bf16.mxu1 %v8263_v14 }
 0xb94   :  { %2643 = vmatpush2.bf16.msra.mxu1 %v8264_v18 }
 0xb95   :  { %2644 = vmatprep.subr.bf16.mxu1 %v8265_v15 }
 0xb98   :  { %2645 = vmatpush2.bf16.msra.mxu1 %v8266_v46 }
 0xb99   :  { %2646 = vmatprep.subr.bf16.mxu1 %v8267_v52 }
 0xb9c   :  { %2647 = vmatpush2.bf16.msra.mxu1 %v8268_v41 }
 0xb9d   :  { %2648 = vmatprep.subr.bf16.mxu1 %v8269_v17 }
 0xba0   :  { %2649 = vmatpush2.bf16.msra.mxu1 %v8270_v0 }
 0xba1   :  { %2650 = vmatprep.subr.bf16.mxu1 %v8271_v34 }
 0xba4   :  { %2651 = vmatpush2.bf16.msra.mxu1 %v8272_v31 }
 0xba5   :  { %2652 = vmatprep.subr.bf16.mxu1 %v8273_v27 }
 0xba8   :  { %2653 = vmatpush2.bf16.msra.mxu1 %v8274_v63 }
 0xba9   :  { %2654 = vmatprep.subr.bf16.mxu1 %v8275_v9 }
 0xbac   :  { %2655 = vmatpush2.bf16.msra.mxu1 %v8276_v30 }
 0xbad   :  { %2656 = vmatprep.subr.bf16.mxu1 %v8277_v5  ;;  %v2561_v5 = vadd.f32 %v2444_v47, %v5476_v16 }
 0xbb0   :  { %2657 = vmatpush2.bf16.msra.mxu1 %v8278_v40 }
 0xbb1   :  { %2736 = vmatprep.subr.bf16.mxu1 %v6752_v42 }
 0xc13   :  { %v2513_v12 = vpop.f32.mrf.mxu1 }
 0xc14   :  { %v2514_v36 = vadd.f32 %v2513_v12, %v8281_v59 }
 0xc15   :  { %v2515_v56 = vpop.f32.mrf.mxu1 }
 0xc16   :  { %v2563_v39 = vadd.f32 %v2560_v22, %v2514_v36  ;;  %v2516_v30 = vadd.f32 %v2515_v56, %v5478_v11  ;;  %v2562_v22 = vadd.f32 %v6704_v57, %v5483_v60  ;;  %v8284_v56 = vld [vmem:[#allocation91_spill] sm:$0xff] }
 0xc17   :  { %v2517_v19 = vpop.f32.mrf.mxu1 }
 0xc18   :  { %v3777_v9 = vmul.f32 -1.442695, %v2563_v39  ;;  %v2570_v40 = vadd.f32 %v2561_v5, %v2516_v30  ;;  %v8285_v19 = vld [vmem:[#allocation92_spill] sm:$0xff] }
 0xc19   :  { %v2518_v63 = vpop.f32.mrf.mxu1 }
 0xc1a   :  { %4481 = vpow2.f32 %v3777_v9  ;;  %v3778_v27 = vmul.f32 -1.442695, %v2570_v40 }
 0xc1c   :  { %4483 = vpow2.f32 %v3778_v27 }
 0xc27   :  { %v4482_v42 = vpop.eup %4481 }
 0xc28   :  { %v2567_v31 = vadd.f32 1.0, %v4482_v42 }
 0xc29   :  { %v4484_v34 = vpop.eup %4483 }
 0xc2a   :  { %4485 = vrcp.f32 %v2567_v31  ;;  %v2574_v45 = vadd.f32 1.0, %v4484_v34 }
 0xc2c   :  { %4487 = vrcp.f32 %v2574_v45  ;;  %v8283_v45 = vld [vmem:[#allocation90_spill] sm:$0xff] }
 0xc33   :  { %v2554_v62 = vpop.f32.mrf.mxu1 }
 0xc34   :  { %v2555_v63 = vadd.f32 %v2554_v62, %v5485_v38  ;;  %v6790_v62 = vld [vmem:[#allocation7 + $0x4c] ss:$12 sps:$4 sm:$0xff]  }
 0xc35   :  { %v4068_v12 = vpop.f32.mrf.mxu1  ;;  %8286 = vst [vmem:[#allocation110_spill] sm:$0xff] %v6790_v62 }
 0xc36   :  { %v8287_v12 = vld [vmem:[#allocation94_spill] sm:$0xff] }
 0xc37   :  { %v4486_v36 = vpop.eup %4485  ;;  %v2557_v39 = vpop.f32.mrf.mxu1 }
 0xc38   :  { %v2577_v47 = vmul.f32 %v4486_v36, %v2562_v22  ;;  %v6795_v22 = vld [vmem:[#allocation7 + $0x48] ss:$12 sps:$4 sm:$0xff]  }
 0xc39   :  { %v4069_v9 = vpop.f32.mrf.mxu1  ;;  %v4488_v27 = vpop.eup %4487  ;;  %8288 = vst [vmem:[#allocation111_spill] sm:$0xff] %v6795_v22  ;;  %v6798_v36 = vld [vmem:[#allocation7 + $0x34] ss:$12 sps:$4 sm:$0xff]   ;;  %v8290_v39 = vld [vmem:[#allocation66_spill] sm:$0xff] }
 0xc3a   :  { %v2578_v30 = vadd.f32 %v2577_v47, %v2555_v63  ;;  %v2580_v5 = vsub.f32 1.0, %v4488_v27  ;;  %v2582_v42 = vmul.f32 %v4488_v27, %v6516_v43  ;;  %v8282_v43 = vld [vmem:[#allocation89_spill] sm:$0xff]  ;;  %8289 = vst [vmem:[#allocation112_spill] sm:$0xff] %v6798_v36  ;;  %v8291_v63 = vld [vmem:[#allocation60_spill] sm:$0xff] }
 0xc3b   :  { %v6803_v47 = vld [vmem:[#allocation7 + $0x30] ss:$12 sps:$4 sm:$0xff]  }
 0xc3c   :  { %4489 = vtanh.f32 %v2578_v30  ;;  %8292 = vst [vmem:[#allocation36_spill] sm:$0xff] %v6803_v47  ;;  %v6806_v9 = vld [vmem:[#allocation7 + $0x1c] ss:$12 sps:$4 sm:$0xff]   ;;  %v8294_v30 = vld [vmem:[#allocation95_spill] sm:$0xff] }
 0xc3d   :  { %8293 = vst [vmem:[#allocation113_spill] sm:$0xff] %v6806_v9  ;;  %v8295_v27 = vld [vmem:[#allocation96_spill] sm:$0xff] }
 0xc49   :  { %v4490_v40 = vpop.eup %4489 }
 0xc4a   :  { %v2581_v31 = vmul.f32 %v4490_v40, %v2580_v5  ;;  %v6811_v5 = vld [vmem:[#allocation7 + $0x18] ss:$12 sps:$4 sm:$0xff]  }
 0xc4b   :  { %8296 = vst [vmem:[#allocation72_spill] sm:$0xff] %v6811_v5  ;;  %v8297_v40 = vld [vmem:[#allocation32_spill] sm:$0xff] }
 0xc4c   :  { %v6764_v34 = vadd.f32 %v2582_v42, %v2581_v31  ;;  %v8298_v31 = vld [vmem:[#allocation35_spill] sm:$0xff]  ;;  %v8299_v42 = vld [vmem:[#allocation97_spill] sm:$0xff] }
 0xc4e   :  { %v2584_v57 = vpack.c.bf16 %v6764_v34, %v6764_v34 }
 0xc50   :  { %2617 = vmatprep.mubr.bf16.mxu0 %v2584_v57  ;;  %2658 = vmatprep.mubr.bf16.mxu1 %v2584_v57 }
 0xc51   :  { %2618 = vmatmul.mubr.bf16.vlgmr.msra.gmra.mxu0 %v6697_v20  ;;  %2659 = vmatmul.mubr.bf16.vlgmr.msra.gmra.mxu1 %v6697_v20 }
 0xc52   :  { %2668 = vmatpush1.bf16.msra.mxu0 %v6522_v51  ;;  %2699 = vmatprep.mubr.bf16.mxu0 %v2584_v57  ;;  %v8300_v57 = vld [vmem:[#allocation98_spill] sm:$0xff] }
 0xc53   :  { %2669 = vmatprep.subr.bf16.mxu0 %v6525_v7  ;;  %2737 = vmatpush1.bf16.msra.mxu1 %v6528_v23 }
 0xc54   :  { %2738 = vmatprep.subr.bf16.mxu1 %v6531_v26  ;;  %2768 = vmatprep.mubr.bf16.mxu1 %v7829_v32 }
 0xc56   :  { %2670 = vmatpush1.bf16.msra.mxu0 %v6535_v61 }
 0xc57   :  { %2671 = vmatprep.subr.bf16.mxu0 %v6538_v2  ;;  %2739 = vmatpush1.bf16.msra.mxu1 %v6541_v28 }
 0xc58   :  { %2740 = vmatprep.subr.bf16.mxu1 %v6544_v44 }
 0xc5a   :  { %2672 = vmatpush1.bf16.msra.mxu0 %v6547_v13 }
 0xc5b   :  { %2673 = vmatprep.subr.bf16.mxu0 %v6550_v21  ;;  %2741 = vmatpush1.bf16.msra.mxu1 %v6553_v37 }
 0xc5c   :  { %2742 = vmatprep.subr.bf16.mxu1 %v6556_v4 }
 0xc5e   :  { %2674 = vmatpush1.bf16.msra.mxu0 %v6559_v29 }
 0xc5f   :  { %2675 = vmatprep.subr.bf16.mxu0 %v8282_v43  ;;  %2743 = vmatpush1.bf16.msra.mxu1 %v8283_v45 }
 0xc60   :  { %2744 = vmatprep.subr.bf16.mxu1 %v6568_v8 }
 0xc62   :  { %2676 = vmatpush1.bf16.msra.mxu0 %v8284_v56 }
 0xc63   :  { %2677 = vmatprep.subr.bf16.mxu0 %v8285_v19  ;;  %2745 = vmatpush1.bf16.msra.mxu1 %v6577_v50 }
 0xc64   :  { %2746 = vmatprep.subr.bf16.mxu1 %v6790_v62 }
 0xc66   :  { %2678 = vmatpush1.bf16.msra.mxu0 %v6581_v53 }
 0xc67   :  { %2679 = vmatprep.subr.bf16.mxu0 %v8287_v12  ;;  %2747 = vmatpush1.bf16.msra.mxu1 %v6795_v22 }
 0xc68   :  { %2748 = vmatprep.subr.bf16.mxu1 %v6798_v36 }
 0xc6a   :  { %2680 = vmatpush1.bf16.msra.mxu0 %v8290_v39  ;;  %v8307_v39 = vld [vmem:[#allocation104_spill] sm:$0xff] }
 0xc6b   :  { %2681 = vmatprep.subr.bf16.mxu0 %v8291_v63  ;;  %2749 = vmatpush1.bf16.msra.mxu1 %v6803_v47  ;;  %v8301_v47 = vld [vmem:[#allocation62_spill] sm:$0xff] }
 0xc6c   :  { %2750 = vmatprep.subr.bf16.mxu1 %v6806_v9  ;;  %v8302_v9 = vld [vmem:[#allocation99_spill] sm:$0xff]  ;;  %v8305_v63 = vld [vmem:[#allocation102_spill] sm:$0xff] }
 0xc6e   :  { %2682 = vmatpush1.bf16.msra.mxu0 %v8294_v30  ;;  %v8303_v30 = vld [vmem:[#allocation100_spill] sm:$0xff] }
 0xc6f   :  { %2683 = vmatprep.subr.bf16.mxu0 %v8295_v27  ;;  %2751 = vmatpush1.bf16.msra.mxu1 %v6811_v5  ;;  %v8304_v27 = vld [vmem:[#allocation101_spill] sm:$0xff]  ;;  %v8306_v5 = vld [vmem:[#allocation103_spill] sm:$0xff] }
 0xc70   :  { %4070 = vmatprep.subr.bf16.mxu1 %v7849_v10 }
 0xc72   :  { %2684 = vmatpush2.bf16.msra.mxu0 %v8297_v40  ;;  %v8308_v40 = vld [vmem:[#allocation105_spill] sm:$0xff] }
 0xc73   :  { %2685 = vmatprep.subr.bf16.mxu0 %v8298_v31  ;;  %v8309_v31 = vld [vmem:[#allocation106_spill] sm:$0xff] }
 0xc76   :  { %2686 = vmatpush2.bf16.msra.mxu0 %v8299_v42  ;;  %v8310_v42 = vld [vmem:[#allocation107_spill] sm:$0xff] }
 0xc77   :  { %2687 = vmatprep.subr.bf16.mxu0 %v8300_v57  ;;  %v6829_v57 = vld [vmem:[#allocation6 + $0x190] ss:$24 sps:$4 sm:$0xff]  }
 0xc78   :  { %8311 = vst [vmem:[#allocation73_spill] sm:$0xff] %v6829_v57 }
 0xc7a   :  { %2688 = vmatpush2.bf16.msra.mxu0 %v8301_v47  ;;  %v8345_v47 = vld [vmem:[#allocation84_spill] sm:$0xff] }
 0xc7b   :  { %2689 = vmatprep.subr.bf16.mxu0 %v8302_v9  ;;  %v8312_v9 = vld [vmem:[#allocation39_spill] sm:$0xff] }
 0xc7e   :  { %2690 = vmatpush2.bf16.msra.mxu0 %v8303_v30  ;;  %v8320_v30 = vld [vmem:[#allocation55_spill] sm:$0xff] }
 0xc7f   :  { %2691 = vmatprep.subr.bf16.mxu0 %v8304_v27  ;;  %v8313_v27 = vld [vmem:[#allocation40_spill] sm:$0xff] }
 0xc82   :  { %2692 = vmatpush2.bf16.msra.mxu0 %v8305_v63  ;;  %v8314_v63 = vld [vmem:[#allocation43_spill] sm:$0xff] }
 0xc83   :  { %2693 = vmatprep.subr.bf16.mxu0 %v8306_v5  ;;  %v8315_v5 = vld [vmem:[#allocation44_spill] sm:$0xff] }
 0xc86   :  { %2694 = vmatpush2.bf16.msra.mxu0 %v8307_v39  ;;  %v8316_v39 = vld [vmem:[#allocation47_spill] sm:$0xff] }
 0xc87   :  { %2695 = vmatprep.subr.bf16.mxu0 %v8308_v40  ;;  %v8317_v40 = vld [vmem:[#allocation48_spill] sm:$0xff] }
 0xc8a   :  { %2696 = vmatpush2.bf16.msra.mxu0 %v8309_v31  ;;  %v8318_v31 = vld [vmem:[#allocation51_spill] sm:$0xff] }
 0xc8b   :  { %2697 = vmatprep.subr.bf16.mxu0 %v8310_v42  ;;  %v8319_v42 = vld [vmem:[#allocation53_spill] sm:$0xff] }
 0xc8e   :  { %2698 = vmatpush2.bf16.msra.mxu0 %v6829_v57  ;;  %v8321_v57 = vld [vmem:[#allocation87_spill] sm:$0xff] }
 0xc8f   :  { %2845 = vmatprep.subr.bf16.mxu0 %v8312_v9  ;;  %v8322_v9 = vld [vmem:[#allocation88_spill] sm:$0xff] }
 0xc91   :  { %2700 = vmatmul.mubr.bf16.vlgmr.msra.gmra.mxu0 %v6697_v20  ;;  %v8323_v20 = vld [vmem:[#allocation14_spill] sm:$0xff] }
 0xc92   :  { %2846 = vmatpush1.bf16.msra.mxu0 %v8313_v27  ;;  %v8324_v27 = vld [vmem:[#allocation15_spill] sm:$0xff] }
 0xc93   :  { %2847 = vmatprep.subr.bf16.mxu0 %v8314_v63  ;;  %v8325_v63 = vld [vmem:[#allocation16_spill] sm:$0xff] }
 0xc96   :  { %2848 = vmatpush1.bf16.msra.mxu0 %v8315_v5  ;;  %v8326_v5 = vld [vmem:[#allocation17_spill] sm:$0xff] }
 0xc97   :  { %2849 = vmatprep.subr.bf16.mxu0 %v8316_v39  ;;  %v8327_v39 = vld [vmem:[#allocation33_spill] sm:$0xff] }
 0xc9a   :  { %2850 = vmatpush1.bf16.msra.mxu0 %v8317_v40  ;;  %v8328_v40 = vld [vmem:[#allocation18_spill] sm:$0xff] }
 0xc9b   :  { %2851 = vmatprep.subr.bf16.mxu0 %v8318_v31  ;;  %v8329_v31 = vld [vmem:[#allocation19_spill] sm:$0xff] }
 0xc9e   :  { %2852 = vmatpush1.bf16.msra.mxu0 %v8319_v42  ;;  %v8330_v42 = vld [vmem:[#allocation34_spill] sm:$0xff] }
 0xc9f   :  { %2853 = vmatprep.subr.bf16.mxu0 %v8320_v30  ;;  %v8331_v30 = vld [vmem:[#allocation37_spill] sm:$0xff] }
 0xca2   :  { %2854 = vmatpush1.bf16.msra.mxu0 %v8321_v57  ;;  %v8332_v57 = vld [vmem:[#allocation20_spill] sm:$0xff] }
 0xca3   :  { %2855 = vmatprep.subr.bf16.mxu0 %v8322_v9  ;;  %v8333_v9 = vld [vmem:[#allocation21_spill] sm:$0xff] }
 0xca6   :  { %2856 = vmatpush1.bf16.msra.mxu0 %v8323_v20  ;;  %v8334_v20 = vld [vmem:[#allocation38_spill] sm:$0xff] }
 0xca7   :  { %2857 = vmatprep.subr.bf16.mxu0 %v8324_v27  ;;  %v8335_v27 = vld [vmem:[#allocation41_spill] sm:$0xff] }
 0xcaa   :  { %2858 = vmatpush1.bf16.msra.mxu0 %v8325_v63  ;;  %v8336_v63 = vld [vmem:[#allocation22_spill] sm:$0xff] }
 0xcab   :  { %2859 = vmatprep.subr.bf16.mxu0 %v8326_v5  ;;  %v8337_v5 = vld [vmem:[#allocation23_spill] sm:$0xff] }
 0xcae   :  { %2860 = vmatpush1.bf16.msra.mxu0 %v8327_v39  ;;  %v8338_v39 = vld [vmem:[#allocation42_spill] sm:$0xff] }
 0xcaf   :  { %2861 = vmatprep.subr.bf16.mxu0 %v8328_v40  ;;  %v8339_v40 = vld [vmem:[#allocation45_spill] sm:$0xff] }
 0xcb2   :  { %2862 = vmatpush2.bf16.msra.mxu0 %v8329_v31  ;;  %v8340_v31 = vld [vmem:[#allocation24_spill] sm:$0xff] }
 0xcb3   :  { %2863 = vmatprep.subr.bf16.mxu0 %v8330_v42  ;;  %v8341_v42 = vld [vmem:[#allocation25_spill] sm:$0xff] }
 0xcb6   :  { %2864 = vmatpush2.bf16.msra.mxu0 %v8331_v30  ;;  %v8342_v30 = vld [vmem:[#allocation46_spill] sm:$0xff] }
 0xcb7   :  { %2865 = vmatprep.subr.bf16.mxu0 %v8332_v57  ;;  %v8343_v57 = vld [vmem:[#allocation49_spill] sm:$0xff] }
 0xcba   :  { %2866 = vmatpush2.bf16.msra.mxu0 %v8333_v9  ;;  %v8344_v9 = vld [vmem:[#allocation108_spill] sm:$0xff] }
 0xcbb   :  { %2867 = vmatprep.subr.bf16.mxu0 %v8334_v20 }
 0xcbe   :  { %2868 = vmatpush2.bf16.msra.mxu0 %v8335_v27 }
 0xcbf   :  { %2869 = vmatprep.subr.bf16.mxu0 %v8336_v63 }
 0xcc2   :  { %2870 = vmatpush2.bf16.msra.mxu0 %v8337_v5 }
 0xcc3   :  { %2871 = vmatprep.subr.bf16.mxu0 %v8338_v39  ;;  %v8346_v39 = vld [vmem:[#allocation78_spill] sm:$0xff] }
 0xcc6   :  { %2872 = vmatpush2.bf16.msra.mxu0 %v8339_v40 }
 0xcc7   :  { %2873 = vmatprep.subr.bf16.mxu0 %v8340_v31 }
 0xcca   :  { %2874 = vmatpush2.bf16.msra.mxu0 %v8341_v42 }
 0xccb   :  { %2875 = vmatprep.subr.bf16.mxu0 %v8342_v30 }
 0xcce   :  { %2876 = vmatpush2.bf16.msra.mxu0 %v8343_v57  ;;  %v8347_v57 = vld [vmem:[#allocation80_spill] sm:$0xff] }
 0xccf   :  { %2927 = vmatprep.subr.bf16.mxu0 %v8344_v9 }
 0xd11   :  { %v2619_v20 = vpop.f32.mrf.mxu0  ;;  %v2660_v27 = vpop.f32.mrf.mxu1 }
 0xd12   :  { %v2711_v63 = vadd.f32 %v2619_v20, %v8345_v47  ;;  %v2713_v56 = vadd.f32 %v2660_v27, %v5376_v49  ;;  %v6889_v27 = vld [vmem:[#allocation7 + $0xb0] ss:$12 sps:$4 sm:$0xff]  }
 0xd13   :  { %v2621_v36 = vpop.f32.mrf.mxu0  ;;  %v6867_v5 = vpop.f32.mrf.mxu1 }
 0xd14   :  { %v2714_v22 = vadd.f32 %v2711_v63, %v8346_v39  ;;  %v2712_v42 = vadd.f32 %v2621_v36, %v5366_v55 }
 0xd15   :  { %v2623_v40 = vpop.f32.mrf.mxu0  ;;  %v2664_v12 = vpop.f32.mrf.mxu1 }
 0xd16   :  { %v3779_v31 = vmul.f32 -1.442695, %v2714_v22  ;;  %v2721_v62 = vadd.f32 %v2712_v42, %v8347_v57  ;;  %v8348_v12 = vld [vmem:[#allocation75_spill] sm:$0xff] }
 0xd17   :  { %v2624_v53 = vpop.f32.mrf.mxu0  ;;  %v2665_v30 = vpop.f32.mrf.mxu1 }
 0xd18   :  { %4491 = vpow2.f32 %v3779_v31  ;;  %v3780_v9 = vmul.f32 -1.442695, %v2721_v62 }
 0xd1a   :  { %4493 = vpow2.f32 %v3780_v9  ;;  %v6893_v9 = vld [vmem:[#allocation7 + $0x98] ss:$12 sps:$4 sm:$0xff]  }
 0xd25   :  { %v4492_v50 = vpop.eup %4491 }
 0xd26   :  { %v2718_v19 = vadd.f32 1.0, %v4492_v50 }
 0xd27   :  { %v4494_v20 = vpop.eup %4493 }
 0xd28   :  { %4495 = vrcp.f32 %v2718_v19  ;;  %v2725_v47 = vadd.f32 1.0, %v4494_v20  ;;  %v6879_v19 = vld [vmem:[#allocation7 + $0xc8] ss:$12 sps:$4 sm:$0xff]   ;;  %v6897_v20 = vld [vmem:[#allocation7 + $0x80] ss:$12 sps:$4 sm:$0xff]  }
 0xd2a   :  { %4497 = vrcp.f32 %v2725_v47 }
 0xd35   :  { %v4496_v63 = vpop.eup %4495 }
 0xd36   :  { %v2728_v39 = vmul.f32 %v4496_v63, %v2713_v56  ;;  %v6901_v63 = vld [vmem:[#allocation7 + $0x68] ss:$12 sps:$4 sm:$0xff]  }
 0xd37   :  { %v4498_v53 = vpop.eup %4497 }
 0xd38   :  { %v2729_v22 = vadd.f32 %v2728_v39, %v8348_v12  ;;  %v2731_v36 = vsub.f32 1.0, %v4498_v53  ;;  %v2733_v62 = vmul.f32 %v4498_v53, %v6693_v1  ;;  %v6905_v39 = vld [vmem:[#allocation7 + $0x50] ss:$12 sps:$4 sm:$0xff]   ;;  %v6909_v12 = vld [vmem:[#allocation7 + $0x38] ss:$12 sps:$4 sm:$0xff]  }
 0xd39   :  { %v4771_v53 = vld [vmem:[#allocation6 + $0x15c] ss:$24 sps:$4 sm:$0xff]  }
 0xd3a   :  { %4499 = vtanh.f32 %v2729_v22  ;;  %v6913_v22 = vld [vmem:[#allocation7 + $0x20] ss:$12 sps:$4 sm:$0xff]  }
 0xd47   :  { %v4500_v40 = vpop.eup %4499 }
 0xd48   :  { %v2732_v31 = vmul.f32 %v4500_v40, %v2731_v36  ;;  %v4772_v36 = vld [vmem:[#allocation6 + $0x158] ss:$24 sps:$4 sm:$0xff]   ;;  %v4773_v40 = vld [vmem:[#allocation6 + $0x12c] ss:$24 sps:$4 sm:$0xff]  }
 0xd4a   :  { %v6875_v42 = vadd.f32 %v2733_v62, %v2732_v31  ;;  %v4774_v31 = vld [vmem:[#allocation6 + $0x128] ss:$24 sps:$4 sm:$0xff]   ;;  %v4775_v62 = vld [vmem:[#allocation6 + $0xfc] ss:$24 sps:$4 sm:$0xff]  }
 0xd4c   :  { %v2735_v50 = vpack.c.bf16 %v6875_v42, %v6875_v42 }
 0xd4e   :  { %2769 = vmatmul.mubr.bf16.vlgmr.msra.gmra.mxu1 %v2735_v50 }
 0xd4f   :  { %4071 = vmatpush3.bf16.msra.mxu1 %v6879_v19  ;;  %4086 = vmatprep.mubr.msk.bf16.mxu1 %vm4845_vm1, %v7849_v10 }
 0xd50   :  { %4072 = vmatprep.subr.bf16.mxu1 %v7849_v10 }
 0xd51   :  { %v6885_v56 = vpop.f32.mrf.mxu0 }
 0xd53   :  { %v6887_v47 = vpop.f32.mrf.mxu0  ;;  %4073 = vmatpush3.bf16.msra.mxu1 %v6889_v27 }
 0xd54   :  { %4074 = vmatprep.subr.bf16.mxu1 %v7849_v10 }
 0xd55   :  { %v2705_v30 = vpop.f32.mrf.mxu0 }
 0xd56   :  { %v4776_v30 = vld [vmem:[#allocation6 + $0xf8] ss:$24 sps:$4 sm:$0xff]  }
 0xd57   :  { %v2706_v57 = vpop.f32.mrf.mxu0  ;;  %4075 = vmatpush3.bf16.msra.mxu1 %v6893_v9 }
 0xd58   :  { %4076 = vmatprep.subr.bf16.mxu1 %v7849_v10  ;;  %v4777_v57 = vld [vmem:[#allocation6 + $0xcc] ss:$24 sps:$4 sm:$0xff]  }
 0xd5b   :  { %4077 = vmatpush3.bf16.msra.mxu1 %v6897_v20 }
 0xd5c   :  { %4078 = vmatprep.subr.bf16.mxu1 %v7849_v10 }
 0xd5f   :  { %4079 = vmatpush3.bf16.msra.mxu1 %v6901_v63 }
 0xd60   :  { %4080 = vmatprep.subr.bf16.mxu1 %v7849_v10 }
 0xd63   :  { %4081 = vmatpush3.bf16.msra.mxu1 %v6905_v39 }
 0xd64   :  { %4082 = vmatprep.subr.bf16.mxu1 %v7849_v10 }
 0xd67   :  { %4083 = vmatpush3.bf16.msra.mxu1 %v6909_v12 }
 0xd68   :  { %4084 = vmatprep.subr.bf16.mxu1 %v7849_v10 }
 0xd6b   :  { %4085 = vmatpush3.bf16.msra.mxu1 %v6913_v22 }
 0xd6c   :  { %2886 = vmatprep.subr.bf16.mxu1 %v4771_v53 }
 0xd6e   :  { %4087 = vmatmul.mubr.bf16.vlgmr.msra.gmra.mxu1 %v2735_v50 }
 0xd6f   :  { %2887 = vmatpush1.bf16.msra.mxu1 %v4772_v36  ;;  %v2818_v36 = vadd.f32 %v6885_v56, %v5476_v16 }
 0xd70   :  { %2888 = vmatprep.subr.bf16.mxu1 %v4773_v40 }
 0xd73   :  { %2889 = vmatpush1.bf16.msra.mxu1 %v4774_v31 }
 0xd74   :  { %2890 = vmatprep.subr.bf16.mxu1 %v4775_v62 }
 0xd77   :  { %2891 = vmatpush1.bf16.msra.mxu1 %v4776_v30 }
 0xd78   :  { %2892 = vmatprep.subr.bf16.mxu1 %v4777_v57 }
 0xd7b   :  { %2893 = vmatpush1.bf16.msra.mxu1 %v6430_v6  ;;  %v8349_v6 = vld [vmem:[#allocation57_spill] sm:$0xff] }
 0xd7c   :  { %2894 = vmatprep.subr.bf16.mxu1 %v6433_v24  ;;  %v8350_v24 = vld [vmem:[#allocation59_spill] sm:$0xff] }
 0xd7f   :  { %2895 = vmatpush1.bf16.msra.mxu1 %v6436_v58  ;;  %v8351_v58 = vld [vmem:[#allocation61_spill] sm:$0xff] }
 0xd80   :  { %2896 = vmatprep.subr.bf16.mxu1 %v8257_v33  ;;  %v8352_v33 = vld [vmem:[#allocation63_spill] sm:$0xff] }
 0xd83   :  { %2897 = vmatpush1.bf16.msra.mxu1 %v8258_v25  ;;  %v8353_v25 = vld [vmem:[#allocation64_spill] sm:$0xff] }
 0xd84   :  { %2898 = vmatprep.subr.bf16.mxu1 %v8259_v48  ;;  %v8354_v48 = vld [vmem:[#allocation85_spill] sm:$0xff] }
 0xd87   :  { %2899 = vmatpush1.bf16.msra.mxu1 %v8260_v54  ;;  %v8355_v54 = vld [vmem:[#allocation86_spill] sm:$0xff] }
 0xd88   :  { %2900 = vmatprep.subr.bf16.mxu1 %v8261_v3  ;;  %v8356_v3 = vld [vmem:[#allocation67_spill] sm:$0xff] }
 0xd8b   :  { %2901 = vmatpush1.bf16.msra.mxu1 %v8262_v35  ;;  %v8357_v35 = vld [vmem:[#allocation109_spill] sm:$0xff] }
 0xd8c   :  { %2902 = vmatprep.subr.bf16.mxu1 %v8263_v14 }
 0xd8f   :  { %2903 = vmatpush2.bf16.msra.mxu1 %v8264_v18  ;;  %v8358_v18 = vld [vmem:[#allocation12_spill] sm:$0xff] }
 0xd90   :  { %2904 = vmatprep.subr.bf16.mxu1 %v8265_v15  ;;  %v2817_v15 = vadd.f32 %v6867_v5, %v8358_v18 }
 0xd93   :  { %2905 = vmatpush2.bf16.msra.mxu1 %v8266_v46 }
 0xd94   :  { %2906 = vmatprep.subr.bf16.mxu1 %v8267_v52 }
 0xd97   :  { %2907 = vmatpush2.bf16.msra.mxu1 %v8268_v41 }
 0xd98   :  { %2908 = vmatprep.subr.bf16.mxu1 %v8269_v17 }
 0xd9b   :  { %2909 = vmatpush2.bf16.msra.mxu1 %v8270_v0 }
 0xd9c   :  { %2910 = vmatprep.subr.bf16.mxu1 %v8349_v6 }
 0xd9f   :  { %2911 = vmatpush2.bf16.msra.mxu1 %v8350_v24 }
 0xda0   :  { %2912 = vmatprep.subr.bf16.mxu1 %v8351_v58  ;;  %v2819_v58 = vadd.f32 %v6887_v47, %v5483_v60 }
 0xda3   :  { %2913 = vmatpush2.bf16.msra.mxu1 %v8352_v33 }
 0xda4   :  { %2914 = vmatprep.subr.bf16.mxu1 %v8353_v25 }
 0xda7   :  { %2915 = vmatpush2.bf16.msra.mxu1 %v8354_v48 }
 0xda8   :  { %2916 = vmatprep.subr.bf16.mxu1 %v8355_v54 }
 0xdab   :  { %2917 = vmatpush2.bf16.msra.mxu1 %v8356_v3 }
 0xdac   :  { %2996 = vmatprep.subr.bf16.mxu1 %v8357_v35 }
 0xe0e   :  { %v2770_v14 = vpop.f32.mrf.mxu1 }
 0xe0f   :  { %v2771_v46 = vadd.f32 %v2770_v14, %v8281_v59  ;;  %v8359_v14 = vlaneseq }
 0xe10   :  { %v2772_v52 = vpop.f32.mrf.mxu1 }
 0xe11   :  { %v2820_v41 = vadd.f32 %v2817_v15, %v2771_v46  ;;  %v2773_v50 = vadd.f32 %v2772_v52, %v5478_v11  ;;  %v6952_v15 = vand.u32 127, %v8359_v14 }
 0xe12   :  { %v2774_v17 = vpop.f32.mrf.mxu1 }
 0xe13   :  { %v3781_v0 = vmul.f32 -1.442695, %v2820_v41  ;;  %v2827_v40 = vadd.f32 %v2818_v36, %v2773_v50  ;;  %vm434_vm2 = vcmp.lt.s32.totalorder %v6952_v15, 32 }
 0xe14   :  { %v2775_v53 = vpop.f32.mrf.mxu1 }
 0xe15   :  { %4501 = vpow2.f32 %v3781_v0  ;;  %v3782_v31 = vmul.f32 -1.442695, %v2827_v40  ;;  %v6960_v0 = vsel %vm434_vm2, %v6875_v42, %v6693_v1  ;;  %v8374_v1 = vld [vmem:[#allocation72_spill] sm:$0xff]  ;;  %v8377_v42 = vld [vmem:[#allocation97_spill] sm:$0xff]  ;;  %v8378_v40 = vld [vmem:[#allocation98_spill] sm:$0xff] }
 0xe16   :  { %v2843_v36 = vpack.c.bf16 %v6960_v0, %v6960_v0 }
 0xe17   :  { %4503 = vpow2.f32 %v3782_v31  ;;  %v8379_v31 = vld [vmem:[#allocation62_spill] sm:$0xff] }
 0xe22   :  { %v4502_v62 = vpop.eup %4501 }
 0xe23   :  { %v2824_v30 = vadd.f32 1.0, %v4502_v62  ;;  %v8380_v62 = vld [vmem:[#allocation99_spill] sm:$0xff] }
 0xe24   :  { %v4504_v5 = vpop.eup %4503 }
 0xe25   :  { %4505 = vrcp.f32 %v2824_v30  ;;  %v2831_v6 = vadd.f32 1.0, %v4504_v5  ;;  %v8381_v30 = vld [vmem:[#allocation100_spill] sm:$0xff]  ;;  %v8382_v5 = vld [vmem:[#allocation101_spill] sm:$0xff] }
 0xe27   :  { %4507 = vrcp.f32 %v2831_v6  ;;  %v8384_v6 = vld [vmem:[#allocation103_spill] sm:$0xff] }
 0xe2e   :  { %v2811_v57 = vpop.f32.mrf.mxu1 }
 0xe2f   :  { %v2812_v48 = vadd.f32 %v2811_v57, %v5485_v38  ;;  %v8383_v57 = vld [vmem:[#allocation102_spill] sm:$0xff] }
 0xe30   :  { %v4088_v24 = vpop.f32.mrf.mxu1 }
 0xe31   :  { %v8385_v24 = vld [vmem:[#allocation104_spill] sm:$0xff] }
 0xe32   :  { %v4506_v33 = vpop.eup %4505  ;;  %v2814_v25 = vpop.f32.mrf.mxu1 }
 0xe33   :  { %v2834_v56 = vmul.f32 %v4506_v33, %v2819_v58  ;;  %v8386_v58 = vld [vmem:[#allocation105_spill] sm:$0xff]  ;;  %v8387_v33 = vld [vmem:[#allocation106_spill] sm:$0xff]  ;;  %v8388_v25 = vld [vmem:[#allocation107_spill] sm:$0xff] }
 0xe34   :  { %v4089_v54 = vpop.f32.mrf.mxu1  ;;  %v4508_v35 = vpop.eup %4507 }
 0xe35   :  { %v2835_v3 = vadd.f32 %v2834_v56, %v2812_v48  ;;  %v2837_v46 = vsub.f32 1.0, %v4508_v35  ;;  %v2839_v47 = vmul.f32 %v4508_v35, %v6764_v34  ;;  %v8389_v48 = vld [vmem:[#allocation73_spill] sm:$0xff] }
 0xe36   :  { %v3102_v56 = vld [vmem:[%s7375_s5] sm:$0xf] }
 0xe37   :  { %4509 = vtanh.f32 %v2835_v3  ;;  %v3105_v54 = vld [vmem:[%s7370_s0] sm:$0xff]  ;;  %v3113_v3 = vsel %vm3111_vm3, %v3102_v56, 0 }
 0xe38   :  { %v3106_v35 = vpack.c.bf16 %v3105_v54, %v3105_v54  ;;  %v4352_v54 = vld [vmem:[%s7375_s5 + $0x28] sm:$0xff]  }
 0xe44   :  { %v4510_v52 = vpop.eup %4509 }
 0xe45   :  { %v2838_v41 = vmul.f32 %v4510_v52, %v2837_v46  ;;  %v8390_v52 = vld [vmem:[#allocation84_spill] sm:$0xff] }
 0xe47   :  { %v2840_v17 = vadd.f32 %v2839_v47, %v2838_v41 }
 0xe49   :  { %v6965_v50 = vsel %vm434_vm2, %v2840_v17, %v6764_v34 }
 0xe4a   :  { %v2844_v53 = vpack.c.bf16 %v6965_v50, %v6965_v50 }
 0xe4c   :  { %2877 = vmatprep.mubr.bf16.mxu0 %v2844_v53  ;;  %2918 = vmatprep.mubr.bf16.mxu1 %v2844_v53 }
 0xe4d   :  { %2878 = vmatmul.mubr.bf16.vlgmr.msra.gmra.mxu0 %v2843_v36  ;;  %2919 = vmatmul.mubr.bf16.vlgmr.msra.gmra.mxu1 %v2843_v36 }
 0xe4e   :  { %2928 = vmatpush1.bf16.msra.mxu0 %v6522_v51  ;;  %2959 = vmatprep.mubr.bf16.mxu0 %v2844_v53  ;;  %v8360_v51 = vld [vmem:[#allocation91_spill] sm:$0xff]  ;;  %v8391_v53 = vld [vmem:[#allocation82_spill] sm:$0xff] }
 0xe4f   :  { %2929 = vmatprep.subr.bf16.mxu0 %v6525_v7  ;;  %2997 = vmatpush1.bf16.msra.mxu1 %v6528_v23  ;;  %v8361_v7 = vld [vmem:[#allocation92_spill] sm:$0xff] }
 0xe50   :  { %2998 = vmatprep.subr.bf16.mxu1 %v6531_v26  ;;  %3028 = vmatprep.mubr.bf16.mxu1 %v7829_v32  ;;  %v8362_v23 = vld [vmem:[#allocation68_spill] sm:$0xff]  ;;  %v8363_v26 = vld [vmem:[#allocation110_spill] sm:$0xff] }
 0xe52   :  { %2930 = vmatpush1.bf16.msra.mxu0 %v6535_v61  ;;  %v8364_v61 = vld [vmem:[#allocation93_spill] sm:$0xff] }
 0xe53   :  { %2931 = vmatprep.subr.bf16.mxu0 %v6538_v2  ;;  %2999 = vmatpush1.bf16.msra.mxu1 %v6541_v28  ;;  %v8365_v2 = vld [vmem:[#allocation94_spill] sm:$0xff]  ;;  %v8366_v28 = vld [vmem:[#allocation111_spill] sm:$0xff] }
 0xe54   :  { %3000 = vmatprep.subr.bf16.mxu1 %v6544_v44  ;;  %v8367_v44 = vld [vmem:[#allocation112_spill] sm:$0xff] }
 0xe56   :  { %2932 = vmatpush1.bf16.msra.mxu0 %v6547_v13  ;;  %v8368_v13 = vld [vmem:[#allocation66_spill] sm:$0xff] }
 0xe57   :  { %2933 = vmatprep.subr.bf16.mxu0 %v6550_v21  ;;  %3001 = vmatpush1.bf16.msra.mxu1 %v6553_v37  ;;  %v8369_v21 = vld [vmem:[#allocation60_spill] sm:$0xff] }
 0xe58   :  { %3002 = vmatprep.subr.bf16.mxu1 %v6556_v4  ;;  %v8370_v37 = vld [vmem:[#allocation36_spill] sm:$0xff]  ;;  %v8371_v4 = vld [vmem:[#allocation113_spill] sm:$0xff] }
 0xe5a   :  { %2934 = vmatpush1.bf16.msra.mxu0 %v6559_v29  ;;  %v8372_v29 = vld [vmem:[#allocation95_spill] sm:$0xff] }
 0xe5b   :  { %2935 = vmatprep.subr.bf16.mxu0 %v8282_v43  ;;  %3003 = vmatpush1.bf16.msra.mxu1 %v8283_v45  ;;  %v8375_v43 = vld [vmem:[#allocation32_spill] sm:$0xff]  ;;  %v8376_v45 = vld [vmem:[#allocation35_spill] sm:$0xff] }
 0xe5c   :  { %3004 = vmatprep.subr.bf16.mxu1 %v6568_v8  ;;  %v8373_v8 = vld [vmem:[#allocation96_spill] sm:$0xff] }
 0xe5e   :  { %2936 = vmatpush1.bf16.msra.mxu0 %v8360_v51 }
 0xe5f   :  { %2937 = vmatprep.subr.bf16.mxu0 %v8361_v7  ;;  %3005 = vmatpush1.bf16.msra.mxu1 %v8362_v23 }
 0xe60   :  { %3006 = vmatprep.subr.bf16.mxu1 %v8363_v26 }
 0xe62   :  { %2938 = vmatpush1.bf16.msra.mxu0 %v8364_v61 }
 0xe63   :  { %2939 = vmatprep.subr.bf16.mxu0 %v8365_v2  ;;  %3007 = vmatpush1.bf16.msra.mxu1 %v8366_v28  ;;  %v8392_v28 = vld [vmem:[#allocation83_spill] sm:$0xff] }
 0xe64   :  { %3008 = vmatprep.subr.bf16.mxu1 %v8367_v44 }
 0xe66   :  { %2940 = vmatpush1.bf16.msra.mxu0 %v8368_v13 }
 0xe67   :  { %2941 = vmatprep.subr.bf16.mxu0 %v8369_v21  ;;  %3009 = vmatpush1.bf16.msra.mxu1 %v8370_v37 }
 0xe68   :  { %3010 = vmatprep.subr.bf16.mxu1 %v8371_v4 }
 0xe6a   :  { %2942 = vmatpush1.bf16.msra.mxu0 %v8372_v29 }
 0xe6b   :  { %2943 = vmatprep.subr.bf16.mxu0 %v8373_v8  ;;  %3011 = vmatpush1.bf16.msra.mxu1 %v8374_v1 }
 0xe6c   :  { %4090 = vmatprep.subr.bf16.mxu1 %v7849_v10 }
 0xe6e   :  { %2944 = vmatpush2.bf16.msra.mxu0 %v8375_v43 }
 0xe6f   :  { %2945 = vmatprep.subr.bf16.mxu0 %v8376_v45  ;;  %v8393_v45 = vld [vmem:[#allocation79_spill] sm:$0xff] }
 0xe72   :  { %2946 = vmatpush2.bf16.msra.mxu0 %v8377_v42 }
 0xe73   :  { %2947 = vmatprep.subr.bf16.mxu0 %v8378_v40 }
 0xe76   :  { %2948 = vmatpush2.bf16.msra.mxu0 %v8379_v31 }
 0xe77   :  { %2949 = vmatprep.subr.bf16.mxu0 %v8380_v62 }
 0xe7a   :  { %2950 = vmatpush2.bf16.msra.mxu0 %v8381_v30 }
 0xe7b   :  { %2951 = vmatprep.subr.bf16.mxu0 %v8382_v5 }
 0xe7e   :  { %2952 = vmatpush2.bf16.msra.mxu0 %v8383_v57 }
 0xe7f   :  { %2953 = vmatprep.subr.bf16.mxu0 %v8384_v6 }
 0xe82   :  { %2954 = vmatpush2.bf16.msra.mxu0 %v8385_v24 }
 0xe83   :  { %2955 = vmatprep.subr.bf16.mxu0 %v8386_v58  ;;  %v3173_v58 = vstv %s7072_s11 }
 0xe84   :  { %vm7146_vm15 = vcmp.eq.s32.totalorder %v6952_v15, %v3173_v58 }
 0xe86   :  { %2956 = vmatpush2.bf16.msra.mxu0 %v8387_v33  ;;  %v4351_v33 = vld [vmem:[%s7375_s5 + $0x88] sm:$0xff]  }
 0xe87   :  { %2957 = vmatprep.subr.bf16.mxu0 %v8388_v25  ;;  %v3185_v25 = vstv %s7077_s14 }
 0xe8a   :  { %2958 = vmatpush2.bf16.msra.mxu0 %v8389_v48 }
 0xe8b   :  { %4110 = vmatprep.subr.bf16.mxu0 %v7849_v10 }
 0xe8d   :  { %2960 = vmatmul.mubr.bf16.vlgmr.msra.gmra.mxu0 %v2843_v36 }
 0xe8e   :  { %4112 = vmatprep.mubr.msk.bf16.mxu0 %vm4845_vm1, %v7849_v10  ;;  %4111 = vmatpush3.bf16.msra.mxu0 %v3113_v3 }
 0xe8f   :  { %4116 = vmatprep.subr.bf16.mxu0 %v7849_v10 }
 0xe95   :  { %4113 = vmatmul.mubr.msk.bf16.vlgmr.msra.gmra.mxu0 %vm3107_vm4, %v3106_v35  ;;  %v3197_v35 = vstv %s7082_s16 }
 0xe96   :  { %4132 = vmatprep.mubr.msk.bf16.mxu0 %vm4845_vm1, %v7849_v10 }
 0xf0d   :  { %v2879_v14 = vpop.f32.mrf.mxu0  ;;  %v2920_v46 = vpop.f32.mrf.mxu1 }
 0xf0e   :  { %v2971_v41 = vadd.f32 %v2879_v14, %v8390_v52  ;;  %v2973_v8 = vadd.f32 %v2920_v46, %v5376_v49 }
 0xf0f   :  { %v2881_v47 = vpop.f32.mrf.mxu0  ;;  %v7034_v17 = vpop.f32.mrf.mxu1 }
 0xf10   :  { %v2974_v36 = vadd.f32 %v2971_v41, %v8391_v53  ;;  %v2972_v26 = vadd.f32 %v2881_v47, %v5366_v55  ;;  %v4353_v41 = vld [vmem:[%s7375_s5 + $0x80] sm:$0xff]   ;;  %v3209_v53 = vstv %s7091_s18 }
 0xf11   :  { %v2883_v51 = vpop.f32.mrf.mxu0  ;;  %v2924_v7 = vpop.f32.mrf.mxu1  ;;  %v4354_v47 = vld [vmem:[%s7375_s5 + $0x20] sm:$0xff]  }
 0xf12   :  { %v3783_v23 = vmul.f32 -1.442695, %v2974_v36  ;;  %v2981_v44 = vadd.f32 %v2972_v26, %v8392_v28  ;;  %v4355_v7 = vld [vmem:[%s7375_s5 + $0x78] sm:$0xff]   ;;  %v3222_v26 = vstv %s7104_s21 }
 0xf13   :  { %v2884_v61 = vpop.f32.mrf.mxu0  ;;  %v2925_v2 = vpop.f32.mrf.mxu1 }
 0xf14   :  { %4511 = vpow2.f32 %v3783_v23  ;;  %v3784_v13 = vmul.f32 -1.442695, %v2981_v44 }
 0xf16   :  { %4513 = vpow2.f32 %v3784_v13  ;;  %v4356_v13 = vld [vmem:[%s7375_s5 + $0x18] sm:$0xff]  }
 0xf21   :  { %v4512_v21 = vpop.eup %4511 }
 0xf22   :  { %v2978_v37 = vadd.f32 1.0, %v4512_v21  ;;  %v3234_v21 = vstv %s7123_s24 }
 0xf23   :  { %v4514_v4 = vpop.eup %4513 }
 0xf24   :  { %4515 = vrcp.f32 %v2978_v37  ;;  %v2985_v29 = vadd.f32 1.0, %v4514_v4  ;;  %v4363_v4 = vld [vmem:[%s7375_s5 + $0xd8] sm:$0xff]  }
 0xf26   :  { %4517 = vrcp.f32 %v2985_v29 }
 0xf31   :  { %v4516_v1 = vpop.eup %4515 }
 0xf32   :  { %v2988_v43 = vmul.f32 %v4516_v1, %v2973_v8 }
 0xf33   :  { %v4518_v55 = vpop.eup %4517 }
 0xf34   :  { %v2989_v42 = vadd.f32 %v2988_v43, %v8393_v45  ;;  %v2991_v40 = vsub.f32 1.0, %v4518_v55  ;;  %v2993_v30 = vmul.f32 %v4518_v55, %v6960_v0  ;;  %v3246_v43 = vstv %s7143_s1 }
 0xf36   :  { %4519 = vtanh.f32 %v2989_v42 }
 0xf43   :  { %v4520_v31 = vpop.eup %4519 }
 0xf44   :  { %v2992_v62 = vmul.f32 %v4520_v31, %v2991_v40 }
 0xf46   :  { %v2994_v5 = vadd.f32 %v2993_v30, %v2992_v62  ;;  %v4357_v62 = vld [vmem:[%s7375_s5 + $0x70] sm:$0xff]   ;;  %v3258_v30 = vstv %s7161_s30 }
 0xf48   :  { %v2995_v57 = vpack.c.bf16 %v2994_v5, %v2994_v5 }
 0xf4a   :  { %3029 = vmatmul.mubr.bf16.vlgmr.msra.gmra.mxu1 %v2995_v57 }
 0xf4b   :  { %4091 = vmatpush3.bf16.msra.mxu1 %v6879_v19  ;;  %4106 = vmatprep.mubr.msk.bf16.mxu1 %vm4845_vm1, %v7849_v10  ;;  %v4346_v19 = vld [vmem:[%s7375_s5 + $0x48] sm:$0xff]  }
 0xf4c   :  { %4092 = vmatprep.subr.bf16.mxu1 %v7849_v10 }
 0xf4d   :  { %v7046_v49 = vpop.f32.mrf.mxu0 }
 0xf4f   :  { %v7048_v6 = vpop.f32.mrf.mxu0  ;;  %4093 = vmatpush3.bf16.msra.mxu1 %v6889_v27  ;;  %v4347_v27 = vld [vmem:[%s7375_s5 + $0x40] sm:$0xff]  }
 0xf50   :  { %4094 = vmatprep.subr.bf16.mxu1 %v7849_v10 }
 0xf51   :  { %v2965_v24 = vpop.f32.mrf.mxu0 }
 0xf53   :  { %v2966_v0 = vpop.f32.mrf.mxu0  ;;  %4095 = vmatpush3.bf16.msra.mxu1 %v6893_v9  ;;  %v4348_v9 = vld [vmem:[%s7375_s5 + $0x38] sm:$0xff]  }
 0xf54   :  { %4096 = vmatprep.subr.bf16.mxu1 %v7849_v10 }
 0xf57   :  { %4097 = vmatpush3.bf16.msra.mxu1 %v6897_v20  ;;  %v4349_v20 = vld [vmem:[%s7375_s5 + $0x90] sm:$0xff]  }
 0xf58   :  { %4098 = vmatprep.subr.bf16.mxu1 %v7849_v10  ;;  %4117 = vmatpush3.bf16.msra.mxu0 %v4349_v20  ;;  %v3270_v20 = vstv %s7185_s8 }
 0xf59   :  { %4118 = vmatprep.subr.bf16.mxu0 %v7849_v10 }
 0xf5b   :  { %4099 = vmatpush3.bf16.msra.mxu1 %v6901_v63  ;;  %v7086_v63 = vadd.s32 128, %v6952_v15 }
 0xf5c   :  { %4100 = vmatprep.subr.bf16.mxu1 %v7849_v10  ;;  %4119 = vmatpush3.bf16.msra.mxu0 %v4351_v33 }
 0xf5d   :  { %vm3175_vm8 = vcmp.eq.s32.totalorder %v7086_v63, %v3173_v58  ;;  %vm3187_vm11 = vcmp.eq.s32.totalorder %v7086_v63, %v3185_v25  ;;  %4120 = vmatprep.subr.bf16.mxu0 %v7849_v10  ;;  %vm3199_vm13 = vcmp.eq.s32.totalorder %v7086_v63, %v3197_v35 }
 0xf5f   :  { %4101 = vmatpush3.bf16.msra.mxu1 %v6905_v39  ;;  %v4350_v39 = vld [vmem:[%s7375_s5 + $0x30] sm:$0xff]  }
 0xf60   :  { %4102 = vmatprep.subr.bf16.mxu1 %v7849_v10  ;;  %4121 = vmatpush3.bf16.msra.mxu0 %v4353_v41 }
 0xf61   :  { %4122 = vmatprep.subr.bf16.mxu0 %v7849_v10 }
 0xf63   :  { %4103 = vmatpush3.bf16.msra.mxu1 %v6909_v12  ;;  %v3161_v12 = vstv %s3160_s10 }
 0xf64   :  { %4104 = vmatprep.subr.bf16.mxu1 %v7849_v10  ;;  %vm3163_vm6 = vcmp.eq.s32.totalorder %v7086_v63, %v3161_v12  ;;  %vm7107_vm9 = vcmp.eq.s32.totalorder %v6952_v15, %v3161_v12  ;;  %4123 = vmatpush3.bf16.msra.mxu0 %v4355_v7  ;;  %v3079_v12 = vadd.f32 %v7048_v6, %v5483_v60 }
 0xf65   :  { %4124 = vmatprep.subr.bf16.mxu0 %v7849_v10 }
 0xf67   :  { %4105 = vmatpush3.bf16.msra.mxu1 %v6913_v22  ;;  %v8394_v22 = vld [vmem:[#allocation65_spill] sm:$0xff] }
 0xf68   :  { %3357 = vmatprep.subr.bf16.mxu1 %v7829_v32  ;;  %vm3159_vm5 = vcmp.eq.s32.totalorder %v8394_v22, 0  ;;  %4125 = vmatpush3.bf16.msra.mxu0 %v4357_v62 }
 0xf69   :  { %vm3165_vm7 = vmand %vm3159_vm5, %vm3163_vm6  ;;  %vm3211_vm6 = vcmp.eq.s32.totalorder %v7086_v63, %v3209_v53  ;;  %4126 = vmatprep.subr.bf16.mxu0 %v7849_v10 }
 0xf6a   :  { %4107 = vmatmul.mubr.bf16.vlgmr.msra.gmra.mxu1 %v2995_v57  ;;  %v3789_v56 = vsel %vm3165_vm7, 1.0, %v7849_v10  ;;  %vm3177_vm10 = vmand %vm3159_vm5, %vm3175_vm8  ;;  %vm7167_vm8 = vcmp.eq.s32.totalorder %v6952_v15, %v3185_v25 }
 0xf6b   :  { %3358 = vmatpush1.bf16.msra.mxu1 %v4346_v19  ;;  %v3792_v3 = vsel %vm3177_vm10, 1.0, %v7849_v10  ;;  %vm3189_vm12 = vmand %vm3159_vm5, %vm3187_vm11  ;;  %vm3224_vm10 = vcmp.eq.s32.totalorder %v7086_v63, %v3222_v26 }
 0xf6c   :  { %3359 = vmatprep.subr.bf16.mxu1 %v7829_v32  ;;  %v3183_v14 = vadd.f32 %v3792_v3, %v3789_v56  ;;  %v3795_v46 = vsel %vm3189_vm12, 1.0, %v7849_v10  ;;  %vm7132_vm14 = vmand %vm3159_vm5, %vm7107_vm9  ;;  %vm3220_vm9 = vcmp.eq.s32.totalorder %v8394_v22, 1 }
 0xf6d   :  { %vm3201_vm0 = vmand %vm3159_vm5, %vm3199_vm13  ;;  %v3788_v61 = vsel %vm7132_vm14, 1.0, %v7849_v10  ;;  %vm7189_vm13 = vcmp.eq.s32.totalorder %v6952_v15, %v3197_v35  ;;  %vm3236_vm14 = vcmp.eq.s32.totalorder %v7086_v63, %v3234_v21  ;;  %v4360_v35 = vld [vmem:[%s7375_s5 + $0x50] ss:$0 sps:$4 sm:$0xff]  }
 0xf6e   :  { %v3195_v51 = vadd.f32 %v3795_v46, %v3183_v14  ;;  %v3798_v23 = vsel %vm3201_vm0, 1.0, %v7849_v10  ;;  %vm3213_vm7 = vmand %vm3159_vm5, %vm3211_vm6  ;;  %vm7205_vm6 = vcmp.eq.s32.totalorder %v6952_v15, %v3209_v53  ;;  %v3355_v53 = vsel %vm3111_vm3, %v4360_v35, 0 }
 0xf6f   :  { %3360 = vmatpush1.bf16.msra.mxu1 %v4347_v27  ;;  %v3801_v44 = vsel %vm3213_vm7, 1.0, %v7849_v10  ;;  %vm3176_vm11 = vmand %vm3159_vm5, %vm7146_vm15  ;;  %vm3248_vm7 = vcmp.eq.s32.totalorder %v7086_v63, %v3246_v43  ;;  %v7235_v27 = vpop.f32.mrf.mxu0 }
 0xf70   :  { %3361 = vmatprep.subr.bf16.mxu1 %v7829_v32  ;;  %v3207_v28 = vadd.f32 %v3798_v23, %v3195_v51  ;;  %vm3226_vm12 = vmand %vm3220_vm9, %vm3224_vm10  ;;  %v3791_v37 = vsel %vm3176_vm11, 1.0, %v7849_v10  ;;  %vm7224_vm11 = vcmp.eq.s32.totalorder %v6952_v15, %v3222_v26  ;;  %v4361_v23 = vld [vmem:[%s7375_s5 + $0x60] sm:$0xff]  }
 0xf71   :  { %v3804_v8 = vsel %vm3226_vm12, 1.0, %v7849_v10  ;;  %v3182_v1 = vadd.f32 %v3791_v37, %v3788_v61  ;;  %vm3188_vm15 = vmand %vm3159_vm5, %vm7167_vm8  ;;  %vm3260_vm12 = vcmp.eq.s32.totalorder %v7086_v63, %v3258_v30  ;;  %v4114_v56 = vpop.f32.mrf.mxu0 }
 0xf72   :  { %v3219_v29 = vadd.f32 %v3801_v44, %v3207_v28  ;;  %vm3238_vm0 = vmand %vm3220_vm9, %vm3236_vm14  ;;  %v3794_v45 = vsel %vm3188_vm15, 1.0, %v7849_v10  ;;  %vm7245_vm15 = vcmp.eq.s32.totalorder %v6952_v15, %v3234_v21  ;;  %v4362_v21 = vld [vmem:[%s7375_s5 + $0x58] sm:$0xff]  }
 0xf73   :  { %3362 = vmatpush1.bf16.msra.mxu1 %v4348_v9  ;;  %v3807_v40 = vsel %vm3238_vm0, 1.0, %v7849_v10  ;;  %v3194_v31 = vadd.f32 %v3794_v45, %v3182_v1  ;;  %vm3200_vm8 = vmand %vm3159_vm5, %vm7189_vm13  ;;  %v4358_v9 = vld [vmem:[%s7375_s5 + $0x10] sm:$0xff]   ;;  %vm3272_vm0 = vcmp.eq.s32.totalorder %v7086_v63, %v3270_v20  ;;  %v4366_v1 = vld [vmem:[%s7375_s5 + $0xc0] sm:$0xff]   ;;  %v3077_v45 = vadd.f32 %v7034_v17, %v8358_v18 }
 0xf74   :  { %3363 = vmatprep.subr.bf16.mxu1 %v7829_v32  ;;  %v3232_v55 = vadd.f32 %v3804_v8, %v3219_v29  ;;  %vm3250_vm10 = vmand %vm3220_vm9, %vm3248_vm7  ;;  %v3797_v5 = vsel %vm3200_vm8, 1.0, %v7849_v10  ;;  %vm7268_vm8 = vcmp.eq.s32.totalorder %v6952_v15, %v3258_v30  ;;  %v4364_v29 = vld [vmem:[%s7375_s5 + $0xd0] sm:$0xff]   ;;  %v4365_v8 = vld [vmem:[%s7375_s5 + $0xc8] sm:$0xff]  }
 0xf75   :  { %v3810_v0 = vsel %vm3250_vm10, 1.0, %v7849_v10  ;;  %v3206_v19 = vadd.f32 %v3797_v5, %v3194_v31  ;;  %vm3212_vm13 = vmand %vm3159_vm5, %vm7205_vm6  ;;  %vm7250_vm5 = vcmp.eq.s32.totalorder %v6952_v15, %v3246_v43  ;;  %v4368_v18 = vld [vmem:[%s7375_s5 + $0xb0] sm:$0xff]   ;;  %v3103_v56 = vld [vmem:[%s7375_s5 + $0x8] ss:$144 sps:$4 sm:$0xff]  }
 0xf76   :  { %v3244_v24 = vadd.f32 %v3807_v40, %v3232_v55  ;;  %vm3262_vm14 = vmand %vm3220_vm9, %vm3260_vm12  ;;  %v4367_v40 = vld [vmem:[%s7375_s5 + $0xb8] sm:$0xff]  }
 0xf77   :  { %3364 = vmatpush1.bf16.msra.mxu1 %v4350_v39  ;;  %v3800_v39 = vsel %vm3212_vm13, 1.0, %v7849_v10  ;;  %v3813_v25 = vsel %vm3262_vm14, 1.0, %v7849_v10  ;;  %vm3225_vm6 = vmand %vm3220_vm9, %vm7224_vm11  ;;  %vm7282_vm11 = vcmp.eq.s32.totalorder %v6952_v15, %v3270_v20 }
 0xf78   :  { %3365 = vmatprep.subr.bf16.mxu1 %v7829_v32  ;;  %v3256_v33 = vadd.f32 %v3810_v0, %v3244_v24  ;;  %v3218_v48 = vadd.f32 %v3800_v39, %v3206_v19  ;;  %vm3274_vm7 = vmand %vm3220_vm9, %vm3272_vm0  ;;  %v3803_v3 = vsel %vm3225_vm6, 1.0, %v7849_v10 }
 0xf79   :  { %v3816_v46 = vsel %vm3274_vm7, 1.0, %v7849_v10  ;;  %vm3237_vm10 = vmand %vm3220_vm9, %vm7245_vm15 }
 0xf7a   :  { %v3268_v14 = vadd.f32 %v3813_v25, %v3256_v33  ;;  %v3231_v52 = vadd.f32 %v3803_v3, %v3218_v48  ;;  %vm3249_vm12 = vmand %vm3220_vm9, %vm7250_vm5 }
 0xf7b   :  { %3366 = vmatpush1.bf16.msra.mxu1 %v4352_v54  ;;  %v4359_v54 = vld [vmem:[%s7375_s5 + $0x68] sm:$0xff]   ;;  %vm3261_vm13 = vmand %vm3220_vm9, %vm7268_vm8  ;;  %v3809_v26 = vsel %vm3249_vm12, 1.0, %v7849_v10 }
 0xf7c   :  { %3367 = vmatprep.subr.bf16.mxu1 %v7829_v32  ;;  %4127 = vmatpush3.bf16.msra.mxu0 %v4359_v54  ;;  %v3280_v36 = vadd.f32 %v3816_v46, %v3268_v14  ;;  %v3812_v61 = vsel %vm3261_vm13, 1.0, %v7849_v10  ;;  %vm3273_vm3 = vmand %vm3220_vm9, %vm7282_vm11  ;;  %v3104_v54 = vunpack.c.l.bf16 %v3103_v56 }
 0xf7d   :  { %4128 = vmatprep.subr.bf16.mxu0 %v7849_v10  ;;  %v3815_v44 = vsel %vm3273_vm3, 1.0, %v7849_v10 }
 0xf7e   :  { %v3282_v2 = vpack.c.bf16 %v3280_v36, %v3280_v36  ;;  %v3150_v35 = vadd.f32 %v7235_v27, %v3104_v54  ;;  %v4369_v27 = vld [vmem:[%s7375_s5 + $0xa8] sm:$0xff]  }
 0xf7f   :  { %3368 = vmatpush1.bf16.msra.mxu1 %v4354_v47  ;;  %v3152_v47 = vpop.f32.mrf.mxu0 }
 0xf80   :  { %3369 = vmatprep.subr.bf16.mxu1 %v7829_v32  ;;  %4129 = vmatpush3.bf16.msra.mxu0 %v4361_v23 }
 0xf81   :  { %v4115_v7 = vpop.f32.mrf.mxu0  ;;  %3826 = vmatprep.mubr.msk.bf16.mxu1 %vm3107_vm4, %v3282_v2  ;;  %4130 = vmatprep.subr.bf16.mxu0 %v7849_v10 }
 0xf83   :  { %3370 = vmatpush1.bf16.msra.mxu1 %v4356_v13 }
 0xf84   :  { %3371 = vmatprep.subr.bf16.mxu1 %v7829_v32  ;;  %4131 = vmatpush3.bf16.msra.mxu0 %v4362_v21 }
 0xf87   :  { %3372 = vmatpush1.bf16.msra.mxu1 %v4358_v9 }
 0xf88   :  { %3387 = vmatprep.subr.bf16.mxu1 %v7829_v32  ;;  %v3806_v32 = vsel %vm3237_vm10, 1.0, %v7849_v10 }
 0xf89   :  { %v3243_v51 = vadd.f32 %v3806_v32, %v3231_v52  ;;  %v3155_v52 = vmax.f32 %v3150_v35, 0.0 }
 0xf8b   :  { %3388 = vmatpush2.bf16.msra.mxu1 %v3355_v53  ;;  %v3255_v28 = vadd.f32 %v3809_v26, %v3243_v51  ;;  %v4370_v51 = vld [vmem:[%s7375_s5 + $0xa0] sm:$0xff]  }
 0xf8c   :  { %4136 = vmatprep.subr.bf16.mxu1 %v7849_v10 }
 0xf8d   :  { %v3267_v13 = vadd.f32 %v3812_v61, %v3255_v28 }
 0xf8f   :  { %v3279_v37 = vadd.f32 %v3815_v44, %v3267_v13 }
 0xf91   :  { %v3281_v22 = vpack.c.bf16 %v3279_v37, %v3279_v37 }
 0xf93   :  { %3390 = vmatmul.mubr.bf16.vlgmr.msra.gmra.mxu1 %v3281_v22 }
 0xf94   :  { %4137 = vmatpush3.bf16.msra.mxu1 %v4363_v4  ;;  %4152 = vmatprep.mubr.msk.bf16.mxu1 %vm4845_vm1, %v7849_v10  ;;  %vm3397_vm1 = vcmp.lt.s32.totalorder %v6952_v15, 64 }
 0xf95   :  { %4138 = vmatprep.subr.bf16.mxu1 %v7849_v10 }
 0xf98   :  { %4139 = vmatpush3.bf16.msra.mxu1 %v4364_v29 }
 0xf99   :  { %4140 = vmatprep.subr.bf16.mxu1 %v7849_v10 }
 0xf9c   :  { %4141 = vmatpush3.bf16.msra.mxu1 %v4365_v8 }
 0xf9d   :  { %4142 = vmatprep.subr.bf16.mxu1 %v7849_v10 }
 0xfa0   :  { %4143 = vmatpush3.bf16.msra.mxu1 %v4366_v1 }
 0xfa1   :  { %4144 = vmatprep.subr.bf16.mxu1 %v7849_v10 }
 0xfa4   :  { %4145 = vmatpush3.bf16.msra.mxu1 %v4367_v40 }
 0xfa5   :  { %4146 = vmatprep.subr.bf16.mxu1 %v7849_v10 }
 0xfa8   :  { %4147 = vmatpush3.bf16.msra.mxu1 %v4368_v18 }
 0xfa9   :  { %4148 = vmatprep.subr.bf16.mxu1 %v7849_v10 }
 0xfac   :  { %4149 = vmatpush3.bf16.msra.mxu1 %v4369_v27 }
 0xfad   :  { %4150 = vmatprep.subr.bf16.mxu1 %v7849_v10  ;;  %v3526_v10 = vld [vmem:[%s7375_s5 + $0xe0] sm:$0xf] }
 0xfae   :  { %v3527_v21 = vunpack.c.l.bf16 %v3526_v10 }
 0xfb0   :  { %4151 = vmatpush3.bf16.msra.mxu1 %v4370_v51 }
0x100a   :  { %v3030_v43 = vpop.f32.mrf.mxu1 }
0x100b   :  { %v3031_v42 = vadd.f32 %v3030_v43, %v8281_v59  ;;  %v3078_v59 = vadd.f32 %v7046_v49, %v5476_v16 }
0x100c   :  { %v3032_v55 = vpop.f32.mrf.mxu1 }
0x100d   :  { %v3080_v31 = vadd.f32 %v3077_v45, %v3031_v42  ;;  %v3033_v5 = vadd.f32 %v3032_v55, %v5478_v11 }
0x100e   :  { %v3034_v62 = vpop.f32.mrf.mxu1 }
0x100f   :  { %v3785_v30 = vmul.f32 -1.442695, %v3080_v31  ;;  %v3087_v17 = vadd.f32 %v3078_v59, %v3033_v5 }
0x1010   :  { %v3035_v57 = vpop.f32.mrf.mxu1 }
0x1011   :  { %4521 = vpow2.f32 %v3785_v30  ;;  %v3786_v24 = vmul.f32 -1.442695, %v3087_v17 }
0x1013   :  { %4523 = vpow2.f32 %v3786_v24 }
0x101e   :  { %v4522_v0 = vpop.eup %4521 }
0x101f   :  { %v3084_v19 = vadd.f32 1.0, %v4522_v0 }
0x1020   :  { %v4524_v11 = vpop.eup %4523 }
0x1021   :  { %4525 = vrcp.f32 %v3084_v19  ;;  %v3091_v20 = vadd.f32 1.0, %v4524_v11 }
0x1023   :  { %4527 = vrcp.f32 %v3091_v20 }
0x102a   :  { %v3071_v9 = vpop.f32.mrf.mxu1 }
0x102b   :  { %v3072_v16 = vadd.f32 %v3071_v9, %v5485_v38 }
0x102c   :  { %v4108_v39 = vpop.f32.mrf.mxu1 }
0x102e   :  { %v4526_v58 = vpop.eup %4525  ;;  %v3074_v33 = vpop.f32.mrf.mxu1 }
0x102f   :  { %v3094_v49 = vmul.f32 %v4526_v58, %v3079_v12 }
0x1030   :  { %v4109_v25 = vpop.f32.mrf.mxu1  ;;  %v4528_v3 = vpop.eup %4527 }
0x1031   :  { %v3095_v48 = vadd.f32 %v3094_v49, %v3072_v16  ;;  %v3097_v63 = vsub.f32 1.0, %v4528_v3  ;;  %v3099_v6 = vmul.f32 %v4528_v3, %v6965_v50 }
0x1033   :  { %4529 = vtanh.f32 %v3095_v48 }
0x1040   :  { %v4530_v14 = vpop.eup %4529 }
0x1041   :  { %v3098_v60 = vmul.f32 %v4530_v14, %v3097_v63 }
0x1043   :  { %v3100_v46 = vadd.f32 %v3099_v6, %v3098_v60 }
0x1045   :  { %v3101_v38 = vsel %vm434_vm2, %v3100_v46, %v6764_v34  ;;  %v3506_v34 = vunpack.c.h.bf16 %v3103_v56 }
0x1046   :  { %v3398_v41 = vsel %vm3397_vm1, %v3101_v38, 0.0 }
0x1047   :  { %v3399_v47 = vadd.f32 %v3398_v41, %v3155_v52 }
0x1049   :  { %v3400_v32 = vpack.c.bf16 %v3399_v47, %v3399_v47 }
0x104b   :  { %4133 = vmatmul.mubr.bf16.vlgmr.msra.gmra.mxu0 %v3400_v32 }
0x1053   :  { %v3391_v53 = vpop.f32.mrf.mxu1 }
0x1055   :  { %v3393_v36 = vpop.f32.mrf.mxu1 }
0x1057   :  { %v3394_v50 = vpop.f32.mrf.mxu1 }
0x1059   :  { %v3395_v15 = vpop.f32.mrf.mxu1 }
0x110b   :  { %v3499_v7 = vpop.f32.mrf.mxu0 }
0x110c   :  { %v3500_v23 = vadd.f32 %v3499_v7, %v3391_v53 }
0x110d   :  { %v4134_v26 = vpop.f32.mrf.mxu0 }
0x110e   :  { %v3507_v61 = vadd.f32 %v3506_v34, %v3500_v23 }
0x110f   :  { %v3502_v2 = vpop.f32.mrf.mxu0 }
0x1110   :  { %v3508_v28 = vmax.f32 %v3507_v61, 0.0 }
0x1111   :  { %v4135_v44 = vpop.f32.mrf.mxu0 }
0x1112   :  { %v3509_v13 = vpack.c.bf16 %v3508_v28, %v3508_v28 }
0x1114   :  { %4153 = vmatmul.mubr.bf16.vlgmr.msra.gmra.mxu1 %v3509_v13 }
0x11d4   :  { %v3610_v37 = vpop.f32.mrf.mxu1 }
0x11d5   :  { %v3611_v22 = vadd.f32 %v3610_v37, %v3527_v21 }
0x11d6   :  { %v4154_v4 = vpop.f32.mrf.mxu1 }
0x11d7   :  { %3616 = vst [vmem:[%s7376_s6] sm:$0xff] %v3611_v22 }
0x11d8   :  { %v3613_v29 = vpop.f32.mrf.mxu1 }
0x11da   :  { %v4155_v8 = vpop.f32.mrf.mxu1 }
0x11db   :  { %3621 = vsyncpa [#allocation4], 1 }
0x11dc   :  { %3622 = vsyncpa [#allocation8], 1 }
0x11dd   :  { %3623 = vsyncpa [#allocation5], 1 }

</bundles_post_ra>
